<compile_context>
chip_gen: v7x
topology: tpu7x:2x2x1
jax: 0.10.0
libtpu: 0.0.40
codegen_flags: <defaults>
</compile_context>

<pallas_src>
import math

import numpy as np
import jax
import jax.numpy as jnp
from jax.experimental import pallas as pl
from jax.experimental.pallas import tpu as pltpu


# ---------------------------------------------------------------------------
# Fused Pallas kernel: 8 x (MXU dot + f32 bias + activation), VMEM-resident
# ---------------------------------------------------------------------------
def _fused_forward_kernel(x_ref, *refs):
    n_layers = (len(refs) - 1) // 2
    u_refs = refs[:n_layers]                     # unfolded operators, bf16
    b_refs = refs[n_layers:2 * n_layers]         # expanded biases, f32 (1, F)
    o_ref = refs[2 * n_layers]

    h = x_ref[...].astype(jnp.bfloat16)          # (M, F_in) bf16 MXU operand
    for l in range(n_layers):                    # static unroll over layers
        acc = jnp.dot(h, u_refs[l][...], preferred_element_type=jnp.float32)
        acc = acc + b_refs[l][...]               # (1, F_out) f32 broadcast
        if l < n_layers - 1:
            h = jnp.maximum(acc, 0.0).astype(jnp.bfloat16)    # ReLU, bf16 carry
        else:
            o_ref[...] = 1.0 / (1.0 + jnp.exp(-acc))          # exact sigmoid, f32


def belt_autoencoder_forward(x_nchw, packed):
    """x_nchw: (N, 3, H, W) f32 -> (N, 3, H, W) f32, matching the PyTorch module."""
    n = x_nchw.shape[0]
    x2d = x_nchw.reshape(n, -1)                  # NCHW-flatten: no copy
    us, bs = packed["U"], packed["b"]
    f_out = us[-1].shape[1]

    in_specs = [pl.BlockSpec(x2d.shape, lambda i: (0, 0))]
    in_specs += [pl.BlockSpec(u.shape, lambda i: (0, 0)) for u in us]
    in_specs += [pl.BlockSpec(b.shape, lambda i: (0, 0)) for b in bs]

    out = pl.pallas_call(
        _fused_forward_kernel,
        out_shape=jax.ShapeDtypeStruct((n, f_out), jnp.float32),
        grid_spec=pltpu.PrefetchScalarGridSpec(
            num_scalar_prefetch=0,
            grid=(1,),
            in_specs=in_specs,
            out_specs=pl.BlockSpec((n, f_out), lambda i: (0, 0)),
        ),
        compiler_params=pltpu.CompilerParams(
            dimension_semantics=("arbitrary",),
            vmem_limit_bytes=32 * 1024 * 1024,   # ~11.5 MiB needed; fits all gens
        ),
    )(x2d, *us, *bs)
    return out.reshape(x_nchw.shape)


# ---------------------------------------------------------------------------
# One-time packing: fold conv / deconv + im2col + pixel-shuffle into dense
# per-layer operators U (Cin*Hi*Wi, Cout*Ho*Wo) in NCHW-flattened order.
# ---------------------------------------------------------------------------
def _unfold_conv_s2(w, b, hi, wi):
    """Conv2d(kernel=3, stride=2, padding=1); w: (cout, cin, 3, 3)."""
    w = np.asarray(w, np.float32)
    b = np.asarray(b, np.float32)
    cout, cin, k, _ = w.shape
    ho = (hi + 2 - k) // 2 + 1
    wo = (wi + 2 - k) // 2 + 1
    u = np.zeros((cin, hi, wi, cout, ho, wo), np.float32)
    for ky in range(k):
        for kx in range(k):
            wt = w[:, :, ky, kx].T                       # (cin, cout)
            for yo in range(ho):
                yi = 2 * yo - 1 + ky
                if not 0 <= yi < hi:
                    continue
                for xo in range(wo):
                    xi = 2 * xo - 1 + kx
                    if not 0 <= xi < wi:
                        continue
                    u[:, yi, xi, :, yo, xo] += wt
    u = u.reshape(cin * hi * wi, cout * ho * wo)
    bexp = np.repeat(b, ho * wo).reshape(1, cout * ho * wo)
    return u, bexp, ho, wo


def _unfold_deconv_s2(w, b, hi, wi):
    """ConvTranspose2d(kernel=4, stride=2, padding=1); w: (cin, cout, 4, 4).
    out[2*yi+ky-1, 2*xi+kx-1] += x[yi, xi] * w[:, :, ky, kx]."""
    w = np.asarray(w, np.float32)
    b = np.asarray(b, np.float32)
    cin, cout, k, _ = w.shape
    ho, wo = 2 * hi, 2 * wi
    u = np.zeros((cin, hi, wi, cout, ho, wo), np.float32)
    for ky in range(k):
        for kx in range(k):
            wt = w[:, :, ky, kx]                         # (cin, cout)
            for yi in range(hi):
                yo = 2 * yi + ky - 1
                if not 0 <= yo < ho:
                    continue
                for xi in range(wi):
                    xo = 2 * xi + kx - 1
                    if not 0 <= xo < wo:
                        continue
                    u[:, yi, xi, :, yo, xo] += wt
    u = u.reshape(cin * hi * wi, cout * ho * wo)
    bexp = np.repeat(b, ho * wo).reshape(1, cout * ho * wo)
    return u, bexp, ho, wo


def pack_params(params, in_hw=16):
    us, bs = [], []
    h = w = in_hw
    for (wt, b) in params["enc"]:
        u, bexp, h, w = _unfold_conv_s2(wt, b, h, w)
        us.append(jnp.asarray(u, jnp.bfloat16))
        bs.append(jnp.asarray(bexp, jnp.float32))
    for (wt, b) in params["dec"]:
        u, bexp, h, w = _unfold_deconv_s2(wt, b, h, w)
        us.append(jnp.asarray(u, jnp.bfloat16))
        bs.append(jnp.asarray(bexp, jnp.float32))
    return {"U": us, "b": bs}


# ---------------------------------------------------------------------------
# Parameter init (PyTorch layout, deterministic)
# ---------------------------------------------------------------------------
def init_params(key):
    enc_shapes = [(16, 3, 3, 3), (32, 16, 3, 3), (64, 32, 3, 3), (128, 64, 3, 3)]
    dec_shapes = [(128, 64, 4, 4), (64, 32, 4, 4), (32, 16, 4, 4), (16, 3, 4, 4)]
    params = {"enc": [], "dec": []}
    keys = jax.random.split(key, 2 * (len(enc_shapes) + len(dec_shapes)))
    ki = 0
    for shp in enc_shapes:
        cout, cin, k, _ = shp
        bound = 1.0 / math.sqrt(cin * k * k)
        wt = jax.random.uniform(keys[ki], shp, jnp.float32, -bound, bound); ki += 1
        b = jax.random.uniform(keys[ki], (cout,), jnp.float32, -bound, bound); ki += 1
        params["enc"].append((wt, b))
    for shp in dec_shapes:
        cin, cout, k, _ = shp
        bound = 1.0 / math.sqrt(cin * k * k)
        wt = jax.random.uniform(keys[ki], shp, jnp.float32, -bound, bound); ki += 1
        b = jax.random.uniform(keys[ki], (cout,), jnp.float32, -bound, bound); ki += 1
        params["dec"].append((wt, b))
    return params


# ---------------------------------------------------------------------------
# Pure-XLA f32 reference (exact PyTorch Conv2d / ConvTranspose2d semantics)
# ---------------------------------------------------------------------------
def reference_forward(x, params):
    h = x
    for (w, b) in params["enc"]:
        h = jax.lax.conv_general_dilated(
            h, w, window_strides=(2, 2), padding=[(1, 1), (1, 1)],
            dimension_numbers=("NCHW", "OIHW", "NCHW"))
        h = jnp.maximum(h + b.reshape(1, -1, 1, 1), 0.0)
    ndec = len(params["dec"])
    for i, (w, b) in enumerate(params["dec"]):
        wc = jnp.flip(w, axis=(2, 3)).transpose(1, 0, 2, 3)    # (cout, cin, kh, kw)
        h = jax.lax.conv_general_dilated(
            h, wc, window_strides=(1, 1), padding=[(2, 2), (2, 2)],
            lhs_dilation=(2, 2),
            dimension_numbers=("NCHW", "OIHW", "NCHW"))
        h = h + b.reshape(1, -1, 1, 1)
        h = jax.nn.sigmoid(h) if i == ndec - 1 else jnp.maximum(h, 0.0)
    return h


if __name__ == "__main__":
    key = jax.random.PRNGKey(0)
    k_param, k_x = jax.random.split(key)
    params = init_params(k_param)            # PyTorch-layout weights (f32)
    packed = pack_params(params, in_hw=16)   # unfolded bf16 operators + f32 biases
    # batch=2, channels=3, spatial=16x16 (NCHW, matching the PyTorch module)
    x = jax.random.normal(k_x, (2, 3, 16, 16), jnp.float32)

    fwd = jax.jit(belt_autoencoder_forward)
    out = jax.block_until_ready(fwd(x, packed))

    assert out.shape == (2, 3, 16, 16), out.shape
    assert out.dtype == jnp.float32
    assert bool(jnp.all(jnp.isfinite(out)))
    assert bool(jnp.all((out >= 0.0) & (out <= 1.0)))   # exact sigmoid range

    # cross-check against the pure-XLA f32 reference (tolerance covers bf16
    # operands / bf16 intermediate activations)
    ref = jax.block_until_ready(reference_forward(x, params))
    max_err = float(jnp.max(jnp.abs(out - ref)))
    assert max_err < 1e-1, max_err

    print("KERNEL_OK")
</pallas_src>

<mosaic_0001>
module attributes {stable_mosaic.version = 11 : i64} {
  func.func @_fused_forward_kernel(%arg0: i32, %arg1: memref<2x768xf32, #tpu.memory_space<vmem>>, %arg2: memref<768x1024xbf16, #tpu.memory_space<vmem>>, %arg3: memref<1024x512xbf16, #tpu.memory_space<vmem>>, %arg4: memref<512x256xbf16, #tpu.memory_space<vmem>>, %arg5: memref<256x128xbf16, #tpu.memory_space<vmem>>, %arg6: memref<128x256xbf16, #tpu.memory_space<vmem>>, %arg7: memref<256x512xbf16, #tpu.memory_space<vmem>>, %arg8: memref<512x1024xbf16, #tpu.memory_space<vmem>>, %arg9: memref<1024x768xbf16, #tpu.memory_space<vmem>>, %arg10: memref<1x1024xf32, #tpu.memory_space<vmem>>, %arg11: memref<1x512xf32, #tpu.memory_space<vmem>>, %arg12: memref<1x256xf32, #tpu.memory_space<vmem>>, %arg13: memref<1x128xf32, #tpu.memory_space<vmem>>, %arg14: memref<1x256xf32, #tpu.memory_space<vmem>>, %arg15: memref<1x512xf32, #tpu.memory_space<vmem>>, %arg16: memref<1x1024xf32, #tpu.memory_space<vmem>>, %arg17: memref<1x768xf32, #tpu.memory_space<vmem>>, %arg18: memref<2x768xf32, #tpu.memory_space<vmem>>) attributes {dimension_semantics = [#tpu.dimension_semantics<arbitrary>], iteration_bounds = array<i64: 1>, scalar_prefetch = 0 : i64, scratch_operands = 0 : i64, tpu.core_type = #tpu.core_type<tc>, window_params = [{pipeline_mode = #tpu.pipeline_mode<synchronous>, transform_indices = @transform_0, window_bounds = array<i64: 2, 768>}, {pipeline_mode = #tpu.pipeline_mode<synchronous>, transform_indices = @transform_1, window_bounds = array<i64: 768, 1024>}, {pipeline_mode = #tpu.pipeline_mode<synchronous>, transform_indices = @transform_2, window_bounds = array<i64: 1024, 512>}, {pipeline_mode = #tpu.pipeline_mode<synchronous>, transform_indices = @transform_3, window_bounds = array<i64: 512, 256>}, {pipeline_mode = #tpu.pipeline_mode<synchronous>, transform_indices = @transform_4, window_bounds = array<i64: 256, 128>}, {pipeline_mode = #tpu.pipeline_mode<synchronous>, transform_indices = @transform_5, window_bounds = array<i64: 128, 256>}, {pipeline_mode = #tpu.pipeline_mode<synchronous>, transform_indices = @transform_6, window_bounds = array<i64: 256, 512>}, {pipeline_mode = #tpu.pipeline_mode<synchronous>, transform_indices = @transform_7, window_bounds = array<i64: 512, 1024>}, {pipeline_mode = #tpu.pipeline_mode<synchronous>, transform_indices = @transform_8, window_bounds = array<i64: 1024, 768>}, {pipeline_mode = #tpu.pipeline_mode<synchronous>, transform_indices = @transform_9, window_bounds = array<i64: 1, 1024>}, {pipeline_mode = #tpu.pipeline_mode<synchronous>, transform_indices = @transform_10, window_bounds = array<i64: 1, 512>}, {pipeline_mode = #tpu.pipeline_mode<synchronous>, transform_indices = @transform_11, window_bounds = array<i64: 1, 256>}, {pipeline_mode = #tpu.pipeline_mode<synchronous>, transform_indices = @transform_12, window_bounds = array<i64: 1, 128>}, {pipeline_mode = #tpu.pipeline_mode<synchronous>, transform_indices = @transform_13, window_bounds = array<i64: 1, 256>}, {pipeline_mode = #tpu.pipeline_mode<synchronous>, transform_indices = @transform_14, window_bounds = array<i64: 1, 512>}, {pipeline_mode = #tpu.pipeline_mode<synchronous>, transform_indices = @transform_15, window_bounds = array<i64: 1, 1024>}, {pipeline_mode = #tpu.pipeline_mode<synchronous>, transform_indices = @transform_16, window_bounds = array<i64: 1, 768>}, {pipeline_mode = #tpu.pipeline_mode<synchronous>, transform_indices = @transform_17, window_bounds = array<i64: 2, 768>}]} {
    %c0 = arith.constant 0 : index
    %c0_0 = arith.constant 0 : index
    %0 = vector.load %arg1[%c0, %c0_0] : memref<2x768xf32, #tpu.memory_space<vmem>>, vector<2x768xf32>
    %1 = arith.truncf %0 : vector<2x768xf32> to vector<2x768xbf16>
    %c0_1 = arith.constant 0 : index
    %c0_2 = arith.constant 0 : index
    %2 = vector.load %arg2[%c0_1, %c0_2] : memref<768x1024xbf16, #tpu.memory_space<vmem>>, vector<768x1024xbf16>
    %cst = arith.constant dense<0.000000e+00> : vector<2x1024xf32>
    %3 = tpu.matmul %1, %2, %cst {dimension_numbers = #tpu.dot_dimension_numbers<[1], [0], [0], [1], [0, 0, 1, 1], [], []>} : vector<2x768xbf16>, vector<768x1024xbf16>, vector<2x1024xf32> -> vector<2x1024xf32>
    %c0_3 = arith.constant 0 : index
    %c0_4 = arith.constant 0 : index
    %4 = vector.load %arg10[%c0_3, %c0_4] : memref<1x1024xf32, #tpu.memory_space<vmem>>, vector<1x1024xf32>
    %5 = vector.broadcast %4 : vector<1x1024xf32> to vector<2x1024xf32>
    %6 = arith.addf %3, %5 : vector<2x1024xf32>
    %cst_5 = arith.constant 0.000000e+00 : f32
    %7 = vector.broadcast %cst_5 : f32 to vector<2x1024xf32>
    %8 = arith.maximumf %6, %7 : vector<2x1024xf32>
    %9 = arith.truncf %8 : vector<2x1024xf32> to vector<2x1024xbf16>
    %c0_6 = arith.constant 0 : index
    %c0_7 = arith.constant 0 : index
    %10 = vector.load %arg3[%c0_6, %c0_7] : memref<1024x512xbf16, #tpu.memory_space<vmem>>, vector<1024x512xbf16>
    %cst_8 = arith.constant dense<0.000000e+00> : vector<2x512xf32>
    %11 = tpu.matmul %9, %10, %cst_8 {dimension_numbers = #tpu.dot_dimension_numbers<[1], [0], [0], [1], [0, 0, 1, 1], [], []>} : vector<2x1024xbf16>, vector<1024x512xbf16>, vector<2x512xf32> -> vector<2x512xf32>
    %c0_9 = arith.constant 0 : index
    %c0_10 = arith.constant 0 : index
    %12 = vector.load %arg11[%c0_9, %c0_10] : memref<1x512xf32, #tpu.memory_space<vmem>>, vector<1x512xf32>
    %13 = vector.broadcast %12 : vector<1x512xf32> to vector<2x512xf32>
    %14 = arith.addf %11, %13 : vector<2x512xf32>
    %cst_11 = arith.constant 0.000000e+00 : f32
    %15 = vector.broadcast %cst_11 : f32 to vector<2x512xf32>
    %16 = arith.maximumf %14, %15 : vector<2x512xf32>
    %17 = arith.truncf %16 : vector<2x512xf32> to vector<2x512xbf16>
    %c0_12 = arith.constant 0 : index
    %c0_13 = arith.constant 0 : index
    %18 = vector.load %arg4[%c0_12, %c0_13] : memref<512x256xbf16, #tpu.memory_space<vmem>>, vector<512x256xbf16>
    %cst_14 = arith.constant dense<0.000000e+00> : vector<2x256xf32>
    %19 = tpu.matmul %17, %18, %cst_14 {dimension_numbers = #tpu.dot_dimension_numbers<[1], [0], [0], [1], [0, 0, 1, 1], [], []>} : vector<2x512xbf16>, vector<512x256xbf16>, vector<2x256xf32> -> vector<2x256xf32>
    %c0_15 = arith.constant 0 : index
    %c0_16 = arith.constant 0 : index
    %20 = vector.load %arg12[%c0_15, %c0_16] : memref<1x256xf32, #tpu.memory_space<vmem>>, vector<1x256xf32>
    %21 = vector.broadcast %20 : vector<1x256xf32> to vector<2x256xf32>
    %22 = arith.addf %19, %21 : vector<2x256xf32>
    %cst_17 = arith.constant 0.000000e+00 : f32
    %23 = vector.broadcast %cst_17 : f32 to vector<2x256xf32>
    %24 = arith.maximumf %22, %23 : vector<2x256xf32>
    %25 = arith.truncf %24 : vector<2x256xf32> to vector<2x256xbf16>
    %c0_18 = arith.constant 0 : index
    %c0_19 = arith.constant 0 : index
    %26 = vector.load %arg5[%c0_18, %c0_19] : memref<256x128xbf16, #tpu.memory_space<vmem>>, vector<256x128xbf16>
    %cst_20 = arith.constant dense<0.000000e+00> : vector<2x128xf32>
    %27 = tpu.matmul %25, %26, %cst_20 {dimension_numbers = #tpu.dot_dimension_numbers<[1], [0], [0], [1], [0, 0, 1, 1], [], []>} : vector<2x256xbf16>, vector<256x128xbf16>, vector<2x128xf32> -> vector<2x128xf32>
    %c0_21 = arith.constant 0 : index
    %c0_22 = arith.constant 0 : index
    %28 = vector.load %arg13[%c0_21, %c0_22] : memref<1x128xf32, #tpu.memory_space<vmem>>, vector<1x128xf32>
    %29 = vector.broadcast %28 : vector<1x128xf32> to vector<2x128xf32>
    %30 = arith.addf %27, %29 : vector<2x128xf32>
    %cst_23 = arith.constant 0.000000e+00 : f32
    %31 = vector.broadcast %cst_23 : f32 to vector<2x128xf32>
    %32 = arith.maximumf %30, %31 : vector<2x128xf32>
    %33 = arith.truncf %32 : vector<2x128xf32> to vector<2x128xbf16>
    %c0_24 = arith.constant 0 : index
    %c0_25 = arith.constant 0 : index
    %34 = vector.load %arg6[%c0_24, %c0_25] : memref<128x256xbf16, #tpu.memory_space<vmem>>, vector<128x256xbf16>
    %cst_26 = arith.constant dense<0.000000e+00> : vector<2x256xf32>
    %35 = tpu.matmul %33, %34, %cst_26 {dimension_numbers = #tpu.dot_dimension_numbers<[1], [0], [0], [1], [0, 0, 1, 1], [], []>} : vector<2x128xbf16>, vector<128x256xbf16>, vector<2x256xf32> -> vector<2x256xf32>
    %c0_27 = arith.constant 0 : index
    %c0_28 = arith.constant 0 : index
    %36 = vector.load %arg14[%c0_27, %c0_28] : memref<1x256xf32, #tpu.memory_space<vmem>>, vector<1x256xf32>
    %37 = vector.broadcast %36 : vector<1x256xf32> to vector<2x256xf32>
    %38 = arith.addf %35, %37 : vector<2x256xf32>
    %cst_29 = arith.constant 0.000000e+00 : f32
    %39 = vector.broadcast %cst_29 : f32 to vector<2x256xf32>
    %40 = arith.maximumf %38, %39 : vector<2x256xf32>
    %41 = arith.truncf %40 : vector<2x256xf32> to vector<2x256xbf16>
    %c0_30 = arith.constant 0 : index
    %c0_31 = arith.constant 0 : index
    %42 = vector.load %arg7[%c0_30, %c0_31] : memref<256x512xbf16, #tpu.memory_space<vmem>>, vector<256x512xbf16>
    %cst_32 = arith.constant dense<0.000000e+00> : vector<2x512xf32>
    %43 = tpu.matmul %41, %42, %cst_32 {dimension_numbers = #tpu.dot_dimension_numbers<[1], [0], [0], [1], [0, 0, 1, 1], [], []>} : vector<2x256xbf16>, vector<256x512xbf16>, vector<2x512xf32> -> vector<2x512xf32>
    %c0_33 = arith.constant 0 : index
    %c0_34 = arith.constant 0 : index
    %44 = vector.load %arg15[%c0_33, %c0_34] : memref<1x512xf32, #tpu.memory_space<vmem>>, vector<1x512xf32>
    %45 = vector.broadcast %44 : vector<1x512xf32> to vector<2x512xf32>
    %46 = arith.addf %43, %45 : vector<2x512xf32>
    %cst_35 = arith.constant 0.000000e+00 : f32
    %47 = vector.broadcast %cst_35 : f32 to vector<2x512xf32>
    %48 = arith.maximumf %46, %47 : vector<2x512xf32>
    %49 = arith.truncf %48 : vector<2x512xf32> to vector<2x512xbf16>
    %c0_36 = arith.constant 0 : index
    %c0_37 = arith.constant 0 : index
    %50 = vector.load %arg8[%c0_36, %c0_37] : memref<512x1024xbf16, #tpu.memory_space<vmem>>, vector<512x1024xbf16>
    %cst_38 = arith.constant dense<0.000000e+00> : vector<2x1024xf32>
    %51 = tpu.matmul %49, %50, %cst_38 {dimension_numbers = #tpu.dot_dimension_numbers<[1], [0], [0], [1], [0, 0, 1, 1], [], []>} : vector<2x512xbf16>, vector<512x1024xbf16>, vector<2x1024xf32> -> vector<2x1024xf32>
    %c0_39 = arith.constant 0 : index
    %c0_40 = arith.constant 0 : index
    %52 = vector.load %arg16[%c0_39, %c0_40] : memref<1x1024xf32, #tpu.memory_space<vmem>>, vector<1x1024xf32>
    %53 = vector.broadcast %52 : vector<1x1024xf32> to vector<2x1024xf32>
    %54 = arith.addf %51, %53 : vector<2x1024xf32>
    %cst_41 = arith.constant 0.000000e+00 : f32
    %55 = vector.broadcast %cst_41 : f32 to vector<2x1024xf32>
    %56 = arith.maximumf %54, %55 : vector<2x1024xf32>
    %57 = arith.truncf %56 : vector<2x1024xf32> to vector<2x1024xbf16>
    %c0_42 = arith.constant 0 : index
    %c0_43 = arith.constant 0 : index
    %58 = vector.load %arg9[%c0_42, %c0_43] : memref<1024x768xbf16, #tpu.memory_space<vmem>>, vector<1024x768xbf16>
    %cst_44 = arith.constant dense<0.000000e+00> : vector<2x768xf32>
    %59 = tpu.matmul %57, %58, %cst_44 {dimension_numbers = #tpu.dot_dimension_numbers<[1], [0], [0], [1], [0, 0, 1, 1], [], []>} : vector<2x1024xbf16>, vector<1024x768xbf16>, vector<2x768xf32> -> vector<2x768xf32>
    %c0_45 = arith.constant 0 : index
    %c0_46 = arith.constant 0 : index
    %60 = vector.load %arg17[%c0_45, %c0_46] : memref<1x768xf32, #tpu.memory_space<vmem>>, vector<1x768xf32>
    %61 = vector.broadcast %60 : vector<1x768xf32> to vector<2x768xf32>
    %62 = arith.addf %59, %61 : vector<2x768xf32>
    %cst_47 = arith.constant 0.000000e+00 : f32
    %63 = vector.broadcast %cst_47 : f32 to vector<2x768xf32>
    %64 = arith.subf %63, %62 : vector<2x768xf32>
    %65 = math.exp %64 : vector<2x768xf32>
    %cst_48 = arith.constant 1.000000e+00 : f32
    %66 = vector.broadcast %cst_48 : f32 to vector<2x768xf32>
    %67 = arith.addf %66, %65 : vector<2x768xf32>
    %cst_49 = arith.constant 1.000000e+00 : f32
    %68 = vector.broadcast %cst_49 : f32 to vector<2x768xf32>
    %69 = arith.divf %68, %67 : vector<2x768xf32>
    %c0_50 = arith.constant 0 : index
    %c0_51 = arith.constant 0 : index
    %70 = vector.load %arg18[%c0_50, %c0_51] : memref<2x768xf32, #tpu.memory_space<vmem>>, vector<2x768xf32>
    tpu.vector_store %arg18[%c0_50, %c0_51], %69 {strides = array<i32>} : memref<2x768xf32, #tpu.memory_space<vmem>>, vector<2x768xf32>,
    return
  }
  func.func @transform_0(%arg0: i32) -> (i32, i32) {
    %c0_i32 = arith.constant 0 : i32
    %c0_i32_0 = arith.constant 0 : i32
    %c0_i32_1 = arith.constant 0 : i32
    return %c0_i32, %c0_i32_0 : i32, i32
  }
  func.func @transform_1(%arg0: i32) -> (i32, i32) {
    %c0_i32 = arith.constant 0 : i32
    %c0_i32_0 = arith.constant 0 : i32
    %c0_i32_1 = arith.constant 0 : i32
    return %c0_i32, %c0_i32_0 : i32, i32
  }
  func.func @transform_2(%arg0: i32) -> (i32, i32) {
    %c0_i32 = arith.constant 0 : i32
    %c0_i32_0 = arith.constant 0 : i32
    %c0_i32_1 = arith.constant 0 : i32
    return %c0_i32, %c0_i32_0 : i32, i32
  }
  func.func @transform_3(%arg0: i32) -> (i32, i32) {
    %c0_i32 = arith.constant 0 : i32
    %c0_i32_0 = arith.constant 0 : i32
    %c0_i32_1 = arith.constant 0 : i32
    return %c0_i32, %c0_i32_0 : i32, i32
  }
  func.func @transform_4(%arg0: i32) -> (i32, i32) {
    %c0_i32 = arith.constant 0 : i32
    %c0_i32_0 = arith.constant 0 : i32
    %c0_i32_1 = arith.constant 0 : i32
    return %c0_i32, %c0_i32_0 : i32, i32
  }
  func.func @transform_5(%arg0: i32) -> (i32, i32) {
    %c0_i32 = arith.constant 0 : i32
    %c0_i32_0 = arith.constant 0 : i32
    %c0_i32_1 = arith.constant 0 : i32
    return %c0_i32, %c0_i32_0 : i32, i32
  }
  func.func @transform_6(%arg0: i32) -> (i32, i32) {
    %c0_i32 = arith.constant 0 : i32
    %c0_i32_0 = arith.constant 0 : i32
    %c0_i32_1 = arith.constant 0 : i32
    return %c0_i32, %c0_i32_0 : i32, i32
  }
  func.func @transform_7(%arg0: i32) -> (i32, i32) {
    %c0_i32 = arith.constant 0 : i32
    %c0_i32_0 = arith.constant 0 : i32
    %c0_i32_1 = arith.constant 0 : i32
    return %c0_i32, %c0_i32_0 : i32, i32
  }
  func.func @transform_8(%arg0: i32) -> (i32, i32) {
    %c0_i32 = arith.constant 0 : i32
    %c0_i32_0 = arith.constant 0 : i32
    %c0_i32_1 = arith.constant 0 : i32
    return %c0_i32, %c0_i32_0 : i32, i32
  }
  func.func @transform_9(%arg0: i32) -> (i32, i32) {
    %c0_i32 = arith.constant 0 : i32
    %c0_i32_0 = arith.constant 0 : i32
    %c0_i32_1 = arith.constant 0 : i32
    return %c0_i32, %c0_i32_0 : i32, i32
  }
  func.func @transform_10(%arg0: i32) -> (i32, i32) {
    %c0_i32 = arith.constant 0 : i32
    %c0_i32_0 = arith.constant 0 : i32
    %c0_i32_1 = arith.constant 0 : i32
    return %c0_i32, %c0_i32_0 : i32, i32
  }
  func.func @transform_11(%arg0: i32) -> (i32, i32) {
    %c0_i32 = arith.constant 0 : i32
    %c0_i32_0 = arith.constant 0 : i32
    %c0_i32_1 = arith.constant 0 : i32
    return %c0_i32, %c0_i32_0 : i32, i32
  }
  func.func @transform_12(%arg0: i32) -> (i32, i32) {
    %c0_i32 = arith.constant 0 : i32
    %c0_i32_0 = arith.constant 0 : i32
    %c0_i32_1 = arith.constant 0 : i32
    return %c0_i32, %c0_i32_0 : i32, i32
  }
  func.func @transform_13(%arg0: i32) -> (i32, i32) {
    %c0_i32 = arith.constant 0 : i32
    %c0_i32_0 = arith.constant 0 : i32
    %c0_i32_1 = arith.constant 0 : i32
    return %c0_i32, %c0_i32_0 : i32, i32
  }
  func.func @transform_14(%arg0: i32) -> (i32, i32) {
    %c0_i32 = arith.constant 0 : i32
    %c0_i32_0 = arith.constant 0 : i32
    %c0_i32_1 = arith.constant 0 : i32
    return %c0_i32, %c0_i32_0 : i32, i32
  }
  func.func @transform_15(%arg0: i32) -> (i32, i32) {
    %c0_i32 = arith.constant 0 : i32
    %c0_i32_0 = arith.constant 0 : i32
    %c0_i32_1 = arith.constant 0 : i32
    return %c0_i32, %c0_i32_0 : i32, i32
  }
  func.func @transform_16(%arg0: i32) -> (i32, i32) {
    %c0_i32 = arith.constant 0 : i32
    %c0_i32_0 = arith.constant 0 : i32
    %c0_i32_1 = arith.constant 0 : i32
    return %c0_i32, %c0_i32_0 : i32, i32
  }
  func.func @transform_17(%arg0: i32) -> (i32, i32) {
    %c0_i32 = arith.constant 0 : i32
    %c0_i32_0 = arith.constant 0 : i32
    %c0_i32_1 = arith.constant 0 : i32
    return %c0_i32, %c0_i32_0 : i32, i32
  }
}

</mosaic_0001>

<bundles_post_ra>
// kernel: belt_autoencoder_forward.1
= control target key start
LH: loop header
LB: loop body
LE: loop exit
PB: predicated region body
PF: predicated region fallthrough
CT: control target
= control target key end

     0   :  { %s15023_s0 = inlined_call_operand.vmem [shape: f32[2,768], index: 0, kind: input, shape index: {}]   ;;  %s15024_s1 = inlined_call_operand.hbm [shape: bf16[768,1024], index: 1, kind: input, shape index: {}]   ;;  %s15025_s2 = inlined_call_operand.hbm [shape: bf16[1024,512], index: 2, kind: input, shape index: {}]   ;;  %s15026_s3 = inlined_call_operand.hbm [shape: bf16[512,256], index: 3, kind: input, shape index: {}]   ;;  %s15027_s4 = inlined_call_operand.hbm [shape: bf16[256,128], index: 4, kind: input, shape index: {}]   ;;  %s15028_s5 = inlined_call_operand.hbm [shape: bf16[128,256], index: 5, kind: input, shape index: {}]   ;;  %s15029_s6 = inlined_call_operand.hbm [shape: bf16[256,512], index: 6, kind: input, shape index: {}]   ;;  %s15030_s7 = inlined_call_operand.hbm [shape: bf16[512,1024], index: 7, kind: input, shape index: {}]   ;;  %s15031_s8 = inlined_call_operand.hbm [shape: bf16[1024,768], index: 8, kind: input, shape index: {}]   ;;  %s15032_s9 = inlined_call_operand.hbm [shape: f32[1,1024], index: 9, kind: input, shape index: {}]   ;;  %s15033_s10 = inlined_call_operand.hbm [shape: f32[1,512], index: 10, kind: input, shape index: {}]   ;;  %s15034_s11 = inlined_call_operand.hbm [shape: f32[1,256], index: 11, kind: input, shape index: {}]   ;;  %s15035_s12 = inlined_call_operand.hbm [shape: f32[1,128], index: 12, kind: input, shape index: {}]   ;;  %s15036_s13 = inlined_call_operand.hbm [shape: f32[1,256], index: 13, kind: input, shape index: {}]   ;;  %s15037_s14 = inlined_call_operand.hbm [shape: f32[1,512], index: 14, kind: input, shape index: {}]   ;;  %s15038_s15 = inlined_call_operand.hbm [shape: f32[1,1024], index: 15, kind: input, shape index: {}]   ;;  %s15039_s16 = inlined_call_operand.hbm [shape: f32[1,768], index: 16, kind: input, shape index: {}]   ;;  %s15040_s17 = inlined_call_operand.vmem [shape: f32[2,768], index: 17, kind: output, shape index: {}]  }
   0x1   :  { %15045 = sst [smem:[#allocation36_spill]] %s15023_s0 }
   0x2   :  { %15046 = sst [smem:[#allocation37_spill]] %s15024_s1 }
   0x3   :  { %22 = vsyncpa [#allocation3], 0 }
   0x4   :  { %23 = vsyncpa [#allocation5], 0 }
   0x5   :  { %24 = vsyncpa [#allocation8], 0 }
   0x6   :  { %25 = vsyncpa [#allocation11], 0 }
   0x7   :  { %26 = vsyncpa [#allocation14], 0 }
   0x8   :  { %27 = vsyncpa [#allocation17], 0 }
   0x9   :  { %28 = vsyncpa [#allocation20], 0 }
   0xa   :  { %29 = vsyncpa [#allocation23], 0 }
   0xb   :  { %30 = vsyncpa [#allocation26], 0  ;;  %s14408_s24 = smov [#allocation4]   ;;  %s14038_s28 = scalar_lea.hbm %s15025_s2, 32768 }
   0xc   :  { %s50_s25 = sshll.u32 %s14408_s24, 4  ;;  %p14039_p0 = scmp.ne.s32.totalorder %s15025_s2, %s14038_s28  ;;  %s51_s25 = int_to_ptr.vmem [resolvable:$true] %s50_s25 }
   0xd   :  { %p14042_p1 = scmp.lt.u32.totalorder %s14038_s28, %s15025_s2 }
   0xf   :  { %p14044_p2 = pnand %p14042_p1, %p14039_p0 }
  0x11   :  { %14047 = shalt.err (!%p14044_p2)
}
  0x12   :  { %s14048_s19 = scalar_lea.vmem %s51_s25, 32768  ;;  %p14053_p4 = scmp.lt.s32.totalorder %s51_s25, %s51_s25 }
  0x13   :  { %p14049_p3 = scmp.ne.s32.totalorder %s51_s25, %s14048_s19  ;;  %p14054_p5 = scmp.lt.s32.totalorder %s14048_s19, %s14048_s19 }
  0x15   :  { %p14055_p6 = por %p14054_p5, %p14053_p4 }
  0x17   :  { %p14056_p7 = pnand %p14055_p6, %p14049_p3 }
  0x19   :  { %14059 = shalt.err (!%p14056_p7)
}
  0x1a   :  { %s15043_s1 = smov 256   ;;  %s15044_s20 = smov 16  }
  0x1b   :  { %56 = dma.hbm_to_vmem [thread:$0]  %s15025_s2, 32768, %s51_s25, [#allocation5], %s15043_s1, %s15043_s1, %s15044_s20  }
  0x1c   :  { %s14411_s23 = smov [#allocation7]   ;;  %s14060_s28 = scalar_lea.hbm %s15027_s4, 2048 }
  0x1d   :  { %s74_s24 = sshll.u32 %s14411_s23, 4  ;;  %p14061_p8 = scmp.ne.s32.totalorder %s15027_s4, %s14060_s28  ;;  %s75_s24 = int_to_ptr.vmem [resolvable:$true] %s74_s24 }
  0x1e   :  { %p14064_p9 = scmp.lt.u32.totalorder %s14060_s28, %s15027_s4 }
  0x20   :  { %p14066_p10 = pnand %p14064_p9, %p14061_p8 }
  0x22   :  { %14069 = shalt.err (!%p14066_p10)
}
  0x23   :  { %s14070_s19 = scalar_lea.vmem %s75_s24, 2048  ;;  %p14075_p12 = scmp.lt.s32.totalorder %s75_s24, %s75_s24 }
  0x24   :  { %p14071_p11 = scmp.ne.s32.totalorder %s75_s24, %s14070_s19  ;;  %p14076_p13 = scmp.lt.s32.totalorder %s14070_s19, %s14070_s19 }
  0x26   :  { %p14077_p0 = por %p14076_p13, %p14075_p12 }
  0x28   :  { %p14078_p1 = pnand %p14077_p0, %p14071_p11 }
  0x2a   :  { %14081 = shalt.err (!%p14078_p1)
}
  0x2b   :  { %s14412_s2 = smov 64   ;;  %s14413_s25 = smov 4  }
  0x2c   :  { %80 = dma.hbm_to_vmem [thread:$0]  %s15027_s4, 2048, %s75_s24, [#allocation8], %s14412_s2, %s14412_s2, %s14413_s25  }
  0x2d   :  { %s14414_s23 = smov [#allocation10]   ;;  %s14415_s27 = smov [#allocation13]  }
  0x2e   :  { %s98_s26 = sshll.u32 %s14414_s23, 4  ;;  %s122_s29 = sshll.u32 %s14415_s27, 4  ;;  %s99_s26 = int_to_ptr.vmem [resolvable:$true] %s98_s26  ;;  %s14553_s29 = int_to_ptr.vmem [resolvable:$true] %s122_s29 }
  0x2f   :  { %s14082_s30 = scalar_lea.hbm %s15029_s6, 8192 }
  0x30   :  { %p14083_p2 = scmp.ne.s32.totalorder %s15029_s6, %s14082_s30  ;;  %p14086_p3 = scmp.lt.u32.totalorder %s14082_s30, %s15029_s6 }
  0x32   :  { %p14088_p4 = pnand %p14086_p3, %p14083_p2 }
  0x34   :  { %14091 = shalt.err (!%p14088_p4)
}
  0x35   :  { %s14092_s4 = scalar_lea.vmem %s99_s26, 8192  ;;  %p14097_p6 = scmp.lt.s32.totalorder %s99_s26, %s99_s26 }
  0x36   :  { %p14093_p5 = scmp.ne.s32.totalorder %s99_s26, %s14092_s4  ;;  %p14098_p7 = scmp.lt.s32.totalorder %s14092_s4, %s14092_s4 }
  0x38   :  { %p14099_p8 = por %p14098_p7, %p14097_p6 }
  0x3a   :  { %p14100_p9 = pnand %p14099_p8, %p14093_p5 }
  0x3c   :  { %14103 = shalt.err (!%p14100_p9)
}
  0x3d   :  { %s15047_s24 = smov 16   ;;  %s15048_s2 = smov 256  }
  0x3e   :  { %104 = dma.hbm_to_vmem [thread:$0]  %s15029_s6, 8192, %s99_s26, [#allocation11], %s15048_s2, %s15048_s2, %s15047_s24  }
  0x3f   :  { %s14104_s1 = scalar_lea.hbm %s15031_s8, 49152 }
  0x40   :  { %p14105_p10 = scmp.ne.s32.totalorder %s15031_s8, %s14104_s1  ;;  %p14108_p11 = scmp.lt.u32.totalorder %s14104_s1, %s15031_s8 }
  0x42   :  { %p14110_p12 = pnand %p14108_p11, %p14105_p10 }
  0x44   :  { %14113 = shalt.err (!%p14110_p12)
}
  0x45   :  { %s14114_s30 = scalar_lea.vmem %s14553_s29, 49152  ;;  %p14119_p0 = scmp.lt.s32.totalorder %s14553_s29, %s14553_s29 }
  0x46   :  { %p14115_p13 = scmp.ne.s32.totalorder %s14553_s29, %s14114_s30  ;;  %p14120_p1 = scmp.lt.s32.totalorder %s14114_s30, %s14114_s30 }
  0x48   :  { %p14121_p2 = por %p14120_p1, %p14119_p0 }
  0x4a   :  { %p14122_p3 = pnand %p14121_p2, %p14115_p13 }
  0x4c   :  { %14125 = shalt.err (!%p14122_p3)
}
  0x4d   :  { %s14416_s6 = smov 384   ;;  %s14417_s26 = smov 24  }
  0x4e   :  { %128 = dma.hbm_to_vmem [thread:$0]  %s15031_s8, 49152, %s14553_s29, [#allocation14], %s14416_s6, %s14416_s6, %s14417_s26  }
  0x4f   :  { %s14418_s4 = smov [#allocation16]   ;;  %s14419_s2 = smov [#allocation19]  }
  0x50   :  { %s145_s24 = sshll.u32 %s14418_s4, 4  ;;  %s165_s25 = sshll.u32 %s14419_s2, 4  ;;  %s146_s24 = int_to_ptr.vmem [resolvable:$true] %s145_s24  ;;  %s166_s25 = int_to_ptr.vmem [resolvable:$true] %s165_s25 }
  0x51   :  { %s14126_s23 = scalar_lea.hbm %s15033_s10, 64 }
  0x52   :  { %p14127_p4 = scmp.ne.s32.totalorder %s15033_s10, %s14126_s23  ;;  %p14130_p5 = scmp.lt.u32.totalorder %s14126_s23, %s15033_s10 }
  0x54   :  { %p14132_p6 = pnand %p14130_p5, %p14127_p4 }
  0x56   :  { %14135 = shalt.err (!%p14132_p6)
}
  0x57   :  { %s14136_s8 = scalar_lea.vmem %s146_s24, 64  ;;  %p14141_p8 = scmp.lt.s32.totalorder %s146_s24, %s146_s24 }
  0x58   :  { %p14137_p7 = scmp.ne.s32.totalorder %s146_s24, %s14136_s8  ;;  %p14142_p9 = scmp.lt.s32.totalorder %s14136_s8, %s14136_s8 }
  0x5a   :  { %p14143_p10 = por %p14142_p9, %p14141_p8 }
  0x5c   :  { %p14144_p11 = pnand %p14143_p10, %p14137_p7 }
  0x5e   :  { %14147 = shalt.err (!%p14144_p11)
}
  0x5f   :  { %148 = dma.hbm_to_vmem [thread:$0]  %s15033_s10, 64, %s146_s24, [#allocation17]  }
  0x60   :  { %s14148_s26 = scalar_lea.hbm %s15035_s12, 16 }
  0x61   :  { %p14149_p12 = scmp.ne.s32.totalorder %s15035_s12, %s14148_s26  ;;  %p14152_p13 = scmp.lt.u32.totalorder %s14148_s26, %s15035_s12 }
  0x63   :  { %p14154_p0 = pnand %p14152_p13, %p14149_p12 }
  0x65   :  { %14157 = shalt.err (!%p14154_p0)
}
  0x66   :  { %s14158_s21 = scalar_lea.vmem %s166_s25, 16  ;;  %s14162_s22 = scalar_lea.vmem %s166_s25, 32 }
  0x67   :  { %p14159_p1 = scmp.ne.s32.totalorder %s166_s25, %s14158_s21  ;;  %p14163_p2 = scmp.lt.s32.totalorder %s166_s25, %s166_s25 }
  0x68   :  { %p14164_p3 = scmp.lt.s32.totalorder %s14162_s22, %s14158_s21 }
  0x6a   :  { %p14165_p4 = por %p14164_p3, %p14163_p2 }
  0x6c   :  { %p14166_p5 = pnand %p14165_p4, %p14159_p1 }
  0x6e   :  { %14169 = shalt.err (!%p14166_p5)
}
  0x6f   :  { %168 = dma.hbm_to_vmem [thread:$0]  %s15035_s12, 16, %s166_s25, [#allocation20]  }
  0x70   :  { %s14420_s23 = smov [#allocation22]   ;;  %s14421_s20 = smov [#allocation2]  }
  0x71   :  { %s185_s1 = sshll.u32 %s14420_s23, 4  ;;  %s38_s27 = sshll.u32 %s14421_s20, 4  ;;  %s186_s1 = int_to_ptr.vmem [resolvable:$true] %s185_s1  ;;  %s14611_s27 = int_to_ptr.vmem [resolvable:$true] %s38_s27 }
  0x72   :  { %s14170_s29 = scalar_lea.hbm %s15037_s14, 64 }
  0x73   :  { %p14171_p6 = scmp.ne.s32.totalorder %s15037_s14, %s14170_s29  ;;  %p14174_p7 = scmp.lt.u32.totalorder %s14170_s29, %s15037_s14 }
  0x75   :  { %p14176_p8 = pnand %p14174_p7, %p14171_p6 }
  0x77   :  { %14179 = shalt.err (!%p14176_p8)
}
  0x78   :  { %s14180_s12 = scalar_lea.vmem %s186_s1, 64  ;;  %p14185_p10 = scmp.lt.s32.totalorder %s186_s1, %s186_s1 }
  0x79   :  { %p14181_p9 = scmp.ne.s32.totalorder %s186_s1, %s14180_s12  ;;  %p14186_p11 = scmp.lt.s32.totalorder %s14180_s12, %s14180_s12 }
  0x7b   :  { %p14187_p12 = por %p14186_p11, %p14185_p10 }
  0x7d   :  { %p14188_p13 = pnand %p14187_p12, %p14181_p9 }
  0x7f   :  { %14191 = shalt.err (!%p14188_p13)
}
  0x80   :  { %188 = dma.hbm_to_vmem [thread:$0]  %s15037_s14, 64, %s186_s1, [#allocation23]  }
  0x81   :  { %s15049_s2 = sld [smem:[#allocation37_spill]] }
  0x87   :  { %s14192_s21 = scalar_lea.hbm %s15049_s2, 49152 }
  0x88   :  { %p14193_p0 = scmp.ne.s32.totalorder %s15049_s2, %s14192_s21  ;;  %p14196_p1 = scmp.lt.u32.totalorder %s14192_s21, %s15049_s2 }
  0x8a   :  { %p14198_p2 = pnand %p14196_p1, %p14193_p0 }
  0x8c   :  { %14201 = shalt.err (!%p14198_p2)
}
  0x8d   :  { %s14202_s20 = scalar_lea.vmem %s14611_s27, 49152  ;;  %p14207_p4 = scmp.lt.s32.totalorder %s14611_s27, %s14611_s27 }
  0x8e   :  { %p14203_p3 = scmp.ne.s32.totalorder %s14611_s27, %s14202_s20  ;;  %p14208_p5 = scmp.lt.s32.totalorder %s14202_s20, %s14202_s20 }
  0x90   :  { %p14209_p6 = por %p14208_p5, %p14207_p4 }
  0x92   :  { %p14210_p7 = pnand %p14209_p6, %p14203_p3 }
  0x94   :  { %14213 = shalt.err (!%p14210_p7)
}
  0x95   :  { %s14422_s14 = smov 512   ;;  %s14423_s1 = smov 32  }
  0x96   :  { %44 = dma.hbm_to_vmem [thread:$0]  %s15049_s2, 49152, %s14611_s27, [#allocation3], %s14422_s14, %s14422_s14, %s14423_s1  }
  0x97   :  { %s14424_s29 = smov [#allocation6]   ;;  %s14214_s26 = scalar_lea.hbm %s15026_s3, 8192 }
  0x98   :  { %s62_s0 = sshll.u32 %s14424_s29, 4  ;;  %p14215_p8 = scmp.ne.s32.totalorder %s15026_s3, %s14214_s26  ;;  %s63_s0 = int_to_ptr.vmem [resolvable:$true] %s62_s0 }
  0x99   :  { %p14218_p9 = scmp.lt.u32.totalorder %s14214_s26, %s15026_s3 }
  0x9b   :  { %p14220_p10 = pnand %p14218_p9, %p14215_p8 }
  0x9d   :  { %14223 = shalt.err (!%p14220_p10)
}
  0x9e   :  { %s14224_s4 = scalar_lea.vmem %s63_s0, 8192  ;;  %p14229_p12 = scmp.lt.s32.totalorder %s63_s0, %s63_s0 }
  0x9f   :  { %p14225_p11 = scmp.ne.s32.totalorder %s63_s0, %s14224_s4  ;;  %p14230_p13 = scmp.lt.s32.totalorder %s14224_s4, %s14224_s4 }
  0xa1   :  { %p14231_p0 = por %p14230_p13, %p14229_p12 }
  0xa3   :  { %p14232_p1 = pnand %p14231_p0, %p14225_p11 }
  0xa5   :  { %14235 = shalt.err (!%p14232_p1)
}
  0xa6   :  { %s14425_s27 = smov 128   ;;  %s14426_s2 = smov 8  }
  0xa7   :  { %68 = dma.hbm_to_vmem [thread:$0]  %s15026_s3, 8192, %s63_s0, [#allocation5], %s14425_s27, %s14425_s27, %s14426_s2  }
  0xa8   :  { %s14427_s10 = smov [#allocation9]   ;;  %s14428_s23 = smov [#allocation12]  }
  0xa9   :  { %s86_s24 = sshll.u32 %s14427_s10, 4  ;;  %s110_s20 = sshll.u32 %s14428_s23, 4  ;;  %s87_s24 = int_to_ptr.vmem [resolvable:$true] %s86_s24  ;;  %s111_s20 = int_to_ptr.vmem [resolvable:$true] %s110_s20 }
  0xaa   :  { %s14236_s29 = scalar_lea.hbm %s15028_s5, 2048 }
  0xab   :  { %p14237_p2 = scmp.ne.s32.totalorder %s15028_s5, %s14236_s29  ;;  %p14240_p3 = scmp.lt.u32.totalorder %s14236_s29, %s15028_s5 }
  0xad   :  { %p14242_p4 = pnand %p14240_p3, %p14237_p2 }
  0xaf   :  { %14245 = shalt.err (!%p14242_p4)
}
  0xb0   :  { %s14246_s3 = scalar_lea.vmem %s87_s24, 2048  ;;  %p14251_p6 = scmp.lt.s32.totalorder %s87_s24, %s87_s24 }
  0xb1   :  { %p14247_p5 = scmp.ne.s32.totalorder %s87_s24, %s14246_s3  ;;  %p14252_p7 = scmp.lt.s32.totalorder %s14246_s3, %s14246_s3 }
  0xb3   :  { %p14253_p8 = por %p14252_p7, %p14251_p6 }
  0xb5   :  { %p14254_p9 = pnand %p14253_p8, %p14247_p5 }
  0xb7   :  { %14257 = shalt.err (!%p14254_p9)
}
  0xb8   :  { %92 = dma.hbm_to_vmem [thread:$0]  %s15028_s5, 2048, %s87_s24, [#allocation8], %s14425_s27, %s14425_s27, %s14426_s2  }
  0xb9   :  { %s14258_s4 = scalar_lea.hbm %s15030_s7, 32768 }
  0xba   :  { %p14259_p10 = scmp.ne.s32.totalorder %s15030_s7, %s14258_s4  ;;  %p14262_p11 = scmp.lt.u32.totalorder %s14258_s4, %s15030_s7 }
  0xbc   :  { %p14264_p12 = pnand %p14262_p11, %p14259_p10 }
  0xbe   :  { %14267 = shalt.err (!%p14264_p12)
}
  0xbf   :  { %s14268_s28 = scalar_lea.vmem %s111_s20, 32768  ;;  %p14273_p0 = scmp.lt.s32.totalorder %s111_s20, %s111_s20 }
  0xc0   :  { %p14269_p13 = scmp.ne.s32.totalorder %s111_s20, %s14268_s28  ;;  %p14274_p1 = scmp.lt.s32.totalorder %s14268_s28, %s14268_s28 }
  0xc2   :  { %p14275_p2 = por %p14274_p1, %p14273_p0 }
  0xc4   :  { %p14276_p3 = pnand %p14275_p2, %p14269_p13 }
  0xc6   :  { %14279 = shalt.err (!%p14276_p3)
}
  0xc7   :  { %116 = dma.hbm_to_vmem [thread:$0]  %s15030_s7, 32768, %s111_s20, [#allocation11], %s14422_s14, %s14422_s14, %s14423_s1  }
  0xc8   :  { %s14429_s2 = smov [#allocation15]   ;;  %s14430_s8 = smov [#allocation18]  }
  0xc9   :  { %s135_s24 = sshll.u32 %s14429_s2, 4  ;;  %s155_s29 = sshll.u32 %s14430_s8, 4  ;;  %s136_s24 = int_to_ptr.vmem [resolvable:$true] %s135_s24  ;;  %s156_s29 = int_to_ptr.vmem [resolvable:$true] %s155_s29 }
  0xca   :  { %s14280_s26 = scalar_lea.hbm %s15032_s9, 128 }
  0xcb   :  { %p14281_p4 = scmp.ne.s32.totalorder %s15032_s9, %s14280_s26  ;;  %p14284_p5 = scmp.lt.u32.totalorder %s14280_s26, %s15032_s9 }
  0xcd   :  { %p14286_p6 = pnand %p14284_p5, %p14281_p4 }
  0xcf   :  { %14289 = shalt.err (!%p14286_p6)
}
  0xd0   :  { %s14290_s7 = scalar_lea.vmem %s136_s24, 128  ;;  %p14295_p8 = scmp.lt.s32.totalorder %s136_s24, %s136_s24 }
  0xd1   :  { %p14291_p7 = scmp.ne.s32.totalorder %s136_s24, %s14290_s7  ;;  %p14296_p9 = scmp.lt.s32.totalorder %s14290_s7, %s14290_s7 }
  0xd3   :  { %p14297_p10 = por %p14296_p9, %p14295_p8 }
  0xd5   :  { %p14298_p11 = pnand %p14297_p10, %p14291_p7 }
  0xd7   :  { %14301 = shalt.err (!%p14298_p11)
}
  0xd8   :  { %138 = dma.hbm_to_vmem [thread:$0]  %s15032_s9, 128, %s136_s24, [#allocation14]  }
  0xd9   :  { %s14302_s19 = scalar_lea.hbm %s15034_s11, 32 }
  0xda   :  { %p14303_p12 = scmp.ne.s32.totalorder %s15034_s11, %s14302_s19  ;;  %p14306_p13 = scmp.lt.u32.totalorder %s14302_s19, %s15034_s11 }
  0xdc   :  { %p14308_p0 = pnand %p14306_p13, %p14303_p12 }
  0xde   :  { %14311 = shalt.err (!%p14308_p0)
}
  0xdf   :  { %s14312_s23 = scalar_lea.vmem %s156_s29, 32  ;;  %p14317_p2 = scmp.lt.s32.totalorder %s156_s29, %s156_s29 }
  0xe0   :  { %p14313_p1 = scmp.ne.s32.totalorder %s156_s29, %s14312_s23  ;;  %p14318_p3 = scmp.lt.s32.totalorder %s14312_s23, %s14312_s23 }
  0xe2   :  { %p14319_p4 = por %p14318_p3, %p14317_p2 }
  0xe4   :  { %p14320_p5 = pnand %p14319_p4, %p14313_p1 }
  0xe6   :  { %14323 = shalt.err (!%p14320_p5)
}
  0xe7   :  { %158 = dma.hbm_to_vmem [thread:$0]  %s15034_s11, 32, %s156_s29, [#allocation17]  }
  0xe8   :  { %s14431_s5 = smov [#allocation21]   ;;  %s14432_s2 = smov [#allocation24]  }
  0xe9   :  { %s175_s27 = sshll.u32 %s14431_s5, 4  ;;  %s195_s24 = sshll.u32 %s14432_s2, 4  ;;  %s176_s27 = int_to_ptr.vmem [resolvable:$true] %s175_s27  ;;  %s196_s24 = int_to_ptr.vmem [resolvable:$true] %s195_s24 }
  0xea   :  { %s14324_s6 = scalar_lea.hbm %s15036_s13, 32 }
  0xeb   :  { %p14325_p6 = scmp.ne.s32.totalorder %s15036_s13, %s14324_s6  ;;  %p14328_p7 = scmp.lt.u32.totalorder %s14324_s6, %s15036_s13 }
  0xed   :  { %p14330_p8 = pnand %p14328_p7, %p14325_p6 }
  0xef   :  { %14333 = shalt.err (!%p14330_p8)
}
  0xf0   :  { %s14334_s11 = scalar_lea.vmem %s176_s27, 32  ;;  %p14339_p10 = scmp.lt.s32.totalorder %s176_s27, %s176_s27 }
  0xf1   :  { %p14335_p9 = scmp.ne.s32.totalorder %s176_s27, %s14334_s11  ;;  %p14340_p11 = scmp.lt.s32.totalorder %s14334_s11, %s14334_s11 }
  0xf3   :  { %p14341_p12 = por %p14340_p11, %p14339_p10 }
  0xf5   :  { %p14342_p13 = pnand %p14341_p12, %p14335_p9 }
  0xf7   :  { %14345 = shalt.err (!%p14342_p13)
}
  0xf8   :  { %178 = dma.hbm_to_vmem [thread:$0]  %s15036_s13, 32, %s176_s27, [#allocation20]  }
  0xf9   :  { %s14346_s1 = scalar_lea.hbm %s15038_s15, 128 }
  0xfa   :  { %p14347_p0 = scmp.ne.s32.totalorder %s15038_s15, %s14346_s1  ;;  %p14350_p1 = scmp.lt.u32.totalorder %s14346_s1, %s15038_s15 }
  0xfc   :  { %p14352_p2 = pnand %p14350_p1, %p14347_p0 }
  0xfe   :  { %14355 = shalt.err (!%p14352_p2)
}
  0xff   :  { %s14356_s21 = scalar_lea.vmem %s196_s24, 128  ;;  %p14361_p4 = scmp.lt.s32.totalorder %s196_s24, %s196_s24 }
 0x100   :  { %p14357_p3 = scmp.ne.s32.totalorder %s196_s24, %s14356_s21  ;;  %p14362_p5 = scmp.lt.s32.totalorder %s14356_s21, %s14356_s21 }
 0x102   :  { %p14363_p6 = por %p14362_p5, %p14361_p4 }
 0x104   :  { %p14364_p7 = pnand %p14363_p6, %p14357_p3 }
 0x106   :  { %14367 = shalt.err (!%p14364_p7)
}
 0x107   :  { %198 = dma.hbm_to_vmem [thread:$0]  %s15038_s15, 128, %s196_s24, [#allocation23]  }
 0x108   :  { %s14433_s10 = smov [#allocation25]   ;;  %s14368_s5 = scalar_lea.hbm %s15039_s16, 96 }
 0x109   :  { %s205_s23 = sshll.u32 %s14433_s10, 4  ;;  %p14369_p8 = scmp.ne.s32.totalorder %s15039_s16, %s14368_s5  ;;  %s206_s23 = int_to_ptr.vmem [resolvable:$true] %s205_s23 }
 0x10a   :  { %p14372_p9 = scmp.lt.u32.totalorder %s14368_s5, %s15039_s16 }
 0x10c   :  { %p14374_p10 = pnand %p14372_p9, %p14369_p8 }
 0x10e   :  { %14377 = shalt.err (!%p14374_p10)
}
 0x10f   :  { %s14378_s6 = scalar_lea.vmem %s206_s23, 96  ;;  %p14383_p12 = scmp.lt.s32.totalorder %s206_s23, %s206_s23 }
 0x110   :  { %p14379_p11 = scmp.ne.s32.totalorder %s206_s23, %s14378_s6  ;;  %p14384_p13 = scmp.lt.s32.totalorder %s14378_s6, %s14378_s6 }
 0x112   :  { %p14385_p0 = por %p14384_p13, %p14383_p12 }
 0x114   :  { %p14386_p1 = pnand %p14385_p0, %p14379_p11 }
 0x116   :  { %14389 = shalt.err (!%p14386_p1)
}
 0x117   :  { %208 = dma.hbm_to_vmem [thread:$0]  %s15039_s16, 96, %s206_s23, [#allocation26]  }
 0x118   :  { %14390 = dma.done.wait [#allocation3], 49152  }
 0x119   :  { %14391 = vsyncadd [#allocation3], 4294918144 }
 0x11a   :  { %14392 = dma.done.wait [#allocation5], 40960  }
 0x11b   :  { %14393 = vsyncadd [#allocation5], 4294926336 }
 0x11c   :  { %14394 = dma.done.wait [#allocation8], 4096  }
 0x11d   :  { %14395 = vsyncadd [#allocation8], 4294963200 }
 0x11e   :  { %14396 = dma.done.wait [#allocation11], 40960  }
 0x11f   :  { %14397 = vsyncadd [#allocation11], 4294926336 }
 0x120   :  { %14398 = dma.done.wait [#allocation14], 49280  }
 0x121   :  { %14399 = vsyncadd [#allocation14], 4294918016 }
 0x122   :  { %14400 = dma.done.wait [#allocation17], 96  }
 0x123   :  { %14401 = vsyncadd [#allocation17], 4294967200 }
 0x124   :  { %14402 = dma.done.wait [#allocation20], 48  }
 0x125   :  { %14403 = vsyncadd [#allocation20], 4294967248 }
 0x126   :  { %14404 = dma.done.wait [#allocation23], 192  }
 0x127   :  { %14405 = vsyncadd [#allocation23], 4294967104 }
 0x128   :  { %14406 = dma.done.wait [#allocation26], 96  }
 0x129   :  { %14407 = vsyncadd [#allocation26], 4294967200  ;;  %v299_v0 = vld [vmem:[#allocation2] sm:$0xff]  ;;  %v428_v11 = vld [vmem:[#allocation2 + $0x408] sm:$0xff]  ;;  %v14434_v13 = vmov 1983009808   ;;  %v266_v15 = vlaneseq }
 0x12a   :  { %v303_v1 = vld [vmem:[#allocation2 + $0x20] sm:$0xff]  ;;  %v432_v12 = vld [vmem:[#allocation2 + $0x428] sm:$0xff]  ;;  %v264_v14 = vunpack.c.l.s4 %v14434_v13  ;;  %s15050_s12 = sld [smem:[#allocation36_spill]] }
 0x12b   :  { %v307_v2 = vld [vmem:[#allocation2 + $0x40] sm:$0xff]  ;;  %v11191_v3 = vcombine.high %v299_v0, %v303_v1  ;;  %v11190_v4 = vcombine.low %v299_v0, %v303_v1  ;;  %v11321_v18 = vcombine.high %v428_v11, %v432_v12  ;;  %v11320_v19 = vcombine.low %v428_v11, %v432_v12  ;;  %v436_v20 = vld [vmem:[#allocation2 + $0x448] sm:$0xff] }
 0x12c   :  { %v311_v5 = vld [vmem:[#allocation2 + $0x60] sm:$0xff]  ;;  %v440_v21 = vld [vmem:[#allocation2 + $0x468] sm:$0xff]  ;;  %v265_v28 = vunpack.c.0.s8 %v264_v14  ;;  %v14744_v29 = vshrl.u32 %v266_v15, 7 }
 0x12d   :  { %v11199_v6 = vcombine.high %v307_v2, %v311_v5  ;;  %v315_v7 = vld [vmem:[#allocation2 + $0x80] sm:$0xff]  ;;  %2645 = vmatprep.subr.bf16.mxu0 %v11191_v3  ;;  %v11198_v9 = vcombine.low %v307_v2, %v311_v5  ;;  %2809 = vmatprep.subr.bf16.mxu1 %v11321_v18  ;;  %v11329_v23 = vcombine.high %v436_v20, %v440_v21  ;;  %v444_v24 = vld [vmem:[#allocation2 + $0x488] sm:$0xff] }
 0x12e   :  { %v319_v8 = vld [vmem:[#allocation2 + $0xa0] sm:$0xff]  ;;  %2646 = vmatpush1.bf16.msra.mxu0 %v11190_v4  ;;  %v448_v25 = vld [vmem:[#allocation2 + $0x4a8] sm:$0xff]  ;;  %2810 = vmatpush1.bf16.msra.mxu1 %v11320_v19  ;;  %v11328_v27 = vcombine.low %v436_v20, %v440_v21  ;;  %v14747_v38 = vsub.s32 %v265_v28, %v14744_v29 }
 0x12f   :  { %2647 = vmatprep.subr.bf16.mxu0 %v11199_v6  ;;  %v11207_v10 = vcombine.high %v315_v7, %v319_v8  ;;  %v323_v16 = vld [vmem:[#allocation2 + $0xc0] sm:$0xff]  ;;  %v11206_v22 = vcombine.low %v315_v7, %v319_v8  ;;  %2811 = vmatprep.subr.bf16.mxu1 %v11329_v23  ;;  %v11337_v32 = vcombine.high %v444_v24, %v448_v25  ;;  %v452_v33 = vld [vmem:[#allocation2 + $0x4c8] sm:$0xff] }
 0x130   :  { %v327_v17 = vld [vmem:[#allocation2 + $0xe0] sm:$0xff]  ;;  %v456_v34 = vld [vmem:[#allocation2 + $0x4e8] sm:$0xff]  ;;  %v11336_v37 = vcombine.low %v444_v24, %v448_v25 }
 0x131   :  { %v11215_v26 = vcombine.high %v323_v16, %v327_v17  ;;  %v331_v30 = vld [vmem:[#allocation2 + $0x100] sm:$0xff]  ;;  %v11214_v35 = vcombine.low %v323_v16, %v327_v17  ;;  %v11345_v41 = vcombine.high %v452_v33, %v456_v34  ;;  %v460_v42 = vld [vmem:[#allocation2 + $0x508] sm:$0xff]  ;;  %v11344_v47 = vcombine.low %v452_v33, %v456_v34 }
 0x132   :  { %2648 = vmatpush1.bf16.msra.mxu0 %v11198_v9  ;;  %v335_v31 = vld [vmem:[#allocation2 + $0x120] sm:$0xff]  ;;  %2812 = vmatpush1.bf16.msra.mxu1 %v11328_v27  ;;  %v464_v43 = vld [vmem:[#allocation2 + $0x528] sm:$0xff] }
 0x133   :  { %2649 = vmatprep.subr.bf16.mxu0 %v11207_v10  ;;  %v11223_v36 = vcombine.high %v331_v30, %v335_v31  ;;  %v339_v39 = vld [vmem:[#allocation2 + $0x140] sm:$0xff]  ;;  %2813 = vmatprep.subr.bf16.mxu1 %v11337_v32  ;;  %v11222_v44 = vcombine.low %v331_v30, %v335_v31  ;;  %v11353_v51 = vcombine.high %v460_v42, %v464_v43  ;;  %v468_v52 = vld [vmem:[#allocation2 + $0x548] sm:$0xff] }
 0x134   :  { %v343_v40 = vld [vmem:[#allocation2 + $0x160] sm:$0xff]  ;;  %v472_v53 = vld [vmem:[#allocation2 + $0x568] sm:$0xff]  ;;  %v11352_v58 = vcombine.low %v460_v42, %v464_v43 }
 0x135   :  { %v258_v45 = vld [vmem:[%s15050_s12] sm:$0xff]  ;;  %v11231_v46 = vcombine.high %v339_v39, %v343_v40  ;;  %v11230_v55 = vcombine.low %v339_v39, %v343_v40  ;;  %v11361_v62 = vcombine.high %v468_v52, %v472_v53  ;;  %v476_v63 = vld [vmem:[#allocation2 + $0x588] sm:$0xff]  ;;  %v11360_v4 = vcombine.low %v468_v52, %v472_v53 }
 0x136   :  { %2650 = vmatpush1.bf16.msra.mxu0 %v11206_v22  ;;  %2814 = vmatpush1.bf16.msra.mxu1 %v11336_v37  ;;  %v14753_v48 = vrot.slane %v258_v45, %v14747_v38  ;;  %v347_v49 = vld [vmem:[#allocation2 + $0x180] sm:$0xff]  ;;  %v262_v56 = vcombine.high %v258_v45, %v258_v45  ;;  %v480_v0 = vld [vmem:[#allocation2 + $0x5a8] sm:$0xff] }
 0x137   :  { %2651 = vmatprep.subr.bf16.mxu0 %v11215_v26  ;;  %v351_v50 = vld [vmem:[#allocation2 + $0x1a0] sm:$0xff]  ;;  %2815 = vmatprep.subr.bf16.mxu1 %v11345_v41  ;;  %v11369_v7 = vcombine.high %v476_v63, %v480_v0  ;;  %v484_v9 = vld [vmem:[#allocation2 + $0x5c8] sm:$0xff]  ;;  %v11368_v14 = vcombine.low %v476_v63, %v480_v0 }
 0x138   :  { %v277_v54 = vcombine.high %v14753_v48, %v14753_v48  ;;  %v11239_v57 = vcombine.high %v347_v49, %v351_v50  ;;  %v355_v60 = vld [vmem:[#allocation2 + $0x1c0] sm:$0xff]  ;;  %v11238_v1 = vcombine.low %v347_v49, %v351_v50  ;;  %v14761_v2 = vrot.slane %v262_v56, %v14747_v38  ;;  %v488_v10 = vld [vmem:[#allocation2 + $0x5e8] sm:$0xff] }
 0x139   :  { %v359_v61 = vld [vmem:[#allocation2 + $0x1e0] sm:$0xff]  ;;  %v11377_v17 = vcombine.high %v484_v9, %v488_v10  ;;  %v492_v18 = vld [vmem:[#allocation2 + $0x608] sm:$0xff]  ;;  %v11376_v22 = vcombine.low %v484_v9, %v488_v10 }
 0x13a   :  { %2652 = vmatpush1.bf16.msra.mxu0 %v11214_v35  ;;  %2816 = vmatpush1.bf16.msra.mxu1 %v11344_v47  ;;  %v14757_v59 = vpack.c.bf16 %v277_v54, %v277_v54  ;;  %v11247_v3 = vcombine.high %v355_v60, %v359_v61  ;;  %v363_v5 = vld [vmem:[#allocation2 + $0x200] sm:$0xff]  ;;  %v278_v8 = vcombine.high %v14761_v2, %v14761_v2  ;;  %v496_v19 = vld [vmem:[#allocation2 + $0x628] sm:$0xff] }
 0x13b   :  { %2653 = vmatprep.subr.bf16.mxu0 %v11223_v36  ;;  %2817 = vmatprep.subr.bf16.mxu1 %v11353_v51  ;;  %v367_v6 = vld [vmem:[#allocation2 + $0x220] sm:$0xff]  ;;  %v11246_v11 = vcombine.low %v355_v60, %v359_v61  ;;  %v11385_v25 = vcombine.high %v492_v18, %v496_v19  ;;  %v500_v26 = vld [vmem:[#allocation2 + $0x648] sm:$0xff]  ;;  %v11384_v31 = vcombine.low %v492_v18, %v496_v19 }
 0x13c   :  { %2677 = vmatprep.mubr.bf16.mxu0 %v14757_v59  ;;  %v14765_v12 = vpack.c.bf16 %v278_v8, %v278_v8  ;;  %v11255_v13 = vcombine.high %v363_v5, %v367_v6  ;;  %v371_v15 = vld [vmem:[#allocation2 + $0x240] sm:$0xff]  ;;  %v11254_v20 = vcombine.low %v363_v5, %v367_v6  ;;  %v504_v27 = vld [vmem:[#allocation2 + $0x668] sm:$0xff] }
 0x13d   :  { %v375_v16 = vld [vmem:[#allocation2 + $0x260] sm:$0xff]  ;;  %v11393_v34 = vcombine.high %v500_v26, %v504_v27  ;;  %v508_v35 = vld [vmem:[#allocation2 + $0x688] sm:$0xff]  ;;  %v11392_v40 = vcombine.low %v500_v26, %v504_v27  ;;  %v14775_v27 = vpack.c.bf16 %v14753_v48, %v14753_v48 }
 0x13e   :  { %2654 = vmatpush1.bf16.msra.mxu0 %v11222_v44  ;;  %2818 = vmatpush1.bf16.msra.mxu1 %v11352_v58  ;;  %v11263_v21 = vcombine.high %v371_v15, %v375_v16  ;;  %v379_v23 = vld [vmem:[#allocation2 + $0x280] sm:$0xff]  ;;  %v11262_v28 = vcombine.low %v371_v15, %v375_v16  ;;  %v512_v36 = vld [vmem:[#allocation2 + $0x6a8] sm:$0xff] }
 0x13f   :  { %2655 = vmatprep.subr.bf16.mxu0 %v11231_v46  ;;  %2819 = vmatprep.subr.bf16.mxu1 %v11361_v62  ;;  %v383_v24 = vld [vmem:[#allocation2 + $0x2a0] sm:$0xff]  ;;  %v11401_v43 = vcombine.high %v508_v35, %v512_v36  ;;  %v516_v44 = vld [vmem:[#allocation2 + $0x6c8] sm:$0xff]  ;;  %v11400_v49 = vcombine.low %v508_v35, %v512_v36 }
 0x140   :  { %2841 = vmatprep.mubr.bf16.mxu1 %v14765_v12  ;;  %v11271_v30 = vcombine.high %v379_v23, %v383_v24  ;;  %v387_v32 = vld [vmem:[#allocation2 + $0x2c0] sm:$0xff]  ;;  %v11270_v37 = vcombine.low %v379_v23, %v383_v24  ;;  %v520_v45 = vld [vmem:[#allocation2 + $0x6e8] sm:$0xff] }
 0x141   :  { %v391_v33 = vld [vmem:[#allocation2 + $0x2e0] sm:$0xff]  ;;  %v11409_v52 = vcombine.high %v516_v44, %v520_v45  ;;  %v524_v53 = vld [vmem:[#allocation2 + $0x708] sm:$0xff] }
 0x142   :  { %2656 = vmatpush1.bf16.msra.mxu0 %v11230_v55  ;;  %2820 = vmatpush1.bf16.msra.mxu1 %v11360_v4  ;;  %v11279_v39 = vcombine.high %v387_v32, %v391_v33  ;;  %v395_v41 = vld [vmem:[#allocation2 + $0x300] sm:$0xff]  ;;  %v11278_v46 = vcombine.low %v387_v32, %v391_v33  ;;  %v528_v54 = vld [vmem:[#allocation2 + $0x728] sm:$0xff] }
 0x143   :  { %2657 = vmatprep.subr.bf16.mxu0 %v11239_v57  ;;  %2821 = vmatprep.subr.bf16.mxu1 %v11369_v7  ;;  %v399_v42 = vld [vmem:[#allocation2 + $0x320] sm:$0xff]  ;;  %v11408_v57 = vcombine.low %v516_v44, %v520_v45  ;;  %v11417_v61 = vcombine.high %v524_v53, %v528_v54  ;;  %v532_v62 = vld [vmem:[#allocation2 + $0x748] sm:$0xff] }
 0x144   :  { %v11287_v47 = vcombine.high %v395_v41, %v399_v42  ;;  %v403_v50 = vld [vmem:[#allocation2 + $0x340] sm:$0xff]  ;;  %v11286_v55 = vcombine.low %v395_v41, %v399_v42  ;;  %v536_v63 = vld [vmem:[#allocation2 + $0x768] sm:$0xff]  ;;  %v14782_v41 = vpack.c.bf16 %v14761_v2, %v14761_v2 }
 0x145   :  { %v407_v51 = vld [vmem:[#allocation2 + $0x360] sm:$0xff]  ;;  %v11425_v6 = vcombine.high %v532_v62, %v536_v63  ;;  %v540_v7 = vld [vmem:[#allocation2 + $0x788] sm:$0xff] }
 0x146   :  { %2658 = vmatpush1.bf16.msra.mxu0 %v11238_v1  ;;  %2822 = vmatpush1.bf16.msra.mxu1 %v11368_v14  ;;  %v11295_v56 = vcombine.high %v403_v50, %v407_v51  ;;  %v411_v58 = vld [vmem:[#allocation2 + $0x380] sm:$0xff]  ;;  %v11294_v0 = vcombine.low %v403_v50, %v407_v51  ;;  %v544_v8 = vld [vmem:[#allocation2 + $0x7a8] sm:$0xff]  ;;  %v11424_v14 = vcombine.low %v532_v62, %v536_v63 }
 0x147   :  { %2659 = vmatprep.subr.bf16.mxu0 %v11247_v3  ;;  %2823 = vmatprep.subr.bf16.mxu1 %v11377_v17  ;;  %v415_v60 = vld [vmem:[#allocation2 + $0x3a0] sm:$0xff]  ;;  %v11416_v3 = vcombine.low %v524_v53, %v528_v54  ;;  %v11433_v15 = vcombine.high %v540_v7, %v544_v8  ;;  %v548_v16 = vld [vmem:[#allocation2 + $0x7c8] sm:$0xff] }
 0x148   :  { %v11303_v1 = vcombine.high %v411_v58, %v415_v60  ;;  %v419_v4 = vld [vmem:[#allocation2 + $0x3c0] sm:$0xff]  ;;  %v11302_v9 = vcombine.low %v411_v58, %v415_v60  ;;  %v552_v17 = vld [vmem:[#allocation2 + $0x7e8] sm:$0xff] }
 0x149   :  { %v423_v5 = vld [vmem:[#allocation2 + $0x3e0] sm:$0xff]  ;;  %v556_v23 = vld [vmem:[#allocation2 + $0x808] sm:$0xff]  ;;  %v11441_v26 = vcombine.high %v548_v16, %v552_v17  ;;  %v11440_v33 = vcombine.low %v548_v16, %v552_v17 }
 0x14a   :  { %2660 = vmatpush1.bf16.msra.mxu0 %v11246_v11  ;;  %2824 = vmatpush1.bf16.msra.mxu1 %v11376_v22  ;;  %v11311_v10 = vcombine.high %v419_v4, %v423_v5  ;;  %v427_v11 = vld [vmem:[#allocation2 + $0x400] sm:$0xff]  ;;  %v11310_v18 = vcombine.low %v419_v4, %v423_v5  ;;  %v11432_v22 = vcombine.low %v540_v7, %v544_v8  ;;  %v560_v24 = vld [vmem:[#allocation2 + $0x828] sm:$0xff] }
 0x14b   :  { %2661 = vmatprep.subr.bf16.mxu0 %v11255_v13  ;;  %2825 = vmatprep.subr.bf16.mxu1 %v11385_v25  ;;  %v431_v13 = vld [vmem:[#allocation2 + $0x420] sm:$0xff]  ;;  %v14771_v25 = vld.sshfl [vmem:[%s15050_s12 + $0x8] sm:$0x33 pattern:$0x76325410]  ;;  %v11449_v36 = vcombine.high %v556_v23, %v560_v24 }
 0x14c   :  { %v435_v19 = vld [vmem:[#allocation2 + $0x440] sm:$0xff]  ;;  %v568_v35 = vld [vmem:[#allocation2 + $0x868] sm:$0xff] }
 0x14d   :  { %v572_v44 = vld [vmem:[#allocation2 + $0x888] sm:$0xff]  ;;  %v459_v50 = vld [vmem:[#allocation2 + $0x500] sm:$0xff] }
 0x14e   :  { %2662 = vmatpush1.bf16.msra.mxu0 %v11254_v20  ;;  %2826 = vmatpush1.bf16.msra.mxu1 %v11384_v31  ;;  %v439_v20 = vld [vmem:[#allocation2 + $0x460] sm:$0xff]  ;;  %v576_v45 = vld [vmem:[#allocation2 + $0x8a8] sm:$0xff] }
 0x14f   :  { %2663 = vmatprep.subr.bf16.mxu0 %v11263_v21  ;;  %2827 = vmatprep.subr.bf16.mxu1 %v11393_v34  ;;  %v11319_v21 = vcombine.high %v427_v11, %v431_v13  ;;  %v447_v31 = vld [vmem:[#allocation2 + $0x4a0] sm:$0xff]  ;;  %v11327_v32 = vcombine.high %v435_v19, %v439_v20  ;;  %v564_v34 = vld [vmem:[#allocation2 + $0x848] sm:$0xff]  ;;  %v11326_v48 = vcombine.low %v435_v19, %v439_v20 }
 0x150   :  { %v463_v51 = vld [vmem:[#allocation2 + $0x520] sm:$0xff]  ;;  %v580_v53 = vld [vmem:[#allocation2 + $0x8c8] sm:$0xff] }
 0x151   :  { %v584_v54 = vld [vmem:[#allocation2 + $0x8e8] sm:$0xff]  ;;  %v471_v58 = vld [vmem:[#allocation2 + $0x560] sm:$0xff]  ;;  %v11351_v60 = vcombine.high %v459_v50, %v463_v51 }
 0x152   :  { %2664 = vmatpush1.bf16.msra.mxu0 %v11262_v28  ;;  %2828 = vmatpush1.bf16.msra.mxu1 %v11392_v40  ;;  %v11318_v28 = vcombine.low %v427_v11, %v431_v13  ;;  %v455_v40 = vld [vmem:[#allocation2 + $0x4e0] sm:$0xff]  ;;  %v588_v62 = vld [vmem:[#allocation2 + $0x908] sm:$0xff] }
 0x153   :  { %2665 = vmatprep.subr.bf16.mxu0 %v11271_v30  ;;  %2829 = vmatprep.subr.bf16.mxu1 %v11401_v43  ;;  %v443_v30 = vld [vmem:[#allocation2 + $0x480] sm:$0xff]  ;;  %v11448_v43 = vcombine.low %v556_v23, %v560_v24  ;;  %v592_v63 = vld [vmem:[#allocation2 + $0x928] sm:$0xff] }
 0x154   :  { %v11335_v42 = vcombine.high %v443_v30, %v447_v31  ;;  %v479_v4 = vld [vmem:[#allocation2 + $0x5a0] sm:$0xff]  ;;  %v596_v7 = vld [vmem:[#allocation2 + $0x948] sm:$0xff] }
 0x155   :  { %v600_v8 = vld [vmem:[#allocation2 + $0x968] sm:$0xff]  ;;  %v483_v11 = vld [vmem:[#allocation2 + $0x5c0] sm:$0xff] }
 0x156   :  { %2666 = vmatpush1.bf16.msra.mxu0 %v11270_v37  ;;  %2830 = vmatpush1.bf16.msra.mxu1 %v11400_v49  ;;  %v286_v37 = vcombine.high %v14771_v25, %v14771_v25  ;;  %v11334_v49 = vcombine.low %v443_v30, %v447_v31  ;;  %v487_v13 = vld [vmem:[#allocation2 + $0x5e0] sm:$0xff]  ;;  %v604_v16 = vld [vmem:[#allocation2 + $0x988] sm:$0xff]  ;;  %v11488_v23 = vcombine.low %v596_v7, %v600_v8 }
 0x157   :  { %2667 = vmatprep.subr.bf16.mxu0 %v11279_v39  ;;  %2831 = vmatprep.subr.bf16.mxu1 %v11409_v52  ;;  %v451_v39 = vld [vmem:[#allocation2 + $0x4c0] sm:$0xff]  ;;  %v11456_v52 = vcombine.low %v564_v34, %v568_v35  ;;  %v608_v17 = vld [vmem:[#allocation2 + $0x9a8] sm:$0xff]  ;;  %v11374_v30 = vcombine.low %v483_v11, %v487_v13 }
 0x158   :  { %v11343_v2 = vcombine.high %v451_v39, %v455_v40  ;;  %v491_v20 = vld [vmem:[#allocation2 + $0x600] sm:$0xff]  ;;  %v612_v24 = vld [vmem:[#allocation2 + $0x9c8] sm:$0xff] }
 0x159   :  { %v499_v31 = vld [vmem:[#allocation2 + $0x640] sm:$0xff] }
 0x15a   :  { %2668 = vmatpush1.bf16.msra.mxu0 %v11278_v46  ;;  %2832 = vmatpush1.bf16.msra.mxu1 %v11408_v57  ;;  %v11457_v46 = vcombine.high %v564_v34, %v568_v35  ;;  %v467_v57 = vld [vmem:[#allocation2 + $0x540] sm:$0xff]  ;;  %v11496_v34 = vcombine.low %v604_v16, %v608_v17  ;;  %v620_v35 = vld [vmem:[#allocation2 + $0xa08] sm:$0xff] }
 0x15b   :  { %2669 = vmatprep.subr.bf16.mxu0 %v11287_v47  ;;  %2833 = vmatprep.subr.bf16.mxu1 %v11417_v61  ;;  %v14785_v47 = vpack.c.bf16 %v286_v37, %v286_v37  ;;  %v11464_v61 = vcombine.low %v572_v44, %v576_v45  ;;  %v11359_v5 = vcombine.high %v467_v57, %v471_v58 }
 0x15e   :  { %2670 = vmatpush1.bf16.msra.mxu0 %v11286_v55  ;;  %2834 = vmatpush1.bf16.msra.mxu1 %v11416_v3  ;;  %v11465_v55 = vcombine.high %v572_v44, %v576_v45  ;;  %v475_v3 = vld [vmem:[#allocation2 + $0x580] sm:$0xff]  ;;  %v628_v44 = vld [vmem:[#allocation2 + $0xa48] sm:$0xff] }
 0x15f   :  { %2671 = vmatprep.subr.bf16.mxu0 %v11295_v56  ;;  %2835 = vmatprep.subr.bf16.mxu1 %v11425_v6  ;;  %v11342_v56 = vcombine.low %v451_v39, %v455_v40  ;;  %v11472_v6 = vcombine.low %v580_v53, %v584_v54  ;;  %v11366_v19 = vcombine.low %v475_v3, %v479_v4  ;;  %v507_v39 = vld [vmem:[#allocation2 + $0x680] sm:$0xff]  ;;  %v632_v45 = vld [vmem:[#allocation2 + $0xa68] sm:$0xff] }
 0x160   :  { %v511_v40 = vld [vmem:[#allocation2 + $0x6a0] sm:$0xff] }
 0x162   :  { %2672 = vmatpush1.bf16.msra.mxu0 %v11294_v0  ;;  %2836 = vmatpush1.bf16.msra.mxu1 %v11424_v14  ;;  %v11473_v0 = vcombine.high %v580_v53, %v584_v54  ;;  %v11367_v14 = vcombine.high %v475_v3, %v479_v4  ;;  %v636_v53 = vld [vmem:[#allocation2 + $0xa88] sm:$0xff]  ;;  %v531_v3 = vld [vmem:[#allocation2 + $0x740] sm:$0xff] }
 0x163   :  { %2673 = vmatprep.subr.bf16.mxu0 %v11303_v1  ;;  %2837 = vmatprep.subr.bf16.mxu1 %v11433_v15  ;;  %v11350_v1 = vcombine.low %v459_v50, %v463_v51  ;;  %v11480_v15 = vcombine.low %v588_v62, %v592_v63  ;;  %v515_v50 = vld [vmem:[#allocation2 + $0x6c0] sm:$0xff]  ;;  %v640_v54 = vld [vmem:[#allocation2 + $0xaa8] sm:$0xff] }
 0x164   :  { %v519_v51 = vld [vmem:[#allocation2 + $0x6e0] sm:$0xff] }
 0x165   :  { %v535_v4 = vld [vmem:[#allocation2 + $0x760] sm:$0xff] }
 0x166   :  { %2674 = vmatpush1.bf16.msra.mxu0 %v11302_v9  ;;  %2838 = vmatpush1.bf16.msra.mxu1 %v11432_v22  ;;  %v11481_v9 = vcombine.high %v588_v62, %v592_v63  ;;  %v11375_v22 = vcombine.high %v483_v11, %v487_v13  ;;  %v644_v62 = vld [vmem:[#allocation2 + $0xac8] sm:$0xff]  ;;  %v539_v11 = vld [vmem:[#allocation2 + $0x780] sm:$0xff] }
 0x167   :  { %2675 = vmatprep.subr.bf16.mxu0 %v11311_v10  ;;  %2839 = vmatprep.subr.bf16.mxu1 %v11441_v26  ;;  %v11358_v10 = vcombine.low %v467_v57, %v471_v58  ;;  %v616_v26 = vld [vmem:[#allocation2 + $0x9e8] sm:$0xff]  ;;  %v523_v57 = vld [vmem:[#allocation2 + $0x700] sm:$0xff] }
 0x168   :  { %v11505_v37 = vcombine.high %v612_v24, %v616_v26  ;;  %v527_v58 = vld [vmem:[#allocation2 + $0x720] sm:$0xff]  ;;  %v648_v63 = vld [vmem:[#allocation2 + $0xae8] sm:$0xff] }
 0x169   :  { %v543_v13 = vld [vmem:[#allocation2 + $0x7a0] sm:$0xff] }
 0x16a   :  { %2676 = vmatpush1.bf16.msra.mxu0 %v11310_v18  ;;  %2840 = vmatpush1.bf16.msra.mxu1 %v11440_v33  ;;  %v11489_v18 = vcombine.high %v596_v7, %v600_v8  ;;  %v652_v7 = vld [vmem:[#allocation2 + $0xb08] sm:$0xff] }
 0x16b   :  { %2686 = vmatprep.subr.bf16.mxu0 %v11319_v21  ;;  %2850 = vmatprep.subr.bf16.mxu1 %v11449_v36  ;;  %v495_v21 = vld [vmem:[#allocation2 + $0x620] sm:$0xff]  ;;  %v624_v36 = vld [vmem:[#allocation2 + $0xa28] sm:$0xff] }
 0x16c   :  { %v11383_v33 = vcombine.high %v491_v20, %v495_v21  ;;  %v656_v8 = vld [vmem:[#allocation2 + $0xb28] sm:$0xff] }
 0x16d   :  { %2678 = vmatmul.mubr.bf16.vlgmr.msra.gmra.mrb[0].mxu0 %v14775_v27  ;;  %2842 = vmatmul.mubr.bf16.vlgmr.msra.gmra.mrb[0].mxu1 %v14782_v41 }
 0x16e   :  { %2687 = vmatpush1.bf16.msra.mxu0 %v11318_v28  ;;  %2718 = vmatprep.mubr.bf16.mxu0 %v14765_v12  ;;  %v11497_v28 = vcombine.high %v604_v16, %v608_v17  ;;  %v660_v16 = vld [vmem:[#allocation2 + $0xb48] sm:$0xff] }
 0x16f   :  { %2688 = vmatprep.subr.bf16.mxu0 %v11327_v32  ;;  %2851 = vmatpush1.bf16.msra.mxu1 %v11448_v43  ;;  %v503_v32 = vld [vmem:[#allocation2 + $0x660] sm:$0xff]  ;;  %v11504_v43 = vcombine.low %v612_v24, %v616_v26  ;;  %v664_v17 = vld [vmem:[#allocation2 + $0xb68] sm:$0xff] }
 0x170   :  { %2852 = vmatprep.subr.bf16.mxu1 %v11457_v46  ;;  %2882 = vmatprep.mubr.bf16.mxu1 %v14785_v47  ;;  %v11513_v46 = vcombine.high %v620_v35, %v624_v36  ;;  %v668_v24 = vld [vmem:[#allocation2 + $0xb88] sm:$0xff] }
 0x171   :  { %v672_v26 = vld [vmem:[#allocation2 + $0xba8] sm:$0xff] }
 0x172   :  { %2689 = vmatpush1.bf16.msra.mxu0 %v11326_v48  ;;  %v11382_v48 = vcombine.low %v491_v20, %v495_v21  ;;  %v547_v20 = vld [vmem:[#allocation2 + $0x7c0] sm:$0xff] }
 0x173   :  { %2690 = vmatprep.subr.bf16.mxu0 %v11335_v42  ;;  %2853 = vmatpush1.bf16.msra.mxu1 %v11456_v52  ;;  %v11391_v42 = vcombine.high %v499_v31, %v503_v32  ;;  %v11512_v52 = vcombine.low %v620_v35, %v624_v36  ;;  %v551_v21 = vld [vmem:[#allocation2 + $0x7e0] sm:$0xff]  ;;  %v676_v35 = vld [vmem:[#allocation2 + $0xbc8] sm:$0xff] }
 0x174   :  { %2854 = vmatprep.subr.bf16.mxu1 %v11465_v55  ;;  %v11521_v55 = vcombine.high %v628_v44, %v632_v45  ;;  %v680_v36 = vld [vmem:[#allocation2 + $0xbe8] sm:$0xff] }
 0x176   :  { %2691 = vmatpush1.bf16.msra.mxu0 %v11334_v49  ;;  %v11390_v49 = vcombine.low %v499_v31, %v503_v32  ;;  %v555_v31 = vld [vmem:[#allocation2 + $0x800] sm:$0xff] }
 0x177   :  { %2692 = vmatprep.subr.bf16.mxu0 %v11343_v2  ;;  %2855 = vmatpush1.bf16.msra.mxu1 %v11464_v61  ;;  %v11399_v2 = vcombine.high %v507_v39, %v511_v40  ;;  %v11520_v61 = vcombine.low %v628_v44, %v632_v45  ;;  %v559_v32 = vld [vmem:[#allocation2 + $0x820] sm:$0xff]  ;;  %v302_v44 = vld [vmem:[#allocation2 + $0x18] sm:$0xff] }
 0x178   :  { %2856 = vmatprep.subr.bf16.mxu1 %v11473_v0  ;;  %v11529_v0 = vcombine.high %v636_v53, %v640_v54  ;;  %v306_v45 = vld [vmem:[#allocation2 + $0x38] sm:$0xff] }
 0x17a   :  { %2693 = vmatpush1.bf16.msra.mxu0 %v11342_v56  ;;  %v11398_v56 = vcombine.low %v507_v39, %v511_v40  ;;  %v563_v39 = vld [vmem:[#allocation2 + $0x840] sm:$0xff] }
 0x17b   :  { %2694 = vmatprep.subr.bf16.mxu0 %v11351_v60  ;;  %2857 = vmatpush1.bf16.msra.mxu1 %v11472_v6  ;;  %v11407_v60 = vcombine.high %v515_v50, %v519_v51  ;;  %v11528_v6 = vcombine.low %v636_v53, %v640_v54  ;;  %v567_v40 = vld [vmem:[#allocation2 + $0x860] sm:$0xff]  ;;  %v310_v53 = vld [vmem:[#allocation2 + $0x58] sm:$0xff] }
 0x17c   :  { %2858 = vmatprep.subr.bf16.mxu1 %v11481_v9  ;;  %v11537_v9 = vcombine.high %v644_v62, %v648_v63  ;;  %v314_v54 = vld [vmem:[#allocation2 + $0x78] sm:$0xff] }
 0x17e   :  { %2695 = vmatpush1.bf16.msra.mxu0 %v11350_v1  ;;  %v11406_v1 = vcombine.low %v515_v50, %v519_v51  ;;  %v571_v50 = vld [vmem:[#allocation2 + $0x880] sm:$0xff] }
 0x17f   :  { %2696 = vmatprep.subr.bf16.mxu0 %v11359_v5  ;;  %2859 = vmatpush1.bf16.msra.mxu1 %v11480_v15  ;;  %v11415_v5 = vcombine.high %v523_v57, %v527_v58  ;;  %v11536_v15 = vcombine.low %v644_v62, %v648_v63  ;;  %v575_v51 = vld [vmem:[#allocation2 + $0x8a0] sm:$0xff]  ;;  %v11196_v62 = vcombine.low %v302_v44, %v306_v45  ;;  %v318_v63 = vld [vmem:[#allocation2 + $0x98] sm:$0xff] }
 0x180   :  { %2860 = vmatprep.subr.bf16.mxu1 %v11489_v18  ;;  %v11545_v18 = vcombine.high %v652_v7, %v656_v8 }
 0x182   :  { %2697 = vmatpush1.bf16.msra.mxu0 %v11358_v10  ;;  %v11414_v10 = vcombine.low %v523_v57, %v527_v58  ;;  %v579_v57 = vld [vmem:[#allocation2 + $0x8c0] sm:$0xff] }
 0x183   :  { %2698 = vmatprep.subr.bf16.mxu0 %v11367_v14  ;;  %2861 = vmatpush1.bf16.msra.mxu1 %v11488_v23  ;;  %v11423_v14 = vcombine.high %v531_v3, %v535_v4  ;;  %v11544_v23 = vcombine.low %v652_v7, %v656_v8  ;;  %v583_v58 = vld [vmem:[#allocation2 + $0x8e0] sm:$0xff]  ;;  %v326_v7 = vld [vmem:[#allocation2 + $0xd8] sm:$0xff] }
 0x184   :  { %2862 = vmatprep.subr.bf16.mxu1 %v11497_v28  ;;  %v11553_v28 = vcombine.high %v660_v16, %v664_v17  ;;  %v330_v8 = vld [vmem:[#allocation2 + $0xf8] sm:$0xff] }
 0x186   :  { %2699 = vmatpush1.bf16.msra.mxu0 %v11366_v19  ;;  %v11422_v19 = vcombine.low %v531_v3, %v535_v4  ;;  %v11462_v3 = vcombine.low %v571_v50, %v575_v51  ;;  %v587_v4 = vld [vmem:[#allocation2 + $0x900] sm:$0xff] }
 0x187   :  { %2700 = vmatprep.subr.bf16.mxu0 %v11375_v22  ;;  %2863 = vmatpush1.bf16.msra.mxu1 %v11496_v34  ;;  %v11431_v22 = vcombine.high %v539_v11, %v543_v13  ;;  %v11552_v34 = vcombine.low %v660_v16, %v664_v17  ;;  %v334_v16 = vld [vmem:[#allocation2 + $0x118] sm:$0xff] }
 0x188   :  { %2864 = vmatprep.subr.bf16.mxu1 %v11505_v37  ;;  %v11561_v37 = vcombine.high %v668_v24, %v672_v26  ;;  %v338_v17 = vld [vmem:[#allocation2 + $0x138] sm:$0xff] }
 0x18a   :  { %2701 = vmatpush1.bf16.msra.mxu0 %v11374_v30  ;;  %v11430_v30 = vcombine.low %v539_v11, %v543_v13  ;;  %v595_v11 = vld [vmem:[#allocation2 + $0x940] sm:$0xff] }
 0x18b   :  { %2702 = vmatprep.subr.bf16.mxu0 %v11383_v33  ;;  %2865 = vmatpush1.bf16.msra.mxu1 %v11504_v43  ;;  %v11439_v33 = vcombine.high %v547_v20, %v551_v21  ;;  %v11560_v43 = vcombine.low %v668_v24, %v672_v26  ;;  %v599_v13 = vld [vmem:[#allocation2 + $0x960] sm:$0xff]  ;;  %v342_v24 = vld [vmem:[#allocation2 + $0x158] sm:$0xff] }
 0x18c   :  { %2866 = vmatprep.subr.bf16.mxu1 %v11513_v46  ;;  %v11569_v46 = vcombine.high %v676_v35, %v680_v36  ;;  %v346_v26 = vld [vmem:[#allocation2 + $0x178] sm:$0xff] }
 0x18e   :  { %2703 = vmatpush1.bf16.msra.mxu0 %v11382_v48  ;;  %v11438_v48 = vcombine.low %v547_v20, %v551_v21  ;;  %v603_v20 = vld [vmem:[#allocation2 + $0x980] sm:$0xff] }
 0x18f   :  { %2704 = vmatprep.subr.bf16.mxu0 %v11391_v42  ;;  %2867 = vmatpush1.bf16.msra.mxu1 %v11512_v52  ;;  %v11447_v42 = vcombine.high %v555_v31, %v559_v32  ;;  %v11568_v52 = vcombine.low %v676_v35, %v680_v36  ;;  %v607_v21 = vld [vmem:[#allocation2 + $0x9a0] sm:$0xff]  ;;  %v350_v35 = vld [vmem:[#allocation2 + $0x198] sm:$0xff] }
 0x190   :  { %2868 = vmatprep.subr.bf16.mxu1 %v11521_v55  ;;  %v11197_v55 = vcombine.high %v302_v44, %v306_v45  ;;  %v354_v36 = vld [vmem:[#allocation2 + $0x1b8] sm:$0xff] }
 0x191   :  { %v358_v44 = vld [vmem:[#allocation2 + $0x1d8] sm:$0xff] }
 0x192   :  { %2705 = vmatpush1.bf16.msra.mxu0 %v11390_v49  ;;  %v11446_v49 = vcombine.low %v555_v31, %v559_v32  ;;  %v611_v31 = vld [vmem:[#allocation2 + $0x9c0] sm:$0xff]  ;;  %v362_v45 = vld [vmem:[#allocation2 + $0x1f8] sm:$0xff] }
 0x193   :  { %2706 = vmatprep.subr.bf16.mxu0 %v11399_v2  ;;  %2869 = vmatpush1.bf16.msra.mxu1 %v11520_v61  ;;  %v11455_v2 = vcombine.high %v563_v39, %v567_v40  ;;  %v11463_v61 = vcombine.high %v571_v50, %v575_v51  ;;  %v615_v32 = vld [vmem:[#allocation2 + $0x9e0] sm:$0xff] }
 0x194   :  { %2870 = vmatprep.subr.bf16.mxu1 %v11529_v0  ;;  %v322_v0 = vld [vmem:[#allocation2 + $0xb8] sm:$0xff]  ;;  %v627_v50 = vld [vmem:[#allocation2 + $0xa40] sm:$0xff] }
 0x195   :  { %v631_v51 = vld [vmem:[#allocation2 + $0xa60] sm:$0xff] }
 0x196   :  { %2707 = vmatpush1.bf16.msra.mxu0 %v11398_v56  ;;  %v11454_v56 = vcombine.low %v563_v39, %v567_v40  ;;  %v619_v39 = vld [vmem:[#allocation2 + $0xa00] sm:$0xff] }
 0x197   :  { %2708 = vmatprep.subr.bf16.mxu0 %v11407_v60  ;;  %2871 = vmatpush1.bf16.msra.mxu1 %v11528_v6  ;;  %v14792_v60 = vpack.c.bf16 %v14771_v25, %v14771_v25  ;;  %v11471_v6 = vcombine.high %v579_v57, %v583_v58  ;;  %v11204_v25 = vcombine.low %v310_v53, %v314_v54  ;;  %v623_v40 = vld [vmem:[#allocation2 + $0xa20] sm:$0xff] }
 0x198   :  { %2872 = vmatprep.subr.bf16.mxu1 %v11537_v9  ;;  %v11213_v9 = vcombine.high %v318_v63, %v322_v0 }
 0x19a   :  { %2709 = vmatpush1.bf16.msra.mxu0 %v11406_v1  ;;  %v11205_v1 = vcombine.high %v310_v53, %v314_v54  ;;  %v366_v53 = vld [vmem:[#allocation2 + $0x218] sm:$0xff] }
 0x19b   :  { %2710 = vmatprep.subr.bf16.mxu0 %v11415_v5  ;;  %2873 = vmatpush1.bf16.msra.mxu1 %v11536_v15  ;;  %v591_v5 = vld [vmem:[#allocation2 + $0x920] sm:$0xff]  ;;  %v11212_v15 = vcombine.low %v318_v63, %v322_v0  ;;  %v370_v54 = vld [vmem:[#allocation2 + $0x238] sm:$0xff] }
 0x19c   :  { %2874 = vmatprep.subr.bf16.mxu1 %v11545_v18  ;;  %v11221_v18 = vcombine.high %v326_v7, %v330_v8  ;;  %v374_v63 = vld [vmem:[#allocation2 + $0x258] sm:$0xff] }
 0x19d   :  { %v378_v0 = vld [vmem:[#allocation2 + $0x278] sm:$0xff] }
 0x19e   :  { %2711 = vmatpush1.bf16.msra.mxu0 %v11414_v10  ;;  %v11470_v10 = vcombine.low %v579_v57, %v583_v58  ;;  %v635_v57 = vld [vmem:[#allocation2 + $0xa80] sm:$0xff] }
 0x19f   :  { %2712 = vmatprep.subr.bf16.mxu0 %v11423_v14  ;;  %2875 = vmatpush1.bf16.msra.mxu1 %v11544_v23  ;;  %v11479_v14 = vcombine.high %v587_v4, %v591_v5  ;;  %v11220_v23 = vcombine.low %v326_v7, %v330_v8  ;;  %v639_v58 = vld [vmem:[#allocation2 + $0xaa0] sm:$0xff]  ;;  %v382_v7 = vld [vmem:[#allocation2 + $0x298] sm:$0xff] }
 0x1a0   :  { %2876 = vmatprep.subr.bf16.mxu1 %v11553_v28  ;;  %v11229_v28 = vcombine.high %v334_v16, %v338_v17  ;;  %v386_v8 = vld [vmem:[#allocation2 + $0x2b8] sm:$0xff] }
 0x1a2   :  { %2713 = vmatpush1.bf16.msra.mxu0 %v11422_v19  ;;  %v11478_v19 = vcombine.low %v587_v4, %v591_v5  ;;  %v643_v4 = vld [vmem:[#allocation2 + $0xac0] sm:$0xff] }
 0x1a3   :  { %2714 = vmatprep.subr.bf16.mxu0 %v11431_v22  ;;  %2877 = vmatpush1.bf16.msra.mxu1 %v11552_v34  ;;  %v11487_v22 = vcombine.high %v595_v11, %v599_v13  ;;  %v11228_v34 = vcombine.low %v334_v16, %v338_v17  ;;  %v647_v5 = vld [vmem:[#allocation2 + $0xae0] sm:$0xff]  ;;  %v390_v16 = vld [vmem:[#allocation2 + $0x2d8] sm:$0xff] }
 0x1a4   :  { %2878 = vmatprep.subr.bf16.mxu1 %v11561_v37  ;;  %v11237_v37 = vcombine.high %v342_v24, %v346_v26  ;;  %v394_v17 = vld [vmem:[#allocation2 + $0x2f8] sm:$0xff] }
 0x1a6   :  { %2715 = vmatpush1.bf16.msra.mxu0 %v11430_v30  ;;  %v11486_v30 = vcombine.low %v595_v11, %v599_v13  ;;  %v651_v11 = vld [vmem:[#allocation2 + $0xb00] sm:$0xff] }
 0x1a7   :  { %2716 = vmatprep.subr.bf16.mxu0 %v11439_v33  ;;  %2879 = vmatpush1.bf16.msra.mxu1 %v11560_v43  ;;  %v11495_v33 = vcombine.high %v603_v20, %v607_v21  ;;  %v11236_v43 = vcombine.low %v342_v24, %v346_v26  ;;  %v655_v13 = vld [vmem:[#allocation2 + $0xb20] sm:$0xff]  ;;  %v398_v24 = vld [vmem:[#allocation2 + $0x318] sm:$0xff] }
 0x1a8   :  { %2880 = vmatprep.subr.bf16.mxu1 %v11569_v46  ;;  %v11245_v46 = vcombine.high %v350_v35, %v354_v36  ;;  %v402_v26 = vld [vmem:[#allocation2 + $0x338] sm:$0xff] }
 0x1aa   :  { %2717 = vmatpush1.bf16.msra.mxu0 %v11438_v48  ;;  %v11494_v48 = vcombine.low %v603_v20, %v607_v21  ;;  %v659_v20 = vld [vmem:[#allocation2 + $0xb40] sm:$0xff] }
 0x1ab   :  { %2727 = vmatprep.subr.bf16.mxu0 %v11447_v42  ;;  %2881 = vmatpush1.bf16.msra.mxu1 %v11568_v52  ;;  %v11503_v42 = vcombine.high %v611_v31, %v615_v32  ;;  %v11244_v52 = vcombine.low %v350_v35, %v354_v36  ;;  %v663_v21 = vld [vmem:[#allocation2 + $0xb60] sm:$0xff]  ;;  %v406_v35 = vld [vmem:[#allocation2 + $0x358] sm:$0xff] }
 0x1ac   :  { %3014 = vmatprep.subr.bf16.mxu1 %v11197_v55  ;;  %v11253_v55 = vcombine.high %v358_v44, %v362_v45  ;;  %v410_v36 = vld [vmem:[#allocation2 + $0x378] sm:$0xff] }
 0x1ad   :  { %2719 = vmatmul.mubr.bf16.vlgmr.msra.gmra.mrb[0].mxu0 %v14782_v41 }
 0x1ae   :  { %2728 = vmatpush1.bf16.msra.mxu0 %v11446_v49  ;;  %2759 = vmatprep.mubr.bf16.mxu0 %v14785_v47  ;;  %v11502_v49 = vcombine.low %v611_v31, %v615_v32  ;;  %v667_v31 = vld [vmem:[#allocation2 + $0xb80] sm:$0xff] }
 0x1af   :  { %2729 = vmatprep.subr.bf16.mxu0 %v11455_v2  ;;  %2883 = vmatmul.mubr.bf16.vlgmr.msra.gmra.mrb[0].mxu1 %v14792_v60  ;;  %v11511_v2 = vcombine.high %v619_v39, %v623_v40  ;;  %v671_v32 = vld [vmem:[#allocation2 + $0xba0] sm:$0xff] }
 0x1b0   :  { %3015 = vmatpush1.bf16.msra.mxu1 %v11196_v62  ;;  %3046 = vmatprep.mubr.bf16.mxu1 %v14757_v59  ;;  %v11252_v62 = vcombine.low %v358_v44, %v362_v45  ;;  %v414_v44 = vld [vmem:[#allocation2 + $0x398] sm:$0xff] }
 0x1b1   :  { %3016 = vmatprep.subr.bf16.mxu1 %v11205_v1  ;;  %v11261_v1 = vcombine.high %v366_v53, %v370_v54  ;;  %v418_v45 = vld [vmem:[#allocation2 + $0x3b8] sm:$0xff] }
 0x1b2   :  { %2730 = vmatpush1.bf16.msra.mxu0 %v11454_v56  ;;  %v11510_v56 = vcombine.low %v619_v39, %v623_v40  ;;  %v675_v39 = vld [vmem:[#allocation2 + $0xbc0] sm:$0xff] }
 0x1b3   :  { %2731 = vmatprep.subr.bf16.mxu0 %v11463_v61  ;;  %v11519_v61 = vcombine.high %v627_v50, %v631_v51  ;;  %v679_v40 = vld [vmem:[#allocation2 + $0xbe0] sm:$0xff] }
 0x1b4   :  { %3017 = vmatpush1.bf16.msra.mxu1 %v11204_v25  ;;  %v11260_v25 = vcombine.low %v366_v53, %v370_v54  ;;  %v422_v53 = vld [vmem:[#allocation2 + $0x3d8] sm:$0xff] }
 0x1b5   :  { %3018 = vmatprep.subr.bf16.mxu1 %v11213_v9  ;;  %v11269_v9 = vcombine.high %v374_v63, %v378_v0  ;;  %v426_v54 = vld [vmem:[#allocation2 + $0x3f8] sm:$0xff] }
 0x1b6   :  { %2732 = vmatpush1.bf16.msra.mxu0 %v11462_v3  ;;  %v11518_v3 = vcombine.low %v627_v50, %v631_v51  ;;  %v300_v50 = vld [vmem:[#allocation2 + $0x8] sm:$0xff] }
 0x1b7   :  { %2733 = vmatprep.subr.bf16.mxu0 %v11471_v6  ;;  %v11527_v6 = vcombine.high %v635_v57, %v639_v58  ;;  %v304_v51 = vld [vmem:[#allocation2 + $0x28] sm:$0xff] }
 0x1b8   :  { %3019 = vmatpush1.bf16.msra.mxu1 %v11212_v15  ;;  %v11268_v15 = vcombine.low %v374_v63, %v378_v0  ;;  %v430_v63 = vld [vmem:[#allocation2 + $0x418] sm:$0xff] }
 0x1b9   :  { %3020 = vmatprep.subr.bf16.mxu1 %v11221_v18  ;;  %v11277_v18 = vcombine.high %v382_v7, %v386_v8  ;;  %v434_v0 = vld [vmem:[#allocation2 + $0x438] sm:$0xff] }
 0x1ba   :  { %2734 = vmatpush1.bf16.msra.mxu0 %v11470_v10  ;;  %v11526_v10 = vcombine.low %v635_v57, %v639_v58  ;;  %v308_v57 = vld [vmem:[#allocation2 + $0x48] sm:$0xff] }
 0x1bb   :  { %2735 = vmatprep.subr.bf16.mxu0 %v11479_v14  ;;  %v11535_v14 = vcombine.high %v643_v4, %v647_v5  ;;  %v312_v58 = vld [vmem:[#allocation2 + $0x68] sm:$0xff] }
 0x1bc   :  { %3021 = vmatpush1.bf16.msra.mxu1 %v11220_v23  ;;  %v11276_v23 = vcombine.low %v382_v7, %v386_v8  ;;  %v438_v7 = vld [vmem:[#allocation2 + $0x458] sm:$0xff] }
 0x1bd   :  { %3022 = vmatprep.subr.bf16.mxu1 %v11229_v28  ;;  %v11285_v28 = vcombine.high %v390_v16, %v394_v17  ;;  %v442_v8 = vld [vmem:[#allocation2 + $0x478] sm:$0xff] }
 0x1be   :  { %2736 = vmatpush1.bf16.msra.mxu0 %v11478_v19  ;;  %v11534_v19 = vcombine.low %v643_v4, %v647_v5  ;;  %v316_v4 = vld [vmem:[#allocation2 + $0x88] sm:$0xff] }
 0x1bf   :  { %2737 = vmatprep.subr.bf16.mxu0 %v11487_v22  ;;  %v11543_v22 = vcombine.high %v651_v11, %v655_v13  ;;  %v320_v5 = vld [vmem:[#allocation2 + $0xa8] sm:$0xff] }
 0x1c0   :  { %3023 = vmatpush1.bf16.msra.mxu1 %v11228_v34  ;;  %v11284_v34 = vcombine.low %v390_v16, %v394_v17  ;;  %v446_v16 = vld [vmem:[#allocation2 + $0x498] sm:$0xff] }
 0x1c1   :  { %3024 = vmatprep.subr.bf16.mxu1 %v11237_v37  ;;  %v11293_v37 = vcombine.high %v398_v24, %v402_v26  ;;  %v450_v17 = vld [vmem:[#allocation2 + $0x4b8] sm:$0xff] }
 0x1c2   :  { %2738 = vmatpush1.bf16.msra.mxu0 %v11486_v30  ;;  %v11542_v30 = vcombine.low %v651_v11, %v655_v13  ;;  %v324_v11 = vld [vmem:[#allocation2 + $0xc8] sm:$0xff] }
 0x1c3   :  { %2739 = vmatprep.subr.bf16.mxu0 %v11495_v33  ;;  %v11551_v33 = vcombine.high %v659_v20, %v663_v21  ;;  %v328_v13 = vld [vmem:[#allocation2 + $0xe8] sm:$0xff] }
 0x1c4   :  { %3025 = vmatpush1.bf16.msra.mxu1 %v11236_v43  ;;  %v11292_v43 = vcombine.low %v398_v24, %v402_v26  ;;  %v454_v24 = vld [vmem:[#allocation2 + $0x4d8] sm:$0xff] }
 0x1c5   :  { %3026 = vmatprep.subr.bf16.mxu1 %v11245_v46  ;;  %v11301_v46 = vcombine.high %v406_v35, %v410_v36  ;;  %v458_v26 = vld [vmem:[#allocation2 + $0x4f8] sm:$0xff] }
 0x1c6   :  { %2740 = vmatpush1.bf16.msra.mxu0 %v11494_v48  ;;  %v11550_v48 = vcombine.low %v659_v20, %v663_v21  ;;  %v332_v20 = vld [vmem:[#allocation2 + $0x108] sm:$0xff] }
 0x1c7   :  { %2741 = vmatprep.subr.bf16.mxu0 %v11503_v42  ;;  %v11559_v42 = vcombine.high %v667_v31, %v671_v32  ;;  %v336_v21 = vld [vmem:[#allocation2 + $0x128] sm:$0xff] }
 0x1c8   :  { %3027 = vmatpush1.bf16.msra.mxu1 %v11244_v52  ;;  %v11300_v52 = vcombine.low %v406_v35, %v410_v36  ;;  %v462_v35 = vld [vmem:[#allocation2 + $0x518] sm:$0xff] }
 0x1c9   :  { %3028 = vmatprep.subr.bf16.mxu1 %v11253_v55  ;;  %v11309_v55 = vcombine.high %v414_v44, %v418_v45  ;;  %v466_v36 = vld [vmem:[#allocation2 + $0x538] sm:$0xff] }
 0x1ca   :  { %2742 = vmatpush1.bf16.msra.mxu0 %v11502_v49  ;;  %v11558_v49 = vcombine.low %v667_v31, %v671_v32  ;;  %v340_v31 = vld [vmem:[#allocation2 + $0x148] sm:$0xff] }
 0x1cb   :  { %2743 = vmatprep.subr.bf16.mxu0 %v11511_v2  ;;  %v11567_v2 = vcombine.high %v675_v39, %v679_v40  ;;  %v344_v32 = vld [vmem:[#allocation2 + $0x168] sm:$0xff] }
 0x1cc   :  { %3029 = vmatpush1.bf16.msra.mxu1 %v11252_v62  ;;  %v11308_v62 = vcombine.low %v414_v44, %v418_v45  ;;  %v470_v44 = vld [vmem:[#allocation2 + $0x558] sm:$0xff] }
 0x1cd   :  { %3030 = vmatprep.subr.bf16.mxu1 %v11261_v1  ;;  %v11317_v1 = vcombine.high %v422_v53, %v426_v54  ;;  %v474_v45 = vld [vmem:[#allocation2 + $0x578] sm:$0xff] }
 0x1ce   :  { %2744 = vmatpush1.bf16.msra.mxu0 %v11510_v56  ;;  %v11566_v56 = vcombine.low %v675_v39, %v679_v40  ;;  %v348_v39 = vld [vmem:[#allocation2 + $0x188] sm:$0xff] }
 0x1cf   :  { %2745 = vmatprep.subr.bf16.mxu0 %v11519_v61  ;;  %v11193_v61 = vcombine.high %v300_v50, %v304_v51  ;;  %v352_v40 = vld [vmem:[#allocation2 + $0x1a8] sm:$0xff] }
 0x1d0   :  { %3031 = vmatpush1.bf16.msra.mxu1 %v11260_v25  ;;  %v11316_v25 = vcombine.low %v422_v53, %v426_v54  ;;  %v478_v53 = vld [vmem:[#allocation2 + $0x598] sm:$0xff] }
 0x1d1   :  { %3032 = vmatprep.subr.bf16.mxu1 %v11269_v9  ;;  %v11325_v9 = vcombine.high %v430_v63, %v434_v0  ;;  %v482_v54 = vld [vmem:[#allocation2 + $0x5b8] sm:$0xff] }
 0x1d2   :  { %2746 = vmatpush1.bf16.msra.mxu0 %v11518_v3  ;;  %v11192_v3 = vcombine.low %v300_v50, %v304_v51  ;;  %v356_v50 = vld [vmem:[#allocation2 + $0x1c8] sm:$0xff] }
 0x1d3   :  { %2747 = vmatprep.subr.bf16.mxu0 %v11527_v6  ;;  %v11201_v6 = vcombine.high %v308_v57, %v312_v58  ;;  %v360_v51 = vld [vmem:[#allocation2 + $0x1e8] sm:$0xff] }
 0x1d4   :  { %3033 = vmatpush1.bf16.msra.mxu1 %v11268_v15  ;;  %v11324_v15 = vcombine.low %v430_v63, %v434_v0  ;;  %v486_v63 = vld [vmem:[#allocation2 + $0x5d8] sm:$0xff] }
 0x1d5   :  { %3034 = vmatprep.subr.bf16.mxu1 %v11277_v18  ;;  %v11333_v18 = vcombine.high %v438_v7, %v442_v8  ;;  %v490_v0 = vld [vmem:[#allocation2 + $0x5f8] sm:$0xff] }
 0x1d6   :  { %2748 = vmatpush1.bf16.msra.mxu0 %v11526_v10  ;;  %v11200_v10 = vcombine.low %v308_v57, %v312_v58  ;;  %v364_v57 = vld [vmem:[#allocation2 + $0x208] sm:$0xff] }
 0x1d7   :  { %2749 = vmatprep.subr.bf16.mxu0 %v11535_v14  ;;  %v11209_v14 = vcombine.high %v316_v4, %v320_v5  ;;  %v368_v58 = vld [vmem:[#allocation2 + $0x228] sm:$0xff] }
 0x1d8   :  { %3035 = vmatpush1.bf16.msra.mxu1 %v11276_v23  ;;  %v11332_v23 = vcombine.low %v438_v7, %v442_v8  ;;  %v494_v7 = vld [vmem:[#allocation2 + $0x618] sm:$0xff] }
 0x1d9   :  { %3036 = vmatprep.subr.bf16.mxu1 %v11285_v28  ;;  %v11341_v28 = vcombine.high %v446_v16, %v450_v17  ;;  %v498_v8 = vld [vmem:[#allocation2 + $0x638] sm:$0xff] }
 0x1da   :  { %2750 = vmatpush1.bf16.msra.mxu0 %v11534_v19  ;;  %v11208_v19 = vcombine.low %v316_v4, %v320_v5  ;;  %v372_v4 = vld [vmem:[#allocation2 + $0x248] sm:$0xff] }
 0x1db   :  { %2751 = vmatprep.subr.bf16.mxu0 %v11543_v22  ;;  %v11217_v22 = vcombine.high %v324_v11, %v328_v13  ;;  %v376_v5 = vld [vmem:[#allocation2 + $0x268] sm:$0xff] }
 0x1dc   :  { %3037 = vmatpush1.bf16.msra.mxu1 %v11284_v34  ;;  %v11340_v34 = vcombine.low %v446_v16, %v450_v17  ;;  %v502_v16 = vld [vmem:[#allocation2 + $0x658] sm:$0xff] }
 0x1dd   :  { %3038 = vmatprep.subr.bf16.mxu1 %v11293_v37  ;;  %v11349_v37 = vcombine.high %v454_v24, %v458_v26  ;;  %v506_v17 = vld [vmem:[#allocation2 + $0x678] sm:$0xff] }
 0x1de   :  { %2752 = vmatpush1.bf16.msra.mxu0 %v11542_v30  ;;  %v11216_v30 = vcombine.low %v324_v11, %v328_v13  ;;  %v380_v11 = vld [vmem:[#allocation2 + $0x288] sm:$0xff] }
 0x1df   :  { %2753 = vmatprep.subr.bf16.mxu0 %v11551_v33  ;;  %v11225_v33 = vcombine.high %v332_v20, %v336_v21  ;;  %v384_v13 = vld [vmem:[#allocation2 + $0x2a8] sm:$0xff] }
 0x1e0   :  { %3039 = vmatpush1.bf16.msra.mxu1 %v11292_v43  ;;  %v11348_v43 = vcombine.low %v454_v24, %v458_v26  ;;  %v510_v24 = vld [vmem:[#allocation2 + $0x698] sm:$0xff] }
 0x1e1   :  { %3040 = vmatprep.subr.bf16.mxu1 %v11301_v46  ;;  %v11357_v46 = vcombine.high %v462_v35, %v466_v36  ;;  %v514_v26 = vld [vmem:[#allocation2 + $0x6b8] sm:$0xff] }
 0x1e2   :  { %2754 = vmatpush1.bf16.msra.mxu0 %v11550_v48  ;;  %v11224_v48 = vcombine.low %v332_v20, %v336_v21  ;;  %v388_v20 = vld [vmem:[#allocation2 + $0x2c8] sm:$0xff] }
 0x1e3   :  { %2755 = vmatprep.subr.bf16.mxu0 %v11559_v42  ;;  %v11233_v42 = vcombine.high %v340_v31, %v344_v32  ;;  %v392_v21 = vld [vmem:[#allocation2 + $0x2e8] sm:$0xff] }
 0x1e4   :  { %3041 = vmatpush1.bf16.msra.mxu1 %v11300_v52  ;;  %v11356_v52 = vcombine.low %v462_v35, %v466_v36  ;;  %v518_v35 = vld [vmem:[#allocation2 + $0x6d8] sm:$0xff] }
 0x1e5   :  { %3042 = vmatprep.subr.bf16.mxu1 %v11309_v55  ;;  %v11365_v55 = vcombine.high %v470_v44, %v474_v45  ;;  %v522_v36 = vld [vmem:[#allocation2 + $0x6f8] sm:$0xff] }
 0x1e6   :  { %2756 = vmatpush1.bf16.msra.mxu0 %v11558_v49  ;;  %v11232_v49 = vcombine.low %v340_v31, %v344_v32  ;;  %v396_v31 = vld [vmem:[#allocation2 + $0x308] sm:$0xff] }
 0x1e7   :  { %2757 = vmatprep.subr.bf16.mxu0 %v11567_v2  ;;  %v11241_v2 = vcombine.high %v348_v39, %v352_v40  ;;  %v400_v32 = vld [vmem:[#allocation2 + $0x328] sm:$0xff] }
 0x1e8   :  { %3043 = vmatpush1.bf16.msra.mxu1 %v11308_v62  ;;  %v11364_v62 = vcombine.low %v470_v44, %v474_v45  ;;  %v526_v44 = vld [vmem:[#allocation2 + $0x718] sm:$0xff] }
 0x1e9   :  { %3044 = vmatprep.subr.bf16.mxu1 %v11317_v1  ;;  %v11373_v1 = vcombine.high %v478_v53, %v482_v54  ;;  %v530_v45 = vld [vmem:[#allocation2 + $0x738] sm:$0xff] }
 0x1ea   :  { %2758 = vmatpush1.bf16.msra.mxu0 %v11566_v56  ;;  %v11240_v56 = vcombine.low %v348_v39, %v352_v40  ;;  %v404_v39 = vld [vmem:[#allocation2 + $0x348] sm:$0xff] }
 0x1eb   :  { %2768 = vmatprep.subr.bf16.mxu0 %v11193_v61  ;;  %v11249_v61 = vcombine.high %v356_v50, %v360_v51  ;;  %v408_v40 = vld [vmem:[#allocation2 + $0x368] sm:$0xff] }
 0x1ec   :  { %3045 = vmatpush1.bf16.msra.mxu1 %v11316_v25  ;;  %v11372_v25 = vcombine.low %v478_v53, %v482_v54  ;;  %v534_v53 = vld [vmem:[#allocation2 + $0x758] sm:$0xff] }
 0x1ed   :  { %2760 = vmatmul.mubr.bf16.vlgmr.msra.gmra.mrb[0].mxu0 %v14792_v60  ;;  %3055 = vmatprep.subr.bf16.mxu1 %v11325_v9  ;;  %v11381_v9 = vcombine.high %v486_v63, %v490_v0  ;;  %v538_v54 = vld [vmem:[#allocation2 + $0x778] sm:$0xff] }
 0x1ee   :  { %2769 = vmatpush1.bf16.msra.mxu0 %v11192_v3  ;;  %2800 = vmatprep.mubr.bf16.mxu0 %v14757_v59  ;;  %v11248_v3 = vcombine.low %v356_v50, %v360_v51  ;;  %v412_v50 = vld [vmem:[#allocation2 + $0x388] sm:$0xff] }
 0x1ef   :  { %2770 = vmatprep.subr.bf16.mxu0 %v11201_v6  ;;  %3047 = vmatmul.mubr.bf16.vlgmr.msra.gmra.mrb[4].mxu1 %v14775_v27  ;;  %v11257_v6 = vcombine.high %v364_v57, %v368_v58  ;;  %v416_v51 = vld [vmem:[#allocation2 + $0x3a8] sm:$0xff] }
 0x1f0   :  { %3056 = vmatpush1.bf16.msra.mxu1 %v11324_v15  ;;  %3087 = vmatprep.mubr.bf16.mxu1 %v14765_v12  ;;  %v11380_v15 = vcombine.low %v486_v63, %v490_v0  ;;  %v542_v63 = vld [vmem:[#allocation2 + $0x798] sm:$0xff] }
 0x1f1   :  { %3057 = vmatprep.subr.bf16.mxu1 %v11333_v18  ;;  %v11389_v18 = vcombine.high %v494_v7, %v498_v8  ;;  %v546_v0 = vld [vmem:[#allocation2 + $0x7b8] sm:$0xff] }
 0x1f2   :  { %2771 = vmatpush1.bf16.msra.mxu0 %v11200_v10  ;;  %v11256_v10 = vcombine.low %v364_v57, %v368_v58  ;;  %v420_v57 = vld [vmem:[#allocation2 + $0x3c8] sm:$0xff] }
 0x1f3   :  { %2772 = vmatprep.subr.bf16.mxu0 %v11209_v14  ;;  %v11265_v14 = vcombine.high %v372_v4, %v376_v5  ;;  %v424_v58 = vld [vmem:[#allocation2 + $0x3e8] sm:$0xff] }
 0x1f4   :  { %3058 = vmatpush1.bf16.msra.mxu1 %v11332_v23  ;;  %v11388_v23 = vcombine.low %v494_v7, %v498_v8  ;;  %v550_v7 = vld [vmem:[#allocation2 + $0x7d8] sm:$0xff] }
 0x1f5   :  { %3059 = vmatprep.subr.bf16.mxu1 %v11341_v28  ;;  %v11397_v28 = vcombine.high %v502_v16, %v506_v17  ;;  %v554_v8 = vld [vmem:[#allocation2 + $0x7f8] sm:$0xff] }
 0x1f6   :  { %2773 = vmatpush1.bf16.msra.mxu0 %v11208_v19  ;;  %v11264_v19 = vcombine.low %v372_v4, %v376_v5  ;;  %v301_v4 = vld [vmem:[#allocation2 + $0x10] sm:$0xff] }
 0x1f7   :  { %2774 = vmatprep.subr.bf16.mxu0 %v11217_v22  ;;  %v11273_v22 = vcombine.high %v380_v11, %v384_v13  ;;  %v305_v5 = vld [vmem:[#allocation2 + $0x30] sm:$0xff] }
 0x1f8   :  { %3060 = vmatpush1.bf16.msra.mxu1 %v11340_v34  ;;  %v11396_v34 = vcombine.low %v502_v16, %v506_v17  ;;  %v558_v16 = vld [vmem:[#allocation2 + $0x818] sm:$0xff] }
 0x1f9   :  { %3061 = vmatprep.subr.bf16.mxu1 %v11349_v37  ;;  %v11405_v37 = vcombine.high %v510_v24, %v514_v26  ;;  %v562_v17 = vld [vmem:[#allocation2 + $0x838] sm:$0xff] }
 0x1fa   :  { %2775 = vmatpush1.bf16.msra.mxu0 %v11216_v30  ;;  %v11272_v30 = vcombine.low %v380_v11, %v384_v13  ;;  %v309_v11 = vld [vmem:[#allocation2 + $0x50] sm:$0xff] }
 0x1fb   :  { %2776 = vmatprep.subr.bf16.mxu0 %v11225_v33  ;;  %v11281_v33 = vcombine.high %v388_v20, %v392_v21  ;;  %v313_v13 = vld [vmem:[#allocation2 + $0x70] sm:$0xff] }
 0x1fc   :  { %3062 = vmatpush1.bf16.msra.mxu1 %v11348_v43  ;;  %v11404_v43 = vcombine.low %v510_v24, %v514_v26  ;;  %v566_v24 = vld [vmem:[#allocation2 + $0x858] sm:$0xff] }
 0x1fd   :  { %3063 = vmatprep.subr.bf16.mxu1 %v11357_v46  ;;  %v11413_v46 = vcombine.high %v518_v35, %v522_v36  ;;  %v570_v26 = vld [vmem:[#allocation2 + $0x878] sm:$0xff] }
 0x1fe   :  { %2777 = vmatpush1.bf16.msra.mxu0 %v11224_v48  ;;  %v11280_v48 = vcombine.low %v388_v20, %v392_v21  ;;  %v317_v20 = vld [vmem:[#allocation2 + $0x90] sm:$0xff] }
 0x1ff   :  { %2778 = vmatprep.subr.bf16.mxu0 %v11233_v42  ;;  %v11289_v42 = vcombine.high %v396_v31, %v400_v32  ;;  %v321_v21 = vld [vmem:[#allocation2 + $0xb0] sm:$0xff] }
 0x200   :  { %3064 = vmatpush1.bf16.msra.mxu1 %v11356_v52  ;;  %v11412_v52 = vcombine.low %v518_v35, %v522_v36  ;;  %v574_v35 = vld [vmem:[#allocation2 + $0x898] sm:$0xff] }
 0x201   :  { %3065 = vmatprep.subr.bf16.mxu1 %v11365_v55  ;;  %v11421_v55 = vcombine.high %v526_v44, %v530_v45  ;;  %v578_v36 = vld [vmem:[#allocation2 + $0x8b8] sm:$0xff] }
 0x202   :  { %2779 = vmatpush1.bf16.msra.mxu0 %v11232_v49  ;;  %v11288_v49 = vcombine.low %v396_v31, %v400_v32  ;;  %v325_v31 = vld [vmem:[#allocation2 + $0xd0] sm:$0xff] }
 0x203   :  { %2780 = vmatprep.subr.bf16.mxu0 %v11241_v2  ;;  %v11297_v2 = vcombine.high %v404_v39, %v408_v40  ;;  %v329_v32 = vld [vmem:[#allocation2 + $0xf0] sm:$0xff] }
 0x204   :  { %3066 = vmatpush1.bf16.msra.mxu1 %v11364_v62  ;;  %v11420_v62 = vcombine.low %v526_v44, %v530_v45  ;;  %v582_v44 = vld [vmem:[#allocation2 + $0x8d8] sm:$0xff]  ;;  %v11469_v45 = vcombine.high %v574_v35, %v578_v36 }
 0x205   :  { %3067 = vmatprep.subr.bf16.mxu1 %v11373_v1  ;;  %v11429_v1 = vcombine.high %v534_v53, %v538_v54 }
 0x206   :  { %2781 = vmatpush1.bf16.msra.mxu0 %v11240_v56  ;;  %v11296_v56 = vcombine.low %v404_v39, %v408_v40  ;;  %v333_v39 = vld [vmem:[#allocation2 + $0x110] sm:$0xff] }
 0x207   :  { %2782 = vmatprep.subr.bf16.mxu0 %v11249_v61  ;;  %v11305_v61 = vcombine.high %v412_v50, %v416_v51  ;;  %v337_v40 = vld [vmem:[#allocation2 + $0x130] sm:$0xff] }
 0x208   :  { %3068 = vmatpush1.bf16.msra.mxu1 %v11372_v25  ;;  %v11428_v25 = vcombine.low %v534_v53, %v538_v54  ;;  %v594_v53 = vld [vmem:[#allocation2 + $0x938] sm:$0xff] }
 0x209   :  { %3069 = vmatprep.subr.bf16.mxu1 %v11381_v9  ;;  %v11437_v9 = vcombine.high %v542_v63, %v546_v0 }
 0x20a   :  { %2783 = vmatpush1.bf16.msra.mxu0 %v11248_v3  ;;  %v11304_v3 = vcombine.low %v412_v50, %v416_v51  ;;  %v345_v50 = vld [vmem:[#allocation2 + $0x170] sm:$0xff]  ;;  %v11227_v51 = vcombine.high %v333_v39, %v337_v40 }
 0x20b   :  { %2784 = vmatprep.subr.bf16.mxu0 %v11257_v6  ;;  %v11313_v6 = vcombine.high %v420_v57, %v424_v58 }
 0x20c   :  { %3070 = vmatpush1.bf16.msra.mxu1 %v11380_v15  ;;  %v11436_v15 = vcombine.low %v542_v63, %v546_v0  ;;  %v602_v63 = vld [vmem:[#allocation2 + $0x978] sm:$0xff] }
 0x20d   :  { %3071 = vmatprep.subr.bf16.mxu1 %v11389_v18  ;;  %v11445_v18 = vcombine.high %v550_v7, %v554_v8 }
 0x20e   :  { %2785 = vmatpush1.bf16.msra.mxu0 %v11256_v10  ;;  %v11312_v10 = vcombine.low %v420_v57, %v424_v58  ;;  %v353_v57 = vld [vmem:[#allocation2 + $0x1b0] sm:$0xff] }
 0x20f   :  { %2786 = vmatprep.subr.bf16.mxu0 %v11265_v14  ;;  %v11195_v14 = vcombine.high %v301_v4, %v305_v5 }
 0x210   :  { %3072 = vmatpush1.bf16.msra.mxu1 %v11388_v23  ;;  %v11444_v23 = vcombine.low %v550_v7, %v554_v8  ;;  %v610_v8 = vld [vmem:[#allocation2 + $0x9b8] sm:$0xff] }
 0x211   :  { %3073 = vmatprep.subr.bf16.mxu1 %v11397_v28  ;;  %v11453_v28 = vcombine.high %v558_v16, %v562_v17 }
 0x212   :  { %2787 = vmatpush1.bf16.msra.mxu0 %v11264_v19  ;;  %v11194_v19 = vcombine.low %v301_v4, %v305_v5  ;;  %v361_v4 = vld [vmem:[#allocation2 + $0x1f0] sm:$0xff] }
 0x213   :  { %2788 = vmatprep.subr.bf16.mxu0 %v11273_v22  ;;  %v11203_v22 = vcombine.high %v309_v11, %v313_v13 }
 0x214   :  { %3074 = vmatpush1.bf16.msra.mxu1 %v11396_v34  ;;  %v11452_v34 = vcombine.low %v558_v16, %v562_v17  ;;  %v618_v17 = vld [vmem:[#allocation2 + $0x9f8] sm:$0xff] }
 0x215   :  { %3075 = vmatprep.subr.bf16.mxu1 %v11405_v37  ;;  %v11461_v37 = vcombine.high %v566_v24, %v570_v26 }
 0x216   :  { %2789 = vmatpush1.bf16.msra.mxu0 %v11272_v30  ;;  %v11202_v30 = vcombine.low %v309_v11, %v313_v13  ;;  %v369_v11 = vld [vmem:[#allocation2 + $0x230] sm:$0xff] }
 0x217   :  { %2790 = vmatprep.subr.bf16.mxu0 %v11281_v33  ;;  %v11211_v33 = vcombine.high %v317_v20, %v321_v21 }
 0x218   :  { %3076 = vmatpush1.bf16.msra.mxu1 %v11404_v43  ;;  %v11460_v43 = vcombine.low %v566_v24, %v570_v26  ;;  %v626_v26 = vld [vmem:[#allocation2 + $0xa38] sm:$0xff] }
 0x219   :  { %3077 = vmatprep.subr.bf16.mxu1 %v11413_v46  ;;  %v11218_v46 = vcombine.low %v325_v31, %v329_v32 }
 0x21a   :  { %2791 = vmatpush1.bf16.msra.mxu0 %v11280_v48  ;;  %v11210_v48 = vcombine.low %v317_v20, %v321_v21  ;;  %v377_v20 = vld [vmem:[#allocation2 + $0x270] sm:$0xff] }
 0x21b   :  { %2792 = vmatprep.subr.bf16.mxu0 %v11289_v42  ;;  %v11219_v42 = vcombine.high %v325_v31, %v329_v32  ;;  %v385_v31 = vld [vmem:[#allocation2 + $0x2b0] sm:$0xff] }
 0x21c   :  { %3078 = vmatpush1.bf16.msra.mxu1 %v11412_v52  ;;  %v590_v52 = vld [vmem:[#allocation2 + $0x918] sm:$0xff] }
 0x21d   :  { %3079 = vmatprep.subr.bf16.mxu1 %v11421_v55  ;;  %v11226_v55 = vcombine.low %v333_v39, %v337_v40  ;;  %v11485_v0 = vcombine.high %v590_v52, %v594_v53  ;;  %v393_v39 = vld [vmem:[#allocation2 + $0x2f0] sm:$0xff] }
 0x21e   :  { %2793 = vmatpush1.bf16.msra.mxu0 %v11288_v49  ;;  %v341_v49 = vld [vmem:[#allocation2 + $0x150] sm:$0xff] }
 0x21f   :  { %2794 = vmatprep.subr.bf16.mxu0 %v11297_v2  ;;  %v11468_v2 = vcombine.low %v574_v35, %v578_v36  ;;  %v11235_v58 = vcombine.high %v341_v49, %v345_v50  ;;  %v634_v36 = vld [vmem:[#allocation2 + $0xa78] sm:$0xff] }
 0x220   :  { %3080 = vmatpush1.bf16.msra.mxu1 %v11420_v62  ;;  %v598_v62 = vld [vmem:[#allocation2 + $0x958] sm:$0xff] }
 0x221   :  { %3081 = vmatprep.subr.bf16.mxu1 %v11429_v1  ;;  %v11234_v1 = vcombine.low %v341_v49, %v345_v50  ;;  %v11493_v7 = vcombine.high %v598_v62, %v602_v63  ;;  %v401_v49 = vld [vmem:[#allocation2 + $0x330] sm:$0xff] }
 0x222   :  { %2795 = vmatpush1.bf16.msra.mxu0 %v11296_v56  ;;  %v349_v56 = vld [vmem:[#allocation2 + $0x190] sm:$0xff] }
 0x223   :  { %2796 = vmatprep.subr.bf16.mxu0 %v11305_v61  ;;  %v11243_v5 = vcombine.high %v349_v56, %v353_v57 }
 0x224   :  { %3082 = vmatpush1.bf16.msra.mxu1 %v11428_v25  ;;  %v606_v25 = vld [vmem:[#allocation2 + $0x998] sm:$0xff] }
 0x225   :  { %3083 = vmatprep.subr.bf16.mxu1 %v11437_v9  ;;  %v11242_v9 = vcombine.low %v349_v56, %v353_v57  ;;  %v11501_v16 = vcombine.high %v606_v25, %v610_v8  ;;  %v409_v56 = vld [vmem:[#allocation2 + $0x370] sm:$0xff] }
 0x226   :  { %2797 = vmatpush1.bf16.msra.mxu0 %v11304_v3  ;;  %v357_v3 = vld [vmem:[#allocation2 + $0x1d0] sm:$0xff] }
 0x227   :  { %2798 = vmatprep.subr.bf16.mxu0 %v11313_v6  ;;  %v11484_v6 = vcombine.low %v590_v52, %v594_v53  ;;  %v11251_v13 = vcombine.high %v357_v3, %v361_v4  ;;  %v650_v53 = vld [vmem:[#allocation2 + $0xaf8] sm:$0xff] }
 0x228   :  { %3084 = vmatpush1.bf16.msra.mxu1 %v11436_v15  ;;  %v614_v15 = vld [vmem:[#allocation2 + $0x9d8] sm:$0xff] }
 0x229   :  { %3085 = vmatprep.subr.bf16.mxu1 %v11445_v18  ;;  %v11250_v18 = vcombine.low %v357_v3, %v361_v4  ;;  %v11509_v24 = vcombine.high %v614_v15, %v618_v17  ;;  %v417_v3 = vld [vmem:[#allocation2 + $0x3b0] sm:$0xff] }
 0x22a   :  { %2799 = vmatpush1.bf16.msra.mxu0 %v11312_v10  ;;  %v365_v10 = vld [vmem:[#allocation2 + $0x210] sm:$0xff] }
 0x22b   :  { %2891 = vmatprep.subr.bf16.mxu0 %v11195_v14  ;;  %v11492_v14 = vcombine.low %v598_v62, %v602_v63  ;;  %v11259_v21 = vcombine.high %v365_v10, %v369_v11  ;;  %v658_v63 = vld [vmem:[#allocation2 + $0xb38] sm:$0xff] }
 0x22c   :  { %3086 = vmatpush1.bf16.msra.mxu1 %v11444_v23  ;;  %v622_v23 = vld [vmem:[#allocation2 + $0xa18] sm:$0xff] }
 0x22d   :  { %2801 = vmatmul.mubr.bf16.vlgmr.msra.gmra.mrb[4].mxu0 %v14775_v27  ;;  %3096 = vmatprep.subr.bf16.mxu1 %v11453_v28  ;;  %v11258_v28 = vcombine.low %v365_v10, %v369_v11  ;;  %v11517_v35 = vcombine.high %v622_v23, %v626_v26  ;;  %v425_v10 = vld [vmem:[#allocation2 + $0x3f0] sm:$0xff] }
 0x22e   :  { %2892 = vmatpush1.bf16.msra.mxu0 %v11194_v19  ;;  %2923 = vmatprep.mubr.bf16.mxu0 %v14757_v59  ;;  %v586_v59 = vld [vmem:[#allocation2 + $0x8f8] sm:$0xff]  ;;  %v373_v19 = vld [vmem:[#allocation2 + $0x250] sm:$0xff] }
 0x22f   :  { %2893 = vmatprep.subr.bf16.mxu0 %v11203_v22  ;;  %3088 = vmatmul.mubr.bf16.vlgmr.msra.gmra.mrb[4].mxu1 %v14782_v41  ;;  %v11477_v54 = vcombine.high %v582_v44, %v586_v59  ;;  %v11476_v61 = vcombine.low %v582_v44, %v586_v59  ;;  %v11500_v22 = vcombine.low %v606_v25, %v610_v8  ;;  %v642_v59 = vld [vmem:[#allocation2 + $0xab8] sm:$0xff] }
 0x230   :  { %3097 = vmatpush1.bf16.msra.mxu1 %v11452_v34  ;;  %3128 = vmatprep.mubr.bf16.mxu1 %v14785_v47  ;;  %v11267_v32 = vcombine.high %v373_v19, %v377_v20  ;;  %v630_v34 = vld [vmem:[#allocation2 + $0xa58] sm:$0xff] }
 0x231   :  { %3098 = vmatprep.subr.bf16.mxu1 %v11461_v37  ;;  %v11266_v37 = vcombine.low %v373_v19, %v377_v20  ;;  %v11525_v44 = vcombine.high %v630_v34, %v634_v36  ;;  %v433_v19 = vld [vmem:[#allocation2 + $0x430] sm:$0xff] }
 0x232   :  { %2894 = vmatpush1.bf16.msra.mxu0 %v11202_v30  ;;  %v381_v30 = vld [vmem:[#allocation2 + $0x290] sm:$0xff] }
 0x233   :  { %2895 = vmatprep.subr.bf16.mxu0 %v11211_v33  ;;  %v11508_v33 = vcombine.low %v614_v15, %v618_v17  ;;  %v11275_v40 = vcombine.high %v381_v30, %v385_v31 }
 0x234   :  { %3099 = vmatpush1.bf16.msra.mxu1 %v11460_v43  ;;  %v638_v43 = vld [vmem:[#allocation2 + $0xa98] sm:$0xff] }
 0x235   :  { %3100 = vmatprep.subr.bf16.mxu1 %v11469_v45  ;;  %v11274_v45 = vcombine.low %v381_v30, %v385_v31  ;;  %v11533_v52 = vcombine.high %v638_v43, %v642_v59  ;;  %v441_v30 = vld [vmem:[#allocation2 + $0x470] sm:$0xff] }
 0x236   :  { %2896 = vmatpush1.bf16.msra.mxu0 %v11210_v48  ;;  %v389_v48 = vld [vmem:[#allocation2 + $0x2d0] sm:$0xff] }
 0x237   :  { %2897 = vmatprep.subr.bf16.mxu0 %v11219_v42  ;;  %v11516_v42 = vcombine.low %v622_v23, %v626_v26  ;;  %v11283_v50 = vcombine.high %v389_v48, %v393_v39 }
 0x238   :  { %3101 = vmatpush1.bf16.msra.mxu1 %v11468_v2  ;;  %v646_v2 = vld [vmem:[#allocation2 + $0xad8] sm:$0xff] }
 0x239   :  { %3102 = vmatprep.subr.bf16.mxu1 %v11477_v54  ;;  %v11282_v54 = vcombine.low %v389_v48, %v393_v39  ;;  %v11541_v62 = vcombine.high %v646_v2, %v650_v53  ;;  %v12823_v39 = vld [vmem:[#allocation4 + $0xc] ss:$16 sps:$4 sm:$0xff]  }
 0x23a   :  { %2898 = vmatpush1.bf16.msra.mxu0 %v11218_v46  ;;  %v397_v46 = vld [vmem:[#allocation2 + $0x310] sm:$0xff] }
 0x23b   :  { %2899 = vmatprep.subr.bf16.mxu0 %v11227_v51  ;;  %v11524_v51 = vcombine.low %v630_v34, %v634_v36  ;;  %v11291_v57 = vcombine.high %v397_v46, %v401_v49 }
 0x23c   :  { %3103 = vmatpush1.bf16.msra.mxu1 %v11476_v61  ;;  %v654_v61 = vld [vmem:[#allocation2 + $0xb18] sm:$0xff] }
 0x23d   :  { %3104 = vmatprep.subr.bf16.mxu1 %v11485_v0  ;;  %v11290_v0 = vcombine.low %v397_v46, %v401_v49  ;;  %v11549_v25 = vcombine.high %v654_v61, %v658_v63  ;;  %v461_v49 = vld [vmem:[#allocation2 + $0x510] sm:$0xff] }
 0x23e   :  { %2900 = vmatpush1.bf16.msra.mxu0 %v11226_v55  ;;  %v405_v55 = vld [vmem:[#allocation2 + $0x350] sm:$0xff] }
 0x23f   :  { %2901 = vmatprep.subr.bf16.mxu0 %v11235_v58  ;;  %v11532_v58 = vcombine.low %v638_v43, %v642_v59  ;;  %v11299_v4 = vcombine.high %v405_v55, %v409_v56  ;;  %v11298_v8 = vcombine.low %v405_v55, %v409_v56  ;;  %v457_v43 = vld [vmem:[#allocation2 + $0x4f0] sm:$0xff]  ;;  %v12821_v59 = vld [vmem:[#allocation4 + $0x8] ss:$16 sps:$4 sm:$0xff]   ;;  %v12832_v56 = vld [vmem:[#allocation4 + $0x6c] ss:$16 sps:$4 sm:$0xff]  }
 0x240   :  { %3105 = vmatpush1.bf16.msra.mxu1 %v11484_v6  ;;  %v662_v6 = vld [vmem:[#allocation2 + $0xb58] sm:$0xff] }
 0x241   :  { %3106 = vmatprep.subr.bf16.mxu1 %v11493_v7  ;;  %v666_v7 = vld [vmem:[#allocation2 + $0xb78] sm:$0xff] }
 0x242   :  { %2902 = vmatpush1.bf16.msra.mxu0 %v11234_v1  ;;  %v413_v1 = vld [vmem:[#allocation2 + $0x390] sm:$0xff]  ;;  %v11557_v15 = vcombine.high %v662_v6, %v666_v7  ;;  %v12827_v55 = vld [vmem:[#allocation4 + $0x48] ss:$16 sps:$4 sm:$0xff]  }
 0x243   :  { %2903 = vmatprep.subr.bf16.mxu0 %v11243_v5  ;;  %v11540_v5 = vcombine.low %v646_v2, %v650_v53  ;;  %v11307_v11 = vcombine.high %v413_v1, %v417_v3  ;;  %v11306_v17 = vcombine.low %v413_v1, %v417_v3  ;;  %v12829_v2 = vld [vmem:[#allocation4 + $0x4c] ss:$16 sps:$4 sm:$0xff]   ;;  %v473_v53 = vld [vmem:[#allocation2 + $0x570] sm:$0xff] }
 0x244   :  { %3107 = vmatpush1.bf16.msra.mxu1 %v11492_v14  ;;  %v670_v14 = vld [vmem:[#allocation2 + $0xb98] sm:$0xff]  ;;  %v485_v3 = vld [vmem:[#allocation2 + $0x5d0] sm:$0xff] }
 0x245   :  { %3108 = vmatprep.subr.bf16.mxu1 %v11501_v16  ;;  %v674_v16 = vld [vmem:[#allocation2 + $0xbb8] sm:$0xff] }
 0x246   :  { %2904 = vmatpush1.bf16.msra.mxu0 %v11242_v9  ;;  %v421_v9 = vld [vmem:[#allocation2 + $0x3d0] sm:$0xff]  ;;  %v11565_v23 = vcombine.high %v670_v14, %v674_v16 }
 0x247   :  { %2905 = vmatprep.subr.bf16.mxu0 %v11251_v13  ;;  %v11548_v13 = vcombine.low %v654_v61, %v658_v63  ;;  %v11315_v20 = vcombine.high %v421_v9, %v425_v10  ;;  %v11314_v26 = vcombine.low %v421_v9, %v425_v10  ;;  %v481_v61 = vld [vmem:[#allocation2 + $0x5b0] sm:$0xff]  ;;  %v12830_v63 = vld [vmem:[#allocation4 + $0x68] ss:$16 sps:$4 sm:$0xff]  }
 0x248   :  { %3109 = vmatpush1.bf16.msra.mxu1 %v11500_v22  ;;  %v678_v22 = vld [vmem:[#allocation2 + $0xbd8] sm:$0xff]  ;;  %v497_v9 = vld [vmem:[#allocation2 + $0x630] sm:$0xff] }
 0x249   :  { %3110 = vmatprep.subr.bf16.mxu1 %v11509_v24  ;;  %v682_v24 = vld [vmem:[#allocation2 + $0xbf8] sm:$0xff] }
 0x24a   :  { %2906 = vmatpush1.bf16.msra.mxu0 %v11250_v18  ;;  %v429_v18 = vld [vmem:[#allocation2 + $0x410] sm:$0xff]  ;;  %v11572_v48 = vcombine.low %v678_v22, %v682_v24 }
 0x24b   :  { %2907 = vmatprep.subr.bf16.mxu0 %v11259_v21  ;;  %v11556_v21 = vcombine.low %v662_v6, %v666_v7  ;;  %v11323_v31 = vcombine.high %v429_v18, %v433_v19  ;;  %v11322_v34 = vcombine.low %v429_v18, %v433_v19  ;;  %v12833_v6 = vld [vmem:[#allocation4 + $0x88] ss:$16 sps:$4 sm:$0xff]  }
 0x24c   :  { %3111 = vmatpush1.bf16.msra.mxu1 %v11508_v33  ;;  %v11573_v33 = vcombine.high %v678_v22, %v682_v24  ;;  %v12844_v22 = vld [vmem:[#allocation4 + $0xec] ss:$16 sps:$4 sm:$0xff]  }
 0x24d   :  { %3112 = vmatprep.subr.bf16.mxu1 %v11517_v35  ;;  %v445_v35 = vld [vmem:[#allocation2 + $0x490] sm:$0xff] }
 0x24e   :  { %2908 = vmatpush1.bf16.msra.mxu0 %v11258_v28  ;;  %v437_v28 = vld [vmem:[#allocation2 + $0x450] sm:$0xff] }
 0x24f   :  { %2909 = vmatprep.subr.bf16.mxu0 %v11267_v32  ;;  %v11564_v32 = vcombine.low %v670_v14, %v674_v16  ;;  %v11331_v36 = vcombine.high %v437_v28, %v441_v30  ;;  %v501_v16 = vld [vmem:[#allocation2 + $0x650] sm:$0xff] }
 0x250   :  { %3113 = vmatpush1.bf16.msra.mxu1 %v11516_v42  ;;  %v453_v42 = vld [vmem:[#allocation2 + $0x4d0] sm:$0xff] }
 0x251   :  { %3114 = vmatprep.subr.bf16.mxu1 %v11525_v44 }
 0x252   :  { %2910 = vmatpush1.bf16.msra.mxu0 %v11266_v37  ;;  %v449_v37 = vld [vmem:[#allocation2 + $0x4b0] sm:$0xff] }
 0x253   :  { %2911 = vmatprep.subr.bf16.mxu0 %v11275_v40  ;;  %v11330_v40 = vcombine.low %v437_v28, %v441_v30  ;;  %v11339_v44 = vcombine.high %v445_v35, %v449_v37  ;;  %v11338_v46 = vcombine.low %v445_v35, %v449_v37  ;;  %v513_v28 = vld [vmem:[#allocation2 + $0x6b0] sm:$0xff]  ;;  %v12850_v37 = vld [vmem:[#allocation4 + $0x12c] ss:$16 sps:$4 sm:$0xff]  }
 0x254   :  { %3115 = vmatpush1.bf16.msra.mxu1 %v11524_v51  ;;  %v12824_v51 = vld [vmem:[#allocation4 + $0x28] ss:$16 sps:$4 sm:$0xff]   ;;  %v521_v35 = vld [vmem:[#allocation2 + $0x6f0] sm:$0xff] }
 0x255   :  { %3116 = vmatprep.subr.bf16.mxu1 %v11533_v52  ;;  %v469_v52 = vld [vmem:[#allocation2 + $0x550] sm:$0xff] }
 0x256   :  { %2912 = vmatpush1.bf16.msra.mxu0 %v11274_v45  ;;  %v12826_v45 = vld [vmem:[#allocation4 + $0x2c] ss:$16 sps:$4 sm:$0xff]   ;;  %v11362_v1 = vcombine.low %v469_v52, %v473_v53 }
 0x257   :  { %2913 = vmatprep.subr.bf16.mxu0 %v11283_v50  ;;  %v465_v50 = vld [vmem:[#allocation2 + $0x530] sm:$0xff] }
 0x258   :  { %3117 = vmatpush1.bf16.msra.mxu1 %v11532_v58  ;;  %v477_v58 = vld [vmem:[#allocation2 + $0x590] sm:$0xff] }
 0x259   :  { %3118 = vmatprep.subr.bf16.mxu1 %v11541_v62  ;;  %v11363_v62 = vcombine.high %v469_v52, %v473_v53  ;;  %v11370_v7 = vcombine.low %v477_v58, %v481_v61  ;;  %v545_v52 = vld [vmem:[#allocation2 + $0x7b0] sm:$0xff]  ;;  %v12854_v53 = vld [vmem:[#allocation4 + $0x168] ss:$16 sps:$4 sm:$0xff]  }
 0x25a   :  { %2914 = vmatpush1.bf16.msra.mxu0 %v11282_v54  ;;  %v11355_v54 = vcombine.high %v461_v49, %v465_v50 }
 0x25b   :  { %2915 = vmatprep.subr.bf16.mxu0 %v11291_v57  ;;  %v11354_v57 = vcombine.low %v461_v49, %v465_v50  ;;  %v537_v49 = vld [vmem:[#allocation2 + $0x770] sm:$0xff]  ;;  %v12851_v50 = vld [vmem:[#allocation4 + $0x148] ss:$16 sps:$4 sm:$0xff]  }
 0x25c   :  { %3119 = vmatpush1.bf16.msra.mxu1 %v11540_v5  ;;  %v11371_v5 = vcombine.high %v477_v58, %v481_v61  ;;  %v553_v58 = vld [vmem:[#allocation2 + $0x7f0] sm:$0xff]  ;;  %v12857_v61 = vld [vmem:[#allocation4 + $0x188] ss:$16 sps:$4 sm:$0xff]  }
 0x25d   :  { %3120 = vmatprep.subr.bf16.mxu1 %v11549_v25  ;;  %v12838_v25 = vld [vmem:[#allocation4 + $0xac] ss:$16 sps:$4 sm:$0xff]  }
 0x25e   :  { %2916 = vmatpush1.bf16.msra.mxu0 %v11290_v0  ;;  %v12835_v0 = vld [vmem:[#allocation4 + $0x8c] ss:$16 sps:$4 sm:$0xff]  }
 0x25f   :  { %2917 = vmatprep.subr.bf16.mxu0 %v11299_v4  ;;  %v489_v4 = vld [vmem:[#allocation2 + $0x5f0] sm:$0xff] }
 0x260   :  { %3121 = vmatpush1.bf16.msra.mxu1 %v11548_v13  ;;  %v11379_v10 = vcombine.high %v485_v3, %v489_v4  ;;  %v12841_v13 = vld [vmem:[#allocation4 + $0xcc] ss:$16 sps:$4 sm:$0xff]  }
 0x261   :  { %3122 = vmatprep.subr.bf16.mxu1 %v11557_v15  ;;  %v11378_v15 = vcombine.low %v485_v3, %v489_v4  ;;  %v561_v3 = vld [vmem:[#allocation2 + $0x830] sm:$0xff]  ;;  %v12860_v4 = vld [vmem:[#allocation4 + $0x1a8] ss:$16 sps:$4 sm:$0xff]  }
 0x262   :  { %2918 = vmatpush1.bf16.msra.mxu0 %v11298_v8  ;;  %v493_v8 = vld [vmem:[#allocation2 + $0x610] sm:$0xff] }
 0x263   :  { %2919 = vmatprep.subr.bf16.mxu0 %v11307_v11  ;;  %v12836_v11 = vld [vmem:[#allocation4 + $0xa8] ss:$16 sps:$4 sm:$0xff]   ;;  %v11387_v19 = vcombine.high %v493_v8, %v497_v9  ;;  %v11386_v24 = vcombine.low %v493_v8, %v497_v9  ;;  %v569_v8 = vld [vmem:[#allocation2 + $0x870] sm:$0xff] }
 0x264   :  { %3123 = vmatpush1.bf16.msra.mxu1 %v11556_v21  ;;  %v12863_v9 = vld [vmem:[#allocation4 + $0x1c8] ss:$16 sps:$4 sm:$0xff]  }
 0x265   :  { %3124 = vmatprep.subr.bf16.mxu1 %v11565_v23 }
 0x266   :  { %2920 = vmatpush1.bf16.msra.mxu0 %v11306_v17  ;;  %v505_v17 = vld [vmem:[#allocation2 + $0x670] sm:$0xff] }
 0x267   :  { %2921 = vmatprep.subr.bf16.mxu0 %v11315_v20  ;;  %v12839_v20 = vld [vmem:[#allocation4 + $0xc8] ss:$16 sps:$4 sm:$0xff]   ;;  %v11395_v30 = vcombine.high %v501_v16, %v505_v17 }
 0x268   :  { %3125 = vmatpush1.bf16.msra.mxu1 %v11564_v32  ;;  %v12847_v32 = vld [vmem:[#allocation4 + $0x10c] ss:$16 sps:$4 sm:$0xff]  }
 0x269   :  { %3126 = vmatprep.subr.bf16.mxu1 %v11573_v33  ;;  %v11394_v33 = vcombine.low %v501_v16, %v505_v17  ;;  %v577_v16 = vld [vmem:[#allocation2 + $0x8b0] sm:$0xff] }
 0x26a   :  { %2922 = vmatpush1.bf16.msra.mxu0 %v11314_v26  ;;  %v509_v26 = vld [vmem:[#allocation2 + $0x690] sm:$0xff] }
 0x26b   :  { %2932 = vmatprep.subr.bf16.mxu0 %v11323_v31  ;;  %v12842_v31 = vld [vmem:[#allocation4 + $0xe8] ss:$16 sps:$4 sm:$0xff]  }
 0x26c   :  { %3127 = vmatpush1.bf16.msra.mxu1 %v11572_v48  ;;  %v11403_v48 = vcombine.high %v509_v26, %v513_v28 }
 0x26d   :  { %2924 = vmatmul.mubr.bf16.vlgmr.msra.gmra.mrb[8].mxu0 %v14775_v27  ;;  %4875 = vmatprep.subr.bf16.mxu1 %v12823_v39  ;;  %v11347_v27 = vcombine.high %v453_v42, %v457_v43  ;;  %v11402_v39 = vcombine.low %v509_v26, %v513_v28  ;;  %v589_v28 = vld [vmem:[#allocation2 + $0x910] sm:$0xff] }
 0x26e   :  { %2933 = vmatpush1.bf16.msra.mxu0 %v11322_v34  ;;  %2964 = vmatprep.mubr.bf16.mxu0 %v14765_v12  ;;  %v11346_v12 = vcombine.low %v453_v42, %v457_v43  ;;  %v517_v34 = vld [vmem:[#allocation2 + $0x6d0] sm:$0xff]  ;;  %v12848_v43 = vld [vmem:[#allocation4 + $0x128] ss:$16 sps:$4 sm:$0xff]  }
 0x26f   :  { %2934 = vmatprep.subr.bf16.mxu0 %v11331_v36  ;;  %3129 = vmatmul.mubr.bf16.vlgmr.msra.gmra.mrb[4].mxu1 %v14792_v60  ;;  %v12845_v36 = vld [vmem:[#allocation4 + $0x108] ss:$16 sps:$4 sm:$0xff]   ;;  %v529_v42 = vld [vmem:[#allocation2 + $0x730] sm:$0xff] }
 0x270   :  { %4876 = vmatpush1.bf16.msra.mxu1 %v12821_v59  ;;  %v11411_v59 = vcombine.high %v517_v34, %v521_v35 }
 0x271   :  { %4877 = vmatprep.subr.bf16.mxu1 %v12826_v45  ;;  %v11410_v45 = vcombine.low %v517_v34, %v521_v35  ;;  %v14814_v35 = vld [vmem:[#allocation15] sm:$0xff] }
 0x272   :  { %2935 = vmatpush1.bf16.msra.mxu0 %v11330_v40  ;;  %v525_v40 = vld [vmem:[#allocation2 + $0x710] sm:$0xff] }
 0x273   :  { %2936 = vmatprep.subr.bf16.mxu0 %v11339_v44  ;;  %v12853_v44 = vld [vmem:[#allocation4 + $0x14c] ss:$16 sps:$4 sm:$0xff]  }
 0x274   :  { %4878 = vmatpush1.bf16.msra.mxu1 %v12824_v51  ;;  %v11419_v51 = vcombine.high %v525_v40, %v529_v42 }
 0x275   :  { %4879 = vmatprep.subr.bf16.mxu1 %v12829_v2  ;;  %v11418_v2 = vcombine.low %v525_v40, %v529_v42 }
 0x276   :  { %2937 = vmatpush1.bf16.msra.mxu0 %v11338_v46  ;;  %v533_v46 = vld [vmem:[#allocation2 + $0x750] sm:$0xff] }
 0x277   :  { %2938 = vmatprep.subr.bf16.mxu0 %v11347_v27  ;;  %v12856_v27 = vld [vmem:[#allocation4 + $0x16c] ss:$16 sps:$4 sm:$0xff]  }
 0x278   :  { %4880 = vmatpush1.bf16.msra.mxu1 %v12827_v55  ;;  %v11427_v55 = vcombine.high %v533_v46, %v537_v49 }
 0x279   :  { %4881 = vmatprep.subr.bf16.mxu1 %v12832_v56  ;;  %v11426_v56 = vcombine.low %v533_v46, %v537_v49 }
 0x27a   :  { %2939 = vmatpush1.bf16.msra.mxu0 %v11346_v12  ;;  %v541_v12 = vld [vmem:[#allocation2 + $0x790] sm:$0xff] }
 0x27b   :  { %2940 = vmatprep.subr.bf16.mxu0 %v11355_v54  ;;  %v12859_v54 = vld [vmem:[#allocation4 + $0x18c] ss:$16 sps:$4 sm:$0xff]  }
 0x27c   :  { %4882 = vmatpush1.bf16.msra.mxu1 %v12830_v63  ;;  %v11435_v63 = vcombine.high %v541_v12, %v545_v52 }
 0x27d   :  { %4883 = vmatprep.subr.bf16.mxu1 %v12835_v0  ;;  %v11434_v0 = vcombine.low %v541_v12, %v545_v52  ;;  %v621_v52 = vld [vmem:[#allocation2 + $0xa10] sm:$0xff] }
 0x27e   :  { %2941 = vmatpush1.bf16.msra.mxu0 %v11354_v57  ;;  %v549_v57 = vld [vmem:[#allocation2 + $0x7d0] sm:$0xff] }
 0x27f   :  { %2942 = vmatprep.subr.bf16.mxu0 %v11363_v62  ;;  %v12862_v62 = vld [vmem:[#allocation4 + $0x1ac] ss:$16 sps:$4 sm:$0xff]  }
 0x280   :  { %4884 = vmatpush1.bf16.msra.mxu1 %v12833_v6  ;;  %v11443_v6 = vcombine.high %v549_v57, %v553_v58 }
 0x281   :  { %4885 = vmatprep.subr.bf16.mxu1 %v12838_v25  ;;  %v11442_v25 = vcombine.low %v549_v57, %v553_v58  ;;  %v12869_v58 = vld [vmem:[#allocation4 + $0x208] ss:$16 sps:$4 sm:$0xff]  }
 0x282   :  { %2943 = vmatpush1.bf16.msra.mxu0 %v11362_v1  ;;  %v14808_v14 = vpop.f32.mrb[0].mxu1  ;;  %v557_v1 = vld [vmem:[#allocation2 + $0x810] sm:$0xff] }
 0x283   :  { %2944 = vmatprep.subr.bf16.mxu0 %v11371_v5  ;;  %v14810_v18 = vpop.f32.mrb[1].mxu1  ;;  %v12865_v5 = vld [vmem:[#allocation4 + $0x1cc] ss:$16 sps:$4 sm:$0xff]  }
 0x284   :  { %4886 = vmatpush1.bf16.msra.mxu1 %v12836_v11  ;;  %v2888_v21 = vpop.f32.mrb[2].mxu1  ;;  %v11451_v11 = vcombine.high %v557_v1, %v561_v3 }
 0x285   :  { %4887 = vmatprep.subr.bf16.mxu1 %v12841_v13  ;;  %v2889_v23 = vpop.f32.mrb[3].mxu1  ;;  %v11450_v13 = vcombine.low %v557_v1, %v561_v3  ;;  %v633_v1 = vld [vmem:[#allocation2 + $0xa70] sm:$0xff] }
 0x286   :  { %2945 = vmatpush1.bf16.msra.mxu0 %v11370_v7  ;;  %v565_v7 = vld [vmem:[#allocation2 + $0x850] sm:$0xff] }
 0x287   :  { %2946 = vmatprep.subr.bf16.mxu0 %v11379_v10  ;;  %v12868_v10 = vld [vmem:[#allocation4 + $0x1ec] ss:$16 sps:$4 sm:$0xff]   ;;  %v11459_v17 = vcombine.high %v565_v7, %v569_v8  ;;  %v11458_v21 = vcombine.low %v565_v7, %v569_v8  ;;  %v585_v23 = vld [vmem:[#allocation2 + $0x8f0] sm:$0xff] }
 0x288   :  { %4888 = vmatpush1.bf16.msra.mxu1 %v12839_v20  ;;  %v12871_v20 = vld [vmem:[#allocation4 + $0x20c] ss:$16 sps:$4 sm:$0xff]   ;;  %v637_v7 = vld [vmem:[#allocation2 + $0xa90] sm:$0xff] }
 0x289   :  { %4889 = vmatprep.subr.bf16.mxu1 %v12844_v22  ;;  %v581_v22 = vld [vmem:[#allocation2 + $0x8d0] sm:$0xff] }
 0x28a   :  { %2947 = vmatpush1.bf16.msra.mxu0 %v11378_v15  ;;  %v573_v15 = vld [vmem:[#allocation2 + $0x890] sm:$0xff] }
 0x28b   :  { %2948 = vmatprep.subr.bf16.mxu0 %v11387_v19  ;;  %v12866_v19 = vld [vmem:[#allocation4 + $0x1e8] ss:$16 sps:$4 sm:$0xff]   ;;  %v11466_v26 = vcombine.low %v573_v15, %v577_v16  ;;  %v641_v8 = vld [vmem:[#allocation2 + $0xab0] sm:$0xff] }
 0x28c   :  { %4890 = vmatpush1.bf16.msra.mxu1 %v12842_v31  ;;  %v11475_v31 = vcombine.high %v581_v22, %v585_v23 }
 0x28d   :  { %4891 = vmatprep.subr.bf16.mxu1 %v12847_v32  ;;  %v11474_v32 = vcombine.low %v581_v22, %v585_v23  ;;  %v653_v22 = vld [vmem:[#allocation2 + $0xb10] sm:$0xff] }
 0x28e   :  { %2949 = vmatpush1.bf16.msra.mxu0 %v11386_v24  ;;  %v11467_v24 = vcombine.high %v573_v15, %v577_v16  ;;  %v645_v15 = vld [vmem:[#allocation2 + $0xad0] sm:$0xff] }
 0x28f   :  { %2950 = vmatprep.subr.bf16.mxu0 %v11395_v30  ;;  %v593_v30 = vld [vmem:[#allocation2 + $0x930] sm:$0xff] }
 0x290   :  { %4892 = vmatpush1.bf16.msra.mxu1 %v12845_v36  ;;  %v11483_v34 = vcombine.high %v589_v28, %v593_v30  ;;  %v11482_v36 = vcombine.low %v589_v28, %v593_v30  ;;  %v649_v16 = vld [vmem:[#allocation2 + $0xaf0] sm:$0xff]  ;;  %v12886_v28 = vld [vmem:[#allocation4 + $0x2ac] ss:$16 sps:$4 sm:$0xff]  }
 0x291   :  { %4893 = vmatprep.subr.bf16.mxu1 %v12850_v37  ;;  %v14820_v37 = vsub.s32 1, %v14744_v29  ;;  %v657_v23 = vld [vmem:[#allocation2 + $0xb30] sm:$0xff]  ;;  %v11538_v30 = vcombine.low %v645_v15, %v649_v16 }
 0x292   :  { %2951 = vmatpush1.bf16.msra.mxu0 %v11394_v33  ;;  %v597_v33 = vld [vmem:[#allocation2 + $0x950] sm:$0xff] }
 0x293   :  { %2952 = vmatprep.subr.bf16.mxu0 %v11403_v48  ;;  %v605_v48 = vld [vmem:[#allocation2 + $0x990] sm:$0xff] }
 0x294   :  { %4894 = vmatpush1.bf16.msra.mxu1 %v12848_v43  ;;  %v692_v43 = vrot.slane %v14814_v35, %v14820_v37 }
 0x295   :  { %4895 = vmatprep.subr.bf16.mxu1 %v12853_v44 }
 0x296   :  { %2953 = vmatpush1.bf16.msra.mxu0 %v11402_v39  ;;  %v609_v39 = vld [vmem:[#allocation2 + $0x9b0] sm:$0xff] }
 0x297   :  { %2954 = vmatprep.subr.bf16.mxu0 %v11411_v59  ;;  %v613_v59 = vld [vmem:[#allocation2 + $0x9d0] sm:$0xff]  ;;  %v11499_v46 = vcombine.high %v605_v48, %v609_v39  ;;  %v11498_v12 = vcombine.low %v605_v48, %v609_v39 }
 0x298   :  { %4896 = vmatpush1.bf16.msra.mxu1 %v12851_v50  ;;  %v669_v48 = vld [vmem:[#allocation2 + $0xb90] sm:$0xff] }
 0x299   :  { %4897 = vmatprep.subr.bf16.mxu1 %v12856_v27  ;;  %v673_v39 = vld [vmem:[#allocation2 + $0xbb0] sm:$0xff] }
 0x29a   :  { %2955 = vmatpush1.bf16.msra.mxu0 %v11410_v45  ;;  %v617_v45 = vld [vmem:[#allocation2 + $0x9f0] sm:$0xff] }
 0x29b   :  { %2956 = vmatprep.subr.bf16.mxu0 %v11419_v51 }
 0x29c   :  { %4898 = vmatpush1.bf16.msra.mxu1 %v12854_v53  ;;  %v625_v53 = vld [vmem:[#allocation2 + $0xa30] sm:$0xff] }
 0x29d   :  { %4899 = vmatprep.subr.bf16.mxu1 %v12859_v54 }
 0x29e   :  { %2957 = vmatpush1.bf16.msra.mxu0 %v11418_v2 }
 0x29f   :  { %2958 = vmatprep.subr.bf16.mxu0 %v11427_v55 }
 0x2a0   :  { %4900 = vmatpush1.bf16.msra.mxu1 %v12857_v61  ;;  %v12874_v61 = vld [vmem:[#allocation4 + $0x22c] ss:$16 sps:$4 sm:$0xff]  }
 0x2a1   :  { %4901 = vmatprep.subr.bf16.mxu1 %v12862_v62 }
 0x2a2   :  { %2959 = vmatpush1.bf16.msra.mxu0 %v11426_v56  ;;  %v11507_v56 = vcombine.high %v613_v59, %v617_v45 }
 0x2a3   :  { %2960 = vmatprep.subr.bf16.mxu0 %v11435_v63  ;;  %v11506_v63 = vcombine.low %v613_v59, %v617_v45  ;;  %v677_v59 = vld [vmem:[#allocation2 + $0xbd0] sm:$0xff] }
 0x2a4   :  { %4902 = vmatpush1.bf16.msra.mxu1 %v12860_v4  ;;  %v11515_v4 = vcombine.high %v621_v52, %v625_v53  ;;  %v681_v45 = vld [vmem:[#allocation2 + $0xbf0] sm:$0xff] }
 0x2a5   :  { %4903 = vmatprep.subr.bf16.mxu1 %v12865_v5  ;;  %v12872_v5 = vld [vmem:[#allocation4 + $0x228] ss:$16 sps:$4 sm:$0xff]  }
 0x2a6   :  { %2961 = vmatpush1.bf16.msra.mxu0 %v11434_v0  ;;  %v629_v0 = vld [vmem:[#allocation2 + $0xa50] sm:$0xff] }
 0x2a7   :  { %2962 = vmatprep.subr.bf16.mxu0 %v11443_v6  ;;  %v12877_v6 = vld [vmem:[#allocation4 + $0x24c] ss:$16 sps:$4 sm:$0xff]  }
 0x2a8   :  { %4904 = vmatpush1.bf16.msra.mxu1 %v12863_v9  ;;  %v11523_v9 = vcombine.high %v629_v0, %v633_v1 }
 0x2a9   :  { %4905 = vmatprep.subr.bf16.mxu1 %v12868_v10  ;;  %v12875_v10 = vld [vmem:[#allocation4 + $0x248] ss:$16 sps:$4 sm:$0xff]  }
 0x2aa   :  { %2963 = vmatpush1.bf16.msra.mxu0 %v11442_v25  ;;  %v11514_v25 = vcombine.low %v621_v52, %v625_v53  ;;  %v12898_v52 = vld [vmem:[#allocation4 + $0x4] ss:$16 sps:$4 sm:$0xff]   ;;  %v12901_v53 = vld [vmem:[#allocation4 + $0x32c] ss:$16 sps:$4 sm:$0xff]  }
 0x2ab   :  { %2973 = vmatprep.subr.bf16.mxu0 %v11451_v11  ;;  %v12880_v11 = vld [vmem:[#allocation4 + $0x26c] ss:$16 sps:$4 sm:$0xff]  }
 0x2ac   :  { %4906 = vmatpush1.bf16.msra.mxu1 %v12866_v19  ;;  %v12878_v19 = vld [vmem:[#allocation4 + $0x268] ss:$16 sps:$4 sm:$0xff]  }
 0x2ad   :  { %2965 = vmatmul.mubr.bf16.vlgmr.msra.gmra.mrb[8].mxu0 %v14782_v41  ;;  %4916 = vmatprep.subr.bf16.mxu1 %v12871_v20  ;;  %v601_v41 = vld [vmem:[#allocation2 + $0x970] sm:$0xff]  ;;  %v12883_v20 = vld [vmem:[#allocation4 + $0x28c] ss:$16 sps:$4 sm:$0xff]  }
 0x2ae   :  { %2974 = vmatpush1.bf16.msra.mxu0 %v11450_v13  ;;  %3005 = vmatprep.mubr.bf16.mxu0 %v14785_v47  ;;  %v14817_v47 = vsub.s32 0, %v14744_v29  ;;  %v11491_v40 = vcombine.high %v597_v33, %v601_v41  ;;  %v11490_v44 = vcombine.low %v597_v33, %v601_v41  ;;  %v11522_v13 = vcombine.low %v629_v0, %v633_v1  ;;  %v12884_v41 = vld [vmem:[#allocation4 + $0x2a8] ss:$16 sps:$4 sm:$0xff]   ;;  %v12913_v0 = vld [vmem:[#allocation4 + $0x36c] ss:$16 sps:$4 sm:$0xff]  }
 0x2af   :  { %2975 = vmatprep.subr.bf16.mxu0 %v11459_v17  ;;  %v11531_v17 = vcombine.high %v637_v7, %v641_v8  ;;  %v11547_v33 = vcombine.high %v653_v22, %v657_v23  ;;  %v12908_v1 = vld [vmem:[#allocation4 + $0x40] ss:$16 sps:$4 sm:$0xff]  }
 0x2b0   :  { %v688_v42 = vrot.slane %v14814_v35, %v14817_v47 }
 0x2b2   :  { %2976 = vmatpush1.bf16.msra.mxu0 %v11458_v21  ;;  %v11530_v21 = vcombine.low %v637_v7, %v641_v8  ;;  %v12925_v7 = vld [vmem:[#allocation4 + $0x3ac] ss:$16 sps:$4 sm:$0xff]   ;;  %v14835_v8 = vsub.s32 2, %v14744_v29 }
 0x2b3   :  { %2977 = vmatprep.subr.bf16.mxu0 %v11467_v24  ;;  %v11539_v24 = vcombine.high %v645_v15, %v649_v16  ;;  %v12931_v15 = vld [vmem:[#allocation4 + $0x3cc] ss:$16 sps:$4 sm:$0xff]  }
 0x2b4   :  { %v696_v16 = vrot.slane %v14814_v35, %v14835_v8 }
 0x2b6   :  { %2978 = vmatpush1.bf16.msra.mxu0 %v11466_v26  ;;  %v12881_v26 = vld [vmem:[#allocation4 + $0x288] ss:$16 sps:$4 sm:$0xff]  }
 0x2b7   :  { %2979 = vmatprep.subr.bf16.mxu0 %v11475_v31  ;;  %v661_v31 = vld [vmem:[#allocation2 + $0xb50] sm:$0xff] }
 0x2ba   :  { %2980 = vmatpush1.bf16.msra.mxu0 %v11474_v32  ;;  %v665_v32 = vld [vmem:[#allocation2 + $0xb70] sm:$0xff] }
 0x2bb   :  { %2981 = vmatprep.subr.bf16.mxu0 %v11483_v34  ;;  %v12889_v34 = vld [vmem:[#allocation4 + $0x2cc] ss:$16 sps:$4 sm:$0xff]  }
 0x2be   :  { %2982 = vmatpush1.bf16.msra.mxu0 %v11482_v36  ;;  %v11546_v36 = vcombine.low %v653_v22, %v657_v23  ;;  %v12937_v23 = vld [vmem:[#allocation4 + $0x3ec] ss:$16 sps:$4 sm:$0xff]  }
 0x2bf   :  { %2983 = vmatprep.subr.bf16.mxu0 %v11491_v40  ;;  %v11555_v40 = vcombine.high %v661_v31, %v665_v32 }
 0x2c0   :  { %v2761_v49 = vpop.f32.mrb[0].mxu0 }
 0x2c1   :  { %v12654_v50 = vadd.f32 %v2761_v49, %v688_v42  ;;  %v2763_v27 = vpop.f32.mrb[1].mxu0  ;;  %v12887_v42 = vld [vmem:[#allocation4 + $0x2c8] ss:$16 sps:$4 sm:$0xff]   ;;  %v11562_v49 = vcombine.low %v669_v48, %v673_v39 }
 0x2c2   :  { %v12655_v51 = vadd.f32 %v2763_v27, %v692_v43  ;;  %v2765_v2 = vpop.f32.mrb[2].mxu0  ;;  %2984 = vmatpush1.bf16.msra.mxu0 %v11490_v44  ;;  %v12892_v43 = vld [vmem:[#allocation4 + $0x2ec] ss:$16 sps:$4 sm:$0xff]   ;;  %v11554_v44 = vcombine.low %v661_v31, %v665_v32  ;;  %v12932_v31 = vld [vmem:[#allocation4 + $0xc0] ss:$16 sps:$4 sm:$0xff]  }
 0x2c3   :  { %v3137_v54 = vmax.f32 %v12654_v50, 0.0  ;;  %v2766_v55 = vpop.f32.mrb[3].mxu0  ;;  %2985 = vmatprep.subr.bf16.mxu0 %v11499_v46  ;;  %v11563_v46 = vcombine.high %v669_v48, %v673_v39  ;;  %v12890_v50 = vld [vmem:[#allocation4 + $0x2e8] ss:$16 sps:$4 sm:$0xff]   ;;  %v12895_v27 = vld [vmem:[#allocation4 + $0x30c] ss:$16 sps:$4 sm:$0xff]   ;;  %v11570_v2 = vcombine.low %v677_v59, %v681_v45 }
 0x2c4   :  { %v3138_v57 = vmax.f32 %v12655_v51, 0.0  ;;  %v11571_v51 = vcombine.high %v677_v59, %v681_v45  ;;  %v12899_v55 = vld [vmem:[#allocation4 + $0x328] ss:$16 sps:$4 sm:$0xff]   ;;  %v13024_v59 = vld [vmem:[#allocation4 + $0x42c] ss:$16 sps:$4 sm:$0xff]  }
 0x2c5   :  { %v14828_v3 = vpack.c.bf16 %v3137_v54, %v3137_v54  ;;  %v12896_v54 = vld [vmem:[#allocation4] ss:$16 sps:$4 sm:$0xff]   ;;  %v12946_v45 = vld [vmem:[#allocation4 + $0x124] ss:$16 sps:$4 sm:$0xff]  }
 0x2c6   :  { %v14826_v62 = vpack.c.bf16 %v3138_v57, %v3138_v57  ;;  %2986 = vmatpush1.bf16.msra.mxu0 %v11498_v12  ;;  %v12893_v12 = vld [vmem:[#allocation4 + $0x308] ss:$16 sps:$4 sm:$0xff]   ;;  %v12907_v57 = vld [vmem:[#allocation4 + $0x34c] ss:$16 sps:$4 sm:$0xff]  }
 0x2c7   :  { %2987 = vmatprep.subr.bf16.mxu0 %v11507_v56  ;;  %v12904_v56 = vld [vmem:[#allocation4 + $0x24] ss:$16 sps:$4 sm:$0xff]  }
 0x2c8   :  { %4907 = vmatprep.mubr.bf16.mxu1 %v14826_v62 }
 0x2c9   :  { %4908 = vmatmul.mubr.bf16.vlgmr.msra.gmra.mrb[8].mxu1 %v14828_v3 }
 0x2ca   :  { %2988 = vmatpush1.bf16.msra.mxu0 %v11506_v63  ;;  %4917 = vmatpush1.bf16.msra.mxu1 %v12869_v58  ;;  %v12902_v58 = vld [vmem:[#allocation4 + $0x20] ss:$16 sps:$4 sm:$0xff]   ;;  %v12910_v63 = vld [vmem:[#allocation4 + $0x44] ss:$16 sps:$4 sm:$0xff]  }
 0x2cb   :  { %2989 = vmatprep.subr.bf16.mxu0 %v11515_v4  ;;  %4918 = vmatprep.subr.bf16.mxu1 %v12874_v61  ;;  %v12905_v61 = vld [vmem:[#allocation4 + $0x348] ss:$16 sps:$4 sm:$0xff]  }
 0x2cc   :  { %v12911_v4 = vld [vmem:[#allocation4 + $0x368] ss:$16 sps:$4 sm:$0xff]  }
 0x2ce   :  { %2990 = vmatpush1.bf16.msra.mxu0 %v11514_v25  ;;  %4919 = vmatpush1.bf16.msra.mxu1 %v12872_v5  ;;  %v12916_v5 = vld [vmem:[#allocation4 + $0x64] ss:$16 sps:$4 sm:$0xff]  }
 0x2cf   :  { %2991 = vmatprep.subr.bf16.mxu0 %v11523_v9  ;;  %4920 = vmatprep.subr.bf16.mxu1 %v12877_v6  ;;  %v12919_v6 = vld [vmem:[#allocation4 + $0x38c] ss:$16 sps:$4 sm:$0xff]   ;;  %v12922_v25 = vld [vmem:[#allocation4 + $0x84] ss:$16 sps:$4 sm:$0xff]   ;;  %v12920_v9 = vld [vmem:[#allocation4 + $0x80] ss:$16 sps:$4 sm:$0xff]  }
 0x2d2   :  { %2992 = vmatpush1.bf16.msra.mxu0 %v11522_v13  ;;  %4921 = vmatpush1.bf16.msra.mxu1 %v12875_v10  ;;  %v14838_v10 = vsub.s32 3, %v14744_v29  ;;  %v12928_v13 = vld [vmem:[#allocation4 + $0xa4] ss:$16 sps:$4 sm:$0xff]  }
 0x2d3   :  { %2993 = vmatprep.subr.bf16.mxu0 %v11531_v17  ;;  %4922 = vmatprep.subr.bf16.mxu1 %v12880_v11  ;;  %v12923_v11 = vld [vmem:[#allocation4 + $0x3a8] ss:$16 sps:$4 sm:$0xff]  }
 0x2d4   :  { %v700_v17 = vrot.slane %v14814_v35, %v14838_v10  ;;  %v12935_v35 = vld [vmem:[#allocation4 + $0x3e8] ss:$16 sps:$4 sm:$0xff]  }
 0x2d6   :  { %2994 = vmatpush1.bf16.msra.mxu0 %v11530_v21  ;;  %4923 = vmatpush1.bf16.msra.mxu1 %v12878_v19  ;;  %v12926_v19 = vld [vmem:[#allocation4 + $0xa0] ss:$16 sps:$4 sm:$0xff]   ;;  %v12934_v21 = vld [vmem:[#allocation4 + $0xc4] ss:$16 sps:$4 sm:$0xff]  }
 0x2d7   :  { %2995 = vmatprep.subr.bf16.mxu0 %v11539_v24  ;;  %4924 = vmatprep.subr.bf16.mxu1 %v12883_v20  ;;  %v12929_v20 = vld [vmem:[#allocation4 + $0x3c8] ss:$16 sps:$4 sm:$0xff]  }
 0x2da   :  { %2996 = vmatpush1.bf16.msra.mxu0 %v11538_v30  ;;  %4925 = vmatpush1.bf16.msra.mxu1 %v12881_v26 }
 0x2db   :  { %2997 = vmatprep.subr.bf16.mxu0 %v11547_v33  ;;  %4926 = vmatprep.subr.bf16.mxu1 %v12886_v28 }
 0x2de   :  { %2998 = vmatpush1.bf16.msra.mxu0 %v11546_v36  ;;  %4927 = vmatpush1.bf16.msra.mxu1 %v12884_v41  ;;  %v12940_v41 = vld [vmem:[#allocation4 + $0xe4] ss:$16 sps:$4 sm:$0xff]   ;;  %v13018_v36 = vld [vmem:[#allocation4 + $0x40c] ss:$16 sps:$4 sm:$0xff]  }
 0x2df   :  { %2999 = vmatprep.subr.bf16.mxu0 %v11555_v40  ;;  %4928 = vmatprep.subr.bf16.mxu1 %v12889_v34  ;;  %v12938_v40 = vld [vmem:[#allocation4 + $0xe0] ss:$16 sps:$4 sm:$0xff]  }
 0x2e2   :  { %3000 = vmatpush1.bf16.msra.mxu0 %v11554_v44  ;;  %4929 = vmatpush1.bf16.msra.mxu1 %v12887_v42  ;;  %v12943_v42 = vld [vmem:[#allocation4 + $0x104] ss:$16 sps:$4 sm:$0xff]   ;;  %v13016_v44 = vld [vmem:[#allocation4 + $0x408] ss:$16 sps:$4 sm:$0xff]  }
 0x2e3   :  { %3001 = vmatprep.subr.bf16.mxu0 %v11563_v46  ;;  %4930 = vmatprep.subr.bf16.mxu1 %v12892_v43  ;;  %v13022_v46 = vld [vmem:[#allocation4 + $0x428] ss:$16 sps:$4 sm:$0xff]  }
 0x2e6   :  { %3002 = vmatpush1.bf16.msra.mxu0 %v11562_v49  ;;  %4931 = vmatpush1.bf16.msra.mxu1 %v12890_v50  ;;  %v13030_v49 = vld [vmem:[#allocation4 + $0x44c] ss:$16 sps:$4 sm:$0xff]   ;;  %v12944_v50 = vld [vmem:[#allocation4 + $0x120] ss:$16 sps:$4 sm:$0xff]  }
 0x2e7   :  { %3003 = vmatprep.subr.bf16.mxu0 %v11571_v51  ;;  %4932 = vmatprep.subr.bf16.mxu1 %v12895_v27  ;;  %v12949_v27 = vld [vmem:[#allocation4 + $0x144] ss:$16 sps:$4 sm:$0xff]   ;;  %v13028_v51 = vld [vmem:[#allocation4 + $0x448] ss:$16 sps:$4 sm:$0xff]  }
 0x2ea   :  { %3004 = vmatpush1.bf16.msra.mxu0 %v11570_v2  ;;  %4933 = vmatpush1.bf16.msra.mxu1 %v12893_v12  ;;  %v13036_v2 = vld [vmem:[#allocation4 + $0x46c] ss:$16 sps:$4 sm:$0xff]   ;;  %v12947_v12 = vld [vmem:[#allocation4 + $0x140] ss:$16 sps:$4 sm:$0xff]  }
 0x2eb   :  { %4711 = vmatprep.subr.bf16.mxu0 %v12898_v52  ;;  %4934 = vmatprep.subr.bf16.mxu1 %v12901_v53  ;;  %v12952_v52 = vld [vmem:[#allocation4 + $0x164] ss:$16 sps:$4 sm:$0xff]   ;;  %v13034_v53 = vld [vmem:[#allocation4 + $0x468] ss:$16 sps:$4 sm:$0xff]  }
 0x2ed   :  { %3006 = vmatmul.mubr.bf16.vlgmr.msra.gmra.mrb[8].mxu0 %v14792_v60  ;;  %v12914_v60 = vld [vmem:[#allocation4 + $0x60] ss:$16 sps:$4 sm:$0xff]  }
 0x2ee   :  { %4712 = vmatpush1.bf16.msra.mxu0 %v12896_v54  ;;  %4743 = vmatprep.mubr.bf16.mxu0 %v14826_v62  ;;  %v12917_v62 = vld [vmem:[#allocation4 + $0x388] ss:$16 sps:$4 sm:$0xff]   ;;  %v13042_v54 = vld [vmem:[#allocation4 + $0x48c] ss:$16 sps:$4 sm:$0xff]  }
 0x2ef   :  { %4935 = vmatpush1.bf16.msra.mxu1 %v12899_v55  ;;  %4713 = vmatprep.subr.bf16.mxu0 %v12904_v56  ;;  %v12950_v55 = vld [vmem:[#allocation4 + $0x160] ss:$16 sps:$4 sm:$0xff]   ;;  %v12955_v56 = vld [vmem:[#allocation4 + $0x184] ss:$16 sps:$4 sm:$0xff]  }
 0x2f0   :  { %4936 = vmatprep.subr.bf16.mxu1 %v12907_v57  ;;  %v13040_v57 = vld [vmem:[#allocation4 + $0x488] ss:$16 sps:$4 sm:$0xff]  }
 0x2f2   :  { %4714 = vmatpush1.bf16.msra.mxu0 %v12902_v58  ;;  %v13048_v58 = vld [vmem:[#allocation4 + $0x4ac] ss:$16 sps:$4 sm:$0xff]  }
 0x2f3   :  { %4937 = vmatpush1.bf16.msra.mxu1 %v12905_v61  ;;  %4715 = vmatprep.subr.bf16.mxu0 %v12910_v63  ;;  %v12953_v61 = vld [vmem:[#allocation4 + $0x180] ss:$16 sps:$4 sm:$0xff]   ;;  %v12958_v63 = vld [vmem:[#allocation4 + $0x1a4] ss:$16 sps:$4 sm:$0xff]  }
 0x2f4   :  { %4938 = vmatprep.subr.bf16.mxu1 %v12913_v0  ;;  %v13046_v0 = vld [vmem:[#allocation4 + $0x4a8] ss:$16 sps:$4 sm:$0xff]  }
 0x2f6   :  { %4716 = vmatpush1.bf16.msra.mxu0 %v12908_v1  ;;  %v13054_v1 = vld [vmem:[#allocation4 + $0x4cc] ss:$16 sps:$4 sm:$0xff]  }
 0x2f7   :  { %4939 = vmatpush1.bf16.msra.mxu1 %v12911_v4  ;;  %4717 = vmatprep.subr.bf16.mxu0 %v12916_v5  ;;  %v12956_v4 = vld [vmem:[#allocation4 + $0x1a0] ss:$16 sps:$4 sm:$0xff]   ;;  %v12961_v5 = vld [vmem:[#allocation4 + $0x1c4] ss:$16 sps:$4 sm:$0xff]  }
 0x2f8   :  { %4940 = vmatprep.subr.bf16.mxu1 %v12919_v6  ;;  %v13052_v6 = vld [vmem:[#allocation4 + $0x4c8] ss:$16 sps:$4 sm:$0xff]  }
 0x2fa   :  { %4718 = vmatpush1.bf16.msra.mxu0 %v12914_v60  ;;  %v13060_v60 = vld [vmem:[#allocation4 + $0x4ec] ss:$16 sps:$4 sm:$0xff]  }
 0x2fb   :  { %4941 = vmatpush1.bf16.msra.mxu1 %v12917_v62  ;;  %4719 = vmatprep.subr.bf16.mxu0 %v12922_v25  ;;  %v12959_v62 = vld [vmem:[#allocation4 + $0x1c0] ss:$16 sps:$4 sm:$0xff]   ;;  %v12964_v25 = vld [vmem:[#allocation4 + $0x1e4] ss:$16 sps:$4 sm:$0xff]  }
 0x2fc   :  { %4942 = vmatprep.subr.bf16.mxu1 %v12925_v7  ;;  %v13058_v7 = vld [vmem:[#allocation4 + $0x4e8] ss:$16 sps:$4 sm:$0xff]  }
 0x2fe   :  { %4720 = vmatpush1.bf16.msra.mxu0 %v12920_v9  ;;  %v13066_v9 = vld [vmem:[#allocation4 + $0x50c] ss:$16 sps:$4 sm:$0xff]  }
 0x2ff   :  { %4943 = vmatpush1.bf16.msra.mxu1 %v12923_v11  ;;  %4721 = vmatprep.subr.bf16.mxu0 %v12928_v13  ;;  %v12962_v11 = vld [vmem:[#allocation4 + $0x1e0] ss:$16 sps:$4 sm:$0xff]   ;;  %v12967_v13 = vld [vmem:[#allocation4 + $0x204] ss:$16 sps:$4 sm:$0xff]  }
 0x300   :  { %v2802_v22 = vpop.f32.mrb[4].mxu0  ;;  %4944 = vmatprep.subr.bf16.mxu1 %v12931_v15  ;;  %v13064_v15 = vld [vmem:[#allocation4 + $0x508] ss:$16 sps:$4 sm:$0xff]  }
 0x301   :  { %v2803_v24 = vadd.f32 %v2802_v22, %v696_v16  ;;  %v2804_v26 = vpop.f32.mrb[5].mxu0  ;;  %v13072_v16 = vld [vmem:[#allocation4 + $0x52c] ss:$16 sps:$4 sm:$0xff]   ;;  %v12968_v22 = vld [vmem:[#allocation4 + $0x220] ss:$16 sps:$4 sm:$0xff]  }
 0x302   :  { %v2805_v28 = vadd.f32 %v2804_v26, %v700_v17  ;;  %v2806_v30 = vpop.f32.mrb[6].mxu0  ;;  %4722 = vmatpush1.bf16.msra.mxu0 %v12926_v19  ;;  %v12965_v17 = vld [vmem:[#allocation4 + $0x200] ss:$16 sps:$4 sm:$0xff]   ;;  %v12970_v19 = vld [vmem:[#allocation4 + $0x224] ss:$16 sps:$4 sm:$0xff]  }
 0x303   :  { %v12657_v32 = vadd.f32 %v14808_v14, %v2803_v24  ;;  %v2807_v33 = vpop.f32.mrb[7].mxu0  ;;  %4945 = vmatpush1.bf16.msra.mxu1 %v12929_v20  ;;  %4723 = vmatprep.subr.bf16.mxu0 %v12934_v21  ;;  %v13070_v20 = vld [vmem:[#allocation4 + $0x528] ss:$16 sps:$4 sm:$0xff]   ;;  %v13078_v21 = vld [vmem:[#allocation4 + $0x54c] ss:$16 sps:$4 sm:$0xff]  }
 0x304   :  { %v12659_v34 = vadd.f32 %v14810_v18, %v2805_v28  ;;  %4946 = vmatprep.subr.bf16.mxu1 %v12937_v23  ;;  %v12941_v18 = vld [vmem:[#allocation4 + $0x100] ss:$16 sps:$4 sm:$0xff]   ;;  %v12973_v23 = vld [vmem:[#allocation4 + $0x244] ss:$16 sps:$4 sm:$0xff]   ;;  %v13076_v24 = vld [vmem:[#allocation4 + $0x548] ss:$16 sps:$4 sm:$0xff]  }
 0x305   :  { %v3139_v48 = vmax.f32 %v12657_v32, 0.0  ;;  %v13084_v26 = vld [vmem:[#allocation4 + $0x56c] ss:$16 sps:$4 sm:$0xff]   ;;  %v12971_v28 = vld [vmem:[#allocation4 + $0x240] ss:$16 sps:$4 sm:$0xff]  }
 0x306   :  { %v3140_v39 = vmax.f32 %v12659_v34, 0.0  ;;  %4724 = vmatpush1.bf16.msra.mxu0 %v12932_v31  ;;  %v12976_v30 = vld [vmem:[#allocation4 + $0x264] ss:$16 sps:$4 sm:$0xff]   ;;  %v13082_v31 = vld [vmem:[#allocation4 + $0x568] ss:$16 sps:$4 sm:$0xff]  }
 0x307   :  { %4947 = vmatpush1.bf16.msra.mxu1 %v12935_v35  ;;  %4725 = vmatprep.subr.bf16.mxu0 %v12940_v41  ;;  %v14848_v14 = vpack.c.bf16 %v3139_v48, %v3139_v48  ;;  %v12974_v32 = vld [vmem:[#allocation4 + $0x260] ss:$16 sps:$4 sm:$0xff]   ;;  %v12979_v33 = vld [vmem:[#allocation4 + $0x284] ss:$16 sps:$4 sm:$0xff]   ;;  %v13088_v35 = vld [vmem:[#allocation4 + $0x588] ss:$16 sps:$4 sm:$0xff]  }
 0x308   :  { %v14846_v43 = vpack.c.bf16 %v3140_v39, %v3140_v39  ;;  %4957 = vmatprep.subr.bf16.mxu1 %v13018_v36  ;;  %v13096_v41 = vld [vmem:[#allocation4 + $0x5ac] ss:$16 sps:$4 sm:$0xff]   ;;  %v12977_v34 = vld [vmem:[#allocation4 + $0x280] ss:$16 sps:$4 sm:$0xff]   ;;  %v12982_v36 = vld [vmem:[#allocation4 + $0x2a4] ss:$16 sps:$4 sm:$0xff]  }
 0x309   :  { %v13094_v48 = vld [vmem:[#allocation4 + $0x5a8] ss:$16 sps:$4 sm:$0xff]   ;;  %v12980_v39 = vld [vmem:[#allocation4 + $0x2a0] ss:$16 sps:$4 sm:$0xff]  }
 0x30a   :  { %4726 = vmatpush1.bf16.msra.mxu0 %v12938_v40  ;;  %4948 = vmatprep.mubr.bf16.mxu1 %v14846_v43  ;;  %v13102_v40 = vld [vmem:[#allocation4 + $0x5cc] ss:$16 sps:$4 sm:$0xff]  }
 0x30b   :  { %4949 = vmatmul.mubr.bf16.vlgmr.msra.gmra.mrb[8].mxu1 %v14848_v14  ;;  %4727 = vmatprep.subr.bf16.mxu0 %v12943_v42  ;;  %v12985_v42 = vld [vmem:[#allocation4 + $0x2c4] ss:$16 sps:$4 sm:$0xff]  }
 0x30c   :  { %4958 = vmatpush1.bf16.msra.mxu1 %v13016_v44  ;;  %v12983_v44 = vld [vmem:[#allocation4 + $0x2c0] ss:$16 sps:$4 sm:$0xff]  }
 0x30d   :  { %4959 = vmatprep.subr.bf16.mxu1 %v13024_v59  ;;  %v13108_v59 = vld [vmem:[#allocation4 + $0x5ec] ss:$16 sps:$4 sm:$0xff]  }
 0x30e   :  { %4728 = vmatpush1.bf16.msra.mxu0 %v12941_v18  ;;  %v12988_v18 = vld [vmem:[#allocation4 + $0x2e4] ss:$16 sps:$4 sm:$0xff]  }
 0x30f   :  { %4729 = vmatprep.subr.bf16.mxu0 %v12946_v45  ;;  %v13106_v45 = vld [vmem:[#allocation4 + $0x5e8] ss:$16 sps:$4 sm:$0xff]  }
 0x310   :  { %4960 = vmatpush1.bf16.msra.mxu1 %v13022_v46 }
 0x311   :  { %4961 = vmatprep.subr.bf16.mxu1 %v13030_v49  ;;  %v12986_v49 = vld [vmem:[#allocation4 + $0x2e0] ss:$16 sps:$4 sm:$0xff]  }
 0x312   :  { %4730 = vmatpush1.bf16.msra.mxu0 %v12944_v50 }
 0x313   :  { %4731 = vmatprep.subr.bf16.mxu0 %v12949_v27  ;;  %v13114_v27 = vld [vmem:[#allocation4 + $0x60c] ss:$16 sps:$4 sm:$0xff]  }
 0x314   :  { %4962 = vmatpush1.bf16.msra.mxu1 %v13028_v51  ;;  %v12991_v51 = vld [vmem:[#allocation4 + $0x304] ss:$16 sps:$4 sm:$0xff]  }
 0x315   :  { %4963 = vmatprep.subr.bf16.mxu1 %v13036_v2 }
 0x316   :  { %4732 = vmatpush1.bf16.msra.mxu0 %v12947_v12 }
 0x317   :  { %4733 = vmatprep.subr.bf16.mxu0 %v12952_v52  ;;  %v12989_v52 = vld [vmem:[#allocation4 + $0x300] ss:$16 sps:$4 sm:$0xff]  }
 0x318   :  { %4964 = vmatpush1.bf16.msra.mxu1 %v13034_v53  ;;  %v12994_v53 = vld [vmem:[#allocation4 + $0x324] ss:$16 sps:$4 sm:$0xff]  }
 0x319   :  { %4965 = vmatprep.subr.bf16.mxu1 %v13042_v54  ;;  %v12992_v54 = vld [vmem:[#allocation4 + $0x320] ss:$16 sps:$4 sm:$0xff]  }
 0x31a   :  { %4734 = vmatpush1.bf16.msra.mxu0 %v12950_v55  ;;  %v12997_v55 = vld [vmem:[#allocation4 + $0x344] ss:$16 sps:$4 sm:$0xff]  }
 0x31b   :  { %4735 = vmatprep.subr.bf16.mxu0 %v12955_v56  ;;  %v12995_v56 = vld [vmem:[#allocation4 + $0x340] ss:$16 sps:$4 sm:$0xff]  }
 0x31c   :  { %4966 = vmatpush1.bf16.msra.mxu1 %v13040_v57  ;;  %v13000_v57 = vld [vmem:[#allocation4 + $0x364] ss:$16 sps:$4 sm:$0xff]  }
 0x31d   :  { %4967 = vmatprep.subr.bf16.mxu1 %v13048_v58  ;;  %v12998_v58 = vld [vmem:[#allocation4 + $0x360] ss:$16 sps:$4 sm:$0xff]  }
 0x31e   :  { %4736 = vmatpush1.bf16.msra.mxu0 %v12953_v61  ;;  %v13003_v61 = vld [vmem:[#allocation4 + $0x384] ss:$16 sps:$4 sm:$0xff]  }
 0x31f   :  { %4737 = vmatprep.subr.bf16.mxu0 %v12958_v63  ;;  %v13001_v63 = vld [vmem:[#allocation4 + $0x380] ss:$16 sps:$4 sm:$0xff]  }
 0x320   :  { %4968 = vmatpush1.bf16.msra.mxu1 %v13046_v0  ;;  %v13006_v0 = vld [vmem:[#allocation4 + $0x3a4] ss:$16 sps:$4 sm:$0xff]  }
 0x321   :  { %4969 = vmatprep.subr.bf16.mxu1 %v13054_v1  ;;  %v13004_v1 = vld [vmem:[#allocation4 + $0x3a0] ss:$16 sps:$4 sm:$0xff]  }
 0x322   :  { %4738 = vmatpush1.bf16.msra.mxu0 %v12956_v4  ;;  %v13009_v4 = vld [vmem:[#allocation4 + $0x3c4] ss:$16 sps:$4 sm:$0xff]  }
 0x323   :  { %4739 = vmatprep.subr.bf16.mxu0 %v12961_v5  ;;  %v13007_v5 = vld [vmem:[#allocation4 + $0x3c0] ss:$16 sps:$4 sm:$0xff]  }
 0x324   :  { %4970 = vmatpush1.bf16.msra.mxu1 %v13052_v6  ;;  %v13012_v6 = vld [vmem:[#allocation4 + $0x3e4] ss:$16 sps:$4 sm:$0xff]  }
 0x325   :  { %4971 = vmatprep.subr.bf16.mxu1 %v13060_v60  ;;  %v13010_v60 = vld [vmem:[#allocation4 + $0x3e0] ss:$16 sps:$4 sm:$0xff]  }
 0x326   :  { %4740 = vmatpush1.bf16.msra.mxu0 %v12959_v62  ;;  %v13015_v62 = vld [vmem:[#allocation4 + $0x404] ss:$16 sps:$4 sm:$0xff]  }
 0x327   :  { %4741 = vmatprep.subr.bf16.mxu0 %v12964_v25  ;;  %v13013_v25 = vld [vmem:[#allocation4 + $0x400] ss:$16 sps:$4 sm:$0xff]  }
 0x328   :  { %4972 = vmatpush1.bf16.msra.mxu1 %v13058_v7  ;;  %v13021_v7 = vld [vmem:[#allocation4 + $0x424] ss:$16 sps:$4 sm:$0xff]  }
 0x329   :  { %4973 = vmatprep.subr.bf16.mxu1 %v13066_v9  ;;  %v13019_v9 = vld [vmem:[#allocation4 + $0x420] ss:$16 sps:$4 sm:$0xff]  }
 0x32a   :  { %4742 = vmatpush1.bf16.msra.mxu0 %v12962_v11  ;;  %v13027_v11 = vld [vmem:[#allocation4 + $0x444] ss:$16 sps:$4 sm:$0xff]  }
 0x32b   :  { %4752 = vmatprep.subr.bf16.mxu0 %v12967_v13  ;;  %v13025_v13 = vld [vmem:[#allocation4 + $0x440] ss:$16 sps:$4 sm:$0xff]  }
 0x32c   :  { %4974 = vmatpush1.bf16.msra.mxu1 %v13064_v15  ;;  %v13033_v15 = vld [vmem:[#allocation4 + $0x464] ss:$16 sps:$4 sm:$0xff]  }
 0x32d   :  { %4744 = vmatmul.mubr.bf16.vlgmr.msra.gmra.mrb[12].mxu0 %v14828_v3  ;;  %4975 = vmatprep.subr.bf16.mxu1 %v13072_v16  ;;  %v13090_v3 = vld [vmem:[#allocation4 + $0x58c] ss:$16 sps:$4 sm:$0xff]   ;;  %v13031_v16 = vld [vmem:[#allocation4 + $0x460] ss:$16 sps:$4 sm:$0xff]  }
 0x32e   :  { %4753 = vmatpush1.bf16.msra.mxu0 %v12965_v17  ;;  %4784 = vmatprep.mubr.bf16.mxu0 %v14846_v43  ;;  %v13100_v43 = vld [vmem:[#allocation4 + $0x5c8] ss:$16 sps:$4 sm:$0xff]   ;;  %v13039_v17 = vld [vmem:[#allocation4 + $0x484] ss:$16 sps:$4 sm:$0xff]  }
 0x32f   :  { %4754 = vmatprep.subr.bf16.mxu0 %v12970_v19  ;;  %v13037_v19 = vld [vmem:[#allocation4 + $0x480] ss:$16 sps:$4 sm:$0xff]  }
 0x330   :  { %4976 = vmatpush1.bf16.msra.mxu1 %v13070_v20  ;;  %v13045_v20 = vld [vmem:[#allocation4 + $0x4a4] ss:$16 sps:$4 sm:$0xff]  }
 0x331   :  { %4977 = vmatprep.subr.bf16.mxu1 %v13078_v21  ;;  %v13043_v21 = vld [vmem:[#allocation4 + $0x4a0] ss:$16 sps:$4 sm:$0xff]  }
 0x332   :  { %4755 = vmatpush1.bf16.msra.mxu0 %v12968_v22  ;;  %v13049_v22 = vld [vmem:[#allocation4 + $0x4c0] ss:$16 sps:$4 sm:$0xff]  }
 0x333   :  { %4756 = vmatprep.subr.bf16.mxu0 %v12973_v23  ;;  %v13057_v23 = vld [vmem:[#allocation4 + $0x4e4] ss:$16 sps:$4 sm:$0xff]  }
 0x334   :  { %4978 = vmatpush1.bf16.msra.mxu1 %v13076_v24  ;;  %v13055_v24 = vld [vmem:[#allocation4 + $0x4e0] ss:$16 sps:$4 sm:$0xff]  }
 0x335   :  { %4979 = vmatprep.subr.bf16.mxu1 %v13084_v26  ;;  %v13063_v26 = vld [vmem:[#allocation4 + $0x504] ss:$16 sps:$4 sm:$0xff]  }
 0x336   :  { %4757 = vmatpush1.bf16.msra.mxu0 %v12971_v28  ;;  %v13061_v28 = vld [vmem:[#allocation4 + $0x500] ss:$16 sps:$4 sm:$0xff]  }
 0x337   :  { %4758 = vmatprep.subr.bf16.mxu0 %v12976_v30  ;;  %v13069_v30 = vld [vmem:[#allocation4 + $0x524] ss:$16 sps:$4 sm:$0xff]  }
 0x338   :  { %4980 = vmatpush1.bf16.msra.mxu1 %v13082_v31  ;;  %v13067_v31 = vld [vmem:[#allocation4 + $0x520] ss:$16 sps:$4 sm:$0xff]  }
 0x339   :  { %4981 = vmatprep.subr.bf16.mxu1 %v13090_v3  ;;  %v13075_v3 = vld [vmem:[#allocation4 + $0x544] ss:$16 sps:$4 sm:$0xff]  }
 0x33a   :  { %4759 = vmatpush1.bf16.msra.mxu0 %v12974_v32  ;;  %v13073_v32 = vld [vmem:[#allocation4 + $0x540] ss:$16 sps:$4 sm:$0xff]  }
 0x33b   :  { %4760 = vmatprep.subr.bf16.mxu0 %v12979_v33  ;;  %v13081_v33 = vld [vmem:[#allocation4 + $0x564] ss:$16 sps:$4 sm:$0xff]  }
 0x33c   :  { %4982 = vmatpush1.bf16.msra.mxu1 %v13088_v35  ;;  %v13079_v35 = vld [vmem:[#allocation4 + $0x560] ss:$16 sps:$4 sm:$0xff]  }
 0x33d   :  { %4983 = vmatprep.subr.bf16.mxu1 %v13096_v41  ;;  %v13087_v41 = vld [vmem:[#allocation4 + $0x584] ss:$16 sps:$4 sm:$0xff]  }
 0x33e   :  { %4761 = vmatpush1.bf16.msra.mxu0 %v12977_v34  ;;  %v13085_v34 = vld [vmem:[#allocation4 + $0x580] ss:$16 sps:$4 sm:$0xff]  }
 0x33f   :  { %4762 = vmatprep.subr.bf16.mxu0 %v12982_v36  ;;  %v13093_v36 = vld [vmem:[#allocation4 + $0x5a4] ss:$16 sps:$4 sm:$0xff]  }
 0x340   :  { %4984 = vmatpush1.bf16.msra.mxu1 %v13094_v48  ;;  %v13091_v48 = vld [vmem:[#allocation4 + $0x5a0] ss:$16 sps:$4 sm:$0xff]  }
 0x341   :  { %4985 = vmatprep.subr.bf16.mxu1 %v13102_v40  ;;  %v13097_v40 = vld [vmem:[#allocation4 + $0x5c0] ss:$16 sps:$4 sm:$0xff]  }
 0x342   :  { %4763 = vmatpush1.bf16.msra.mxu0 %v12980_v39  ;;  %v14854_v46 = vpop.f32.mrb[4].mxu1  ;;  %v13099_v39 = vld [vmem:[#allocation4 + $0x5c4] ss:$16 sps:$4 sm:$0xff]  }
 0x343   :  { %4764 = vmatprep.subr.bf16.mxu0 %v12985_v42  ;;  %v14856_v50 = vpop.f32.mrb[5].mxu1  ;;  %v13105_v42 = vld [vmem:[#allocation4 + $0x5e4] ss:$16 sps:$4 sm:$0xff]  }
 0x344   :  { %4986 = vmatpush1.bf16.msra.mxu1 %v13100_v43  ;;  %v3134_v2 = vpop.f32.mrb[6].mxu1  ;;  %v13103_v43 = vld [vmem:[#allocation4 + $0x5e0] ss:$16 sps:$4 sm:$0xff]  }
 0x345   :  { %4987 = vmatprep.subr.bf16.mxu1 %v13108_v59  ;;  %v3135_v12 = vpop.f32.mrb[7].mxu1  ;;  %v715_v59 = vsub.s32 7, %v14744_v29 }
 0x346   :  { %4765 = vmatpush1.bf16.msra.mxu0 %v12983_v44  ;;  %v13111_v44 = vld [vmem:[#allocation4 + $0x604] ss:$16 sps:$4 sm:$0xff]  }
 0x347   :  { %4766 = vmatprep.subr.bf16.mxu0 %v12988_v18  ;;  %v14861_v18 = vsub.s32 4, %v14744_v29 }
 0x348   :  { %4988 = vmatpush1.bf16.msra.mxu1 %v13106_v45  ;;  %v14864_v45 = vsub.s32 5, %v14744_v29 }
 0x349   :  { %4998 = vmatprep.subr.bf16.mxu1 %v13114_v27 }
 0x34a   :  { %4767 = vmatpush1.bf16.msra.mxu0 %v12986_v49  ;;  %v14866_v49 = vld [vmem:[#allocation15] sm:$0xff] }
 0x34b   :  { %4768 = vmatprep.subr.bf16.mxu0 %v12991_v51  ;;  %v716_v27 = vrot.slane %v14866_v49, %v715_v59  ;;  %v704_v51 = vrot.slane %v14866_v49, %v14861_v18  ;;  %v708_v2 = vrot.slane %v14866_v49, %v14864_v45 }
 0x34e   :  { %4769 = vmatpush1.bf16.msra.mxu0 %v12989_v52  ;;  %v12663_v52 = vadd.f32 %v14856_v50, %v716_v27  ;;  %v13115_v50 = vld [vmem:[#allocation4 + $0x620] ss:$16 sps:$4 sm:$0xff]   ;;  %v13166_v27 = vld [vmem:[#allocation4 + $0x728] ss:$16 sps:$4 sm:$0xff]  }
 0x34f   :  { %4770 = vmatprep.subr.bf16.mxu0 %v12994_v53 }
 0x352   :  { %4771 = vmatpush1.bf16.msra.mxu0 %v12992_v54 }
 0x353   :  { %4772 = vmatprep.subr.bf16.mxu0 %v12997_v55 }
 0x356   :  { %4773 = vmatpush1.bf16.msra.mxu0 %v12995_v56 }
 0x357   :  { %4774 = vmatprep.subr.bf16.mxu0 %v13000_v57 }
 0x35a   :  { %4775 = vmatpush1.bf16.msra.mxu0 %v12998_v58 }
 0x35b   :  { %4776 = vmatprep.subr.bf16.mxu0 %v13003_v61 }
 0x35e   :  { %4777 = vmatpush1.bf16.msra.mxu0 %v13001_v63  ;;  %v3144_v63 = vmax.f32 %v12663_v52, 0.0  ;;  %v13172_v52 = vld [vmem:[#allocation4 + $0x748] ss:$16 sps:$4 sm:$0xff]  }
 0x35f   :  { %4778 = vmatprep.subr.bf16.mxu0 %v13006_v0 }
 0x362   :  { %4779 = vmatpush1.bf16.msra.mxu0 %v13004_v1  ;;  %v13109_v1 = vld [vmem:[#allocation4 + $0x600] ss:$16 sps:$4 sm:$0xff]  }
 0x363   :  { %4780 = vmatprep.subr.bf16.mxu0 %v13009_v4  ;;  %v13112_v4 = vld [vmem:[#allocation4 + $0x608] ss:$16 sps:$4 sm:$0xff]  }
 0x366   :  { %4781 = vmatpush1.bf16.msra.mxu0 %v13007_v5 }
 0x367   :  { %4782 = vmatprep.subr.bf16.mxu0 %v13012_v6  ;;  %v13117_v6 = vld [vmem:[#allocation4 + $0x624] ss:$16 sps:$4 sm:$0xff]  }
 0x36a   :  { %4783 = vmatpush1.bf16.msra.mxu0 %v13010_v60  ;;  %v13120_v60 = vld [vmem:[#allocation4 + $0x62c] ss:$16 sps:$4 sm:$0xff]  }
 0x36b   :  { %4793 = vmatprep.subr.bf16.mxu0 %v13015_v62  ;;  %v3152_v62 = vpack.c.bf16 %v3144_v63, %v3144_v63  ;;  %v13184_v63 = vld [vmem:[#allocation4 + $0x788] ss:$16 sps:$4 sm:$0xff]  }
 0x36d   :  { %4785 = vmatmul.mubr.bf16.vlgmr.msra.gmra.mrb[12].mxu0 %v14848_v14  ;;  %v13051_v14 = vld [vmem:[#allocation4 + $0x4c4] ss:$16 sps:$4 sm:$0xff]  }
 0x36e   :  { %4794 = vmatpush1.bf16.msra.mxu0 %v13013_v25  ;;  %v13118_v25 = vld [vmem:[#allocation4 + $0x628] ss:$16 sps:$4 sm:$0xff]  }
 0x36f   :  { %4795 = vmatprep.subr.bf16.mxu0 %v13021_v7  ;;  %v13123_v7 = vld [vmem:[#allocation4 + $0x644] ss:$16 sps:$4 sm:$0xff]  }
 0x372   :  { %4796 = vmatpush1.bf16.msra.mxu0 %v13019_v9  ;;  %v13126_v9 = vld [vmem:[#allocation4 + $0x64c] ss:$16 sps:$4 sm:$0xff]  }
 0x373   :  { %4797 = vmatprep.subr.bf16.mxu0 %v13027_v11  ;;  %v13121_v11 = vld [vmem:[#allocation4 + $0x640] ss:$16 sps:$4 sm:$0xff]  }
 0x376   :  { %4798 = vmatpush1.bf16.msra.mxu0 %v13025_v13  ;;  %v13124_v13 = vld [vmem:[#allocation4 + $0x648] ss:$16 sps:$4 sm:$0xff]  }
 0x377   :  { %4799 = vmatprep.subr.bf16.mxu0 %v13033_v15  ;;  %v13129_v15 = vld [vmem:[#allocation4 + $0x664] ss:$16 sps:$4 sm:$0xff]  }
 0x37a   :  { %4800 = vmatpush1.bf16.msra.mxu0 %v13031_v16  ;;  %v13132_v16 = vld [vmem:[#allocation4 + $0x66c] ss:$16 sps:$4 sm:$0xff]  }
 0x37b   :  { %4801 = vmatprep.subr.bf16.mxu0 %v13039_v17  ;;  %v13127_v17 = vld [vmem:[#allocation4 + $0x660] ss:$16 sps:$4 sm:$0xff]  }
 0x37e   :  { %4802 = vmatpush1.bf16.msra.mxu0 %v13037_v19  ;;  %v13130_v19 = vld [vmem:[#allocation4 + $0x668] ss:$16 sps:$4 sm:$0xff]  }
 0x37f   :  { %4803 = vmatprep.subr.bf16.mxu0 %v13045_v20  ;;  %v13135_v20 = vld [vmem:[#allocation4 + $0x684] ss:$16 sps:$4 sm:$0xff]  }
 0x382   :  { %4804 = vmatpush1.bf16.msra.mxu0 %v13043_v21  ;;  %v13138_v21 = vld [vmem:[#allocation4 + $0x68c] ss:$16 sps:$4 sm:$0xff]  }
 0x383   :  { %4805 = vmatprep.subr.bf16.mxu0 %v13051_v14  ;;  %v13133_v14 = vld [vmem:[#allocation4 + $0x680] ss:$16 sps:$4 sm:$0xff]  }
 0x386   :  { %4806 = vmatpush1.bf16.msra.mxu0 %v13049_v22  ;;  %v13136_v22 = vld [vmem:[#allocation4 + $0x688] ss:$16 sps:$4 sm:$0xff]  }
 0x387   :  { %4807 = vmatprep.subr.bf16.mxu0 %v13057_v23  ;;  %v13141_v23 = vld [vmem:[#allocation4 + $0x6a4] ss:$16 sps:$4 sm:$0xff]  }
 0x38a   :  { %4808 = vmatpush1.bf16.msra.mxu0 %v13055_v24  ;;  %v13144_v24 = vld [vmem:[#allocation4 + $0x6ac] ss:$16 sps:$4 sm:$0xff]  }
 0x38b   :  { %4809 = vmatprep.subr.bf16.mxu0 %v13063_v26  ;;  %v13139_v26 = vld [vmem:[#allocation4 + $0x6a0] ss:$16 sps:$4 sm:$0xff]  }
 0x38e   :  { %4810 = vmatpush1.bf16.msra.mxu0 %v13061_v28  ;;  %v13142_v28 = vld [vmem:[#allocation4 + $0x6a8] ss:$16 sps:$4 sm:$0xff]  }
 0x38f   :  { %4811 = vmatprep.subr.bf16.mxu0 %v13069_v30  ;;  %v13147_v30 = vld [vmem:[#allocation4 + $0x6c4] ss:$16 sps:$4 sm:$0xff]  }
 0x392   :  { %4812 = vmatpush1.bf16.msra.mxu0 %v13067_v31  ;;  %v13150_v31 = vld [vmem:[#allocation4 + $0x6cc] ss:$16 sps:$4 sm:$0xff]  }
 0x393   :  { %4813 = vmatprep.subr.bf16.mxu0 %v13075_v3  ;;  %v13145_v3 = vld [vmem:[#allocation4 + $0x6c0] ss:$16 sps:$4 sm:$0xff]  }
 0x396   :  { %4814 = vmatpush1.bf16.msra.mxu0 %v13073_v32  ;;  %v13148_v32 = vld [vmem:[#allocation4 + $0x6c8] ss:$16 sps:$4 sm:$0xff]  }
 0x397   :  { %4815 = vmatprep.subr.bf16.mxu0 %v13081_v33  ;;  %v13153_v33 = vld [vmem:[#allocation4 + $0x6e4] ss:$16 sps:$4 sm:$0xff]  }
 0x39a   :  { %4816 = vmatpush1.bf16.msra.mxu0 %v13079_v35  ;;  %v13156_v35 = vld [vmem:[#allocation4 + $0x6ec] ss:$16 sps:$4 sm:$0xff]  }
 0x39b   :  { %4817 = vmatprep.subr.bf16.mxu0 %v13087_v41  ;;  %v13151_v41 = vld [vmem:[#allocation4 + $0x6e0] ss:$16 sps:$4 sm:$0xff]  }
 0x39e   :  { %4818 = vmatpush1.bf16.msra.mxu0 %v13085_v34  ;;  %v13154_v34 = vld [vmem:[#allocation4 + $0x6e8] ss:$16 sps:$4 sm:$0xff]  }
 0x39f   :  { %4819 = vmatprep.subr.bf16.mxu0 %v13093_v36  ;;  %v13159_v36 = vld [vmem:[#allocation4 + $0x704] ss:$16 sps:$4 sm:$0xff]  }
 0x3a2   :  { %4820 = vmatpush1.bf16.msra.mxu0 %v13091_v48  ;;  %v13162_v48 = vld [vmem:[#allocation4 + $0x70c] ss:$16 sps:$4 sm:$0xff]  }
 0x3a3   :  { %4821 = vmatprep.subr.bf16.mxu0 %v13099_v39  ;;  %v13157_v39 = vld [vmem:[#allocation4 + $0x700] ss:$16 sps:$4 sm:$0xff]  }
 0x3a6   :  { %4822 = vmatpush1.bf16.msra.mxu0 %v13097_v40  ;;  %v13160_v40 = vld [vmem:[#allocation4 + $0x708] ss:$16 sps:$4 sm:$0xff]  }
 0x3a7   :  { %4823 = vmatprep.subr.bf16.mxu0 %v13105_v42  ;;  %v13165_v42 = vld [vmem:[#allocation4 + $0x724] ss:$16 sps:$4 sm:$0xff]  }
 0x3aa   :  { %4824 = vmatpush1.bf16.msra.mxu0 %v13103_v43  ;;  %v13168_v43 = vld [vmem:[#allocation4 + $0x72c] ss:$16 sps:$4 sm:$0xff]  }
 0x3ab   :  { %4834 = vmatprep.subr.bf16.mxu0 %v13111_v44  ;;  %v13163_v44 = vld [vmem:[#allocation4 + $0x720] ss:$16 sps:$4 sm:$0xff]  }
 0x3c0   :  { %v3007_v12 = vpop.f32.mrb[8].mxu0 }
 0x3c1   :  { %v12660_v53 = vadd.f32 %v3007_v12, %v704_v51  ;;  %v3009_v54 = vpop.f32.mrb[9].mxu0  ;;  %v13171_v51 = vld [vmem:[#allocation4 + $0x744] ss:$16 sps:$4 sm:$0xff]   ;;  %v13169_v12 = vld [vmem:[#allocation4 + $0x740] ss:$16 sps:$4 sm:$0xff]  }
 0x3c2   :  { %v12661_v55 = vadd.f32 %v3009_v54, %v708_v2  ;;  %v3011_v56 = vpop.f32.mrb[10].mxu0  ;;  %v13174_v2 = vld [vmem:[#allocation4 + $0x74c] ss:$16 sps:$4 sm:$0xff]  }
 0x3c3   :  { %v3141_v57 = vmax.f32 %v12660_v53, 0.0  ;;  %v3012_v58 = vpop.f32.mrb[11].mxu0  ;;  %v13177_v53 = vld [vmem:[#allocation4 + $0x764] ss:$16 sps:$4 sm:$0xff]   ;;  %v13180_v54 = vld [vmem:[#allocation4 + $0x76c] ss:$16 sps:$4 sm:$0xff]  }
 0x3c4   :  { %v3142_v61 = vmax.f32 %v12661_v55, 0.0  ;;  %v13175_v55 = vld [vmem:[#allocation4 + $0x760] ss:$16 sps:$4 sm:$0xff]   ;;  %v13178_v56 = vld [vmem:[#allocation4 + $0x768] ss:$16 sps:$4 sm:$0xff]  }
 0x3c5   :  { %v3149_v5 = vpack.c.bf16 %v3141_v57, %v3141_v57  ;;  %v13183_v57 = vld [vmem:[#allocation4 + $0x784] ss:$16 sps:$4 sm:$0xff]   ;;  %v13186_v58 = vld [vmem:[#allocation4 + $0x78c] ss:$16 sps:$4 sm:$0xff]  }
 0x3c6   :  { %v3150_v0 = vpack.c.bf16 %v3142_v61, %v3142_v61  ;;  %v13181_v61 = vld [vmem:[#allocation4 + $0x780] ss:$16 sps:$4 sm:$0xff]  }
 0x3c8   :  { %4825 = vmatprep.mubr.bf16.mxu0 %v3150_v0  ;;  %4989 = vmatprep.mubr.bf16.mxu1 %v3150_v0  ;;  %v711_v0 = vsub.s32 6, %v14744_v29  ;;  %v13818_v29 = vld [vmem:[#allocation13 + $0xbd8] ss:$24 sps:$4 sm:$0xff]  }
 0x3c9   :  { %4826 = vmatmul.mubr.bf16.vlgmr.msra.gmra.mrb[12].mxu0 %v3149_v5  ;;  %4990 = vmatmul.mubr.bf16.vlgmr.msra.gmra.mrb[8].mxu1 %v3149_v5  ;;  %v13187_v5 = vld [vmem:[#allocation4 + $0x7a0] ss:$16 sps:$4 sm:$0xff]  }
 0x3ca   :  { %4835 = vmatpush1.bf16.msra.mxu0 %v13109_v1  ;;  %4999 = vmatpush1.bf16.msra.mxu1 %v13112_v4  ;;  %v13189_v1 = vld [vmem:[#allocation4 + $0x7a4] ss:$16 sps:$4 sm:$0xff]   ;;  %v13192_v4 = vld [vmem:[#allocation4 + $0x7ac] ss:$16 sps:$4 sm:$0xff]  }
 0x3cb   :  { %4866 = vmatprep.mubr.bf16.mxu0 %v3152_v62  ;;  %5030 = vmatprep.mubr.bf16.mxu1 %v3152_v62  ;;  %v13195_v62 = vld [vmem:[#allocation4 + $0x7c4] ss:$16 sps:$4 sm:$0xff]  }
 0x3cc   :  { %4836 = vmatprep.subr.bf16.mxu0 %v13117_v6  ;;  %5000 = vmatprep.subr.bf16.mxu1 %v13120_v60  ;;  %v13190_v6 = vld [vmem:[#allocation4 + $0x7a8] ss:$16 sps:$4 sm:$0xff]   ;;  %v712_v60 = vrot.slane %v14866_v49, %v711_v0  ;;  %v13207_v49 = vld [vmem:[#allocation6 + $0x4] ss:$8 sps:$4 sm:$0xff]  }
 0x3ce   :  { %4837 = vmatpush1.bf16.msra.mxu0 %v13115_v50  ;;  %5001 = vmatpush1.bf16.msra.mxu1 %v13118_v25  ;;  %v13198_v50 = vld [vmem:[#allocation4 + $0x7cc] ss:$16 sps:$4 sm:$0xff]   ;;  %v13193_v25 = vld [vmem:[#allocation4 + $0x7c0] ss:$16 sps:$4 sm:$0xff]  }
 0x3cf   :  { %4838 = vmatprep.subr.bf16.mxu0 %v13123_v7  ;;  %5002 = vmatprep.subr.bf16.mxu1 %v13126_v9  ;;  %v13196_v7 = vld [vmem:[#allocation4 + $0x7c8] ss:$16 sps:$4 sm:$0xff]   ;;  %v12662_v9 = vadd.f32 %v14854_v46, %v712_v60 }
 0x3d0   :  { %v13208_v46 = vld [vmem:[#allocation6 + $0x10] ss:$8 sps:$4 sm:$0xff]  }
 0x3d2   :  { %4839 = vmatpush1.bf16.msra.mxu0 %v13121_v11  ;;  %5003 = vmatpush1.bf16.msra.mxu1 %v13124_v13  ;;  %v13201_v11 = vld [vmem:[#allocation4 + $0x7e4] ss:$16 sps:$4 sm:$0xff]   ;;  %v13204_v13 = vld [vmem:[#allocation4 + $0x7ec] ss:$16 sps:$4 sm:$0xff]  }
 0x3d3   :  { %4840 = vmatprep.subr.bf16.mxu0 %v13129_v15  ;;  %5004 = vmatprep.subr.bf16.mxu1 %v13132_v16  ;;  %v13199_v15 = vld [vmem:[#allocation4 + $0x7e0] ss:$16 sps:$4 sm:$0xff]   ;;  %v13202_v16 = vld [vmem:[#allocation4 + $0x7e8] ss:$16 sps:$4 sm:$0xff]  }
 0x3d6   :  { %4841 = vmatpush1.bf16.msra.mxu0 %v13127_v17  ;;  %5005 = vmatpush1.bf16.msra.mxu1 %v13130_v19  ;;  %v3143_v17 = vmax.f32 %v12662_v9, 0.0  ;;  %v13205_v19 = vld [vmem:[#allocation6] ss:$8 sps:$4 sm:$0xff]  }
 0x3d7   :  { %4842 = vmatprep.subr.bf16.mxu0 %v13135_v20  ;;  %5006 = vmatprep.subr.bf16.mxu1 %v13138_v21  ;;  %v13210_v21 = vld [vmem:[#allocation6 + $0x14] ss:$8 sps:$4 sm:$0xff]  }
 0x3d8   :  { %v3151_v20 = vpack.c.bf16 %v3143_v17, %v3143_v17  ;;  %v13253_v17 = vld [vmem:[#allocation6 + $0x100] ss:$8 sps:$4 sm:$0xff]  }
 0x3da   :  { %4843 = vmatpush1.bf16.msra.mxu0 %v13133_v14  ;;  %5007 = vmatpush1.bf16.msra.mxu1 %v13136_v22  ;;  %v13213_v14 = vld [vmem:[#allocation6 + $0x24] ss:$8 sps:$4 sm:$0xff]   ;;  %v13211_v22 = vld [vmem:[#allocation6 + $0x20] ss:$8 sps:$4 sm:$0xff]  }
 0x3db   :  { %4844 = vmatprep.subr.bf16.mxu0 %v13141_v23  ;;  %5008 = vmatprep.subr.bf16.mxu1 %v13144_v24  ;;  %v13216_v23 = vld [vmem:[#allocation6 + $0x34] ss:$8 sps:$4 sm:$0xff]   ;;  %v13214_v24 = vld [vmem:[#allocation6 + $0x30] ss:$8 sps:$4 sm:$0xff]  }
 0x3de   :  { %4845 = vmatpush1.bf16.msra.mxu0 %v13139_v26  ;;  %5009 = vmatpush1.bf16.msra.mxu1 %v13142_v28  ;;  %v13219_v26 = vld [vmem:[#allocation6 + $0x44] ss:$8 sps:$4 sm:$0xff]   ;;  %v13217_v28 = vld [vmem:[#allocation6 + $0x40] ss:$8 sps:$4 sm:$0xff]  }
 0x3df   :  { %4846 = vmatprep.subr.bf16.mxu0 %v13147_v30  ;;  %5010 = vmatprep.subr.bf16.mxu1 %v13150_v31  ;;  %v13222_v30 = vld [vmem:[#allocation6 + $0x54] ss:$8 sps:$4 sm:$0xff]   ;;  %v13220_v31 = vld [vmem:[#allocation6 + $0x50] ss:$8 sps:$4 sm:$0xff]  }
 0x3e2   :  { %4847 = vmatpush1.bf16.msra.mxu0 %v13145_v3  ;;  %5011 = vmatpush1.bf16.msra.mxu1 %v13148_v32  ;;  %v13225_v3 = vld [vmem:[#allocation6 + $0x64] ss:$8 sps:$4 sm:$0xff]   ;;  %v13223_v32 = vld [vmem:[#allocation6 + $0x60] ss:$8 sps:$4 sm:$0xff]  }
 0x3e3   :  { %4848 = vmatprep.subr.bf16.mxu0 %v13153_v33  ;;  %5012 = vmatprep.subr.bf16.mxu1 %v13156_v35  ;;  %v13228_v33 = vld [vmem:[#allocation6 + $0x74] ss:$8 sps:$4 sm:$0xff]   ;;  %v13226_v35 = vld [vmem:[#allocation6 + $0x70] ss:$8 sps:$4 sm:$0xff]  }
 0x3e6   :  { %4849 = vmatpush1.bf16.msra.mxu0 %v13151_v41  ;;  %5013 = vmatpush1.bf16.msra.mxu1 %v13154_v34  ;;  %v13231_v41 = vld [vmem:[#allocation6 + $0x84] ss:$8 sps:$4 sm:$0xff]   ;;  %v13229_v34 = vld [vmem:[#allocation6 + $0x80] ss:$8 sps:$4 sm:$0xff]  }
 0x3e7   :  { %4850 = vmatprep.subr.bf16.mxu0 %v13159_v36  ;;  %5014 = vmatprep.subr.bf16.mxu1 %v13162_v48  ;;  %v13234_v36 = vld [vmem:[#allocation6 + $0x94] ss:$8 sps:$4 sm:$0xff]   ;;  %v13232_v48 = vld [vmem:[#allocation6 + $0x90] ss:$8 sps:$4 sm:$0xff]  }
 0x3ea   :  { %4851 = vmatpush1.bf16.msra.mxu0 %v13157_v39  ;;  %5015 = vmatpush1.bf16.msra.mxu1 %v13160_v40  ;;  %v13237_v39 = vld [vmem:[#allocation6 + $0xa4] ss:$8 sps:$4 sm:$0xff]   ;;  %v13235_v40 = vld [vmem:[#allocation6 + $0xa0] ss:$8 sps:$4 sm:$0xff]  }
 0x3eb   :  { %4852 = vmatprep.subr.bf16.mxu0 %v13165_v42  ;;  %5016 = vmatprep.subr.bf16.mxu1 %v13168_v43  ;;  %v13240_v42 = vld [vmem:[#allocation6 + $0xb4] ss:$8 sps:$4 sm:$0xff]   ;;  %v13238_v43 = vld [vmem:[#allocation6 + $0xb0] ss:$8 sps:$4 sm:$0xff]  }
 0x3ee   :  { %4853 = vmatpush1.bf16.msra.mxu0 %v13163_v44  ;;  %5017 = vmatpush1.bf16.msra.mxu1 %v13166_v27  ;;  %v13243_v44 = vld [vmem:[#allocation6 + $0xc4] ss:$8 sps:$4 sm:$0xff]   ;;  %v13241_v27 = vld [vmem:[#allocation6 + $0xc0] ss:$8 sps:$4 sm:$0xff]  }
 0x3ef   :  { %4854 = vmatprep.subr.bf16.mxu0 %v13171_v51  ;;  %5018 = vmatprep.subr.bf16.mxu1 %v13174_v2  ;;  %v13246_v51 = vld [vmem:[#allocation6 + $0xd4] ss:$8 sps:$4 sm:$0xff]   ;;  %v13244_v2 = vld [vmem:[#allocation6 + $0xd0] ss:$8 sps:$4 sm:$0xff]  }
 0x3f2   :  { %4855 = vmatpush1.bf16.msra.mxu0 %v13169_v12  ;;  %5019 = vmatpush1.bf16.msra.mxu1 %v13172_v52  ;;  %v13249_v12 = vld [vmem:[#allocation6 + $0xe4] ss:$8 sps:$4 sm:$0xff]   ;;  %v13247_v52 = vld [vmem:[#allocation6 + $0xe0] ss:$8 sps:$4 sm:$0xff]  }
 0x3f3   :  { %4856 = vmatprep.subr.bf16.mxu0 %v13177_v53  ;;  %5020 = vmatprep.subr.bf16.mxu1 %v13180_v54  ;;  %v13252_v53 = vld [vmem:[#allocation6 + $0xf4] ss:$8 sps:$4 sm:$0xff]   ;;  %v13250_v54 = vld [vmem:[#allocation6 + $0xf0] ss:$8 sps:$4 sm:$0xff]  }
 0x3f6   :  { %4857 = vmatpush1.bf16.msra.mxu0 %v13175_v55  ;;  %5021 = vmatpush1.bf16.msra.mxu1 %v13178_v56  ;;  %v13255_v55 = vld [vmem:[#allocation6 + $0x104] ss:$8 sps:$4 sm:$0xff]   ;;  %v14881_v56 = vld [vmem:[#allocation16] sm:$0xf] }
 0x3f7   :  { %4858 = vmatprep.subr.bf16.mxu0 %v13183_v57  ;;  %5022 = vmatprep.subr.bf16.mxu1 %v13186_v58  ;;  %v3414_v57 = vrot.slane %v14881_v56, %v14817_v47  ;;  %v3418_v58 = vrot.slane %v14881_v56, %v14820_v37 }
 0x3fa   :  { %4859 = vmatpush1.bf16.msra.mxu0 %v13181_v61  ;;  %5023 = vmatpush1.bf16.msra.mxu1 %v13184_v63  ;;  %v3426_v61 = vrot.slane %v14881_v56, %v14838_v10 }
 0x3fb   :  { %4860 = vmatprep.subr.bf16.mxu0 %v13189_v1  ;;  %5024 = vmatprep.subr.bf16.mxu1 %v13192_v4 }
 0x3fe   :  { %4861 = vmatpush1.bf16.msra.mxu0 %v13187_v5  ;;  %5025 = vmatpush1.bf16.msra.mxu1 %v13190_v6 }
 0x3ff   :  { %4862 = vmatprep.subr.bf16.mxu0 %v13195_v62  ;;  %5026 = vmatprep.subr.bf16.mxu1 %v13198_v50 }
 0x402   :  { %4863 = vmatpush1.bf16.msra.mxu0 %v13193_v25  ;;  %5027 = vmatpush1.bf16.msra.mxu1 %v13196_v7 }
 0x403   :  { %4864 = vmatprep.subr.bf16.mxu0 %v13201_v11  ;;  %5028 = vmatprep.subr.bf16.mxu1 %v13204_v13 }
 0x406   :  { %4865 = vmatpush1.bf16.msra.mxu0 %v13199_v15  ;;  %5029 = vmatpush1.bf16.msra.mxu1 %v13202_v16 }
 0x407   :  { %5443 = vmatprep.subr.bf16.mxu0 %v13207_v49 }
 0x409   :  { %4867 = vmatmul.mubr.bf16.vlgmr.msra.gmra.mrb[12].mxu0 %v3151_v20  ;;  %5031 = vmatmul.mubr.bf16.vlgmr.msra.gmra.mrb[8].mxu1 %v3151_v20 }
 0x40a   :  { %5444 = vmatpush1.bf16.msra.mxu0 %v13205_v19  ;;  %v13258_v19 = vld [vmem:[#allocation6 + $0x114] ss:$8 sps:$4 sm:$0xff]  }
 0x40b   :  { %5445 = vmatprep.subr.bf16.mxu0 %v13210_v21  ;;  %v13256_v21 = vld [vmem:[#allocation6 + $0x110] ss:$8 sps:$4 sm:$0xff]  }
 0x40e   :  { %5446 = vmatpush1.bf16.msra.mxu0 %v13208_v46  ;;  %v13261_v46 = vld [vmem:[#allocation6 + $0x124] ss:$8 sps:$4 sm:$0xff]  }
 0x40f   :  { %5447 = vmatprep.subr.bf16.mxu0 %v13213_v14  ;;  %v13259_v14 = vld [vmem:[#allocation6 + $0x120] ss:$8 sps:$4 sm:$0xff]  }
 0x412   :  { %5448 = vmatpush1.bf16.msra.mxu0 %v13211_v22  ;;  %v13264_v22 = vld [vmem:[#allocation6 + $0x134] ss:$8 sps:$4 sm:$0xff]  }
 0x413   :  { %5449 = vmatprep.subr.bf16.mxu0 %v13216_v23  ;;  %v13262_v23 = vld [vmem:[#allocation6 + $0x130] ss:$8 sps:$4 sm:$0xff]  }
 0x416   :  { %5450 = vmatpush1.bf16.msra.mxu0 %v13214_v24  ;;  %v13267_v24 = vld [vmem:[#allocation6 + $0x144] ss:$8 sps:$4 sm:$0xff]  }
 0x417   :  { %5451 = vmatprep.subr.bf16.mxu0 %v13219_v26  ;;  %v13265_v26 = vld [vmem:[#allocation6 + $0x140] ss:$8 sps:$4 sm:$0xff]  }
 0x41a   :  { %5452 = vmatpush1.bf16.msra.mxu0 %v13217_v28  ;;  %v13270_v28 = vld [vmem:[#allocation6 + $0x154] ss:$8 sps:$4 sm:$0xff]  }
 0x41b   :  { %5453 = vmatprep.subr.bf16.mxu0 %v13222_v30  ;;  %v13268_v30 = vld [vmem:[#allocation6 + $0x150] ss:$8 sps:$4 sm:$0xff]  }
 0x41e   :  { %5454 = vmatpush1.bf16.msra.mxu0 %v13220_v31  ;;  %v13273_v31 = vld [vmem:[#allocation6 + $0x164] ss:$8 sps:$4 sm:$0xff]  }
 0x41f   :  { %5455 = vmatprep.subr.bf16.mxu0 %v13225_v3  ;;  %v13271_v3 = vld [vmem:[#allocation6 + $0x160] ss:$8 sps:$4 sm:$0xff]  }
 0x422   :  { %5456 = vmatpush1.bf16.msra.mxu0 %v13223_v32  ;;  %v13276_v32 = vld [vmem:[#allocation6 + $0x174] ss:$8 sps:$4 sm:$0xff]  }
 0x423   :  { %5457 = vmatprep.subr.bf16.mxu0 %v13228_v33  ;;  %v13274_v33 = vld [vmem:[#allocation6 + $0x170] ss:$8 sps:$4 sm:$0xff]  }
 0x426   :  { %5458 = vmatpush1.bf16.msra.mxu0 %v13226_v35  ;;  %v13279_v35 = vld [vmem:[#allocation6 + $0x184] ss:$8 sps:$4 sm:$0xff]  }
 0x427   :  { %5459 = vmatprep.subr.bf16.mxu0 %v13231_v41  ;;  %v13277_v41 = vld [vmem:[#allocation6 + $0x180] ss:$8 sps:$4 sm:$0xff]  }
 0x42a   :  { %5460 = vmatpush1.bf16.msra.mxu0 %v13229_v34  ;;  %v13282_v34 = vld [vmem:[#allocation6 + $0x194] ss:$8 sps:$4 sm:$0xff]  }
 0x42b   :  { %5461 = vmatprep.subr.bf16.mxu0 %v13234_v36  ;;  %v13280_v36 = vld [vmem:[#allocation6 + $0x190] ss:$8 sps:$4 sm:$0xff]  }
 0x42e   :  { %5462 = vmatpush1.bf16.msra.mxu0 %v13232_v48  ;;  %v13285_v48 = vld [vmem:[#allocation6 + $0x1a4] ss:$8 sps:$4 sm:$0xff]  }
 0x42f   :  { %5463 = vmatprep.subr.bf16.mxu0 %v13237_v39  ;;  %v13283_v39 = vld [vmem:[#allocation6 + $0x1a0] ss:$8 sps:$4 sm:$0xff]  }
 0x432   :  { %5464 = vmatpush1.bf16.msra.mxu0 %v13235_v40  ;;  %v13288_v40 = vld [vmem:[#allocation6 + $0x1b4] ss:$8 sps:$4 sm:$0xff]  }
 0x433   :  { %5465 = vmatprep.subr.bf16.mxu0 %v13240_v42  ;;  %v13286_v42 = vld [vmem:[#allocation6 + $0x1b0] ss:$8 sps:$4 sm:$0xff]  }
 0x436   :  { %5466 = vmatpush1.bf16.msra.mxu0 %v13238_v43  ;;  %v13291_v43 = vld [vmem:[#allocation6 + $0x1c4] ss:$8 sps:$4 sm:$0xff]  }
 0x437   :  { %5467 = vmatprep.subr.bf16.mxu0 %v13243_v44  ;;  %v13289_v44 = vld [vmem:[#allocation6 + $0x1c0] ss:$8 sps:$4 sm:$0xff]  }
 0x43a   :  { %5468 = vmatpush1.bf16.msra.mxu0 %v13241_v27  ;;  %v13294_v27 = vld [vmem:[#allocation6 + $0x1d4] ss:$8 sps:$4 sm:$0xff]  }
 0x43b   :  { %5469 = vmatprep.subr.bf16.mxu0 %v13246_v51  ;;  %v13292_v51 = vld [vmem:[#allocation6 + $0x1d0] ss:$8 sps:$4 sm:$0xff]  }
 0x43e   :  { %5470 = vmatpush1.bf16.msra.mxu0 %v13244_v2  ;;  %v3422_v2 = vrot.slane %v14881_v56, %v14835_v8  ;;  %v13304_v56 = vld [vmem:[#allocation7 + $0x8] sm:$0xff]  }
 0x43f   :  { %5471 = vmatprep.subr.bf16.mxu0 %v13249_v12  ;;  %v13297_v12 = vld [vmem:[#allocation6 + $0x1e4] ss:$8 sps:$4 sm:$0xff]  }
 0x442   :  { %5472 = vmatpush1.bf16.msra.mxu0 %v13247_v52  ;;  %v13295_v52 = vld [vmem:[#allocation6 + $0x1e0] ss:$8 sps:$4 sm:$0xff]  }
 0x443   :  { %5473 = vmatprep.subr.bf16.mxu0 %v13252_v53 }
 0x446   :  { %5474 = vmatpush1.bf16.msra.mxu0 %v13250_v54  ;;  %v13300_v54 = vld [vmem:[#allocation6 + $0x1f4] ss:$8 sps:$4 sm:$0xff]  }
 0x447   :  { %5484 = vmatprep.subr.bf16.mxu0 %v13255_v55  ;;  %v13298_v55 = vld [vmem:[#allocation6 + $0x1f0] ss:$8 sps:$4 sm:$0xff]  }
 0x4dc   :  { %v4868_v63 = vpop.f32.mrb[12].mxu0  ;;  %v14889_v1 = vpop.f32.mrb[8].mxu1 }
 0x4dd   :  { %v12664_v4 = vadd.f32 %v4868_v63, %v3414_v57  ;;  %v4870_v5 = vpop.f32.mrb[13].mxu0  ;;  %v5034_v6 = vpop.f32.mrb[9].mxu1  ;;  %v12666_v53 = vadd.f32 %v14889_v1, %v3422_v2  ;;  %v13307_v1 = vld [vmem:[#allocation7 + $0x58] sm:$0xff]   ;;  %v13343_v2 = vld [vmem:[#allocation10 + $0x4] ss:$16 sps:$4 sm:$0xff]  }
 0x4de   :  { %v12665_v60 = vadd.f32 %v4870_v5, %v3418_v58  ;;  %v12667_v62 = vadd.f32 %v5034_v6, %v3426_v61  ;;  %v4872_v50 = vpop.f32.mrb[14].mxu0  ;;  %v5036_v25 = vpop.f32.mrb[10].mxu1  ;;  %v13301_v58 = vld [vmem:[#allocation7 + $0x40] sm:$0xff]   ;;  %v13305_v5 = vld [vmem:[#allocation7 + $0x50] sm:$0xff]  }
 0x4df   :  { %v5039_v7 = vmax.f32 %v12664_v4, 0.0  ;;  %v4873_v9 = vpop.f32.mrb[15].mxu0  ;;  %v5037_v11 = vpop.f32.mrb[11].mxu1  ;;  %v5041_v57 = vmax.f32 %v12666_v53, 0.0  ;;  %v13302_v61 = vld [vmem:[#allocation7] sm:$0xff]   ;;  %v13303_v4 = vld [vmem:[#allocation7 + $0x48] sm:$0xff]  }
 0x4e0   :  { %v5040_v13 = vmax.f32 %v12665_v60, 0.0  ;;  %v5042_v15 = vmax.f32 %v12667_v62, 0.0  ;;  %v13306_v6 = vld [vmem:[#allocation7 + $0x10] sm:$0xff]   ;;  %v13308_v60 = vld [vmem:[#allocation7 + $0x18] sm:$0xff]   ;;  %v13309_v62 = vld [vmem:[#allocation7 + $0x60] sm:$0xff]  }
 0x4e1   :  { %v5043_v49 = vpack.c.bf16 %v5039_v7, %v5039_v7  ;;  %v5045_v63 = vpack.c.bf16 %v5041_v57, %v5041_v57  ;;  %v13310_v50 = vld [vmem:[#allocation7 + $0x20] sm:$0xff]   ;;  %v13311_v25 = vld [vmem:[#allocation7 + $0x68] sm:$0xff]   ;;  %v13313_v9 = vld [vmem:[#allocation7 + $0x70] sm:$0xff]  }
 0x4e2   :  { %v5044_v16 = vpack.c.bf16 %v5040_v13, %v5040_v13  ;;  %v5046_v20 = vpack.c.bf16 %v5042_v15, %v5042_v15  ;;  %v13312_v7 = vld [vmem:[#allocation7 + $0x28] sm:$0xff]   ;;  %v13314_v11 = vld [vmem:[#allocation7 + $0x30] sm:$0xff]   ;;  %v13315_v13 = vld [vmem:[#allocation7 + $0x78] sm:$0xff]  }
 0x4e3   :  { %v13316_v15 = vld [vmem:[#allocation7 + $0x38] sm:$0xff]  }
 0x4e4   :  { %5475 = vmatprep.mubr.bf16.mxu0 %v5044_v16  ;;  %v13317_v16 = vld [vmem:[#allocation9] ss:$8 sps:$4 sm:$0xff]   ;;  %v13352_v53 = vld [vmem:[#allocation10 + $0x2c] ss:$16 sps:$4 sm:$0xff]  }
 0x4e5   :  { %5476 = vmatmul.mubr.bf16.vlgmr.msra.gmra.mrb[16].mxu0 %v5043_v49  ;;  %v13322_v49 = vld [vmem:[#allocation9 + $0x14] ss:$8 sps:$4 sm:$0xff]   ;;  %v13356_v57 = vld [vmem:[#allocation10 + $0x48] ss:$16 sps:$4 sm:$0xff]  }
 0x4e6   :  { %5485 = vmatpush1.bf16.msra.mxu0 %v13253_v17  ;;  %5516 = vmatprep.mubr.bf16.mxu0 %v5046_v20  ;;  %v13319_v17 = vld [vmem:[#allocation9 + $0x4] ss:$8 sps:$4 sm:$0xff]  }
 0x4e7   :  { %5486 = vmatprep.subr.bf16.mxu0 %v13258_v19  ;;  %5814 = vmatprep.subr.bf16.mxu1 %v13319_v17  ;;  %v13320_v19 = vld [vmem:[#allocation9 + $0x10] ss:$8 sps:$4 sm:$0xff]   ;;  %v13325_v20 = vld [vmem:[#allocation9 + $0x24] ss:$8 sps:$4 sm:$0xff]  }
 0x4e8   :  { %5815 = vmatpush1.bf16.msra.mxu1 %v13317_v16  ;;  %v13410_v16 = vld [vmem:[#allocation10 + $0x168] ss:$16 sps:$4 sm:$0xff]   ;;  %v13418_v17 = vld [vmem:[#allocation10 + $0x18c] ss:$16 sps:$4 sm:$0xff]  }
 0x4e9   :  { %5816 = vmatprep.subr.bf16.mxu1 %v13322_v49  ;;  %v13416_v49 = vld [vmem:[#allocation10 + $0x188] ss:$16 sps:$4 sm:$0xff]  }
 0x4ea   :  { %5487 = vmatpush1.bf16.msra.mxu0 %v13256_v21  ;;  %v13323_v21 = vld [vmem:[#allocation9 + $0x20] ss:$8 sps:$4 sm:$0xff]  }
 0x4eb   :  { %5488 = vmatprep.subr.bf16.mxu0 %v13261_v46  ;;  %v13328_v46 = vld [vmem:[#allocation9 + $0x34] ss:$8 sps:$4 sm:$0xff]  }
 0x4ec   :  { %5817 = vmatpush1.bf16.msra.mxu1 %v13320_v19  ;;  %v13424_v19 = vld [vmem:[#allocation10 + $0x1ac] ss:$16 sps:$4 sm:$0xff]  }
 0x4ed   :  { %5818 = vmatprep.subr.bf16.mxu1 %v13325_v20  ;;  %v13422_v20 = vld [vmem:[#allocation10 + $0x1a8] ss:$16 sps:$4 sm:$0xff]  }
 0x4ee   :  { %5489 = vmatpush1.bf16.msra.mxu0 %v13259_v14  ;;  %v13326_v14 = vld [vmem:[#allocation9 + $0x30] ss:$8 sps:$4 sm:$0xff]  }
 0x4ef   :  { %5490 = vmatprep.subr.bf16.mxu0 %v13264_v22  ;;  %v13331_v22 = vld [vmem:[#allocation9 + $0x44] ss:$8 sps:$4 sm:$0xff]  }
 0x4f0   :  { %5819 = vmatpush1.bf16.msra.mxu1 %v13323_v21 }
 0x4f1   :  { %5820 = vmatprep.subr.bf16.mxu1 %v13328_v46  ;;  %v11894_v46 = vld [vmem:[#allocation19] ss:$0 sm:$0xff] }
 0x4f2   :  { %5491 = vmatpush1.bf16.msra.mxu0 %v13262_v23  ;;  %v13329_v23 = vld [vmem:[#allocation9 + $0x40] ss:$8 sps:$4 sm:$0xff]  }
 0x4f3   :  { %5492 = vmatprep.subr.bf16.mxu0 %v13267_v24  ;;  %v13334_v24 = vld [vmem:[#allocation9 + $0x54] ss:$8 sps:$4 sm:$0xff]  }
 0x4f4   :  { %5821 = vmatpush1.bf16.msra.mxu1 %v13326_v14 }
 0x4f5   :  { %5822 = vmatprep.subr.bf16.mxu1 %v13331_v22 }
 0x4f6   :  { %5493 = vmatpush1.bf16.msra.mxu0 %v13265_v26  ;;  %v13332_v26 = vld [vmem:[#allocation9 + $0x50] ss:$8 sps:$4 sm:$0xff]  }
 0x4f7   :  { %5494 = vmatprep.subr.bf16.mxu0 %v13270_v28  ;;  %v5111_v28 = vld [vmem:[#allocation18] sm:$0x3] }
 0x4f8   :  { %5823 = vmatpush1.bf16.msra.mxu1 %v13329_v23 }
 0x4f9   :  { %5824 = vmatprep.subr.bf16.mxu1 %v13334_v24 }
 0x4fa   :  { %5495 = vmatpush1.bf16.msra.mxu0 %v13268_v30  ;;  %v5116_v30 = vrot.slane %v5111_v28, %v14817_v47 }
 0x4fb   :  { %5496 = vmatprep.subr.bf16.mxu0 %v13273_v31  ;;  %v5120_v31 = vrot.slane %v5111_v28, %v14820_v37 }
 0x4fc   :  { %5825 = vmatpush1.bf16.msra.mxu1 %v13332_v26 }
 0x4fe   :  { %5497 = vmatpush1.bf16.msra.mxu0 %v13271_v3 }
 0x4ff   :  { %5498 = vmatprep.subr.bf16.mxu0 %v13276_v32 }
 0x502   :  { %5499 = vmatpush1.bf16.msra.mxu0 %v13274_v33 }
 0x503   :  { %5500 = vmatprep.subr.bf16.mxu0 %v13279_v35 }
 0x506   :  { %5501 = vmatpush1.bf16.msra.mxu0 %v13277_v41 }
 0x507   :  { %5502 = vmatprep.subr.bf16.mxu0 %v13282_v34 }
 0x50a   :  { %5503 = vmatpush1.bf16.msra.mxu0 %v13280_v36 }
 0x50b   :  { %5504 = vmatprep.subr.bf16.mxu0 %v13285_v48 }
 0x50e   :  { %5505 = vmatpush1.bf16.msra.mxu0 %v13283_v39 }
 0x50f   :  { %5506 = vmatprep.subr.bf16.mxu0 %v13288_v40 }
 0x512   :  { %5507 = vmatpush1.bf16.msra.mxu0 %v13286_v42  ;;  %v13337_v42 = vld [vmem:[#allocation9 + $0x64] ss:$8 sps:$4 sm:$0xff]  }
 0x513   :  { %5508 = vmatprep.subr.bf16.mxu0 %v13291_v43  ;;  %v13335_v43 = vld [vmem:[#allocation9 + $0x60] ss:$8 sps:$4 sm:$0xff]   ;;  %5826 = vmatprep.subr.bf16.mxu1 %v13337_v42  ;;  %v13379_v42 = vld [vmem:[#allocation10 + $0xc4] ss:$16 sps:$4 sm:$0xff]  }
 0x514   :  { %5827 = vmatpush1.bf16.msra.mxu1 %v13335_v43  ;;  %v13377_v43 = vld [vmem:[#allocation10 + $0xc0] ss:$16 sps:$4 sm:$0xff]  }
 0x516   :  { %5509 = vmatpush1.bf16.msra.mxu0 %v13289_v44  ;;  %v13340_v44 = vld [vmem:[#allocation9 + $0x74] ss:$8 sps:$4 sm:$0xff]  }
 0x517   :  { %5510 = vmatprep.subr.bf16.mxu0 %v13294_v27  ;;  %v13338_v27 = vld [vmem:[#allocation9 + $0x70] ss:$8 sps:$4 sm:$0xff]   ;;  %5828 = vmatprep.subr.bf16.mxu1 %v13340_v44  ;;  %v13385_v44 = vld [vmem:[#allocation10 + $0xe4] ss:$16 sps:$4 sm:$0xff]  }
 0x518   :  { %5829 = vmatpush1.bf16.msra.mxu1 %v13338_v27  ;;  %v13383_v27 = vld [vmem:[#allocation10 + $0xe0] ss:$16 sps:$4 sm:$0xff]  }
 0x519   :  { %6265 = vmatprep.subr.bf16.mxu1 %v13343_v2  ;;  %v13389_v2 = vld [vmem:[#allocation10 + $0x100] ss:$16 sps:$4 sm:$0xff]  }
 0x51a   :  { %5511 = vmatpush1.bf16.msra.mxu0 %v13292_v51  ;;  %v14435_v51 = vmov 0  }
 0x51b   :  { %5512 = vmatprep.subr.bf16.mxu0 %v13297_v12  ;;  %5846 = vmatprep.mubr.bf16.mxu1 %v14435_v51  ;;  %v13344_v12 = vld [vmem:[#allocation10 + $0x8] ss:$16 sps:$4 sm:$0xff]   ;;  %v13391_v51 = vld [vmem:[#allocation10 + $0x104] ss:$16 sps:$4 sm:$0xff]  }
 0x51e   :  { %5513 = vmatpush1.bf16.msra.mxu0 %v13295_v52  ;;  %v13346_v52 = vld [vmem:[#allocation10 + $0xc] ss:$16 sps:$4 sm:$0xff]  }
 0x51f   :  { %5514 = vmatprep.subr.bf16.mxu0 %v13300_v54  ;;  %v13350_v54 = vld [vmem:[#allocation10 + $0x28] ss:$16 sps:$4 sm:$0xff]  }
 0x522   :  { %5515 = vmatpush1.bf16.msra.mxu0 %v13298_v55  ;;  %v13358_v55 = vld [vmem:[#allocation10 + $0x4c] ss:$16 sps:$4 sm:$0xff]  }
 0x523   :  { %12632 = vmatprep.subr.bf16.mxu0 %v13301_v58  ;;  %v13364_v58 = vld [vmem:[#allocation10 + $0x6c] ss:$16 sps:$4 sm:$0xff]  }
 0x525   :  { %5517 = vmatmul.mubr.bf16.vlgmr.msra.gmra.mrb[16].mxu0 %v5045_v63  ;;  %v13370_v63 = vld [vmem:[#allocation10 + $0x8c] ss:$16 sps:$4 sm:$0xff]  }
 0x526   :  { %12633 = vmatpush3.bf16.msra.mxu0 %v13302_v61  ;;  %v13362_v61 = vld [vmem:[#allocation10 + $0x68] ss:$16 sps:$4 sm:$0xff]  }
 0x527   :  { %12634 = vmatprep.subr.bf16.mxu0 %v13303_v4  ;;  %v13368_v4 = vld [vmem:[#allocation10 + $0x88] ss:$16 sps:$4 sm:$0xff]  }
 0x52a   :  { %12635 = vmatpush3.bf16.msra.mxu0 %v13304_v56  ;;  %v13376_v56 = vld [vmem:[#allocation10 + $0xac] ss:$16 sps:$4 sm:$0xff]  }
 0x52b   :  { %12636 = vmatprep.subr.bf16.mxu0 %v13305_v5  ;;  %v13374_v5 = vld [vmem:[#allocation10 + $0xa8] ss:$16 sps:$4 sm:$0xff]  }
 0x52e   :  { %12637 = vmatpush3.bf16.msra.mxu0 %v13306_v6  ;;  %v13382_v6 = vld [vmem:[#allocation10 + $0xcc] ss:$16 sps:$4 sm:$0xff]  }
 0x52f   :  { %12638 = vmatprep.subr.bf16.mxu0 %v13307_v1  ;;  %v13380_v1 = vld [vmem:[#allocation10 + $0xc8] ss:$16 sps:$4 sm:$0xff]  }
 0x532   :  { %12639 = vmatpush3.bf16.msra.mxu0 %v13308_v60  ;;  %v13388_v60 = vld [vmem:[#allocation10 + $0xec] ss:$16 sps:$4 sm:$0xff]  }
 0x533   :  { %12640 = vmatprep.subr.bf16.mxu0 %v13309_v62  ;;  %v13386_v62 = vld [vmem:[#allocation10 + $0xe8] ss:$16 sps:$4 sm:$0xff]  }
 0x536   :  { %12641 = vmatpush3.bf16.msra.mxu0 %v13310_v50  ;;  %v13394_v50 = vld [vmem:[#allocation10 + $0x10c] ss:$16 sps:$4 sm:$0xff]  }
 0x537   :  { %12642 = vmatprep.subr.bf16.mxu0 %v13311_v25  ;;  %v13392_v25 = vld [vmem:[#allocation10 + $0x108] ss:$16 sps:$4 sm:$0xff]  }
 0x53a   :  { %12643 = vmatpush3.bf16.msra.mxu0 %v13312_v7  ;;  %v13400_v7 = vld [vmem:[#allocation10 + $0x12c] ss:$16 sps:$4 sm:$0xff]  }
 0x53b   :  { %12644 = vmatprep.subr.bf16.mxu0 %v13313_v9  ;;  %v13398_v9 = vld [vmem:[#allocation10 + $0x128] ss:$16 sps:$4 sm:$0xff]  }
 0x53e   :  { %12645 = vmatpush3.bf16.msra.mxu0 %v13314_v11  ;;  %v13406_v11 = vld [vmem:[#allocation10 + $0x14c] ss:$16 sps:$4 sm:$0xff]  }
 0x53f   :  { %12646 = vmatprep.subr.bf16.mxu0 %v13315_v13  ;;  %v13404_v13 = vld [vmem:[#allocation10 + $0x148] ss:$16 sps:$4 sm:$0xff]  }
 0x542   :  { %12647 = vmatpush3.bf16.msra.mxu0 %v13316_v15  ;;  %v13412_v15 = vld [vmem:[#allocation10 + $0x16c] ss:$16 sps:$4 sm:$0xff]  }
 0x543   :  { %6306 = vmatprep.subr.bf16.mxu0 %v13346_v52  ;;  %v13395_v52 = vld [vmem:[#allocation10 + $0x120] ss:$16 sps:$4 sm:$0xff]  }
 0x5f8   :  { %v5518_v3 = vpop.f32.mrb[16].mxu0 }
 0x5f9   :  { %v12668_v32 = vadd.f32 %v5518_v3, %v5116_v30  ;;  %v5520_v33 = vpop.f32.mrb[17].mxu0  ;;  %v13341_v30 = vld [vmem:[#allocation10] ss:$16 sps:$4 sm:$0xff]   ;;  %v13349_v3 = vld [vmem:[#allocation10 + $0x24] ss:$16 sps:$4 sm:$0xff]  }
 0x5fa   :  { %v12669_v35 = vadd.f32 %v5520_v33, %v5120_v31  ;;  %v5522_v41 = vpop.f32.mrb[18].mxu0  ;;  %v13355_v33 = vld [vmem:[#allocation10 + $0x44] ss:$16 sps:$4 sm:$0xff]  }
 0x5fb   :  { %v5525_v34 = vmax.f32 %v12668_v32, 0.0  ;;  %v5523_v36 = vpop.f32.mrb[19].mxu0  ;;  %v13347_v32 = vld [vmem:[#allocation10 + $0x20] ss:$16 sps:$4 sm:$0xff]   ;;  %v13361_v41 = vld [vmem:[#allocation10 + $0x64] ss:$16 sps:$4 sm:$0xff]  }
 0x5fc   :  { %v5526_v48 = vmax.f32 %v12669_v35, 0.0  ;;  %v13353_v35 = vld [vmem:[#allocation10 + $0x40] ss:$16 sps:$4 sm:$0xff]   ;;  %v13367_v36 = vld [vmem:[#allocation10 + $0x84] ss:$16 sps:$4 sm:$0xff]  }
 0x5fd   :  { %v5527_v40 = vpack.c.bf16 %v5525_v34, %v5525_v34  ;;  %v13359_v34 = vld [vmem:[#allocation10 + $0x60] ss:$16 sps:$4 sm:$0xff]  }
 0x5fe   :  { %v5528_v39 = vpack.c.bf16 %v5526_v48, %v5526_v48  ;;  %v13365_v48 = vld [vmem:[#allocation10 + $0x80] ss:$16 sps:$4 sm:$0xff]  }
 0x600   :  { %5696 = vmatprep.mubr.bf16.mxu0 %v5528_v39  ;;  %v13373_v39 = vld [vmem:[#allocation10 + $0xa4] ss:$16 sps:$4 sm:$0xff]  }
 0x601   :  { %5697 = vmatmul.mubr.bf16.vlgmr.msra.gmra.mrb[20].mxu0 %v5527_v40  ;;  %v13371_v40 = vld [vmem:[#allocation10 + $0xa0] ss:$16 sps:$4 sm:$0xff]  }
 0x602   :  { %6307 = vmatpush1.bf16.msra.mxu0 %v13344_v12  ;;  %v13397_v12 = vld [vmem:[#allocation10 + $0x124] ss:$16 sps:$4 sm:$0xff]  }
 0x603   :  { %6308 = vmatprep.subr.bf16.mxu0 %v13352_v53  ;;  %v13403_v53 = vld [vmem:[#allocation10 + $0x144] ss:$16 sps:$4 sm:$0xff]  }
 0x606   :  { %6309 = vmatpush1.bf16.msra.mxu0 %v13350_v54  ;;  %v13401_v54 = vld [vmem:[#allocation10 + $0x140] ss:$16 sps:$4 sm:$0xff]  }
 0x607   :  { %6310 = vmatprep.subr.bf16.mxu0 %v13358_v55  ;;  %v13409_v55 = vld [vmem:[#allocation10 + $0x164] ss:$16 sps:$4 sm:$0xff]  }
 0x60a   :  { %6311 = vmatpush1.bf16.msra.mxu0 %v13356_v57  ;;  %v13407_v57 = vld [vmem:[#allocation10 + $0x160] ss:$16 sps:$4 sm:$0xff]  }
 0x60b   :  { %6312 = vmatprep.subr.bf16.mxu0 %v13364_v58  ;;  %v13415_v58 = vld [vmem:[#allocation10 + $0x184] ss:$16 sps:$4 sm:$0xff]  }
 0x60e   :  { %6313 = vmatpush1.bf16.msra.mxu0 %v13362_v61  ;;  %v13413_v61 = vld [vmem:[#allocation10 + $0x180] ss:$16 sps:$4 sm:$0xff]  }
 0x60f   :  { %6314 = vmatprep.subr.bf16.mxu0 %v13370_v63  ;;  %v13421_v63 = vld [vmem:[#allocation10 + $0x1a4] ss:$16 sps:$4 sm:$0xff]  }
 0x612   :  { %6315 = vmatpush1.bf16.msra.mxu0 %v13368_v4  ;;  %v13419_v4 = vld [vmem:[#allocation10 + $0x1a0] ss:$16 sps:$4 sm:$0xff]  }
 0x613   :  { %6316 = vmatprep.subr.bf16.mxu0 %v13376_v56  ;;  %v13427_v56 = vld [vmem:[#allocation10 + $0x1c4] ss:$16 sps:$4 sm:$0xff]  }
 0x616   :  { %6317 = vmatpush1.bf16.msra.mxu0 %v13374_v5  ;;  %v13430_v5 = vld [vmem:[#allocation10 + $0x1cc] ss:$16 sps:$4 sm:$0xff]  }
 0x617   :  { %6318 = vmatprep.subr.bf16.mxu0 %v13382_v6  ;;  %v13425_v6 = vld [vmem:[#allocation10 + $0x1c0] ss:$16 sps:$4 sm:$0xff]  }
 0x61a   :  { %6319 = vmatpush1.bf16.msra.mxu0 %v13380_v1  ;;  %v13428_v1 = vld [vmem:[#allocation10 + $0x1c8] ss:$16 sps:$4 sm:$0xff]  }
 0x61b   :  { %6320 = vmatprep.subr.bf16.mxu0 %v13388_v60  ;;  %v13433_v60 = vld [vmem:[#allocation10 + $0x1e4] ss:$16 sps:$4 sm:$0xff]  }
 0x61e   :  { %6321 = vmatpush1.bf16.msra.mxu0 %v13386_v62  ;;  %v13436_v62 = vld [vmem:[#allocation10 + $0x1ec] ss:$16 sps:$4 sm:$0xff]  }
 0x61f   :  { %6322 = vmatprep.subr.bf16.mxu0 %v13394_v50  ;;  %v13431_v50 = vld [vmem:[#allocation10 + $0x1e0] ss:$16 sps:$4 sm:$0xff]  }
 0x622   :  { %6323 = vmatpush1.bf16.msra.mxu0 %v13392_v25  ;;  %v13434_v25 = vld [vmem:[#allocation10 + $0x1e8] ss:$16 sps:$4 sm:$0xff]  }
 0x623   :  { %6324 = vmatprep.subr.bf16.mxu0 %v13400_v7  ;;  %v6355_v7 = vld [vmem:[#allocation12] sm:$0xff] }
 0x626   :  { %6325 = vmatpush1.bf16.msra.mxu0 %v13398_v9  ;;  %v6359_v9 = vld [vmem:[#allocation12 + $0x20] sm:$0xff] }
 0x627   :  { %6326 = vmatprep.subr.bf16.mxu0 %v13406_v11  ;;  %v6356_v11 = vld [vmem:[#allocation12 + $0x8] sm:$0xff] }
 0x62a   :  { %6327 = vmatpush1.bf16.msra.mxu0 %v13404_v13  ;;  %v11991_v13 = vcombine.low %v6355_v7, %v6359_v9 }
 0x62b   :  { %6328 = vmatprep.subr.bf16.mxu0 %v13412_v15  ;;  %v11992_v15 = vcombine.high %v6355_v7, %v6359_v9  ;;  %v6400_v7 = vld [vmem:[#allocation12 + $0x168] sm:$0xff] }
 0x62e   :  { %6329 = vmatpush1.bf16.msra.mxu0 %v13410_v16  ;;  %v6360_v16 = vld [vmem:[#allocation12 + $0x28] sm:$0xff] }
 0x62f   :  { %6330 = vmatprep.subr.bf16.mxu0 %v13418_v17  ;;  %v11993_v17 = vcombine.low %v6356_v11, %v6360_v16 }
 0x632   :  { %6331 = vmatpush1.bf16.msra.mxu0 %v13416_v49  ;;  %v11994_v49 = vcombine.high %v6356_v11, %v6360_v16  ;;  %v6403_v16 = vld [vmem:[#allocation12 + $0x180] sm:$0xff] }
 0x633   :  { %6332 = vmatprep.subr.bf16.mxu0 %v13424_v19  ;;  %v5722_v19 = vld [vmem:[#allocation21] sm:$0x3] }
 0x636   :  { %6333 = vmatpush1.bf16.msra.mxu0 %v13422_v20  ;;  %v5727_v20 = vrot.slane %v5722_v19, %v14817_v47 }
 0x637   :  { %6334 = vmatprep.subr.bf16.mxu0 %v13430_v5 }
 0x63a   :  { %6335 = vmatpush1.bf16.msra.mxu0 %v13428_v1 }
 0x63b   :  { %6336 = vmatprep.subr.bf16.mxu0 %v13436_v62  ;;  %v6395_v62 = vld [vmem:[#allocation12 + $0x140] sm:$0xff] }
 0x63e   :  { %6337 = vmatpush1.bf16.msra.mxu0 %v13434_v25  ;;  %v6396_v25 = vld [vmem:[#allocation12 + $0x148] sm:$0xff] }
 0x63f   :  { %8015 = vmatprep.subr.bf16.mxu0 %v11994_v49  ;;  %v6404_v49 = vld [vmem:[#allocation12 + $0x188] sm:$0xff] }
 0x6d4   :  { %v12648_v21 = vpop.f32.mrb[20].mxu0 }
 0x6d5   :  { %v12649_v14 = vpop.f32.mrb[21].mxu0 }
 0x6d6   :  { %v12650_v22 = vadd.f32 %v12649_v14, %v12648_v21  ;;  %v12651_v23 = vpop.f32.mrb[22].mxu0  ;;  %v5731_v21 = vrot.slane %v5722_v19, %v14820_v37  ;;  %v6408_v19 = vld [vmem:[#allocation12 + $0x1a8] sm:$0xff] }
 0x6d7   :  { %v12652_v24 = vpop.f32.mrb[23].mxu0 }
 0x6d8   :  { %v5699_v26 = vadd.f32 %v12650_v22, %v11894_v46 }
 0x6da   :  { %v5704_v28 = vmax.f32 %v5699_v26, 0.0 }
 0x6dc   :  { %v5705_v31 = vpack.c.bf16 %v5704_v28, %v5704_v28 }
 0x6de   :  { %5847 = vmatmul.mubr.bf16.vlgmr.msra.gmra.mrb[12].mxu1 %v5705_v31 }
 0x6df   :  { %6266 = vmatpush1.bf16.msra.mxu1 %v13341_v30  ;;  %v6363_v30 = vld [vmem:[#allocation12 + $0x40] sm:$0xff] }
 0x6e0   :  { %6267 = vmatprep.subr.bf16.mxu1 %v13349_v3  ;;  %v6367_v3 = vld [vmem:[#allocation12 + $0x60] sm:$0xff] }
 0x6e3   :  { %6268 = vmatpush1.bf16.msra.mxu1 %v13347_v32  ;;  %v6364_v32 = vld [vmem:[#allocation12 + $0x48] sm:$0xff] }
 0x6e4   :  { %6269 = vmatprep.subr.bf16.mxu1 %v13355_v33  ;;  %v6368_v33 = vld [vmem:[#allocation12 + $0x68] sm:$0xff] }
 0x6e7   :  { %6270 = vmatpush1.bf16.msra.mxu1 %v13353_v35 }
 0x6e8   :  { %6271 = vmatprep.subr.bf16.mxu1 %v13361_v41 }
 0x6eb   :  { %6272 = vmatpush1.bf16.msra.mxu1 %v13359_v34  ;;  %v12000_v34 = vcombine.high %v6363_v30, %v6367_v3 }
 0x6ec   :  { %6273 = vmatprep.subr.bf16.mxu1 %v13367_v36  ;;  %v12002_v36 = vcombine.high %v6364_v32, %v6368_v33 }
 0x6ef   :  { %6274 = vmatpush1.bf16.msra.mxu1 %v13365_v48  ;;  %v6371_v48 = vld [vmem:[#allocation12 + $0x80] sm:$0xff] }
 0x6f0   :  { %6275 = vmatprep.subr.bf16.mxu1 %v13373_v39  ;;  %v6375_v39 = vld [vmem:[#allocation12 + $0xa0] sm:$0xff] }
 0x6f3   :  { %6276 = vmatpush1.bf16.msra.mxu1 %v13371_v40  ;;  %v6372_v40 = vld [vmem:[#allocation12 + $0x88] sm:$0xff] }
 0x6f4   :  { %6277 = vmatprep.subr.bf16.mxu1 %v13379_v42  ;;  %v6376_v42 = vld [vmem:[#allocation12 + $0xa8] sm:$0xff] }
 0x6f7   :  { %6278 = vmatpush1.bf16.msra.mxu1 %v13377_v43  ;;  %v11999_v43 = vcombine.low %v6363_v30, %v6367_v3  ;;  %v12041_v30 = vcombine.low %v6404_v49, %v6408_v19 }
 0x6f8   :  { %6279 = vmatprep.subr.bf16.mxu1 %v13385_v44  ;;  %v12001_v44 = vcombine.low %v6364_v32, %v6368_v33  ;;  %v6419_v32 = vld [vmem:[#allocation12 + $0x200] sm:$0xff] }
 0x6f9   :  { %v6423_v33 = vld [vmem:[#allocation12 + $0x220] sm:$0xff] }
 0x6fb   :  { %6280 = vmatpush1.bf16.msra.mxu1 %v13383_v27  ;;  %v12008_v27 = vcombine.high %v6371_v48, %v6375_v39 }
 0x6fc   :  { %6281 = vmatprep.subr.bf16.mxu1 %v13391_v51  ;;  %v12010_v51 = vcombine.high %v6372_v40, %v6376_v42 }
 0x6ff   :  { %6282 = vmatpush1.bf16.msra.mxu1 %v13389_v2  ;;  %v6379_v2 = vld [vmem:[#allocation12 + $0xc0] sm:$0xff] }
 0x700   :  { %6283 = vmatprep.subr.bf16.mxu1 %v13397_v12  ;;  %v6383_v12 = vld [vmem:[#allocation12 + $0xe0] sm:$0xff] }
 0x701   :  { %v12015_v5 = vcombine.low %v6379_v2, %v6383_v12 }
 0x703   :  { %6284 = vmatpush1.bf16.msra.mxu1 %v13395_v52  ;;  %v6380_v52 = vld [vmem:[#allocation12 + $0xc8] sm:$0xff] }
 0x704   :  { %6285 = vmatprep.subr.bf16.mxu1 %v13403_v53  ;;  %v6384_v53 = vld [vmem:[#allocation12 + $0xe8] sm:$0xff] }
 0x707   :  { %6286 = vmatpush1.bf16.msra.mxu1 %v13401_v54  ;;  %v12007_v54 = vcombine.low %v6371_v48, %v6375_v39  ;;  %v12056_v48 = vcombine.high %v6419_v32, %v6423_v33 }
 0x708   :  { %6287 = vmatprep.subr.bf16.mxu1 %v13409_v55  ;;  %v12009_v55 = vcombine.low %v6372_v40, %v6376_v42  ;;  %v6427_v40 = vld [vmem:[#allocation12 + $0x240] sm:$0xff] }
 0x709   :  { %v6431_v42 = vld [vmem:[#allocation12 + $0x260] sm:$0xff] }
 0x70b   :  { %6288 = vmatpush1.bf16.msra.mxu1 %v13407_v57  ;;  %v12016_v57 = vcombine.high %v6379_v2, %v6383_v12  ;;  %v12064_v2 = vcombine.high %v6427_v40, %v6431_v42 }
 0x70c   :  { %6289 = vmatprep.subr.bf16.mxu1 %v13415_v58  ;;  %v12018_v58 = vcombine.high %v6380_v52, %v6384_v53 }
 0x70f   :  { %6290 = vmatpush1.bf16.msra.mxu1 %v13413_v61  ;;  %v6387_v61 = vld [vmem:[#allocation12 + $0x100] sm:$0xff] }
 0x710   :  { %6291 = vmatprep.subr.bf16.mxu1 %v13421_v63  ;;  %v6391_v63 = vld [vmem:[#allocation12 + $0x120] sm:$0xff] }
 0x711   :  { %v12024_v1 = vcombine.high %v6387_v61, %v6391_v63  ;;  %v12023_v9 = vcombine.low %v6387_v61, %v6391_v63 }
 0x713   :  { %6292 = vmatpush1.bf16.msra.mxu1 %v13419_v4  ;;  %v6388_v4 = vld [vmem:[#allocation12 + $0x108] sm:$0xff] }
 0x714   :  { %6293 = vmatprep.subr.bf16.mxu1 %v13427_v56  ;;  %v6392_v56 = vld [vmem:[#allocation12 + $0x128] sm:$0xff] }
 0x715   :  { %v12025_v11 = vcombine.low %v6388_v4, %v6392_v56 }
 0x717   :  { %6294 = vmatpush1.bf16.msra.mxu1 %v13425_v6  ;;  %v12017_v6 = vcombine.low %v6380_v52, %v6384_v53  ;;  %v6435_v52 = vld [vmem:[#allocation12 + $0x280] sm:$0xff] }
 0x718   :  { %6295 = vmatprep.subr.bf16.mxu1 %v13433_v60  ;;  %v12026_v60 = vcombine.high %v6388_v4, %v6392_v56  ;;  %v6439_v53 = vld [vmem:[#allocation12 + $0x2a0] sm:$0xff] }
 0x719   :  { %v12072_v61 = vcombine.high %v6435_v52, %v6439_v53  ;;  %v6443_v4 = vld [vmem:[#allocation12 + $0x2c0] sm:$0xff] }
 0x71a   :  { %v6447_v56 = vld [vmem:[#allocation12 + $0x2e0] sm:$0xff] }
 0x71b   :  { %6296 = vmatpush1.bf16.msra.mxu1 %v13431_v50  ;;  %v6399_v50 = vld [vmem:[#allocation12 + $0x160] sm:$0xff] }
 0x71c   :  { %7933 = vmatprep.subr.bf16.mxu1 %v11992_v15  ;;  %v12034_v15 = vcombine.high %v6396_v25, %v6400_v7 }
 0x7b1   :  { %v5848_v46 = vpop.f32.mrb[12].mxu1 }
 0x7b2   :  { %v5849_v14 = vadd.f32 %v5848_v46, %v5727_v20  ;;  %v5850_v22 = vpop.f32.mrb[13].mxu1  ;;  %v12031_v20 = vcombine.low %v6395_v62, %v6399_v50 }
 0x7b3   :  { %v5851_v23 = vadd.f32 %v5850_v22, %v5731_v21  ;;  %v5852_v24 = vpop.f32.mrb[14].mxu1  ;;  %v12033_v21 = vcombine.low %v6396_v25, %v6400_v7  ;;  %v6411_v22 = vld [vmem:[#allocation12 + $0x1c0] sm:$0xff] }
 0x7b4   :  { %v5855_v26 = vmax.f32 %v5849_v14, 0.0  ;;  %v5853_v28 = vpop.f32.mrb[15].mxu1  ;;  %v12042_v14 = vcombine.high %v6404_v49, %v6408_v19  ;;  %v6412_v24 = vld [vmem:[#allocation12 + $0x1c8] sm:$0xff]  ;;  %v6451_v25 = vld [vmem:[#allocation12 + $0x300] sm:$0xff] }
 0x7b5   :  { %v5856_v31 = vmax.f32 %v5851_v23, 0.0  ;;  %v6415_v23 = vld [vmem:[#allocation12 + $0x1e0] sm:$0xff] }
 0x7b6   :  { %v5857_v41 = vpack.c.bf16 %v5855_v26, %v5855_v26  ;;  %v6416_v26 = vld [vmem:[#allocation12 + $0x1e8] sm:$0xff]  ;;  %v6455_v7 = vld [vmem:[#allocation12 + $0x320] sm:$0xff] }
 0x7b7   :  { %v5858_v35 = vpack.c.bf16 %v5856_v31, %v5856_v31  ;;  %v12048_v31 = vcombine.high %v6411_v22, %v6415_v23  ;;  %v12050_v3 = vcombine.high %v6412_v24, %v6416_v26  ;;  %v6459_v49 = vld [vmem:[#allocation12 + $0x340] sm:$0xff] }
 0x7b8   :  { %v6463_v19 = vld [vmem:[#allocation12 + $0x360] sm:$0xff] }
 0x7b9   :  { %6297 = vmatprep.mubr.bf16.mxu1 %v5858_v35  ;;  %6338 = vmatprep.mubr.bf16.mxu0 %v5858_v35  ;;  %v6420_v35 = vld [vmem:[#allocation12 + $0x208] sm:$0xff] }
 0x7ba   :  { %6298 = vmatmul.mubr.bf16.vlgmr.msra.gmra.mrb[16].mxu1 %v5857_v41  ;;  %6339 = vmatmul.mubr.bf16.vlgmr.msra.gmra.mrb[24].mxu0 %v5857_v41  ;;  %v6424_v41 = vld [vmem:[#allocation12 + $0x228] sm:$0xff] }
 0x7bb   :  { %7934 = vmatpush1.bf16.msra.mxu1 %v11991_v13  ;;  %8016 = vmatpush1.bf16.msra.mxu0 %v11993_v17  ;;  %v12032_v13 = vcombine.high %v6395_v62, %v6399_v50  ;;  %v6407_v17 = vld [vmem:[#allocation12 + $0x1a0] sm:$0xff]  ;;  %v12058_v39 = vcombine.high %v6420_v35, %v6424_v41  ;;  %v12080_v62 = vcombine.high %v6443_v4, %v6447_v56 }
 0x7bc   :  { %7935 = vmatprep.subr.bf16.mxu1 %v12000_v34  ;;  %8017 = vmatprep.subr.bf16.mxu0 %v12002_v36  ;;  %v12040_v46 = vcombine.high %v6403_v16, %v6407_v17  ;;  %v12039_v28 = vcombine.low %v6403_v16, %v6407_v17  ;;  %v12047_v34 = vcombine.low %v6411_v22, %v6415_v23 }
 0x7bd   :  { %v12049_v36 = vcombine.low %v6412_v24, %v6416_v26  ;;  %v12088_v16 = vcombine.high %v6451_v25, %v6455_v7  ;;  %v12096_v22 = vcombine.high %v6459_v49, %v6463_v19  ;;  %v12095_v24 = vcombine.low %v6459_v49, %v6463_v19  ;;  %v6492_v49 = vld [vmem:[#allocation12 + $0x448] sm:$0xff] }
 0x7be   :  { %v6496_v19 = vld [vmem:[#allocation12 + $0x468] sm:$0xff] }
 0x7bf   :  { %7936 = vmatpush1.bf16.msra.mxu1 %v11999_v43  ;;  %8018 = vmatpush1.bf16.msra.mxu0 %v12001_v44  ;;  %v6428_v43 = vld [vmem:[#allocation12 + $0x248] sm:$0xff] }
 0x7c0   :  { %7937 = vmatprep.subr.bf16.mxu1 %v12008_v27  ;;  %8019 = vmatprep.subr.bf16.mxu0 %v12010_v51  ;;  %v6432_v44 = vld [vmem:[#allocation12 + $0x268] sm:$0xff]  ;;  %v12055_v27 = vcombine.low %v6419_v32, %v6423_v33  ;;  %v12057_v51 = vcombine.low %v6420_v35, %v6424_v41 }
 0x7c1   :  { %v12066_v12 = vcombine.high %v6428_v43, %v6432_v44  ;;  %v6472_v32 = vld [vmem:[#allocation12 + $0x3a8] sm:$0xff] }
 0x7c3   :  { %7938 = vmatpush1.bf16.msra.mxu1 %v12007_v54  ;;  %8020 = vmatpush1.bf16.msra.mxu0 %v12009_v55  ;;  %v6436_v54 = vld [vmem:[#allocation12 + $0x288] sm:$0xff] }
 0x7c4   :  { %7939 = vmatprep.subr.bf16.mxu1 %v12016_v57  ;;  %8021 = vmatprep.subr.bf16.mxu0 %v12018_v58  ;;  %v6440_v55 = vld [vmem:[#allocation12 + $0x2a8] sm:$0xff]  ;;  %v12063_v57 = vcombine.low %v6427_v40, %v6431_v42  ;;  %v12065_v58 = vcombine.low %v6428_v43, %v6432_v44 }
 0x7c5   :  { %v12074_v63 = vcombine.high %v6436_v54, %v6440_v55  ;;  %v6480_v40 = vld [vmem:[#allocation12 + $0x3e8] sm:$0xff] }
 0x7c7   :  { %7940 = vmatpush1.bf16.msra.mxu1 %v12015_v5  ;;  %8022 = vmatpush1.bf16.msra.mxu0 %v12017_v6  ;;  %v6444_v5 = vld [vmem:[#allocation12 + $0x2c8] sm:$0xff] }
 0x7c8   :  { %7941 = vmatprep.subr.bf16.mxu1 %v12024_v1  ;;  %8023 = vmatprep.subr.bf16.mxu0 %v12026_v60  ;;  %v6448_v6 = vld [vmem:[#allocation12 + $0x2e8] sm:$0xff]  ;;  %v12071_v1 = vcombine.low %v6435_v52, %v6439_v53  ;;  %v12073_v60 = vcombine.low %v6436_v54, %v6440_v55 }
 0x7c9   :  { %v12082_v50 = vcombine.high %v6444_v5, %v6448_v6  ;;  %v6488_v52 = vld [vmem:[#allocation12 + $0x428] sm:$0xff] }
 0x7cb   :  { %7942 = vmatpush1.bf16.msra.mxu1 %v12023_v9  ;;  %8024 = vmatpush1.bf16.msra.mxu0 %v12025_v11  ;;  %v6452_v9 = vld [vmem:[#allocation12 + $0x308] sm:$0xff] }
 0x7cc   :  { %7943 = vmatprep.subr.bf16.mxu1 %v12032_v13  ;;  %8025 = vmatprep.subr.bf16.mxu0 %v12034_v15  ;;  %v6456_v11 = vld [vmem:[#allocation12 + $0x328] sm:$0xff]  ;;  %v12079_v13 = vcombine.low %v6443_v4, %v6447_v56  ;;  %v12081_v15 = vcombine.low %v6444_v5, %v6448_v6 }
 0x7cd   :  { %v12090_v17 = vcombine.high %v6452_v9, %v6456_v11 }
 0x7cf   :  { %7944 = vmatpush1.bf16.msra.mxu1 %v12031_v20  ;;  %8026 = vmatpush1.bf16.msra.mxu0 %v12033_v21  ;;  %v6460_v20 = vld [vmem:[#allocation12 + $0x348] sm:$0xff] }
 0x7d0   :  { %7945 = vmatprep.subr.bf16.mxu1 %v12040_v46  ;;  %8027 = vmatprep.subr.bf16.mxu0 %v12042_v14  ;;  %v6464_v21 = vld [vmem:[#allocation12 + $0x368] sm:$0xff]  ;;  %v12087_v46 = vcombine.low %v6451_v25, %v6455_v7  ;;  %v12089_v14 = vcombine.low %v6452_v9, %v6456_v11 }
 0x7d1   :  { %v12098_v23 = vcombine.high %v6460_v20, %v6464_v21  ;;  %v12097_v26 = vcombine.low %v6460_v20, %v6464_v21 }
 0x7d3   :  { %7946 = vmatpush1.bf16.msra.mxu1 %v12039_v28  ;;  %8028 = vmatpush1.bf16.msra.mxu0 %v12041_v30  ;;  %v6467_v28 = vld [vmem:[#allocation12 + $0x380] sm:$0xff] }
 0x7d4   :  { %7947 = vmatprep.subr.bf16.mxu1 %v12048_v31  ;;  %8029 = vmatprep.subr.bf16.mxu0 %v12050_v3  ;;  %v6471_v30 = vld [vmem:[#allocation12 + $0x3a0] sm:$0xff]  ;;  %v6468_v31 = vld [vmem:[#allocation12 + $0x388] sm:$0xff] }
 0x7d5   :  { %v12104_v3 = vcombine.high %v6467_v28, %v6471_v30  ;;  %v12103_v33 = vcombine.low %v6467_v28, %v6471_v30  ;;  %v12105_v35 = vcombine.low %v6468_v31, %v6472_v32  ;;  %v12106_v41 = vcombine.high %v6468_v31, %v6472_v32 }
 0x7d6   :  { %v12129_v31 = vcombine.low %v6492_v49, %v6496_v19 }
 0x7d7   :  { %7948 = vmatpush1.bf16.msra.mxu1 %v12047_v34  ;;  %8030 = vmatpush1.bf16.msra.mxu0 %v12049_v36  ;;  %v6475_v34 = vld [vmem:[#allocation12 + $0x3c0] sm:$0xff] }
 0x7d8   :  { %7949 = vmatprep.subr.bf16.mxu1 %v12056_v48  ;;  %8031 = vmatprep.subr.bf16.mxu0 %v12058_v39  ;;  %v6479_v36 = vld [vmem:[#allocation12 + $0x3e0] sm:$0xff]  ;;  %v6476_v48 = vld [vmem:[#allocation12 + $0x3c8] sm:$0xff] }
 0x7d9   :  { %v12112_v39 = vcombine.high %v6475_v34, %v6479_v36  ;;  %v12111_v42 = vcombine.low %v6475_v34, %v6479_v36  ;;  %v12113_v43 = vcombine.low %v6476_v48, %v6480_v40  ;;  %v12114_v44 = vcombine.high %v6476_v48, %v6480_v40  ;;  %v6512_v34 = vld [vmem:[#allocation12 + $0x4e8] sm:$0xff] }
 0x7db   :  { %7950 = vmatpush1.bf16.msra.mxu1 %v12055_v27  ;;  %8032 = vmatpush1.bf16.msra.mxu0 %v12057_v51  ;;  %v6483_v27 = vld [vmem:[#allocation12 + $0x400] sm:$0xff] }
 0x7dc   :  { %7951 = vmatprep.subr.bf16.mxu1 %v12064_v2  ;;  %8033 = vmatprep.subr.bf16.mxu0 %v12066_v12  ;;  %v6487_v51 = vld [vmem:[#allocation12 + $0x420] sm:$0xff]  ;;  %v6484_v2 = vld [vmem:[#allocation12 + $0x408] sm:$0xff] }
 0x7dd   :  { %v12120_v12 = vcombine.high %v6483_v27, %v6487_v51  ;;  %v12119_v53 = vcombine.low %v6483_v27, %v6487_v51  ;;  %v12121_v54 = vcombine.low %v6484_v2, %v6488_v52  ;;  %v12122_v55 = vcombine.high %v6484_v2, %v6488_v52  ;;  %v6520_v27 = vld [vmem:[#allocation12 + $0x528] sm:$0xff] }
 0x7df   :  { %7952 = vmatpush1.bf16.msra.mxu1 %v12063_v57  ;;  %8034 = vmatpush1.bf16.msra.mxu0 %v12065_v58  ;;  %v14898_v57 = vld [vmem:[#allocation22] sm:$0xf] }
 0x7e0   :  { %7953 = vmatprep.subr.bf16.mxu1 %v12072_v61  ;;  %8035 = vmatprep.subr.bf16.mxu0 %v12074_v63  ;;  %v5928_v58 = vrot.slane %v14898_v57, %v14817_v47  ;;  %v5932_v61 = vrot.slane %v14898_v57, %v14820_v37  ;;  %v5940_v63 = vrot.slane %v14898_v57, %v14838_v10 }
 0x7e3   :  { %7954 = vmatpush1.bf16.msra.mxu1 %v12071_v1  ;;  %8036 = vmatpush1.bf16.msra.mxu0 %v12073_v60 }
 0x7e4   :  { %7955 = vmatprep.subr.bf16.mxu1 %v12080_v62  ;;  %8037 = vmatprep.subr.bf16.mxu0 %v12082_v50 }
 0x7e7   :  { %7956 = vmatpush1.bf16.msra.mxu1 %v12079_v13  ;;  %8038 = vmatpush1.bf16.msra.mxu0 %v12081_v15  ;;  %v6491_v15 = vld [vmem:[#allocation12 + $0x440] sm:$0xff] }
 0x7e8   :  { %7957 = vmatprep.subr.bf16.mxu1 %v12088_v16  ;;  %8039 = vmatprep.subr.bf16.mxu0 %v12090_v17  ;;  %v6495_v17 = vld [vmem:[#allocation12 + $0x460] sm:$0xff] }
 0x7e9   :  { %v12127_v30 = vcombine.low %v6491_v15, %v6495_v17 }
 0x7eb   :  { %7958 = vmatpush1.bf16.msra.mxu1 %v12087_v46  ;;  %8040 = vmatpush1.bf16.msra.mxu0 %v12089_v14  ;;  %v6499_v46 = vld [vmem:[#allocation12 + $0x480] sm:$0xff]  ;;  %v12128_v14 = vcombine.high %v6491_v15, %v6495_v17  ;;  %v6540_v15 = vld [vmem:[#allocation12 + $0x5c8] sm:$0xff] }
 0x7ec   :  { %7959 = vmatprep.subr.bf16.mxu1 %v12096_v22  ;;  %8041 = vmatprep.subr.bf16.mxu0 %v12098_v23  ;;  %v12130_v22 = vcombine.high %v6492_v49, %v6496_v19  ;;  %v6503_v23 = vld [vmem:[#allocation12 + $0x4a0] sm:$0xff] }
 0x7ed   :  { %v12135_v36 = vcombine.low %v6499_v46, %v6503_v23 }
 0x7ef   :  { %7960 = vmatpush1.bf16.msra.mxu1 %v12095_v24  ;;  %8042 = vmatpush1.bf16.msra.mxu0 %v12097_v26  ;;  %v6500_v24 = vld [vmem:[#allocation12 + $0x488] sm:$0xff] }
 0x7f0   :  { %7961 = vmatprep.subr.bf16.mxu1 %v12104_v3  ;;  %8043 = vmatprep.subr.bf16.mxu0 %v12106_v41  ;;  %v6504_v26 = vld [vmem:[#allocation12 + $0x4a8] sm:$0xff]  ;;  %v12136_v3 = vcombine.high %v6499_v46, %v6503_v23 }
 0x7f1   :  { %v12138_v32 = vcombine.high %v6500_v24, %v6504_v26  ;;  %v6508_v41 = vld [vmem:[#allocation12 + $0x4c8] sm:$0xff]  ;;  %v12137_v48 = vcombine.low %v6500_v24, %v6504_v26 }
 0x7f2   :  { %v12146_v40 = vcombine.high %v6508_v41, %v6512_v34  ;;  %v12145_v2 = vcombine.low %v6508_v41, %v6512_v34  ;;  %v6548_v23 = vld [vmem:[#allocation12 + $0x608] sm:$0xff] }
 0x7f3   :  { %7962 = vmatpush1.bf16.msra.mxu1 %v12103_v33  ;;  %8044 = vmatpush1.bf16.msra.mxu0 %v12105_v35  ;;  %v6507_v33 = vld [vmem:[#allocation12 + $0x4c0] sm:$0xff]  ;;  %v6552_v24 = vld [vmem:[#allocation12 + $0x628] sm:$0xff] }
 0x7f4   :  { %7963 = vmatprep.subr.bf16.mxu1 %v12112_v39  ;;  %8045 = vmatprep.subr.bf16.mxu0 %v12114_v44  ;;  %v6511_v35 = vld [vmem:[#allocation12 + $0x4e0] sm:$0xff]  ;;  %v6516_v44 = vld [vmem:[#allocation12 + $0x508] sm:$0xff] }
 0x7f5   :  { %v12144_v39 = vcombine.high %v6507_v33, %v6511_v35  ;;  %v12143_v51 = vcombine.low %v6507_v33, %v6511_v35  ;;  %v12154_v52 = vcombine.high %v6516_v44, %v6520_v27  ;;  %v6559_v33 = vld [vmem:[#allocation12 + $0x660] sm:$0xff]  ;;  %v6556_v35 = vld [vmem:[#allocation12 + $0x648] sm:$0xff] }
 0x7f6   :  { %v6560_v41 = vld [vmem:[#allocation12 + $0x668] sm:$0xff] }
 0x7f7   :  { %7964 = vmatpush1.bf16.msra.mxu1 %v12111_v42  ;;  %8046 = vmatpush1.bf16.msra.mxu0 %v12113_v43  ;;  %v6515_v42 = vld [vmem:[#allocation12 + $0x500] sm:$0xff] }
 0x7f8   :  { %7974 = vmatprep.subr.bf16.mxu1 %v12120_v12  ;;  %8056 = vmatprep.subr.bf16.mxu0 %v12122_v55  ;;  %v6519_v43 = vld [vmem:[#allocation12 + $0x520] sm:$0xff]  ;;  %v6524_v55 = vld [vmem:[#allocation12 + $0x548] sm:$0xff] }
 0x7f9   :  { %v12152_v12 = vcombine.high %v6515_v42, %v6519_v43 }
 0x88d   :  { %v6299_v4 = vpop.f32.mrb[16].mxu1  ;;  %v14906_v56 = vpop.f32.mrb[24].mxu0 }
 0x88e   :  { %v6300_v5 = vadd.f32 %v6299_v4, %v5928_v58  ;;  %v6301_v6 = vpop.f32.mrb[17].mxu1  ;;  %v6342_v1 = vpop.f32.mrb[25].mxu0  ;;  %v6528_v58 = vld [vmem:[#allocation12 + $0x568] sm:$0xff] }
 0x88f   :  { %v6302_v60 = vadd.f32 %v6301_v6, %v5932_v61  ;;  %v6343_v62 = vadd.f32 %v6342_v1, %v5940_v63  ;;  %v6303_v50 = vpop.f32.mrb[18].mxu1  ;;  %v6344_v25 = vpop.f32.mrb[26].mxu0  ;;  %v12151_v61 = vcombine.low %v6515_v42, %v6519_v43  ;;  %v12153_v63 = vcombine.low %v6516_v44, %v6520_v27  ;;  %v6531_v6 = vld [vmem:[#allocation12 + $0x580] sm:$0xff]  ;;  %v6564_v43 = vld [vmem:[#allocation12 + $0x688] sm:$0xff] }
 0x890   :  { %v6347_v7 = vmax.f32 %v6300_v5, 0.0  ;;  %v6304_v9 = vpop.f32.mrb[19].mxu1  ;;  %v6345_v11 = vpop.f32.mrb[27].mxu0  ;;  %v12162_v5 = vcombine.high %v6524_v55, %v6528_v58  ;;  %v6535_v1 = vld [vmem:[#allocation12 + $0x5a0] sm:$0xff]  ;;  %v12161_v25 = vcombine.low %v6524_v55, %v6528_v58  ;;  %v6568_v44 = vld [vmem:[#allocation12 + $0x6a8] sm:$0xff] }
 0x891   :  { %v6348_v13 = vmax.f32 %v6302_v60, 0.0  ;;  %v6350_v16 = vmax.f32 %v6343_v62, 0.0  ;;  %v6532_v60 = vld [vmem:[#allocation12 + $0x588] sm:$0xff]  ;;  %v6539_v11 = vld [vmem:[#allocation12 + $0x5c0] sm:$0xff]  ;;  %v12167_v17 = vcombine.low %v6531_v6, %v6535_v1 }
 0x892   :  { %v14910_v21 = vpack.c.bf16 %v6347_v7, %v6347_v7  ;;  %v6536_v62 = vld [vmem:[#allocation12 + $0x5a8] sm:$0xff]  ;;  %v12168_v7 = vcombine.high %v6531_v6, %v6535_v1  ;;  %v6567_v42 = vld [vmem:[#allocation12 + $0x6a0] sm:$0xff] }
 0x893   :  { %v14908_v20 = vpack.c.bf16 %v6348_v13, %v6348_v13  ;;  %v14914_v28 = vpack.c.bf16 %v6350_v16, %v6350_v16  ;;  %v12170_v9 = vcombine.high %v6532_v60, %v6536_v62  ;;  %v6543_v13 = vld [vmem:[#allocation12 + $0x5e0] sm:$0xff]  ;;  %v6544_v16 = vld [vmem:[#allocation12 + $0x5e8] sm:$0xff]  ;;  %v12169_v49 = vcombine.low %v6532_v60, %v6536_v62 }
 0x894   :  { %v12176_v19 = vcombine.high %v6539_v11, %v6543_v13  ;;  %v12178_v46 = vcombine.high %v6540_v15, %v6544_v16  ;;  %v12175_v26 = vcombine.low %v6539_v11, %v6543_v13  ;;  %v6576_v55 = vld [vmem:[#allocation12 + $0x6e8] sm:$0xff]  ;;  %v6583_v6 = vld [vmem:[#allocation12 + $0x720] sm:$0xff] }
 0x895   :  { %7965 = vmatprep.mubr.bf16.mxu1 %v14908_v20  ;;  %8047 = vmatprep.mubr.bf16.mxu0 %v14908_v20  ;;  %v6580_v1 = vld [vmem:[#allocation12 + $0x708] sm:$0xff]  ;;  %v6591_v11 = vld [vmem:[#allocation12 + $0x760] sm:$0xff] }
 0x896   :  { %7966 = vmatmul.mubr.bf16.vlgmr.msra.gmra.mrb[20].mxu1 %v14910_v21  ;;  %8048 = vmatmul.mubr.bf16.vlgmr.msra.gmra.mrb[28].mxu0 %v14910_v21  ;;  %v6584_v60 = vld [vmem:[#allocation12 + $0x728] sm:$0xff] }
 0x897   :  { %7975 = vmatpush1.bf16.msra.mxu1 %v12119_v53  ;;  %8057 = vmatpush1.bf16.msra.mxu0 %v12121_v54  ;;  %v6523_v53 = vld [vmem:[#allocation12 + $0x540] sm:$0xff]  ;;  %v6588_v13 = vld [vmem:[#allocation12 + $0x748] sm:$0xff] }
 0x898   :  { %8006 = vmatprep.mubr.bf16.mxu1 %v14914_v28  ;;  %8088 = vmatprep.mubr.bf16.mxu0 %v14914_v28  ;;  %v6527_v54 = vld [vmem:[#allocation12 + $0x560] sm:$0xff] }
 0x899   :  { %7976 = vmatprep.subr.bf16.mxu1 %v12128_v14  ;;  %8058 = vmatprep.subr.bf16.mxu0 %v12130_v22  ;;  %v12160_v4 = vcombine.high %v6523_v53, %v6527_v54  ;;  %v12159_v50 = vcombine.low %v6523_v53, %v6527_v54  ;;  %v6547_v14 = vld [vmem:[#allocation12 + $0x600] sm:$0xff]  ;;  %v6572_v54 = vld [vmem:[#allocation12 + $0x6c8] sm:$0xff] }
 0x89a   :  { %v6551_v22 = vld [vmem:[#allocation12 + $0x620] sm:$0xff] }
 0x89b   :  { %7977 = vmatpush1.bf16.msra.mxu1 %v12127_v30  ;;  %8059 = vmatpush1.bf16.msra.mxu0 %v12129_v31  ;;  %v12177_v30 = vcombine.low %v6540_v15, %v6544_v16  ;;  %v12184_v31 = vcombine.high %v6547_v14, %v6551_v22  ;;  %v12183_v34 = vcombine.low %v6547_v14, %v6551_v22  ;;  %v6575_v53 = vld [vmem:[#allocation12 + $0x6e0] sm:$0xff]  ;;  %v6592_v15 = vld [vmem:[#allocation12 + $0x768] sm:$0xff] }
 0x89c   :  { %7978 = vmatprep.subr.bf16.mxu1 %v12136_v3  ;;  %8060 = vmatprep.subr.bf16.mxu0 %v12138_v32  ;;  %v12186_v3 = vcombine.high %v6548_v23, %v6552_v24  ;;  %v6555_v32 = vld [vmem:[#allocation12 + $0x640] sm:$0xff]  ;;  %v6596_v22 = vld [vmem:[#allocation12 + $0x788] sm:$0xff] }
 0x89d   :  { %v12191_v27 = vcombine.low %v6555_v32, %v6559_v33  ;;  %v6599_v14 = vld [vmem:[#allocation12 + $0x7a0] sm:$0xff] }
 0x89f   :  { %7979 = vmatpush1.bf16.msra.mxu1 %v12135_v36  ;;  %8061 = vmatpush1.bf16.msra.mxu0 %v12137_v48  ;;  %v12185_v36 = vcombine.low %v6548_v23, %v6552_v24  ;;  %v12192_v48 = vcombine.high %v6555_v32, %v6559_v33  ;;  %v6600_v23 = vld [vmem:[#allocation12 + $0x7a8] sm:$0xff]  ;;  %v6603_v32 = vld [vmem:[#allocation12 + $0x7c0] sm:$0xff] }
 0x8a0   :  { %7980 = vmatprep.subr.bf16.mxu1 %v12144_v39  ;;  %8062 = vmatprep.subr.bf16.mxu0 %v12146_v40  ;;  %v12194_v39 = vcombine.high %v6556_v35, %v6560_v41  ;;  %v6563_v40 = vld [vmem:[#allocation12 + $0x680] sm:$0xff] }
 0x8a1   :  { %v12199_v58 = vcombine.low %v6563_v40, %v6567_v42  ;;  %v6607_v33 = vld [vmem:[#allocation12 + $0x7e0] sm:$0xff] }
 0x8a3   :  { %7981 = vmatpush1.bf16.msra.mxu1 %v12143_v51  ;;  %8063 = vmatpush1.bf16.msra.mxu0 %v12145_v2  ;;  %v12193_v51 = vcombine.low %v6556_v35, %v6560_v41  ;;  %v12200_v2 = vcombine.high %v6563_v40, %v6567_v42  ;;  %v6604_v35 = vld [vmem:[#allocation12 + $0x7c8] sm:$0xff]  ;;  %v6357_v42 = vld [vmem:[#allocation12 + $0x10] sm:$0xff] }
 0x8a4   :  { %7982 = vmatprep.subr.bf16.mxu1 %v12152_v12  ;;  %8064 = vmatprep.subr.bf16.mxu0 %v12154_v52  ;;  %v12202_v12 = vcombine.high %v6564_v43, %v6568_v44  ;;  %v6571_v52 = vld [vmem:[#allocation12 + $0x6c0] sm:$0xff]  ;;  %v6608_v41 = vld [vmem:[#allocation12 + $0x7e8] sm:$0xff] }
 0x8a5   :  { %v12207_v62 = vcombine.low %v6571_v52, %v6575_v53  ;;  %v12242_v40 = vcombine.high %v6604_v35, %v6608_v41 }
 0x8a7   :  { %7983 = vmatpush1.bf16.msra.mxu1 %v12151_v61  ;;  %8065 = vmatpush1.bf16.msra.mxu0 %v12153_v63  ;;  %v12201_v61 = vcombine.low %v6564_v43, %v6568_v44  ;;  %v12208_v63 = vcombine.high %v6571_v52, %v6575_v53  ;;  %v6358_v43 = vld [vmem:[#allocation12 + $0x18] sm:$0xff]  ;;  %v6365_v53 = vld [vmem:[#allocation12 + $0x50] sm:$0xff] }
 0x8a8   :  { %7984 = vmatprep.subr.bf16.mxu1 %v12160_v4  ;;  %8066 = vmatprep.subr.bf16.mxu0 %v12162_v5  ;;  %v12210_v4 = vcombine.high %v6572_v54, %v6576_v55  ;;  %v6579_v5 = vld [vmem:[#allocation12 + $0x700] sm:$0xff]  ;;  %v6362_v44 = vld [vmem:[#allocation12 + $0x38] sm:$0xff] }
 0x8a9   :  { %v12215_v16 = vcombine.low %v6579_v5, %v6583_v6  ;;  %v11998_v52 = vcombine.high %v6358_v43, %v6362_v44 }
 0x8ab   :  { %7985 = vmatpush1.bf16.msra.mxu1 %v12159_v50  ;;  %8067 = vmatpush1.bf16.msra.mxu0 %v12161_v25  ;;  %v12209_v50 = vcombine.low %v6572_v54, %v6576_v55  ;;  %v12216_v25 = vcombine.high %v6579_v5, %v6583_v6  ;;  %v6369_v54 = vld [vmem:[#allocation12 + $0x70] sm:$0xff]  ;;  %v6370_v55 = vld [vmem:[#allocation12 + $0x78] sm:$0xff] }
 0x8ac   :  { %7986 = vmatprep.subr.bf16.mxu1 %v12168_v7  ;;  %8068 = vmatprep.subr.bf16.mxu0 %v12170_v9  ;;  %v12218_v7 = vcombine.high %v6580_v1, %v6584_v60  ;;  %v6587_v9 = vld [vmem:[#allocation12 + $0x740] sm:$0xff]  ;;  %v6373_v6 = vld [vmem:[#allocation12 + $0x90] sm:$0xff] }
 0x8ad   :  { %v12223_v24 = vcombine.low %v6587_v9, %v6591_v11 }
 0x8af   :  { %7987 = vmatpush1.bf16.msra.mxu1 %v12167_v17  ;;  %8069 = vmatpush1.bf16.msra.mxu0 %v12169_v49  ;;  %v12217_v17 = vcombine.low %v6580_v1, %v6584_v60  ;;  %v12224_v49 = vcombine.high %v6587_v9, %v6591_v11  ;;  %v6377_v1 = vld [vmem:[#allocation12 + $0xb0] sm:$0xff]  ;;  %v6374_v60 = vld [vmem:[#allocation12 + $0x98] sm:$0xff] }
 0x8b0   :  { %7988 = vmatprep.subr.bf16.mxu1 %v12176_v19  ;;  %8070 = vmatprep.subr.bf16.mxu0 %v12178_v46  ;;  %v12226_v19 = vcombine.high %v6588_v13, %v6592_v15  ;;  %v6595_v46 = vld [vmem:[#allocation12 + $0x780] sm:$0xff]  ;;  %v6381_v11 = vld [vmem:[#allocation12 + $0xd0] sm:$0xff] }
 0x8b3   :  { %7989 = vmatpush1.bf16.msra.mxu1 %v12175_v26  ;;  %8071 = vmatpush1.bf16.msra.mxu0 %v12177_v30  ;;  %v12225_v26 = vcombine.low %v6588_v13, %v6592_v15  ;;  %v5936_v30 = vrot.slane %v14898_v57, %v14835_v8  ;;  %v6361_v57 = vld [vmem:[#allocation12 + $0x30] sm:$0xff]  ;;  %v6382_v15 = vld [vmem:[#allocation12 + $0xd8] sm:$0xff] }
 0x8b4   :  { %7990 = vmatprep.subr.bf16.mxu1 %v12184_v31  ;;  %8072 = vmatprep.subr.bf16.mxu0 %v12186_v3  ;;  %v12232_v31 = vcombine.high %v6595_v46, %v6599_v14  ;;  %v12234_v3 = vcombine.high %v6596_v22, %v6600_v23  ;;  %v6385_v13 = vld [vmem:[#allocation12 + $0xf0] sm:$0xff] }
 0x8b7   :  { %7991 = vmatpush1.bf16.msra.mxu1 %v12183_v34  ;;  %8073 = vmatpush1.bf16.msra.mxu0 %v12185_v36  ;;  %v12231_v34 = vcombine.low %v6595_v46, %v6599_v14  ;;  %v12233_v36 = vcombine.low %v6596_v22, %v6600_v23  ;;  %v6389_v14 = vld [vmem:[#allocation12 + $0x110] sm:$0xff]  ;;  %v6394_v23 = vld [vmem:[#allocation12 + $0x138] sm:$0xff] }
 0x8b8   :  { %7992 = vmatprep.subr.bf16.mxu1 %v12192_v48  ;;  %8074 = vmatprep.subr.bf16.mxu0 %v12194_v39  ;;  %v6341_v48 = vadd.f32 %v14906_v56, %v5936_v30  ;;  %v12240_v39 = vcombine.high %v6603_v32, %v6607_v33  ;;  %v6366_v56 = vld [vmem:[#allocation12 + $0x58] sm:$0xff]  ;;  %v6393_v22 = vld [vmem:[#allocation12 + $0x130] sm:$0xff] }
 0x8b9   :  { %v12006_v5 = vcombine.high %v6366_v56, %v6370_v55  ;;  %v12028_v30 = vcombine.high %v6389_v14, %v6393_v22 }
 0x8bb   :  { %7993 = vmatpush1.bf16.msra.mxu1 %v12191_v27  ;;  %8075 = vmatpush1.bf16.msra.mxu0 %v12193_v51  ;;  %v12239_v27 = vcombine.low %v6603_v32, %v6607_v33  ;;  %v12241_v51 = vcombine.low %v6604_v35, %v6608_v41  ;;  %v6401_v32 = vld [vmem:[#allocation12 + $0x170] sm:$0xff]  ;;  %v6398_v33 = vld [vmem:[#allocation12 + $0x158] sm:$0xff]  ;;  %v12027_v41 = vcombine.low %v6389_v14, %v6393_v22 }
 0x8bc   :  { %7994 = vmatprep.subr.bf16.mxu1 %v12200_v2  ;;  %8076 = vmatprep.subr.bf16.mxu0 %v12202_v12  ;;  %v6349_v2 = vmax.f32 %v6341_v48, 0.0  ;;  %v11996_v12 = vcombine.high %v6357_v42, %v6361_v57  ;;  %v6402_v35 = vld [vmem:[#allocation12 + $0x178] sm:$0xff] }
 0x8bd   :  { %v12038_v48 = vcombine.high %v6398_v33, %v6402_v35  ;;  %v6442_v14 = vld [vmem:[#allocation12 + $0x2b8] sm:$0xff] }
 0x8bf   :  { %7995 = vmatpush1.bf16.msra.mxu1 %v12199_v58  ;;  %8077 = vmatpush1.bf16.msra.mxu0 %v12201_v61  ;;  %v11995_v58 = vcombine.low %v6357_v42, %v6361_v57  ;;  %v14923_v61 = vpack.c.bf16 %v6349_v2, %v6349_v2  ;;  %v6406_v42 = vld [vmem:[#allocation12 + $0x198] sm:$0xff]  ;;  %v6413_v2 = vld [vmem:[#allocation12 + $0x1d0] sm:$0xff] }
 0x8c0   :  { %7996 = vmatprep.subr.bf16.mxu1 %v12208_v63  ;;  %8078 = vmatprep.subr.bf16.mxu0 %v12210_v4  ;;  %v11997_v63 = vcombine.low %v6358_v43, %v6362_v44  ;;  %v12004_v4 = vcombine.high %v6365_v53, %v6369_v54  ;;  %v6410_v57 = vld [vmem:[#allocation12 + $0x1b8] sm:$0xff]  ;;  %v12037_v44 = vcombine.low %v6398_v33, %v6402_v35 }
 0x8c3   :  { %7997 = vmatpush1.bf16.msra.mxu1 %v12207_v62  ;;  %8079 = vmatpush1.bf16.msra.mxu0 %v12209_v50  ;;  %v6378_v62 = vld [vmem:[#allocation12 + $0xb8] sm:$0xff]  ;;  %v12003_v50 = vcombine.low %v6365_v53, %v6369_v54 }
 0x8c4   :  { %7998 = vmatprep.subr.bf16.mxu1 %v12216_v25  ;;  %8080 = vmatprep.subr.bf16.mxu0 %v12218_v7  ;;  %v12005_v25 = vcombine.low %v6366_v56, %v6370_v55  ;;  %v12012_v7 = vcombine.high %v6373_v6, %v6377_v1  ;;  %v12014_v9 = vcombine.high %v6374_v60, %v6378_v62  ;;  %v6418_v53 = vld [vmem:[#allocation12 + $0x1f8] sm:$0xff] }
 0x8c5   :  { %v12045_v56 = vcombine.low %v6406_v42, %v6410_v57 }
 0x8c7   :  { %7999 = vmatpush1.bf16.msra.mxu1 %v12215_v16  ;;  %8081 = vmatpush1.bf16.msra.mxu0 %v12217_v17  ;;  %v6386_v16 = vld [vmem:[#allocation12 + $0xf8] sm:$0xff]  ;;  %v12011_v17 = vcombine.low %v6373_v6, %v6377_v1 }
 0x8c8   :  { %8000 = vmatprep.subr.bf16.mxu1 %v12224_v49  ;;  %8082 = vmatprep.subr.bf16.mxu0 %v12226_v19  ;;  %v12013_v49 = vcombine.low %v6374_v60, %v6378_v62  ;;  %v12020_v19 = vcombine.high %v6381_v11, %v6385_v13  ;;  %v12022_v46 = vcombine.high %v6382_v15, %v6386_v16  ;;  %v6426_v6 = vld [vmem:[#allocation12 + $0x238] sm:$0xff] }
 0x8cb   :  { %8001 = vmatpush1.bf16.msra.mxu1 %v12223_v24  ;;  %8083 = vmatpush1.bf16.msra.mxu0 %v12225_v26  ;;  %v12019_v24 = vcombine.low %v6381_v11, %v6385_v13  ;;  %v12021_v26 = vcombine.low %v6382_v15, %v6386_v16  ;;  %v6434_v11 = vld [vmem:[#allocation12 + $0x278] sm:$0xff] }
 0x8cc   :  { %8002 = vmatprep.subr.bf16.mxu1 %v12232_v31  ;;  %8084 = vmatprep.subr.bf16.mxu0 %v12234_v3  ;;  %v6397_v3 = vld [vmem:[#allocation12 + $0x150] sm:$0xff] }
 0x8cd   :  { %v12035_v43 = vcombine.low %v6397_v3, %v6401_v32 }
 0x8cf   :  { %8003 = vmatpush1.bf16.msra.mxu1 %v12231_v34  ;;  %8085 = vmatpush1.bf16.msra.mxu0 %v12233_v36  ;;  %v12036_v36 = vcombine.high %v6397_v3, %v6401_v32  ;;  %v6450_v3 = vld [vmem:[#allocation12 + $0x2f8] sm:$0xff] }
 0x8d0   :  { %8004 = vmatprep.subr.bf16.mxu1 %v12240_v39  ;;  %8086 = vmatprep.subr.bf16.mxu0 %v12242_v40  ;;  %v6405_v39 = vld [vmem:[#allocation12 + $0x190] sm:$0xff] }
 0x8d1   :  { %v6409_v40 = vld [vmem:[#allocation12 + $0x1b0] sm:$0xff] }
 0x8d2   :  { %v12043_v54 = vcombine.low %v6405_v39, %v6409_v40 }
 0x8d3   :  { %8005 = vmatpush1.bf16.msra.mxu1 %v12239_v27  ;;  %8087 = vmatpush1.bf16.msra.mxu0 %v12241_v51  ;;  %v12044_v27 = vcombine.high %v6405_v39, %v6409_v40  ;;  %v12046_v51 = vcombine.high %v6406_v42, %v6410_v57  ;;  %v6458_v39 = vld [vmem:[#allocation12 + $0x338] sm:$0xff] }
 0x8d4   :  { %8097 = vmatprep.subr.bf16.mxu1 %v11996_v12  ;;  %8179 = vmatprep.subr.bf16.mxu0 %v11998_v52  ;;  %v6417_v12 = vld [vmem:[#allocation12 + $0x1f0] sm:$0xff]  ;;  %v6414_v52 = vld [vmem:[#allocation12 + $0x1d8] sm:$0xff] }
 0x8d5   :  { %v12052_v55 = vcombine.high %v6413_v2, %v6417_v12  ;;  %v12051_v1 = vcombine.low %v6413_v2, %v6417_v12  ;;  %v12053_v60 = vcombine.low %v6414_v52, %v6418_v53  ;;  %v6466_v2 = vld [vmem:[#allocation12 + $0x378] sm:$0xff] }
 0x8d6   :  { %8007 = vmatmul.mubr.bf16.vlgmr.msra.gmra.mrb[20].mxu1 %v14923_v61  ;;  %8089 = vmatmul.mubr.bf16.vlgmr.msra.gmra.mrb[28].mxu0 %v14923_v61 }
 0x8d7   :  { %8098 = vmatpush1.bf16.msra.mxu1 %v11995_v58  ;;  %8129 = vmatprep.mubr.bf16.mxu1 %v14908_v20  ;;  %v12054_v58 = vcombine.high %v6414_v52, %v6418_v53 }
 0x8d8   :  { %8180 = vmatpush1.bf16.msra.mxu0 %v11997_v63  ;;  %8211 = vmatprep.mubr.bf16.mxu0 %v14908_v20  ;;  %v6390_v20 = vld [vmem:[#allocation12 + $0x118] sm:$0xff]  ;;  %v6421_v63 = vld [vmem:[#allocation12 + $0x210] sm:$0xff] }
 0x8d9   :  { %8099 = vmatprep.subr.bf16.mxu1 %v12004_v4  ;;  %8181 = vmatprep.subr.bf16.mxu0 %v12006_v5  ;;  %v12030_v31 = vcombine.high %v6390_v20, %v6394_v23  ;;  %v12029_v34 = vcombine.low %v6390_v20, %v6394_v23  ;;  %v6425_v4 = vld [vmem:[#allocation12 + $0x230] sm:$0xff]  ;;  %v6422_v5 = vld [vmem:[#allocation12 + $0x218] sm:$0xff] }
 0x8da   :  { %v12060_v62 = vcombine.high %v6421_v63, %v6425_v4  ;;  %v12059_v13 = vcombine.low %v6421_v63, %v6425_v4  ;;  %v12061_v15 = vcombine.low %v6422_v5, %v6426_v6  ;;  %v6474_v63 = vld [vmem:[#allocation12 + $0x3b8] sm:$0xff] }
 0x8db   :  { %8100 = vmatpush1.bf16.msra.mxu1 %v12003_v50  ;;  %v12062_v50 = vcombine.high %v6422_v5, %v6426_v6 }
 0x8dc   :  { %8182 = vmatpush1.bf16.msra.mxu0 %v12005_v25  ;;  %8101 = vmatprep.subr.bf16.mxu1 %v12012_v7  ;;  %v6429_v25 = vld [vmem:[#allocation12 + $0x250] sm:$0xff] }
 0x8dd   :  { %8183 = vmatprep.subr.bf16.mxu0 %v12014_v9  ;;  %v6433_v7 = vld [vmem:[#allocation12 + $0x270] sm:$0xff]  ;;  %v6430_v9 = vld [vmem:[#allocation12 + $0x258] sm:$0xff] }
 0x8de   :  { %v12068_v16 = vcombine.high %v6429_v25, %v6433_v7  ;;  %v12067_v22 = vcombine.low %v6429_v25, %v6433_v7  ;;  %v12069_v20 = vcombine.low %v6430_v9, %v6434_v11  ;;  %v6482_v25 = vld [vmem:[#allocation12 + $0x3f8] sm:$0xff] }
 0x8df   :  { %8102 = vmatpush1.bf16.msra.mxu1 %v12011_v17  ;;  %v12070_v17 = vcombine.high %v6430_v9, %v6434_v11 }
 0x8e0   :  { %8184 = vmatpush1.bf16.msra.mxu0 %v12013_v49  ;;  %8103 = vmatprep.subr.bf16.mxu1 %v12020_v19  ;;  %v6437_v49 = vld [vmem:[#allocation12 + $0x290] sm:$0xff] }
 0x8e1   :  { %8185 = vmatprep.subr.bf16.mxu0 %v12022_v46  ;;  %v6441_v19 = vld [vmem:[#allocation12 + $0x2b0] sm:$0xff]  ;;  %v6438_v46 = vld [vmem:[#allocation12 + $0x298] sm:$0xff] }
 0x8e2   :  { %v12076_v23 = vcombine.high %v6437_v49, %v6441_v19  ;;  %v12075_v32 = vcombine.low %v6437_v49, %v6441_v19  ;;  %v12077_v33 = vcombine.low %v6438_v46, %v6442_v14  ;;  %v6490_v49 = vld [vmem:[#allocation12 + $0x438] sm:$0xff] }
 0x8e3   :  { %8104 = vmatpush1.bf16.msra.mxu1 %v12019_v24  ;;  %v12078_v24 = vcombine.high %v6438_v46, %v6442_v14 }
 0x8e4   :  { %8186 = vmatpush1.bf16.msra.mxu0 %v12021_v26  ;;  %8105 = vmatprep.subr.bf16.mxu1 %v12028_v30  ;;  %v6445_v26 = vld [vmem:[#allocation12 + $0x2d0] sm:$0xff] }
 0x8e5   :  { %8187 = vmatprep.subr.bf16.mxu0 %v12030_v31  ;;  %v6449_v30 = vld [vmem:[#allocation12 + $0x2f0] sm:$0xff]  ;;  %v6446_v31 = vld [vmem:[#allocation12 + $0x2d8] sm:$0xff] }
 0x8e6   :  { %v12084_v35 = vcombine.high %v6445_v26, %v6449_v30  ;;  %v12083_v40 = vcombine.low %v6445_v26, %v6449_v30  ;;  %v12085_v42 = vcombine.low %v6446_v31, %v6450_v3  ;;  %v6494_v26 = vld [vmem:[#allocation12 + $0x458] sm:$0xff] }
 0x8e7   :  { %8106 = vmatpush1.bf16.msra.mxu1 %v12027_v41  ;;  %v12086_v41 = vcombine.high %v6446_v31, %v6450_v3  ;;  %v6498_v30 = vld [vmem:[#allocation12 + $0x478] sm:$0xff] }
 0x8e8   :  { %8188 = vmatpush1.bf16.msra.mxu0 %v12029_v34  ;;  %8107 = vmatprep.subr.bf16.mxu1 %v12036_v36  ;;  %v6453_v34 = vld [vmem:[#allocation12 + $0x310] sm:$0xff] }
 0x8e9   :  { %8189 = vmatprep.subr.bf16.mxu0 %v12038_v48  ;;  %v6457_v36 = vld [vmem:[#allocation12 + $0x330] sm:$0xff]  ;;  %v6454_v48 = vld [vmem:[#allocation12 + $0x318] sm:$0xff] }
 0x8ea   :  { %v12092_v57 = vcombine.high %v6453_v34, %v6457_v36  ;;  %v12091_v12 = vcombine.low %v6453_v34, %v6457_v36  ;;  %v12093_v52 = vcombine.low %v6454_v48, %v6458_v39  ;;  %v6506_v34 = vld [vmem:[#allocation12 + $0x4b8] sm:$0xff] }
 0x8eb   :  { %8108 = vmatpush1.bf16.msra.mxu1 %v12035_v43  ;;  %v12094_v43 = vcombine.high %v6454_v48, %v6458_v39  ;;  %v12133_v48 = vcombine.low %v6494_v26, %v6498_v30 }
 0x8ec   :  { %8190 = vmatpush1.bf16.msra.mxu0 %v12037_v44  ;;  %8109 = vmatprep.subr.bf16.mxu1 %v12044_v27  ;;  %v6461_v44 = vld [vmem:[#allocation12 + $0x350] sm:$0xff] }
 0x8ed   :  { %8191 = vmatprep.subr.bf16.mxu0 %v12046_v51  ;;  %v6465_v27 = vld [vmem:[#allocation12 + $0x370] sm:$0xff]  ;;  %v6462_v51 = vld [vmem:[#allocation12 + $0x358] sm:$0xff] }
 0x8ee   :  { %v12100_v53 = vcombine.high %v6461_v44, %v6465_v27  ;;  %v12099_v4 = vcombine.low %v6461_v44, %v6465_v27  ;;  %v12101_v5 = vcombine.low %v6462_v51, %v6466_v2  ;;  %v6514_v44 = vld [vmem:[#allocation12 + $0x4f8] sm:$0xff] }
 0x8ef   :  { %8110 = vmatpush1.bf16.msra.mxu1 %v12043_v54  ;;  %v12102_v54 = vcombine.high %v6462_v51, %v6466_v2 }
 0x8f0   :  { %8192 = vmatpush1.bf16.msra.mxu0 %v12045_v56  ;;  %8111 = vmatprep.subr.bf16.mxu1 %v12052_v55  ;;  %v6469_v56 = vld [vmem:[#allocation12 + $0x390] sm:$0xff] }
 0x8f1   :  { %8193 = vmatprep.subr.bf16.mxu0 %v12054_v58  ;;  %v6473_v55 = vld [vmem:[#allocation12 + $0x3b0] sm:$0xff]  ;;  %v6470_v58 = vld [vmem:[#allocation12 + $0x398] sm:$0xff] }
 0x8f2   :  { %v12108_v6 = vcombine.high %v6469_v56, %v6473_v55  ;;  %v12107_v7 = vcombine.low %v6469_v56, %v6473_v55  ;;  %v12109_v9 = vcombine.low %v6470_v58, %v6474_v63 }
 0x8f3   :  { %8112 = vmatpush1.bf16.msra.mxu1 %v12051_v1  ;;  %v12110_v1 = vcombine.high %v6470_v58, %v6474_v63  ;;  %v6525_v63 = vld [vmem:[#allocation12 + $0x550] sm:$0xff] }
 0x8f4   :  { %8194 = vmatpush1.bf16.msra.mxu0 %v12053_v60  ;;  %8113 = vmatprep.subr.bf16.mxu1 %v12060_v62  ;;  %v6477_v60 = vld [vmem:[#allocation12 + $0x3d0] sm:$0xff] }
 0x8f5   :  { %8195 = vmatprep.subr.bf16.mxu0 %v12062_v50  ;;  %v6481_v62 = vld [vmem:[#allocation12 + $0x3f0] sm:$0xff]  ;;  %v6478_v50 = vld [vmem:[#allocation12 + $0x3d8] sm:$0xff] }
 0x8f6   :  { %v12116_v11 = vcombine.high %v6477_v60, %v6481_v62  ;;  %v12115_v19 = vcombine.low %v6477_v60, %v6481_v62  ;;  %v12117_v46 = vcombine.low %v6478_v50, %v6482_v25 }
 0x8f7   :  { %8114 = vmatpush1.bf16.msra.mxu1 %v12059_v13  ;;  %v12118_v13 = vcombine.high %v6478_v50, %v6482_v25  ;;  %v6533_v25 = vld [vmem:[#allocation12 + $0x590] sm:$0xff] }
 0x8f8   :  { %8196 = vmatpush1.bf16.msra.mxu0 %v12061_v15  ;;  %8115 = vmatprep.subr.bf16.mxu1 %v12068_v16  ;;  %v6485_v15 = vld [vmem:[#allocation12 + $0x410] sm:$0xff] }
 0x8f9   :  { %8197 = vmatprep.subr.bf16.mxu0 %v12070_v17  ;;  %v6489_v16 = vld [vmem:[#allocation12 + $0x430] sm:$0xff]  ;;  %v6486_v17 = vld [vmem:[#allocation12 + $0x418] sm:$0xff] }
 0x8fa   :  { %v12124_v14 = vcombine.high %v6485_v15, %v6489_v16  ;;  %v12125_v31 = vcombine.low %v6486_v17, %v6490_v49 }
 0x8fb   :  { %8116 = vmatpush1.bf16.msra.mxu1 %v12067_v22  ;;  %v12126_v22 = vcombine.high %v6486_v17, %v6490_v49  ;;  %v6541_v49 = vld [vmem:[#allocation12 + $0x5d0] sm:$0xff] }
 0x8fc   :  { %8198 = vmatpush1.bf16.msra.mxu0 %v12069_v20  ;;  %8117 = vmatprep.subr.bf16.mxu1 %v12076_v23  ;;  %v6493_v20 = vld [vmem:[#allocation12 + $0x450] sm:$0xff] }
 0x8fd   :  { %8199 = vmatprep.subr.bf16.mxu0 %v12078_v24  ;;  %v6497_v23 = vld [vmem:[#allocation12 + $0x470] sm:$0xff]  ;;  %v12123_v24 = vcombine.low %v6485_v15, %v6489_v16 }
 0x8fe   :  { %v12132_v3 = vcombine.high %v6493_v20, %v6497_v23  ;;  %v12131_v36 = vcombine.low %v6493_v20, %v6497_v23 }
 0x8ff   :  { %8118 = vmatpush1.bf16.msra.mxu1 %v12075_v32  ;;  %v6501_v32 = vld [vmem:[#allocation12 + $0x490] sm:$0xff] }
 0x900   :  { %8200 = vmatpush1.bf16.msra.mxu0 %v12077_v33  ;;  %8119 = vmatprep.subr.bf16.mxu1 %v12084_v35  ;;  %v6505_v33 = vld [vmem:[#allocation12 + $0x4b0] sm:$0xff]  ;;  %v12134_v35 = vcombine.high %v6494_v26, %v6498_v30 }
 0x901   :  { %8201 = vmatprep.subr.bf16.mxu0 %v12086_v41  ;;  %v6502_v41 = vld [vmem:[#allocation12 + $0x498] sm:$0xff]  ;;  %v12140_v39 = vcombine.high %v6501_v32, %v6505_v33  ;;  %v12139_v27 = vcombine.low %v6501_v32, %v6505_v33  ;;  %v6549_v26 = vld [vmem:[#allocation12 + $0x610] sm:$0xff] }
 0x902   :  { %v6553_v30 = vld [vmem:[#allocation12 + $0x630] sm:$0xff] }
 0x903   :  { %8120 = vmatpush1.bf16.msra.mxu1 %v12083_v40  ;;  %v12142_v40 = vcombine.high %v6502_v41, %v6506_v34 }
 0x904   :  { %8202 = vmatpush1.bf16.msra.mxu0 %v12085_v42  ;;  %8121 = vmatprep.subr.bf16.mxu1 %v12092_v57  ;;  %v6509_v42 = vld [vmem:[#allocation12 + $0x4d0] sm:$0xff] }
 0x905   :  { %8203 = vmatprep.subr.bf16.mxu0 %v12094_v43  ;;  %v6513_v57 = vld [vmem:[#allocation12 + $0x4f0] sm:$0xff]  ;;  %v6510_v43 = vld [vmem:[#allocation12 + $0x4d8] sm:$0xff] }
 0x906   :  { %v12148_v51 = vcombine.high %v6509_v42, %v6513_v57  ;;  %v12150_v2 = vcombine.high %v6510_v43, %v6514_v44  ;;  %v12149_v56 = vcombine.low %v6510_v43, %v6514_v44  ;;  %v6565_v44 = vld [vmem:[#allocation12 + $0x690] sm:$0xff] }
 0x907   :  { %8122 = vmatpush1.bf16.msra.mxu1 %v12091_v12  ;;  %v6517_v12 = vld [vmem:[#allocation12 + $0x510] sm:$0xff] }
 0x908   :  { %8204 = vmatpush1.bf16.msra.mxu0 %v12093_v52  ;;  %8123 = vmatprep.subr.bf16.mxu1 %v12100_v53  ;;  %v6521_v52 = vld [vmem:[#allocation12 + $0x530] sm:$0xff]  ;;  %v6518_v53 = vld [vmem:[#allocation12 + $0x518] sm:$0xff] }
 0x909   :  { %8205 = vmatprep.subr.bf16.mxu0 %v12102_v54  ;;  %v6522_v54 = vld [vmem:[#allocation12 + $0x538] sm:$0xff]  ;;  %v12156_v55 = vcombine.high %v6517_v12, %v6521_v52 }
 0x90a   :  { %v12158_v58 = vcombine.high %v6518_v53, %v6522_v54  ;;  %v12157_v60 = vcombine.low %v6518_v53, %v6522_v54  ;;  %v6573_v54 = vld [vmem:[#allocation12 + $0x6d0] sm:$0xff] }
 0x90b   :  { %8124 = vmatpush1.bf16.msra.mxu1 %v12099_v4  ;;  %v6529_v4 = vld [vmem:[#allocation12 + $0x570] sm:$0xff] }
 0x90c   :  { %8206 = vmatpush1.bf16.msra.mxu0 %v12101_v5  ;;  %8125 = vmatprep.subr.bf16.mxu1 %v12108_v6  ;;  %v6526_v5 = vld [vmem:[#allocation12 + $0x558] sm:$0xff]  ;;  %v12164_v62 = vcombine.high %v6525_v63, %v6529_v4 }
 0x90d   :  { %8207 = vmatprep.subr.bf16.mxu0 %v12110_v1  ;;  %v6530_v6 = vld [vmem:[#allocation12 + $0x578] sm:$0xff]  ;;  %v12155_v1 = vcombine.low %v6517_v12, %v6521_v52 }
 0x90e   :  { %v12166_v50 = vcombine.high %v6526_v5, %v6530_v6  ;;  %v12165_v15 = vcombine.low %v6526_v5, %v6530_v6  ;;  %v6581_v6 = vld [vmem:[#allocation12 + $0x710] sm:$0xff] }
 0x90f   :  { %8126 = vmatpush1.bf16.msra.mxu1 %v12107_v7  ;;  %v6537_v7 = vld [vmem:[#allocation12 + $0x5b0] sm:$0xff] }
 0x910   :  { %8208 = vmatpush1.bf16.msra.mxu0 %v12109_v9  ;;  %8127 = vmatprep.subr.bf16.mxu1 %v12116_v11  ;;  %v6534_v9 = vld [vmem:[#allocation12 + $0x598] sm:$0xff]  ;;  %v12172_v16 = vcombine.high %v6533_v25, %v6537_v7 }
 0x911   :  { %8209 = vmatprep.subr.bf16.mxu0 %v12118_v13  ;;  %v6538_v11 = vld [vmem:[#allocation12 + $0x5b8] sm:$0xff]  ;;  %v12163_v13 = vcombine.low %v6525_v63, %v6529_v4 }
 0x912   :  { %v12174_v17 = vcombine.high %v6534_v9, %v6538_v11  ;;  %v12173_v20 = vcombine.low %v6534_v9, %v6538_v11  ;;  %v6589_v11 = vld [vmem:[#allocation12 + $0x750] sm:$0xff] }
 0x913   :  { %8128 = vmatpush1.bf16.msra.mxu1 %v12115_v19  ;;  %v6545_v19 = vld [vmem:[#allocation12 + $0x5f0] sm:$0xff] }
 0x914   :  { %8210 = vmatpush1.bf16.msra.mxu0 %v12117_v46  ;;  %8138 = vmatprep.subr.bf16.mxu1 %v12124_v14  ;;  %v6542_v46 = vld [vmem:[#allocation12 + $0x5d8] sm:$0xff]  ;;  %v12180_v23 = vcombine.high %v6541_v49, %v6545_v19  ;;  %v12179_v32 = vcombine.low %v6541_v49, %v6545_v19 }
 0x915   :  { %8220 = vmatprep.subr.bf16.mxu0 %v12126_v22  ;;  %v6546_v14 = vld [vmem:[#allocation12 + $0x5f8] sm:$0xff]  ;;  %v12171_v22 = vcombine.low %v6533_v25, %v6537_v7 }
 0x916   :  { %8130 = vmatmul.mubr.bf16.vlgmr.msra.gmra.mrb[24].mxu1 %v14910_v21  ;;  %v12181_v33 = vcombine.low %v6542_v46, %v6546_v14 }
 0x917   :  { %8212 = vmatmul.mubr.bf16.vlgmr.msra.gmra.mrb[32].mxu0 %v14910_v21  ;;  %8139 = vmatpush1.bf16.msra.mxu1 %v12123_v24  ;;  %v12141_v21 = vcombine.low %v6502_v41, %v6506_v34  ;;  %v12182_v24 = vcombine.high %v6542_v46, %v6546_v14  ;;  %v6557_v34 = vld [vmem:[#allocation12 + $0x650] sm:$0xff] }
 0x918   :  { %8170 = vmatprep.mubr.bf16.mxu1 %v14914_v28  ;;  %8221 = vmatpush1.bf16.msra.mxu0 %v12125_v31  ;;  %v6550_v31 = vld [vmem:[#allocation12 + $0x618] sm:$0xff]  ;;  %v6597_v14 = vld [vmem:[#allocation12 + $0x790] sm:$0xff] }
 0x919   :  { %8252 = vmatprep.mubr.bf16.mxu0 %v14914_v28  ;;  %8140 = vmatprep.subr.bf16.mxu1 %v12132_v3  ;;  %v12147_v28 = vcombine.low %v6509_v42, %v6513_v57  ;;  %v6554_v3 = vld [vmem:[#allocation12 + $0x638] sm:$0xff] }
 0x91a   :  { %8222 = vmatprep.subr.bf16.mxu0 %v12134_v35  ;;  %v12188_v35 = vcombine.high %v6549_v26, %v6553_v30  ;;  %v12190_v41 = vcombine.high %v6550_v31, %v6554_v3  ;;  %v12189_v42 = vcombine.low %v6550_v31, %v6554_v3  ;;  %v6605_v3 = vld [vmem:[#allocation12 + $0x7d0] sm:$0xff] }
 0x91b   :  { %8141 = vmatpush1.bf16.msra.mxu1 %v12131_v36  ;;  %v6561_v36 = vld [vmem:[#allocation12 + $0x670] sm:$0xff] }
 0x91c   :  { %8223 = vmatpush1.bf16.msra.mxu0 %v12133_v48  ;;  %8142 = vmatprep.subr.bf16.mxu1 %v12140_v39  ;;  %v6558_v48 = vld [vmem:[#allocation12 + $0x658] sm:$0xff]  ;;  %v12196_v57 = vcombine.high %v6557_v34, %v6561_v36 }
 0x91d   :  { %8224 = vmatprep.subr.bf16.mxu0 %v12142_v40  ;;  %v6562_v39 = vld [vmem:[#allocation12 + $0x678] sm:$0xff]  ;;  %v12187_v40 = vcombine.low %v6549_v26, %v6553_v30 }
 0x91e   :  { %v12198_v43 = vcombine.high %v6558_v48, %v6562_v39  ;;  %v12197_v12 = vcombine.low %v6558_v48, %v6562_v39 }
 0x91f   :  { %8143 = vmatpush1.bf16.msra.mxu1 %v12139_v27  ;;  %v6569_v27 = vld [vmem:[#allocation12 + $0x6b0] sm:$0xff] }
 0x920   :  { %8225 = vmatpush1.bf16.msra.mxu0 %v12141_v21  ;;  %8144 = vmatprep.subr.bf16.mxu1 %v12148_v51  ;;  %v6566_v21 = vld [vmem:[#allocation12 + $0x698] sm:$0xff]  ;;  %v12204_v52 = vcombine.high %v6565_v44, %v6569_v27 }
 0x921   :  { %8226 = vmatprep.subr.bf16.mxu0 %v12150_v2  ;;  %v6570_v51 = vld [vmem:[#allocation12 + $0x6b8] sm:$0xff]  ;;  %v12195_v2 = vcombine.low %v6557_v34, %v6561_v36 }
 0x922   :  { %v12206_v53 = vcombine.high %v6566_v21, %v6570_v51  ;;  %v12205_v63 = vcombine.low %v6566_v21, %v6570_v51  ;;  %v13448_v21 = vld [vmem:[#allocation13 + $0x3c] ss:$24 sps:$4 sm:$0xff]   ;;  %v13443_v51 = vld [vmem:[#allocation13 + $0x30] ss:$24 sps:$4 sm:$0xff]  }
 0x923   :  { %8145 = vmatpush1.bf16.msra.mxu1 %v12147_v28  ;;  %v6577_v28 = vld [vmem:[#allocation12 + $0x6f0] sm:$0xff] }
 0x924   :  { %8227 = vmatpush1.bf16.msra.mxu0 %v12149_v56  ;;  %8146 = vmatprep.subr.bf16.mxu1 %v12156_v55  ;;  %v6574_v56 = vld [vmem:[#allocation12 + $0x6d8] sm:$0xff]  ;;  %v12212_v4 = vcombine.high %v6573_v54, %v6577_v28 }
 0x925   :  { %8228 = vmatprep.subr.bf16.mxu0 %v12158_v58  ;;  %v6578_v55 = vld [vmem:[#allocation12 + $0x6f8] sm:$0xff]  ;;  %v12203_v58 = vcombine.low %v6565_v44, %v6569_v27  ;;  %v13440_v44 = vld [vmem:[#allocation13 + $0x8] ss:$24 sps:$4 sm:$0xff]   ;;  %v13445_v27 = vld [vmem:[#allocation13 + $0x34] ss:$24 sps:$4 sm:$0xff]  }
 0x926   :  { %v12214_v5 = vcombine.high %v6574_v56, %v6578_v55  ;;  %v12213_v25 = vcombine.low %v6574_v56, %v6578_v55  ;;  %v13460_v56 = vld [vmem:[#allocation13 + $0x9c] ss:$24 sps:$4 sm:$0xff]   ;;  %v13455_v55 = vld [vmem:[#allocation13 + $0x90] ss:$24 sps:$4 sm:$0xff]  }
 0x927   :  { %8147 = vmatpush1.bf16.msra.mxu1 %v12155_v1  ;;  %v6585_v1 = vld [vmem:[#allocation12 + $0x730] sm:$0xff] }
 0x928   :  { %8229 = vmatpush1.bf16.msra.mxu0 %v12157_v60  ;;  %8148 = vmatprep.subr.bf16.mxu1 %v12164_v62  ;;  %v6582_v60 = vld [vmem:[#allocation12 + $0x718] sm:$0xff]  ;;  %v12220_v7 = vcombine.high %v6581_v6, %v6585_v1 }
 0x929   :  { %8230 = vmatprep.subr.bf16.mxu0 %v12166_v50  ;;  %v6586_v62 = vld [vmem:[#allocation12 + $0x738] sm:$0xff]  ;;  %v12211_v50 = vcombine.low %v6573_v54, %v6577_v28  ;;  %v13452_v54 = vld [vmem:[#allocation13 + $0x68] ss:$24 sps:$4 sm:$0xff]   ;;  %v13457_v28 = vld [vmem:[#allocation13 + $0x94] ss:$24 sps:$4 sm:$0xff]  }
 0x92a   :  { %v12222_v9 = vcombine.high %v6582_v60, %v6586_v62  ;;  %v12221_v49 = vcombine.low %v6582_v60, %v6586_v62  ;;  %v13467_v60 = vld [vmem:[#allocation13 + $0xf0] ss:$24 sps:$4 sm:$0xff]  }
 0x92b   :  { %8149 = vmatpush1.bf16.msra.mxu1 %v12163_v13  ;;  %v6593_v13 = vld [vmem:[#allocation12 + $0x770] sm:$0xff] }
 0x92c   :  { %8231 = vmatpush1.bf16.msra.mxu0 %v12165_v15  ;;  %8150 = vmatprep.subr.bf16.mxu1 %v12172_v16  ;;  %v6590_v15 = vld [vmem:[#allocation12 + $0x758] sm:$0xff]  ;;  %v12228_v19 = vcombine.high %v6589_v11, %v6593_v13 }
 0x92d   :  { %8232 = vmatprep.subr.bf16.mxu0 %v12174_v17  ;;  %v6594_v16 = vld [vmem:[#allocation12 + $0x778] sm:$0xff]  ;;  %v12219_v17 = vcombine.low %v6581_v6, %v6585_v1  ;;  %v13469_v6 = vld [vmem:[#allocation13 + $0xf4] ss:$24 sps:$4 sm:$0xff]  }
 0x92e   :  { %v12230_v46 = vcombine.high %v6590_v15, %v6594_v16  ;;  %v12229_v26 = vcombine.low %v6590_v15, %v6594_v16  ;;  %v13472_v1 = vld [vmem:[#allocation13 + $0xfc] ss:$24 sps:$4 sm:$0xff]   ;;  %v13470_v62 = vld [vmem:[#allocation13 + $0xf8] ss:$24 sps:$4 sm:$0xff]  }
 0x92f   :  { %8151 = vmatpush1.bf16.msra.mxu1 %v12171_v22  ;;  %v6601_v22 = vld [vmem:[#allocation12 + $0x7b0] sm:$0xff] }
 0x930   :  { %8233 = vmatpush1.bf16.msra.mxu0 %v12173_v20  ;;  %8152 = vmatprep.subr.bf16.mxu1 %v12180_v23  ;;  %v6598_v20 = vld [vmem:[#allocation12 + $0x798] sm:$0xff]  ;;  %v12236_v30 = vcombine.high %v6597_v14, %v6601_v22  ;;  %v13479_v15 = vld [vmem:[#allocation13 + $0x150] ss:$24 sps:$4 sm:$0xff]  }
 0x931   :  { %8234 = vmatprep.subr.bf16.mxu0 %v12182_v24  ;;  %v6602_v23 = vld [vmem:[#allocation12 + $0x7b8] sm:$0xff]  ;;  %v12227_v24 = vcombine.low %v6589_v11, %v6593_v13  ;;  %v13481_v11 = vld [vmem:[#allocation13 + $0x154] ss:$24 sps:$4 sm:$0xff]  }
 0x932   :  { %v12238_v31 = vcombine.high %v6598_v20, %v6602_v23  ;;  %v12237_v34 = vcombine.low %v6598_v20, %v6602_v23  ;;  %v13484_v13 = vld [vmem:[#allocation13 + $0x15c] ss:$24 sps:$4 sm:$0xff]   ;;  %v13482_v16 = vld [vmem:[#allocation13 + $0x158] ss:$24 sps:$4 sm:$0xff]  }
 0x933   :  { %8153 = vmatpush1.bf16.msra.mxu1 %v12179_v32  ;;  %v6609_v32 = vld [vmem:[#allocation12 + $0x7f0] sm:$0xff] }
 0x934   :  { %8235 = vmatpush1.bf16.msra.mxu0 %v12181_v33  ;;  %8154 = vmatprep.subr.bf16.mxu1 %v12188_v35  ;;  %v6606_v33 = vld [vmem:[#allocation12 + $0x7d8] sm:$0xff]  ;;  %v12244_v36 = vcombine.high %v6605_v3, %v6609_v32  ;;  %v12243_v39 = vcombine.low %v6605_v3, %v6609_v32  ;;  %v13491_v20 = vld [vmem:[#allocation13 + $0x1b0] ss:$24 sps:$4 sm:$0xff]   ;;  %v13505_v3 = vld [vmem:[#allocation13 + $0x214] ss:$24 sps:$4 sm:$0xff]  }
 0x935   :  { %8236 = vmatprep.subr.bf16.mxu0 %v12190_v41  ;;  %v6610_v35 = vld [vmem:[#allocation12 + $0x7f8] sm:$0xff]  ;;  %v12235_v41 = vcombine.low %v6597_v14, %v6601_v22  ;;  %v13493_v14 = vld [vmem:[#allocation13 + $0x1b4] ss:$24 sps:$4 sm:$0xff]  }
 0x936   :  { %v12246_v48 = vcombine.high %v6606_v33, %v6610_v35  ;;  %v13496_v22 = vld [vmem:[#allocation13 + $0x1bc] ss:$24 sps:$4 sm:$0xff]   ;;  %v13494_v23 = vld [vmem:[#allocation13 + $0x1b8] ss:$24 sps:$4 sm:$0xff]  }
 0x937   :  { %8155 = vmatpush1.bf16.msra.mxu1 %v12187_v40  ;;  %v12245_v40 = vcombine.low %v6606_v33, %v6610_v35  ;;  %v13508_v32 = vld [vmem:[#allocation13 + $0x21c] ss:$24 sps:$4 sm:$0xff]   ;;  %v13503_v33 = vld [vmem:[#allocation13 + $0x210] ss:$24 sps:$4 sm:$0xff]  }
 0x938   :  { %8237 = vmatpush1.bf16.msra.mxu0 %v12189_v42  ;;  %8156 = vmatprep.subr.bf16.mxu1 %v12196_v57  ;;  %v13439_v42 = vld [vmem:[#allocation13 + $0x4] ss:$24 sps:$4 sm:$0xff]   ;;  %v13506_v35 = vld [vmem:[#allocation13 + $0x218] ss:$24 sps:$4 sm:$0xff]  }
 0x939   :  { %8238 = vmatprep.subr.bf16.mxu0 %v12198_v43  ;;  %v13442_v57 = vld [vmem:[#allocation13 + $0xc] ss:$24 sps:$4 sm:$0xff]   ;;  %v13437_v43 = vld [vmem:[#allocation13] ss:$24 sps:$4 sm:$0xff]  }
 0x93b   :  { %8157 = vmatpush1.bf16.msra.mxu1 %v12195_v2  ;;  %v13446_v2 = vld [vmem:[#allocation13 + $0x38] ss:$24 sps:$4 sm:$0xff]  }
 0x93c   :  { %8239 = vmatpush1.bf16.msra.mxu0 %v12197_v12  ;;  %8158 = vmatprep.subr.bf16.mxu1 %v12204_v52  ;;  %v13451_v12 = vld [vmem:[#allocation13 + $0x64] ss:$24 sps:$4 sm:$0xff]  }
 0x93d   :  { %8240 = vmatprep.subr.bf16.mxu0 %v12206_v53  ;;  %v13454_v52 = vld [vmem:[#allocation13 + $0x6c] ss:$24 sps:$4 sm:$0xff]   ;;  %v13449_v53 = vld [vmem:[#allocation13 + $0x60] ss:$24 sps:$4 sm:$0xff]  }
 0x93f   :  { %8159 = vmatpush1.bf16.msra.mxu1 %v12203_v58  ;;  %v13463_v58 = vld [vmem:[#allocation13 + $0xc4] ss:$24 sps:$4 sm:$0xff]  }
 0x940   :  { %8241 = vmatpush1.bf16.msra.mxu0 %v12205_v63  ;;  %8160 = vmatprep.subr.bf16.mxu1 %v12212_v4  ;;  %v13466_v63 = vld [vmem:[#allocation13 + $0xcc] ss:$24 sps:$4 sm:$0xff]   ;;  %v13461_v4 = vld [vmem:[#allocation13 + $0xc0] ss:$24 sps:$4 sm:$0xff]  }
 0x941   :  { %8242 = vmatprep.subr.bf16.mxu0 %v12214_v5  ;;  %v13464_v5 = vld [vmem:[#allocation13 + $0xc8] ss:$24 sps:$4 sm:$0xff]  }
 0x943   :  { %8161 = vmatpush1.bf16.msra.mxu1 %v12211_v50  ;;  %v13475_v50 = vld [vmem:[#allocation13 + $0x124] ss:$24 sps:$4 sm:$0xff]  }
 0x944   :  { %8243 = vmatpush1.bf16.msra.mxu0 %v12213_v25  ;;  %8162 = vmatprep.subr.bf16.mxu1 %v12220_v7  ;;  %v13478_v25 = vld [vmem:[#allocation13 + $0x12c] ss:$24 sps:$4 sm:$0xff]   ;;  %v13473_v7 = vld [vmem:[#allocation13 + $0x120] ss:$24 sps:$4 sm:$0xff]  }
 0x945   :  { %8244 = vmatprep.subr.bf16.mxu0 %v12222_v9  ;;  %v13476_v9 = vld [vmem:[#allocation13 + $0x128] ss:$24 sps:$4 sm:$0xff]  }
 0x947   :  { %8163 = vmatpush1.bf16.msra.mxu1 %v12219_v17  ;;  %v13487_v17 = vld [vmem:[#allocation13 + $0x184] ss:$24 sps:$4 sm:$0xff]  }
 0x948   :  { %8245 = vmatpush1.bf16.msra.mxu0 %v12221_v49  ;;  %8164 = vmatprep.subr.bf16.mxu1 %v12228_v19  ;;  %v13490_v49 = vld [vmem:[#allocation13 + $0x18c] ss:$24 sps:$4 sm:$0xff]   ;;  %v13485_v19 = vld [vmem:[#allocation13 + $0x180] ss:$24 sps:$4 sm:$0xff]  }
 0x949   :  { %8246 = vmatprep.subr.bf16.mxu0 %v12230_v46  ;;  %v13488_v46 = vld [vmem:[#allocation13 + $0x188] ss:$24 sps:$4 sm:$0xff]  }
 0x94b   :  { %8165 = vmatpush1.bf16.msra.mxu1 %v12227_v24  ;;  %v13499_v24 = vld [vmem:[#allocation13 + $0x1e4] ss:$24 sps:$4 sm:$0xff]  }
 0x94c   :  { %8247 = vmatpush1.bf16.msra.mxu0 %v12229_v26  ;;  %8166 = vmatprep.subr.bf16.mxu1 %v12236_v30  ;;  %v13502_v26 = vld [vmem:[#allocation13 + $0x1ec] ss:$24 sps:$4 sm:$0xff]   ;;  %v13497_v30 = vld [vmem:[#allocation13 + $0x1e0] ss:$24 sps:$4 sm:$0xff]  }
 0x94d   :  { %8248 = vmatprep.subr.bf16.mxu0 %v12238_v31  ;;  %v13500_v31 = vld [vmem:[#allocation13 + $0x1e8] ss:$24 sps:$4 sm:$0xff]  }
 0x94f   :  { %8167 = vmatpush1.bf16.msra.mxu1 %v12235_v41  ;;  %v13511_v41 = vld [vmem:[#allocation13 + $0x244] ss:$24 sps:$4 sm:$0xff]  }
 0x950   :  { %8249 = vmatpush1.bf16.msra.mxu0 %v12237_v34  ;;  %8168 = vmatprep.subr.bf16.mxu1 %v12244_v36  ;;  %v13514_v34 = vld [vmem:[#allocation13 + $0x24c] ss:$24 sps:$4 sm:$0xff]   ;;  %v13509_v36 = vld [vmem:[#allocation13 + $0x240] ss:$24 sps:$4 sm:$0xff]  }
 0x951   :  { %8250 = vmatprep.subr.bf16.mxu0 %v12246_v48  ;;  %v13512_v48 = vld [vmem:[#allocation13 + $0x248] ss:$24 sps:$4 sm:$0xff]  }
 0x953   :  { %8169 = vmatpush1.bf16.msra.mxu1 %v12243_v39  ;;  %v13517_v39 = vld [vmem:[#allocation13 + $0x274] ss:$24 sps:$4 sm:$0xff]  }
 0x954   :  { %8251 = vmatpush1.bf16.msra.mxu0 %v12245_v40  ;;  %10613 = vmatprep.subr.bf16.mxu1 %v13439_v42  ;;  %v13520_v40 = vld [vmem:[#allocation13 + $0x27c] ss:$24 sps:$4 sm:$0xff]   ;;  %v13515_v42 = vld [vmem:[#allocation13 + $0x270] ss:$24 sps:$4 sm:$0xff]  }
 0x955   :  { %10777 = vmatprep.subr.bf16.mxu0 %v13442_v57  ;;  %v13518_v57 = vld [vmem:[#allocation13 + $0x278] ss:$24 sps:$4 sm:$0xff]  }
 0x956   :  { %8171 = vmatmul.mubr.bf16.vlgmr.msra.gmra.mrb[24].mxu1 %v14923_v61 }
 0x957   :  { %8253 = vmatmul.mubr.bf16.vlgmr.msra.gmra.mrb[32].mxu0 %v14923_v61  ;;  %10614 = vmatpush1.bf16.msra.mxu1 %v13437_v43  ;;  %v13458_v61 = vld [vmem:[#allocation13 + $0x98] ss:$24 sps:$4 sm:$0xff]   ;;  %v13523_v43 = vld [vmem:[#allocation13 + $0x2a4] ss:$24 sps:$4 sm:$0xff]  }
 0x958   :  { %10778 = vmatpush1.bf16.msra.mxu0 %v13440_v44  ;;  %10615 = vmatprep.subr.bf16.mxu1 %v13445_v27  ;;  %v13526_v44 = vld [vmem:[#allocation13 + $0x2ac] ss:$24 sps:$4 sm:$0xff]   ;;  %v13521_v27 = vld [vmem:[#allocation13 + $0x2a0] ss:$24 sps:$4 sm:$0xff]  }
 0x959   :  { %10779 = vmatprep.subr.bf16.mxu0 %v13448_v21  ;;  %v13524_v21 = vld [vmem:[#allocation13 + $0x2a8] ss:$24 sps:$4 sm:$0xff]  }
 0x95b   :  { %10616 = vmatpush1.bf16.msra.mxu1 %v13443_v51  ;;  %v13529_v51 = vld [vmem:[#allocation13 + $0x2d4] ss:$24 sps:$4 sm:$0xff]  }
 0x95c   :  { %10780 = vmatpush1.bf16.msra.mxu0 %v13446_v2  ;;  %10617 = vmatprep.subr.bf16.mxu1 %v13451_v12  ;;  %v13532_v2 = vld [vmem:[#allocation13 + $0x2dc] ss:$24 sps:$4 sm:$0xff]   ;;  %v13527_v12 = vld [vmem:[#allocation13 + $0x2d0] ss:$24 sps:$4 sm:$0xff]  }
 0x95d   :  { %10781 = vmatprep.subr.bf16.mxu0 %v13454_v52  ;;  %v13530_v52 = vld [vmem:[#allocation13 + $0x2d8] ss:$24 sps:$4 sm:$0xff]  }
 0x95f   :  { %10618 = vmatpush1.bf16.msra.mxu1 %v13449_v53  ;;  %v13535_v53 = vld [vmem:[#allocation13 + $0x304] ss:$24 sps:$4 sm:$0xff]  }
 0x960   :  { %10782 = vmatpush1.bf16.msra.mxu0 %v13452_v54  ;;  %10619 = vmatprep.subr.bf16.mxu1 %v13457_v28  ;;  %v13538_v54 = vld [vmem:[#allocation13 + $0x30c] ss:$24 sps:$4 sm:$0xff]   ;;  %v14935_v28 = vld [vmem:[#allocation24] sm:$0xff] }
 0x961   :  { %10783 = vmatprep.subr.bf16.mxu0 %v13460_v56  ;;  %v6616_v56 = vrot.slane %v14935_v28, %v14817_v47 }
 0x963   :  { %10620 = vmatpush1.bf16.msra.mxu1 %v13455_v55  ;;  %v6620_v55 = vrot.slane %v14935_v28, %v14820_v37 }
 0x964   :  { %10784 = vmatpush1.bf16.msra.mxu0 %v13458_v61  ;;  %10621 = vmatprep.subr.bf16.mxu1 %v13463_v58  ;;  %v6628_v61 = vrot.slane %v14935_v28, %v14838_v10 }
 0x965   :  { %10785 = vmatprep.subr.bf16.mxu0 %v13466_v63 }
 0x967   :  { %10622 = vmatpush1.bf16.msra.mxu1 %v13461_v4 }
 0x968   :  { %10786 = vmatpush1.bf16.msra.mxu0 %v13464_v5  ;;  %10623 = vmatprep.subr.bf16.mxu1 %v13469_v6 }
 0x969   :  { %10787 = vmatprep.subr.bf16.mxu0 %v13472_v1 }
 0x96b   :  { %10624 = vmatpush1.bf16.msra.mxu1 %v13467_v60 }
 0x96c   :  { %10788 = vmatpush1.bf16.msra.mxu0 %v13470_v62  ;;  %10625 = vmatprep.subr.bf16.mxu1 %v13475_v50 }
 0x96d   :  { %10789 = vmatprep.subr.bf16.mxu0 %v13478_v25 }
 0x96f   :  { %10626 = vmatpush1.bf16.msra.mxu1 %v13473_v7 }
 0x970   :  { %10790 = vmatpush1.bf16.msra.mxu0 %v13476_v9  ;;  %10627 = vmatprep.subr.bf16.mxu1 %v13481_v11 }
 0x971   :  { %10791 = vmatprep.subr.bf16.mxu0 %v13484_v13 }
 0x973   :  { %10628 = vmatpush1.bf16.msra.mxu1 %v13479_v15 }
 0x974   :  { %10792 = vmatpush1.bf16.msra.mxu0 %v13482_v16  ;;  %10629 = vmatprep.subr.bf16.mxu1 %v13487_v17  ;;  %v13533_v16 = vld [vmem:[#allocation13 + $0x300] ss:$24 sps:$4 sm:$0xff]  }
 0x975   :  { %10793 = vmatprep.subr.bf16.mxu0 %v13490_v49  ;;  %v13536_v17 = vld [vmem:[#allocation13 + $0x308] ss:$24 sps:$4 sm:$0xff]  }
 0x977   :  { %10630 = vmatpush1.bf16.msra.mxu1 %v13485_v19  ;;  %v13541_v19 = vld [vmem:[#allocation13 + $0x334] ss:$24 sps:$4 sm:$0xff]  }
 0x978   :  { %10794 = vmatpush1.bf16.msra.mxu0 %v13488_v46  ;;  %10631 = vmatprep.subr.bf16.mxu1 %v13493_v14  ;;  %v13544_v46 = vld [vmem:[#allocation13 + $0x33c] ss:$24 sps:$4 sm:$0xff]  }
 0x979   :  { %10795 = vmatprep.subr.bf16.mxu0 %v13496_v22  ;;  %v13539_v22 = vld [vmem:[#allocation13 + $0x330] ss:$24 sps:$4 sm:$0xff]  }
 0x97b   :  { %10632 = vmatpush1.bf16.msra.mxu1 %v13491_v20  ;;  %v13542_v20 = vld [vmem:[#allocation13 + $0x338] ss:$24 sps:$4 sm:$0xff]  }
 0x97c   :  { %10796 = vmatpush1.bf16.msra.mxu0 %v13494_v23  ;;  %10633 = vmatprep.subr.bf16.mxu1 %v13499_v24  ;;  %v13547_v23 = vld [vmem:[#allocation13 + $0x364] ss:$24 sps:$4 sm:$0xff]  }
 0x97d   :  { %10797 = vmatprep.subr.bf16.mxu0 %v13502_v26  ;;  %v13550_v24 = vld [vmem:[#allocation13 + $0x36c] ss:$24 sps:$4 sm:$0xff]   ;;  %v13545_v26 = vld [vmem:[#allocation13 + $0x360] ss:$24 sps:$4 sm:$0xff]  }
 0x97f   :  { %10634 = vmatpush1.bf16.msra.mxu1 %v13497_v30  ;;  %v13548_v30 = vld [vmem:[#allocation13 + $0x368] ss:$24 sps:$4 sm:$0xff]  }
 0x980   :  { %10798 = vmatpush1.bf16.msra.mxu0 %v13500_v31  ;;  %10635 = vmatprep.subr.bf16.mxu1 %v13505_v3  ;;  %v13553_v31 = vld [vmem:[#allocation13 + $0x394] ss:$24 sps:$4 sm:$0xff]  }
 0x981   :  { %10799 = vmatprep.subr.bf16.mxu0 %v13508_v32  ;;  %v13556_v3 = vld [vmem:[#allocation13 + $0x39c] ss:$24 sps:$4 sm:$0xff]   ;;  %v13551_v32 = vld [vmem:[#allocation13 + $0x390] ss:$24 sps:$4 sm:$0xff]  }
 0x983   :  { %10636 = vmatpush1.bf16.msra.mxu1 %v13503_v33  ;;  %v13554_v33 = vld [vmem:[#allocation13 + $0x398] ss:$24 sps:$4 sm:$0xff]  }
 0x984   :  { %10800 = vmatpush1.bf16.msra.mxu0 %v13506_v35  ;;  %10637 = vmatprep.subr.bf16.mxu1 %v13511_v41  ;;  %v13559_v35 = vld [vmem:[#allocation13 + $0x3c4] ss:$24 sps:$4 sm:$0xff]  }
 0x985   :  { %10801 = vmatprep.subr.bf16.mxu0 %v13514_v34  ;;  %v13562_v41 = vld [vmem:[#allocation13 + $0x3cc] ss:$24 sps:$4 sm:$0xff]   ;;  %v13557_v34 = vld [vmem:[#allocation13 + $0x3c0] ss:$24 sps:$4 sm:$0xff]  }
 0x987   :  { %10638 = vmatpush1.bf16.msra.mxu1 %v13509_v36  ;;  %v13560_v36 = vld [vmem:[#allocation13 + $0x3c8] ss:$24 sps:$4 sm:$0xff]  }
 0x988   :  { %10802 = vmatpush1.bf16.msra.mxu0 %v13512_v48  ;;  %10639 = vmatprep.subr.bf16.mxu1 %v13517_v39  ;;  %v13565_v48 = vld [vmem:[#allocation13 + $0x3f4] ss:$24 sps:$4 sm:$0xff]  }
 0x989   :  { %10803 = vmatprep.subr.bf16.mxu0 %v13520_v40  ;;  %v13568_v39 = vld [vmem:[#allocation13 + $0x3fc] ss:$24 sps:$4 sm:$0xff]   ;;  %v13563_v40 = vld [vmem:[#allocation13 + $0x3f0] ss:$24 sps:$4 sm:$0xff]  }
 0x98b   :  { %10640 = vmatpush1.bf16.msra.mxu1 %v13515_v42  ;;  %v13566_v42 = vld [vmem:[#allocation13 + $0x3f8] ss:$24 sps:$4 sm:$0xff]  }
 0x98c   :  { %10804 = vmatpush1.bf16.msra.mxu0 %v13518_v57  ;;  %10641 = vmatprep.subr.bf16.mxu1 %v13523_v43  ;;  %v13571_v57 = vld [vmem:[#allocation13 + $0x424] ss:$24 sps:$4 sm:$0xff]  }
 0x98d   :  { %10805 = vmatprep.subr.bf16.mxu0 %v13526_v44  ;;  %v13574_v43 = vld [vmem:[#allocation13 + $0x42c] ss:$24 sps:$4 sm:$0xff]   ;;  %v13569_v44 = vld [vmem:[#allocation13 + $0x420] ss:$24 sps:$4 sm:$0xff]  }
 0x98f   :  { %10642 = vmatpush1.bf16.msra.mxu1 %v13521_v27  ;;  %v13572_v27 = vld [vmem:[#allocation13 + $0x428] ss:$24 sps:$4 sm:$0xff]  }
 0x990   :  { %10806 = vmatpush1.bf16.msra.mxu0 %v13524_v21  ;;  %10643 = vmatprep.subr.bf16.mxu1 %v13529_v51  ;;  %v13577_v21 = vld [vmem:[#allocation13 + $0x454] ss:$24 sps:$4 sm:$0xff]  }
 0x991   :  { %10807 = vmatprep.subr.bf16.mxu0 %v13532_v2  ;;  %v13580_v51 = vld [vmem:[#allocation13 + $0x45c] ss:$24 sps:$4 sm:$0xff]   ;;  %v13575_v2 = vld [vmem:[#allocation13 + $0x450] ss:$24 sps:$4 sm:$0xff]  }
 0x993   :  { %10644 = vmatpush1.bf16.msra.mxu1 %v13527_v12  ;;  %v13578_v12 = vld [vmem:[#allocation13 + $0x458] ss:$24 sps:$4 sm:$0xff]  }
 0x994   :  { %10808 = vmatpush1.bf16.msra.mxu0 %v13530_v52  ;;  %10654 = vmatprep.subr.bf16.mxu1 %v13535_v53  ;;  %v13583_v52 = vld [vmem:[#allocation13 + $0x484] ss:$24 sps:$4 sm:$0xff]  }
 0x995   :  { %10818 = vmatprep.subr.bf16.mxu0 %v13538_v54  ;;  %v13586_v53 = vld [vmem:[#allocation13 + $0x48c] ss:$24 sps:$4 sm:$0xff]   ;;  %v13581_v54 = vld [vmem:[#allocation13 + $0x480] ss:$24 sps:$4 sm:$0xff]  }
 0x9a9   :  { %v8008_v58 = vpop.f32.mrb[20].mxu1  ;;  %v14943_v63 = vpop.f32.mrb[28].mxu0 }
 0x9aa   :  { %v12670_v4 = vadd.f32 %v8008_v58, %v6616_v56  ;;  %v8010_v5 = vpop.f32.mrb[21].mxu1  ;;  %v8092_v6 = vpop.f32.mrb[29].mxu0  ;;  %v13584_v56 = vld [vmem:[#allocation13 + $0x488] ss:$24 sps:$4 sm:$0xff]  }
 0x9ab   :  { %v12671_v1 = vadd.f32 %v8010_v5, %v6620_v55  ;;  %v12673_v60 = vadd.f32 %v8092_v6, %v6628_v61  ;;  %v8012_v62 = vpop.f32.mrb[22].mxu1  ;;  %v8094_v50 = vpop.f32.mrb[30].mxu0  ;;  %v13589_v55 = vld [vmem:[#allocation13 + $0x4b4] ss:$24 sps:$4 sm:$0xff]   ;;  %v13587_v58 = vld [vmem:[#allocation13 + $0x4b0] ss:$24 sps:$4 sm:$0xff]  }
 0x9ac   :  { %v8261_v25 = vmax.f32 %v12670_v4, 0.0  ;;  %v8013_v7 = vpop.f32.mrb[23].mxu1  ;;  %v8095_v9 = vpop.f32.mrb[31].mxu0  ;;  %v13592_v61 = vld [vmem:[#allocation13 + $0x4bc] ss:$24 sps:$4 sm:$0xff]  }
 0x9ad   :  { %v8262_v11 = vmax.f32 %v12671_v1, 0.0  ;;  %v8264_v13 = vmax.f32 %v12673_v60, 0.0  ;;  %v13590_v4 = vld [vmem:[#allocation13 + $0x4b8] ss:$24 sps:$4 sm:$0xff]   ;;  %v13595_v5 = vld [vmem:[#allocation13 + $0x4e4] ss:$24 sps:$4 sm:$0xff]  }
 0x9ae   :  { %v14947_v49 = vpack.c.bf16 %v8261_v25, %v8261_v25  ;;  %v13598_v6 = vld [vmem:[#allocation13 + $0x4ec] ss:$24 sps:$4 sm:$0xff]   ;;  %v13593_v1 = vld [vmem:[#allocation13 + $0x4e0] ss:$24 sps:$4 sm:$0xff]   ;;  %v13604_v50 = vld [vmem:[#allocation13 + $0x51c] ss:$24 sps:$4 sm:$0xff]  }
 0x9af   :  { %v14945_v15 = vpack.c.bf16 %v8262_v11, %v8262_v11  ;;  %v14951_v14 = vpack.c.bf16 %v8264_v13, %v8264_v13  ;;  %v13596_v60 = vld [vmem:[#allocation13 + $0x4e8] ss:$24 sps:$4 sm:$0xff]   ;;  %v13601_v62 = vld [vmem:[#allocation13 + $0x514] ss:$24 sps:$4 sm:$0xff]   ;;  %v13602_v7 = vld [vmem:[#allocation13 + $0x518] ss:$24 sps:$4 sm:$0xff]  }
 0x9b0   :  { %v13599_v25 = vld [vmem:[#allocation13 + $0x510] ss:$24 sps:$4 sm:$0xff]   ;;  %v13607_v9 = vld [vmem:[#allocation13 + $0x544] ss:$24 sps:$4 sm:$0xff]   ;;  %v13605_v13 = vld [vmem:[#allocation13 + $0x540] ss:$24 sps:$4 sm:$0xff]  }
 0x9b1   :  { %10645 = vmatprep.mubr.bf16.mxu1 %v14945_v15  ;;  %10809 = vmatprep.mubr.bf16.mxu0 %v14945_v15  ;;  %v13610_v11 = vld [vmem:[#allocation13 + $0x54c] ss:$24 sps:$4 sm:$0xff]  }
 0x9b2   :  { %10646 = vmatmul.mubr.bf16.vlgmr.msra.gmra.mrb[28].mxu1 %v14947_v49  ;;  %10810 = vmatmul.mubr.bf16.vlgmr.msra.gmra.mrb[36].mxu0 %v14947_v49 }
 0x9b3   :  { %10655 = vmatpush1.bf16.msra.mxu1 %v13533_v16  ;;  %10819 = vmatpush1.bf16.msra.mxu0 %v13536_v17  ;;  %v13608_v16 = vld [vmem:[#allocation13 + $0x548] ss:$24 sps:$4 sm:$0xff]   ;;  %v13613_v17 = vld [vmem:[#allocation13 + $0x574] ss:$24 sps:$4 sm:$0xff]  }
 0x9b4   :  { %10686 = vmatprep.mubr.bf16.mxu1 %v14951_v14  ;;  %10850 = vmatprep.mubr.bf16.mxu0 %v14951_v14 }
 0x9b5   :  { %10656 = vmatprep.subr.bf16.mxu1 %v13541_v19  ;;  %10820 = vmatprep.subr.bf16.mxu0 %v13544_v46  ;;  %v13616_v19 = vld [vmem:[#allocation13 + $0x57c] ss:$24 sps:$4 sm:$0xff]   ;;  %v13611_v46 = vld [vmem:[#allocation13 + $0x570] ss:$24 sps:$4 sm:$0xff]  }
 0x9b7   :  { %10657 = vmatpush1.bf16.msra.mxu1 %v13539_v22  ;;  %10821 = vmatpush1.bf16.msra.mxu0 %v13542_v20  ;;  %v13614_v22 = vld [vmem:[#allocation13 + $0x578] ss:$24 sps:$4 sm:$0xff]   ;;  %v6624_v20 = vrot.slane %v14935_v28, %v14835_v8 }
 0x9b8   :  { %10658 = vmatprep.subr.bf16.mxu1 %v13547_v23  ;;  %10822 = vmatprep.subr.bf16.mxu0 %v13550_v24  ;;  %v13619_v23 = vld [vmem:[#allocation13 + $0x5a4] ss:$24 sps:$4 sm:$0xff]  }
 0x9b9   :  { %v13622_v24 = vld [vmem:[#allocation13 + $0x5ac] ss:$24 sps:$4 sm:$0xff]  }
 0x9bb   :  { %10659 = vmatpush1.bf16.msra.mxu1 %v13545_v26  ;;  %10823 = vmatpush1.bf16.msra.mxu0 %v13548_v30  ;;  %v13617_v26 = vld [vmem:[#allocation13 + $0x5a0] ss:$24 sps:$4 sm:$0xff]  }
 0x9bc   :  { %10660 = vmatprep.subr.bf16.mxu1 %v13553_v31  ;;  %10824 = vmatprep.subr.bf16.mxu0 %v13556_v3  ;;  %v13620_v30 = vld [vmem:[#allocation13 + $0x5a8] ss:$24 sps:$4 sm:$0xff]   ;;  %v12672_v31 = vadd.f32 %v14943_v63, %v6624_v20  ;;  %v13625_v3 = vld [vmem:[#allocation13 + $0x5d4] ss:$24 sps:$4 sm:$0xff]  }
 0x9bd   :  { %v13637_v63 = vld [vmem:[#allocation13 + $0x634] ss:$24 sps:$4 sm:$0xff]   ;;  %v13683_v20 = vld [vmem:[#allocation13 + $0x7b0] ss:$24 sps:$4 sm:$0xff]  }
 0x9bf   :  { %10661 = vmatpush1.bf16.msra.mxu1 %v13551_v32  ;;  %10825 = vmatpush1.bf16.msra.mxu0 %v13554_v33  ;;  %v13628_v32 = vld [vmem:[#allocation13 + $0x5dc] ss:$24 sps:$4 sm:$0xff]   ;;  %v13623_v33 = vld [vmem:[#allocation13 + $0x5d0] ss:$24 sps:$4 sm:$0xff]  }
 0x9c0   :  { %10662 = vmatprep.subr.bf16.mxu1 %v13559_v35  ;;  %10826 = vmatprep.subr.bf16.mxu0 %v13562_v41  ;;  %v13626_v35 = vld [vmem:[#allocation13 + $0x5d8] ss:$24 sps:$4 sm:$0xff]   ;;  %v8263_v41 = vmax.f32 %v12672_v31, 0.0  ;;  %v13692_v31 = vld [vmem:[#allocation13 + $0x7e8] ss:$24 sps:$4 sm:$0xff]  }
 0x9c3   :  { %10663 = vmatpush1.bf16.msra.mxu1 %v13557_v34  ;;  %10827 = vmatpush1.bf16.msra.mxu0 %v13560_v36  ;;  %v13631_v34 = vld [vmem:[#allocation13 + $0x604] ss:$24 sps:$4 sm:$0xff]  }
 0x9c4   :  { %10664 = vmatprep.subr.bf16.mxu1 %v13565_v48  ;;  %10828 = vmatprep.subr.bf16.mxu0 %v13568_v39  ;;  %v13634_v36 = vld [vmem:[#allocation13 + $0x60c] ss:$24 sps:$4 sm:$0xff]   ;;  %v13629_v48 = vld [vmem:[#allocation13 + $0x600] ss:$24 sps:$4 sm:$0xff]  }
 0x9c5   :  { %v13632_v39 = vld [vmem:[#allocation13 + $0x608] ss:$24 sps:$4 sm:$0xff]  }
 0x9c7   :  { %10665 = vmatpush1.bf16.msra.mxu1 %v13563_v40  ;;  %10829 = vmatpush1.bf16.msra.mxu0 %v13566_v42  ;;  %v14960_v40 = vpack.c.bf16 %v8263_v41, %v8263_v41  ;;  %v13640_v42 = vld [vmem:[#allocation13 + $0x63c] ss:$24 sps:$4 sm:$0xff]  }
 0x9c8   :  { %10666 = vmatprep.subr.bf16.mxu1 %v13571_v57  ;;  %10830 = vmatprep.subr.bf16.mxu0 %v13574_v43  ;;  %v13635_v57 = vld [vmem:[#allocation13 + $0x630] ss:$24 sps:$4 sm:$0xff]   ;;  %v13703_v41 = vld [vmem:[#allocation13 + $0x844] ss:$24 sps:$4 sm:$0xff]  }
 0x9c9   :  { %v13638_v43 = vld [vmem:[#allocation13 + $0x638] ss:$24 sps:$4 sm:$0xff]  }
 0x9cb   :  { %10667 = vmatpush1.bf16.msra.mxu1 %v13569_v44  ;;  %10831 = vmatpush1.bf16.msra.mxu0 %v13572_v27  ;;  %v13643_v44 = vld [vmem:[#allocation13 + $0x664] ss:$24 sps:$4 sm:$0xff]  }
 0x9cc   :  { %10668 = vmatprep.subr.bf16.mxu1 %v13577_v21  ;;  %10832 = vmatprep.subr.bf16.mxu0 %v13580_v51  ;;  %v13646_v27 = vld [vmem:[#allocation13 + $0x66c] ss:$24 sps:$4 sm:$0xff]   ;;  %v13641_v21 = vld [vmem:[#allocation13 + $0x660] ss:$24 sps:$4 sm:$0xff]  }
 0x9cd   :  { %v13644_v51 = vld [vmem:[#allocation13 + $0x668] ss:$24 sps:$4 sm:$0xff]  }
 0x9cf   :  { %10669 = vmatpush1.bf16.msra.mxu1 %v13575_v2  ;;  %10833 = vmatpush1.bf16.msra.mxu0 %v13578_v12  ;;  %v13649_v2 = vld [vmem:[#allocation13 + $0x694] ss:$24 sps:$4 sm:$0xff]  }
 0x9d0   :  { %10670 = vmatprep.subr.bf16.mxu1 %v13583_v52  ;;  %10834 = vmatprep.subr.bf16.mxu0 %v13586_v53  ;;  %v13652_v12 = vld [vmem:[#allocation13 + $0x69c] ss:$24 sps:$4 sm:$0xff]   ;;  %v13647_v52 = vld [vmem:[#allocation13 + $0x690] ss:$24 sps:$4 sm:$0xff]  }
 0x9d1   :  { %v13650_v53 = vld [vmem:[#allocation13 + $0x698] ss:$24 sps:$4 sm:$0xff]  }
 0x9d3   :  { %10671 = vmatpush1.bf16.msra.mxu1 %v13581_v54  ;;  %10835 = vmatpush1.bf16.msra.mxu0 %v13584_v56  ;;  %v13655_v54 = vld [vmem:[#allocation13 + $0x6c4] ss:$24 sps:$4 sm:$0xff]  }
 0x9d4   :  { %10672 = vmatprep.subr.bf16.mxu1 %v13589_v55  ;;  %10836 = vmatprep.subr.bf16.mxu0 %v13592_v61  ;;  %v13658_v56 = vld [vmem:[#allocation13 + $0x6cc] ss:$24 sps:$4 sm:$0xff]   ;;  %v13653_v55 = vld [vmem:[#allocation13 + $0x6c0] ss:$24 sps:$4 sm:$0xff]  }
 0x9d5   :  { %v13656_v61 = vld [vmem:[#allocation13 + $0x6c8] ss:$24 sps:$4 sm:$0xff]  }
 0x9d7   :  { %10673 = vmatpush1.bf16.msra.mxu1 %v13587_v58  ;;  %10837 = vmatpush1.bf16.msra.mxu0 %v13590_v4  ;;  %v13661_v58 = vld [vmem:[#allocation13 + $0x6f4] ss:$24 sps:$4 sm:$0xff]  }
 0x9d8   :  { %10674 = vmatprep.subr.bf16.mxu1 %v13595_v5  ;;  %10838 = vmatprep.subr.bf16.mxu0 %v13598_v6  ;;  %v13664_v4 = vld [vmem:[#allocation13 + $0x6fc] ss:$24 sps:$4 sm:$0xff]   ;;  %v13659_v5 = vld [vmem:[#allocation13 + $0x6f0] ss:$24 sps:$4 sm:$0xff]  }
 0x9d9   :  { %v13662_v6 = vld [vmem:[#allocation13 + $0x6f8] ss:$24 sps:$4 sm:$0xff]  }
 0x9db   :  { %10675 = vmatpush1.bf16.msra.mxu1 %v13593_v1  ;;  %10839 = vmatpush1.bf16.msra.mxu0 %v13596_v60  ;;  %v13667_v1 = vld [vmem:[#allocation13 + $0x724] ss:$24 sps:$4 sm:$0xff]  }
 0x9dc   :  { %10676 = vmatprep.subr.bf16.mxu1 %v13601_v62  ;;  %10840 = vmatprep.subr.bf16.mxu0 %v13604_v50  ;;  %v13670_v60 = vld [vmem:[#allocation13 + $0x72c] ss:$24 sps:$4 sm:$0xff]   ;;  %v13665_v62 = vld [vmem:[#allocation13 + $0x720] ss:$24 sps:$4 sm:$0xff]  }
 0x9dd   :  { %v13668_v50 = vld [vmem:[#allocation13 + $0x728] ss:$24 sps:$4 sm:$0xff]  }
 0x9df   :  { %10677 = vmatpush1.bf16.msra.mxu1 %v13599_v25  ;;  %10841 = vmatpush1.bf16.msra.mxu0 %v13602_v7  ;;  %v13673_v25 = vld [vmem:[#allocation13 + $0x754] ss:$24 sps:$4 sm:$0xff]  }
 0x9e0   :  { %10678 = vmatprep.subr.bf16.mxu1 %v13607_v9  ;;  %10842 = vmatprep.subr.bf16.mxu0 %v13610_v11  ;;  %v13676_v7 = vld [vmem:[#allocation13 + $0x75c] ss:$24 sps:$4 sm:$0xff]   ;;  %v13671_v9 = vld [vmem:[#allocation13 + $0x750] ss:$24 sps:$4 sm:$0xff]  }
 0x9e1   :  { %v13674_v11 = vld [vmem:[#allocation13 + $0x758] ss:$24 sps:$4 sm:$0xff]  }
 0x9e3   :  { %10679 = vmatpush1.bf16.msra.mxu1 %v13605_v13  ;;  %10843 = vmatpush1.bf16.msra.mxu0 %v13608_v16  ;;  %v13679_v13 = vld [vmem:[#allocation13 + $0x784] ss:$24 sps:$4 sm:$0xff]  }
 0x9e4   :  { %10680 = vmatprep.subr.bf16.mxu1 %v13613_v17  ;;  %10844 = vmatprep.subr.bf16.mxu0 %v13616_v19  ;;  %v13682_v16 = vld [vmem:[#allocation13 + $0x78c] ss:$24 sps:$4 sm:$0xff]   ;;  %v13677_v17 = vld [vmem:[#allocation13 + $0x780] ss:$24 sps:$4 sm:$0xff]  }
 0x9e5   :  { %v13680_v19 = vld [vmem:[#allocation13 + $0x788] ss:$24 sps:$4 sm:$0xff]  }
 0x9e7   :  { %10681 = vmatpush1.bf16.msra.mxu1 %v13611_v46  ;;  %10845 = vmatpush1.bf16.msra.mxu0 %v13614_v22  ;;  %v13685_v46 = vld [vmem:[#allocation13 + $0x7b4] ss:$24 sps:$4 sm:$0xff]  }
 0x9e8   :  { %10682 = vmatprep.subr.bf16.mxu1 %v13619_v23  ;;  %10846 = vmatprep.subr.bf16.mxu0 %v13622_v24  ;;  %v13688_v22 = vld [vmem:[#allocation13 + $0x7bc] ss:$24 sps:$4 sm:$0xff]   ;;  %v13686_v23 = vld [vmem:[#allocation13 + $0x7b8] ss:$24 sps:$4 sm:$0xff]  }
 0x9e9   :  { %v13691_v24 = vld [vmem:[#allocation13 + $0x7e4] ss:$24 sps:$4 sm:$0xff]  }
 0x9eb   :  { %10683 = vmatpush1.bf16.msra.mxu1 %v13617_v26  ;;  %10847 = vmatpush1.bf16.msra.mxu0 %v13620_v30  ;;  %v13694_v26 = vld [vmem:[#allocation13 + $0x7ec] ss:$24 sps:$4 sm:$0xff]   ;;  %v13689_v30 = vld [vmem:[#allocation13 + $0x7e0] ss:$24 sps:$4 sm:$0xff]  }
 0x9ec   :  { %10684 = vmatprep.subr.bf16.mxu1 %v13625_v3  ;;  %10848 = vmatprep.subr.bf16.mxu0 %v13628_v32  ;;  %v13697_v3 = vld [vmem:[#allocation13 + $0x814] ss:$24 sps:$4 sm:$0xff]  }
 0x9ed   :  { %v13700_v32 = vld [vmem:[#allocation13 + $0x81c] ss:$24 sps:$4 sm:$0xff]  }
 0x9ef   :  { %10685 = vmatpush1.bf16.msra.mxu1 %v13623_v33  ;;  %10849 = vmatpush1.bf16.msra.mxu0 %v13626_v35  ;;  %v13695_v33 = vld [vmem:[#allocation13 + $0x810] ss:$24 sps:$4 sm:$0xff]  }
 0x9f0   :  { %10695 = vmatprep.subr.bf16.mxu1 %v13631_v34  ;;  %10859 = vmatprep.subr.bf16.mxu0 %v13634_v36  ;;  %v13698_v35 = vld [vmem:[#allocation13 + $0x818] ss:$24 sps:$4 sm:$0xff]   ;;  %v13706_v34 = vld [vmem:[#allocation13 + $0x84c] ss:$24 sps:$4 sm:$0xff]  }
 0x9f1   :  { %v13701_v36 = vld [vmem:[#allocation13 + $0x840] ss:$24 sps:$4 sm:$0xff]  }
 0x9f2   :  { %10687 = vmatmul.mubr.bf16.vlgmr.msra.gmra.mrb[28].mxu1 %v14960_v40  ;;  %10851 = vmatmul.mubr.bf16.vlgmr.msra.gmra.mrb[36].mxu0 %v14960_v40 }
 0x9f3   :  { %10696 = vmatpush1.bf16.msra.mxu1 %v13629_v48  ;;  %10860 = vmatpush1.bf16.msra.mxu0 %v13632_v39  ;;  %v13704_v48 = vld [vmem:[#allocation13 + $0x848] ss:$24 sps:$4 sm:$0xff]   ;;  %v13709_v39 = vld [vmem:[#allocation13 + $0x874] ss:$24 sps:$4 sm:$0xff]  }
 0x9f4   :  { %10697 = vmatprep.subr.bf16.mxu1 %v13637_v63  ;;  %10861 = vmatprep.subr.bf16.mxu0 %v13640_v42  ;;  %v13712_v63 = vld [vmem:[#allocation13 + $0x87c] ss:$24 sps:$4 sm:$0xff]   ;;  %v13707_v42 = vld [vmem:[#allocation13 + $0x870] ss:$24 sps:$4 sm:$0xff]  }
 0x9f7   :  { %10698 = vmatpush1.bf16.msra.mxu1 %v13635_v57  ;;  %10862 = vmatpush1.bf16.msra.mxu0 %v13638_v43  ;;  %v13710_v57 = vld [vmem:[#allocation13 + $0x878] ss:$24 sps:$4 sm:$0xff]   ;;  %v13715_v43 = vld [vmem:[#allocation13 + $0x8a4] ss:$24 sps:$4 sm:$0xff]  }
 0x9f8   :  { %10699 = vmatprep.subr.bf16.mxu1 %v13643_v44  ;;  %10863 = vmatprep.subr.bf16.mxu0 %v13646_v27  ;;  %v13718_v44 = vld [vmem:[#allocation13 + $0x8ac] ss:$24 sps:$4 sm:$0xff]   ;;  %v6632_v27 = vrot.slane %v14935_v28, %v14861_v18 }
 0x9fb   :  { %10700 = vmatpush1.bf16.msra.mxu1 %v13641_v21  ;;  %10864 = vmatpush1.bf16.msra.mxu0 %v13644_v51  ;;  %v13713_v21 = vld [vmem:[#allocation13 + $0x8a0] ss:$24 sps:$4 sm:$0xff]  }
 0x9fc   :  { %10701 = vmatprep.subr.bf16.mxu1 %v13649_v2  ;;  %10865 = vmatprep.subr.bf16.mxu0 %v13652_v12  ;;  %v13716_v51 = vld [vmem:[#allocation13 + $0x8a8] ss:$24 sps:$4 sm:$0xff]   ;;  %v6636_v2 = vrot.slane %v14935_v28, %v14864_v45  ;;  %v6644_v12 = vrot.slane %v14935_v28, %v715_v59  ;;  %v13730_v59 = vld [vmem:[#allocation13 + $0x90c] ss:$24 sps:$4 sm:$0xff]  }
 0x9ff   :  { %10702 = vmatpush1.bf16.msra.mxu1 %v13647_v52  ;;  %10866 = vmatpush1.bf16.msra.mxu0 %v13650_v53  ;;  %v13721_v52 = vld [vmem:[#allocation13 + $0x8d4] ss:$24 sps:$4 sm:$0xff]  }
 0xa00   :  { %10703 = vmatprep.subr.bf16.mxu1 %v13655_v54  ;;  %10867 = vmatprep.subr.bf16.mxu0 %v13658_v56  ;;  %v13724_v53 = vld [vmem:[#allocation13 + $0x8dc] ss:$24 sps:$4 sm:$0xff]  }
 0xa03   :  { %10704 = vmatpush1.bf16.msra.mxu1 %v13653_v55  ;;  %10868 = vmatpush1.bf16.msra.mxu0 %v13656_v61 }
 0xa04   :  { %10705 = vmatprep.subr.bf16.mxu1 %v13661_v58  ;;  %10869 = vmatprep.subr.bf16.mxu0 %v13664_v4  ;;  %v13719_v58 = vld [vmem:[#allocation13 + $0x8d0] ss:$24 sps:$4 sm:$0xff]  }
 0xa07   :  { %10706 = vmatpush1.bf16.msra.mxu1 %v13659_v5  ;;  %10870 = vmatpush1.bf16.msra.mxu0 %v13662_v6 }
 0xa08   :  { %10707 = vmatprep.subr.bf16.mxu1 %v13667_v1  ;;  %10871 = vmatprep.subr.bf16.mxu0 %v13670_v60  ;;  %v13722_v1 = vld [vmem:[#allocation13 + $0x8d8] ss:$24 sps:$4 sm:$0xff]   ;;  %v13727_v60 = vld [vmem:[#allocation13 + $0x904] ss:$24 sps:$4 sm:$0xff]  }
 0xa0b   :  { %10708 = vmatpush1.bf16.msra.mxu1 %v13665_v62  ;;  %10872 = vmatpush1.bf16.msra.mxu0 %v13668_v50 }
 0xa0c   :  { %10709 = vmatprep.subr.bf16.mxu1 %v13673_v25  ;;  %10873 = vmatprep.subr.bf16.mxu0 %v13676_v7 }
 0xa0f   :  { %10710 = vmatpush1.bf16.msra.mxu1 %v13671_v9  ;;  %10874 = vmatpush1.bf16.msra.mxu0 %v13674_v11 }
 0xa10   :  { %10711 = vmatprep.subr.bf16.mxu1 %v13679_v13  ;;  %10875 = vmatprep.subr.bf16.mxu0 %v13682_v16 }
 0xa13   :  { %10712 = vmatpush1.bf16.msra.mxu1 %v13677_v17  ;;  %10876 = vmatpush1.bf16.msra.mxu0 %v13680_v19  ;;  %v13725_v17 = vld [vmem:[#allocation13 + $0x900] ss:$24 sps:$4 sm:$0xff]  }
 0xa14   :  { %10713 = vmatprep.subr.bf16.mxu1 %v13685_v46  ;;  %10877 = vmatprep.subr.bf16.mxu0 %v13688_v22  ;;  %v13728_v19 = vld [vmem:[#allocation13 + $0x908] ss:$24 sps:$4 sm:$0xff]   ;;  %v13733_v22 = vld [vmem:[#allocation13 + $0x934] ss:$24 sps:$4 sm:$0xff]  }
 0xa17   :  { %10714 = vmatpush1.bf16.msra.mxu1 %v13683_v20  ;;  %10878 = vmatpush1.bf16.msra.mxu0 %v13686_v23  ;;  %v13736_v20 = vld [vmem:[#allocation13 + $0x93c] ss:$24 sps:$4 sm:$0xff]  }
 0xa18   :  { %10715 = vmatprep.subr.bf16.mxu1 %v13691_v24  ;;  %10879 = vmatprep.subr.bf16.mxu0 %v13694_v26  ;;  %v13731_v24 = vld [vmem:[#allocation13 + $0x930] ss:$24 sps:$4 sm:$0xff]  }
 0xa19   :  { %v13734_v26 = vld [vmem:[#allocation13 + $0x938] ss:$24 sps:$4 sm:$0xff]  }
 0xa1b   :  { %10716 = vmatpush1.bf16.msra.mxu1 %v13689_v30  ;;  %10880 = vmatpush1.bf16.msra.mxu0 %v13692_v31  ;;  %v13739_v30 = vld [vmem:[#allocation13 + $0x964] ss:$24 sps:$4 sm:$0xff]  }
 0xa1c   :  { %10717 = vmatprep.subr.bf16.mxu1 %v13697_v3  ;;  %10881 = vmatprep.subr.bf16.mxu0 %v13700_v32  ;;  %v13742_v31 = vld [vmem:[#allocation13 + $0x96c] ss:$24 sps:$4 sm:$0xff]   ;;  %v13737_v3 = vld [vmem:[#allocation13 + $0x960] ss:$24 sps:$4 sm:$0xff]  }
 0xa1d   :  { %v13740_v32 = vld [vmem:[#allocation13 + $0x968] ss:$24 sps:$4 sm:$0xff]  }
 0xa1f   :  { %10718 = vmatpush1.bf16.msra.mxu1 %v13695_v33  ;;  %10882 = vmatpush1.bf16.msra.mxu0 %v13698_v35  ;;  %v13745_v33 = vld [vmem:[#allocation13 + $0x994] ss:$24 sps:$4 sm:$0xff]  }
 0xa20   :  { %10719 = vmatprep.subr.bf16.mxu1 %v13703_v41  ;;  %10883 = vmatprep.subr.bf16.mxu0 %v13706_v34  ;;  %v13748_v35 = vld [vmem:[#allocation13 + $0x99c] ss:$24 sps:$4 sm:$0xff]   ;;  %v13743_v41 = vld [vmem:[#allocation13 + $0x990] ss:$24 sps:$4 sm:$0xff]  }
 0xa21   :  { %v13746_v34 = vld [vmem:[#allocation13 + $0x998] ss:$24 sps:$4 sm:$0xff]  }
 0xa23   :  { %10720 = vmatpush1.bf16.msra.mxu1 %v13701_v36  ;;  %10884 = vmatpush1.bf16.msra.mxu0 %v13704_v48  ;;  %v13751_v36 = vld [vmem:[#allocation13 + $0x9c4] ss:$24 sps:$4 sm:$0xff]  }
 0xa24   :  { %10721 = vmatprep.subr.bf16.mxu1 %v13709_v39  ;;  %10885 = vmatprep.subr.bf16.mxu0 %v13712_v63  ;;  %v13754_v48 = vld [vmem:[#allocation13 + $0x9cc] ss:$24 sps:$4 sm:$0xff]   ;;  %v13749_v39 = vld [vmem:[#allocation13 + $0x9c0] ss:$24 sps:$4 sm:$0xff]  }
 0xa25   :  { %v13752_v63 = vld [vmem:[#allocation13 + $0x9c8] ss:$24 sps:$4 sm:$0xff]  }
 0xa27   :  { %10722 = vmatpush1.bf16.msra.mxu1 %v13707_v42  ;;  %10886 = vmatpush1.bf16.msra.mxu0 %v13710_v57  ;;  %v13757_v42 = vld [vmem:[#allocation13 + $0x9f4] ss:$24 sps:$4 sm:$0xff]  }
 0xa28   :  { %10723 = vmatprep.subr.bf16.mxu1 %v13715_v43  ;;  %10887 = vmatprep.subr.bf16.mxu0 %v13718_v44  ;;  %v13760_v57 = vld [vmem:[#allocation13 + $0x9fc] ss:$24 sps:$4 sm:$0xff]   ;;  %v13755_v43 = vld [vmem:[#allocation13 + $0x9f0] ss:$24 sps:$4 sm:$0xff]  }
 0xa29   :  { %v8172_v54 = vpop.f32.mrb[24].mxu1  ;;  %v13758_v44 = vld [vmem:[#allocation13 + $0x9f8] ss:$24 sps:$4 sm:$0xff]  }
 0xa2a   :  { %v12674_v56 = vadd.f32 %v8172_v54, %v6632_v27  ;;  %v14971_v55 = vpop.f32.mrb[32].mxu0  ;;  %v8174_v61 = vpop.f32.mrb[25].mxu1  ;;  %v13763_v27 = vld [vmem:[#allocation13 + $0xa24] ss:$24 sps:$4 sm:$0xff]   ;;  %v13770_v54 = vld [vmem:[#allocation13 + $0xa58] ss:$24 sps:$4 sm:$0xff]  }
 0xa2b   :  { %v12675_v4 = vadd.f32 %v8174_v61, %v6636_v2  ;;  %v8256_v5 = vpop.f32.mrb[33].mxu0  ;;  %10724 = vmatpush1.bf16.msra.mxu1 %v13713_v21  ;;  %10888 = vmatpush1.bf16.msra.mxu0 %v13716_v51  ;;  %v8176_v6 = vpop.f32.mrb[26].mxu1  ;;  %v13766_v21 = vld [vmem:[#allocation13 + $0xa2c] ss:$24 sps:$4 sm:$0xff]   ;;  %v13761_v51 = vld [vmem:[#allocation13 + $0xa20] ss:$24 sps:$4 sm:$0xff]  }
 0xa2c   :  { %v8265_v62 = vmax.f32 %v12674_v56, 0.0  ;;  %v12677_v50 = vadd.f32 %v8256_v5, %v6644_v12  ;;  %v8258_v25 = vpop.f32.mrb[34].mxu0  ;;  %v8177_v7 = vpop.f32.mrb[27].mxu1  ;;  %10725 = vmatprep.subr.bf16.mxu1 %v13721_v52  ;;  %10889 = vmatprep.subr.bf16.mxu0 %v13724_v53  ;;  %v13764_v2 = vld [vmem:[#allocation13 + $0xa28] ss:$24 sps:$4 sm:$0xff]  }
 0xa2d   :  { %v8266_v9 = vmax.f32 %v12675_v4, 0.0  ;;  %v8259_v11 = vpop.f32.mrb[35].mxu0  ;;  %v13769_v12 = vld [vmem:[#allocation13 + $0xa54] ss:$24 sps:$4 sm:$0xff]   ;;  %v13767_v53 = vld [vmem:[#allocation13 + $0xa50] ss:$24 sps:$4 sm:$0xff]  }
 0xa2e   :  { %v8268_v13 = vmax.f32 %v12677_v50, 0.0  ;;  %v14975_v46 = vpack.c.bf16 %v8265_v62, %v8265_v62  ;;  %v13772_v52 = vld [vmem:[#allocation13 + $0xa5c] ss:$24 sps:$4 sm:$0xff]   ;;  %v13778_v61 = vld [vmem:[#allocation13 + $0xa8c] ss:$24 sps:$4 sm:$0xff]  }
 0xa2f   :  { %v14973_v16 = vpack.c.bf16 %v8266_v9, %v8266_v9  ;;  %10726 = vmatpush1.bf16.msra.mxu1 %v13719_v58  ;;  %10890 = vmatpush1.bf16.msra.mxu0 %v13722_v1  ;;  %v13775_v56 = vld [vmem:[#allocation13 + $0xa84] ss:$24 sps:$4 sm:$0xff]   ;;  %v13773_v58 = vld [vmem:[#allocation13 + $0xa80] ss:$24 sps:$4 sm:$0xff]   ;;  %v13781_v5 = vld [vmem:[#allocation13 + $0xab4] ss:$24 sps:$4 sm:$0xff]  }
 0xa30   :  { %10736 = vmatprep.subr.bf16.mxu1 %v13727_v60  ;;  %10900 = vmatprep.subr.bf16.mxu0 %v13730_v59  ;;  %v14979_v23 = vpack.c.bf16 %v8268_v13, %v8268_v13  ;;  %v13776_v4 = vld [vmem:[#allocation13 + $0xa88] ss:$24 sps:$4 sm:$0xff]   ;;  %v13784_v6 = vld [vmem:[#allocation13 + $0xabc] ss:$24 sps:$4 sm:$0xff]   ;;  %v13782_v60 = vld [vmem:[#allocation13 + $0xab8] ss:$24 sps:$4 sm:$0xff]  }
 0xa31   :  { %10727 = vmatprep.mubr.bf16.mxu1 %v14973_v16  ;;  %10891 = vmatprep.mubr.bf16.mxu0 %v14973_v16  ;;  %v13779_v1 = vld [vmem:[#allocation13 + $0xab0] ss:$24 sps:$4 sm:$0xff]   ;;  %v13787_v62 = vld [vmem:[#allocation13 + $0xae4] ss:$24 sps:$4 sm:$0xff]   ;;  %v13785_v25 = vld [vmem:[#allocation13 + $0xae0] ss:$24 sps:$4 sm:$0xff]  }
 0xa32   :  { %10728 = vmatmul.mubr.bf16.vlgmr.msra.gmra.mrb[28].mxu1 %v14975_v46  ;;  %10892 = vmatmul.mubr.bf16.vlgmr.msra.gmra.mrb[36].mxu0 %v14975_v46  ;;  %v13790_v50 = vld [vmem:[#allocation13 + $0xaec] ss:$24 sps:$4 sm:$0xff]   ;;  %v13788_v7 = vld [vmem:[#allocation13 + $0xae8] ss:$24 sps:$4 sm:$0xff]   ;;  %v13796_v9 = vld [vmem:[#allocation13 + $0xb1c] ss:$24 sps:$4 sm:$0xff]  }
 0xa33   :  { %10737 = vmatpush1.bf16.msra.mxu1 %v13725_v17  ;;  %10901 = vmatpush1.bf16.msra.mxu0 %v13728_v19  ;;  %v13793_v59 = vld [vmem:[#allocation13 + $0xb14] ss:$24 sps:$4 sm:$0xff]   ;;  %v13791_v11 = vld [vmem:[#allocation13 + $0xb10] ss:$24 sps:$4 sm:$0xff]   ;;  %v13799_v17 = vld [vmem:[#allocation13 + $0xb44] ss:$24 sps:$4 sm:$0xff]  }
 0xa34   :  { %10768 = vmatprep.mubr.bf16.mxu1 %v14979_v23  ;;  %10932 = vmatprep.mubr.bf16.mxu0 %v14979_v23  ;;  %v13794_v13 = vld [vmem:[#allocation13 + $0xb18] ss:$24 sps:$4 sm:$0xff]   ;;  %v13802_v19 = vld [vmem:[#allocation13 + $0xb4c] ss:$24 sps:$4 sm:$0xff]  }
 0xa35   :  { %10738 = vmatprep.subr.bf16.mxu1 %v13733_v22  ;;  %10902 = vmatprep.subr.bf16.mxu0 %v13736_v20  ;;  %v13797_v22 = vld [vmem:[#allocation13 + $0xb40] ss:$24 sps:$4 sm:$0xff]  }
 0xa36   :  { %v13800_v20 = vld [vmem:[#allocation13 + $0xb48] ss:$24 sps:$4 sm:$0xff]  }
 0xa37   :  { %10739 = vmatpush1.bf16.msra.mxu1 %v13731_v24  ;;  %10903 = vmatpush1.bf16.msra.mxu0 %v13734_v26  ;;  %v13805_v24 = vld [vmem:[#allocation13 + $0xb74] ss:$24 sps:$4 sm:$0xff]  }
 0xa38   :  { %10740 = vmatprep.subr.bf16.mxu1 %v13739_v30  ;;  %10904 = vmatprep.subr.bf16.mxu0 %v13742_v31  ;;  %v13808_v26 = vld [vmem:[#allocation13 + $0xb7c] ss:$24 sps:$4 sm:$0xff]   ;;  %v13803_v30 = vld [vmem:[#allocation13 + $0xb70] ss:$24 sps:$4 sm:$0xff]  }
 0xa39   :  { %v13806_v31 = vld [vmem:[#allocation13 + $0xb78] ss:$24 sps:$4 sm:$0xff]  }
 0xa3b   :  { %10741 = vmatpush1.bf16.msra.mxu1 %v13737_v3  ;;  %10905 = vmatpush1.bf16.msra.mxu0 %v13740_v32  ;;  %v6640_v3 = vrot.slane %v14935_v28, %v711_v0  ;;  %v13811_v32 = vld [vmem:[#allocation13 + $0xba4] ss:$24 sps:$4 sm:$0xff]   ;;  %v13823_v0 = vld [vmem:[#allocation13 + $0x14] ss:$24 sps:$4 sm:$0xff]   ;;  %v13821_v28 = vld [vmem:[#allocation13 + $0x10] ss:$24 sps:$4 sm:$0xff]  }
 0xa3c   :  { %10742 = vmatprep.subr.bf16.mxu1 %v13745_v33  ;;  %10906 = vmatprep.subr.bf16.mxu0 %v13748_v35  ;;  %v13814_v33 = vld [vmem:[#allocation13 + $0xbac] ss:$24 sps:$4 sm:$0xff]   ;;  %v13809_v35 = vld [vmem:[#allocation13 + $0xba0] ss:$24 sps:$4 sm:$0xff]  }
 0xa3f   :  { %10743 = vmatpush1.bf16.msra.mxu1 %v13743_v41  ;;  %10907 = vmatpush1.bf16.msra.mxu0 %v13746_v34  ;;  %v13812_v41 = vld [vmem:[#allocation13 + $0xba8] ss:$24 sps:$4 sm:$0xff]   ;;  %v12676_v34 = vadd.f32 %v14971_v55, %v6640_v3 }
 0xa40   :  { %10744 = vmatprep.subr.bf16.mxu1 %v13751_v36  ;;  %10908 = vmatprep.subr.bf16.mxu0 %v13754_v48  ;;  %v13817_v36 = vld [vmem:[#allocation13 + $0xbd4] ss:$24 sps:$4 sm:$0xff]   ;;  %v13824_v55 = vld [vmem:[#allocation13 + $0x40] ss:$24 sps:$4 sm:$0xff]  }
 0xa41   :  { %v13820_v48 = vld [vmem:[#allocation13 + $0xbdc] ss:$24 sps:$4 sm:$0xff]   ;;  %v13878_v3 = vld [vmem:[#allocation13 + $0x3a0] ss:$24 sps:$4 sm:$0xff]  }
 0xa43   :  { %10745 = vmatpush1.bf16.msra.mxu1 %v13749_v39  ;;  %10909 = vmatpush1.bf16.msra.mxu0 %v13752_v63  ;;  %v13815_v39 = vld [vmem:[#allocation13 + $0xbd0] ss:$24 sps:$4 sm:$0xff]   ;;  %v8267_v63 = vmax.f32 %v12676_v34, 0.0  ;;  %v13892_v34 = vld [vmem:[#allocation13 + $0x464] ss:$24 sps:$4 sm:$0xff]  }
 0xa44   :  { %10746 = vmatprep.subr.bf16.mxu1 %v13757_v42  ;;  %10910 = vmatprep.subr.bf16.mxu0 %v13760_v57  ;;  %v13826_v57 = vld [vmem:[#allocation13 + $0x44] ss:$24 sps:$4 sm:$0xff]  }
 0xa45   :  { %v14989_v42 = vpack.c.bf16 %v8267_v63, %v8267_v63  ;;  %v13896_v63 = vld [vmem:[#allocation13 + $0x4c0] ss:$24 sps:$4 sm:$0xff]  }
 0xa47   :  { %10747 = vmatpush1.bf16.msra.mxu1 %v13755_v43  ;;  %10911 = vmatpush1.bf16.msra.mxu0 %v13758_v44  ;;  %v13829_v43 = vld [vmem:[#allocation13 + $0x74] ss:$24 sps:$4 sm:$0xff]   ;;  %v13827_v44 = vld [vmem:[#allocation13 + $0x70] ss:$24 sps:$4 sm:$0xff]  }
 0xa48   :  { %10748 = vmatprep.subr.bf16.mxu1 %v13763_v27  ;;  %10912 = vmatprep.subr.bf16.mxu0 %v13766_v21  ;;  %v13832_v27 = vld [vmem:[#allocation13 + $0xa4] ss:$24 sps:$4 sm:$0xff]   ;;  %v13830_v21 = vld [vmem:[#allocation13 + $0xa0] ss:$24 sps:$4 sm:$0xff]  }
 0xa4b   :  { %10749 = vmatpush1.bf16.msra.mxu1 %v13761_v51  ;;  %10913 = vmatpush1.bf16.msra.mxu0 %v13764_v2  ;;  %v13835_v51 = vld [vmem:[#allocation13 + $0xd4] ss:$24 sps:$4 sm:$0xff]   ;;  %v13833_v2 = vld [vmem:[#allocation13 + $0xd0] ss:$24 sps:$4 sm:$0xff]  }
 0xa4c   :  { %10750 = vmatprep.subr.bf16.mxu1 %v13769_v12  ;;  %10914 = vmatprep.subr.bf16.mxu0 %v13772_v52  ;;  %v13838_v12 = vld [vmem:[#allocation13 + $0x104] ss:$24 sps:$4 sm:$0xff]   ;;  %v13836_v52 = vld [vmem:[#allocation13 + $0x100] ss:$24 sps:$4 sm:$0xff]  }
 0xa4f   :  { %10751 = vmatpush1.bf16.msra.mxu1 %v13767_v53  ;;  %10915 = vmatpush1.bf16.msra.mxu0 %v13770_v54  ;;  %v13841_v53 = vld [vmem:[#allocation13 + $0x134] ss:$24 sps:$4 sm:$0xff]   ;;  %v13844_v54 = vld [vmem:[#allocation13 + $0x164] ss:$24 sps:$4 sm:$0xff]  }
 0xa50   :  { %10752 = vmatprep.subr.bf16.mxu1 %v13775_v56  ;;  %10916 = vmatprep.subr.bf16.mxu0 %v13778_v61  ;;  %v13842_v56 = vld [vmem:[#allocation13 + $0x160] ss:$24 sps:$4 sm:$0xff]   ;;  %v13847_v61 = vld [vmem:[#allocation13 + $0x194] ss:$24 sps:$4 sm:$0xff]  }
 0xa53   :  { %10753 = vmatpush1.bf16.msra.mxu1 %v13773_v58  ;;  %10917 = vmatpush1.bf16.msra.mxu0 %v13776_v4  ;;  %v13845_v58 = vld [vmem:[#allocation13 + $0x190] ss:$24 sps:$4 sm:$0xff]   ;;  %v13850_v4 = vld [vmem:[#allocation13 + $0x1c4] ss:$24 sps:$4 sm:$0xff]  }
 0xa54   :  { %10754 = vmatprep.subr.bf16.mxu1 %v13781_v5  ;;  %10918 = vmatprep.subr.bf16.mxu0 %v13784_v6  ;;  %v13848_v5 = vld [vmem:[#allocation13 + $0x1c0] ss:$24 sps:$4 sm:$0xff]   ;;  %v13853_v6 = vld [vmem:[#allocation13 + $0x1f4] ss:$24 sps:$4 sm:$0xff]  }
 0xa57   :  { %10755 = vmatpush1.bf16.msra.mxu1 %v13779_v1  ;;  %10919 = vmatpush1.bf16.msra.mxu0 %v13782_v60  ;;  %v13851_v1 = vld [vmem:[#allocation13 + $0x1f0] ss:$24 sps:$4 sm:$0xff]   ;;  %v13856_v60 = vld [vmem:[#allocation13 + $0x224] ss:$24 sps:$4 sm:$0xff]  }
 0xa58   :  { %10756 = vmatprep.subr.bf16.mxu1 %v13787_v62  ;;  %10920 = vmatprep.subr.bf16.mxu0 %v13790_v50  ;;  %v13854_v62 = vld [vmem:[#allocation13 + $0x220] ss:$24 sps:$4 sm:$0xff]   ;;  %v13859_v50 = vld [vmem:[#allocation13 + $0x254] ss:$24 sps:$4 sm:$0xff]  }
 0xa5b   :  { %10757 = vmatpush1.bf16.msra.mxu1 %v13785_v25  ;;  %10921 = vmatpush1.bf16.msra.mxu0 %v13788_v7  ;;  %v13857_v25 = vld [vmem:[#allocation13 + $0x250] ss:$24 sps:$4 sm:$0xff]   ;;  %v13862_v7 = vld [vmem:[#allocation13 + $0x284] ss:$24 sps:$4 sm:$0xff]  }
 0xa5c   :  { %10758 = vmatprep.subr.bf16.mxu1 %v13793_v59  ;;  %10922 = vmatprep.subr.bf16.mxu0 %v13796_v9  ;;  %v13860_v59 = vld [vmem:[#allocation13 + $0x280] ss:$24 sps:$4 sm:$0xff]   ;;  %v13865_v9 = vld [vmem:[#allocation13 + $0x2b4] ss:$24 sps:$4 sm:$0xff]  }
 0xa5f   :  { %10759 = vmatpush1.bf16.msra.mxu1 %v13791_v11  ;;  %10923 = vmatpush1.bf16.msra.mxu0 %v13794_v13  ;;  %v13863_v11 = vld [vmem:[#allocation13 + $0x2b0] ss:$24 sps:$4 sm:$0xff]   ;;  %v13868_v13 = vld [vmem:[#allocation13 + $0x2e4] ss:$24 sps:$4 sm:$0xff]  }
 0xa60   :  { %10760 = vmatprep.subr.bf16.mxu1 %v13799_v17  ;;  %10924 = vmatprep.subr.bf16.mxu0 %v13802_v19  ;;  %v13866_v17 = vld [vmem:[#allocation13 + $0x2e0] ss:$24 sps:$4 sm:$0xff]   ;;  %v13871_v19 = vld [vmem:[#allocation13 + $0x314] ss:$24 sps:$4 sm:$0xff]  }
 0xa63   :  { %10761 = vmatpush1.bf16.msra.mxu1 %v13797_v22  ;;  %10925 = vmatpush1.bf16.msra.mxu0 %v13800_v20  ;;  %v13869_v22 = vld [vmem:[#allocation13 + $0x310] ss:$24 sps:$4 sm:$0xff]   ;;  %v13874_v20 = vld [vmem:[#allocation13 + $0x344] ss:$24 sps:$4 sm:$0xff]  }
 0xa64   :  { %10762 = vmatprep.subr.bf16.mxu1 %v13805_v24  ;;  %10926 = vmatprep.subr.bf16.mxu0 %v13808_v26  ;;  %v13872_v24 = vld [vmem:[#allocation13 + $0x340] ss:$24 sps:$4 sm:$0xff]   ;;  %v13877_v26 = vld [vmem:[#allocation13 + $0x374] ss:$24 sps:$4 sm:$0xff]  }
 0xa67   :  { %10763 = vmatpush1.bf16.msra.mxu1 %v13803_v30  ;;  %10927 = vmatpush1.bf16.msra.mxu0 %v13806_v31  ;;  %v13875_v30 = vld [vmem:[#allocation13 + $0x370] ss:$24 sps:$4 sm:$0xff]   ;;  %v13880_v31 = vld [vmem:[#allocation13 + $0x3a4] ss:$24 sps:$4 sm:$0xff]  }
 0xa68   :  { %10764 = vmatprep.subr.bf16.mxu1 %v13811_v32  ;;  %10928 = vmatprep.subr.bf16.mxu0 %v13814_v33  ;;  %v13883_v32 = vld [vmem:[#allocation13 + $0x3d4] ss:$24 sps:$4 sm:$0xff]   ;;  %v13881_v33 = vld [vmem:[#allocation13 + $0x3d0] ss:$24 sps:$4 sm:$0xff]  }
 0xa6b   :  { %10765 = vmatpush1.bf16.msra.mxu1 %v13809_v35  ;;  %10929 = vmatpush1.bf16.msra.mxu0 %v13812_v41  ;;  %v13886_v35 = vld [vmem:[#allocation13 + $0x404] ss:$24 sps:$4 sm:$0xff]   ;;  %v13889_v41 = vld [vmem:[#allocation13 + $0x434] ss:$24 sps:$4 sm:$0xff]  }
 0xa6c   :  { %10766 = vmatprep.subr.bf16.mxu1 %v13817_v36  ;;  %10930 = vmatprep.subr.bf16.mxu0 %v13820_v48  ;;  %v13890_v36 = vld [vmem:[#allocation13 + $0x460] ss:$24 sps:$4 sm:$0xff]   ;;  %v13895_v48 = vld [vmem:[#allocation13 + $0x494] ss:$24 sps:$4 sm:$0xff]  }
 0xa6f   :  { %10767 = vmatpush1.bf16.msra.mxu1 %v13815_v39  ;;  %10931 = vmatpush1.bf16.msra.mxu0 %v13818_v29  ;;  %v13893_v39 = vld [vmem:[#allocation13 + $0x490] ss:$24 sps:$4 sm:$0xff]   ;;  %v13898_v29 = vld [vmem:[#allocation13 + $0x4c4] ss:$24 sps:$4 sm:$0xff]  }
 0xa70   :  { %10941 = vmatprep.subr.bf16.mxu1 %v13823_v0  ;;  %v13901_v0 = vld [vmem:[#allocation13 + $0x4f4] ss:$24 sps:$4 sm:$0xff]  }
 0xa72   :  { %10769 = vmatmul.mubr.bf16.vlgmr.msra.gmra.mrb[28].mxu1 %v14989_v42  ;;  %10933 = vmatmul.mubr.bf16.vlgmr.msra.gmra.mrb[36].mxu0 %v14989_v42 }
 0xa73   :  { %10942 = vmatpush1.bf16.msra.mxu1 %v13821_v28  ;;  %10973 = vmatprep.mubr.bf16.mxu1 %v14945_v15  ;;  %v13839_v15 = vld [vmem:[#allocation13 + $0x130] ss:$24 sps:$4 sm:$0xff]  }
 0xa74   :  { %10943 = vmatprep.subr.bf16.mxu1 %v13826_v57  ;;  %v13899_v28 = vld [vmem:[#allocation13 + $0x4f0] ss:$24 sps:$4 sm:$0xff]   ;;  %v13904_v57 = vld [vmem:[#allocation13 + $0x524] ss:$24 sps:$4 sm:$0xff]  }
 0xa77   :  { %10944 = vmatpush1.bf16.msra.mxu1 %v13824_v55  ;;  %v13902_v55 = vld [vmem:[#allocation13 + $0x520] ss:$24 sps:$4 sm:$0xff]  }
 0xa78   :  { %10945 = vmatprep.subr.bf16.mxu1 %v13829_v43  ;;  %v13907_v43 = vld [vmem:[#allocation13 + $0x554] ss:$24 sps:$4 sm:$0xff]  }
 0xa7b   :  { %10946 = vmatpush1.bf16.msra.mxu1 %v13827_v44  ;;  %v13905_v44 = vld [vmem:[#allocation13 + $0x550] ss:$24 sps:$4 sm:$0xff]  }
 0xa7c   :  { %10947 = vmatprep.subr.bf16.mxu1 %v13832_v27  ;;  %v13910_v27 = vld [vmem:[#allocation13 + $0x584] ss:$24 sps:$4 sm:$0xff]  }
 0xa7f   :  { %10948 = vmatpush1.bf16.msra.mxu1 %v13830_v21  ;;  %v13908_v21 = vld [vmem:[#allocation13 + $0x580] ss:$24 sps:$4 sm:$0xff]  }
 0xa80   :  { %10949 = vmatprep.subr.bf16.mxu1 %v13835_v51  ;;  %v13913_v51 = vld [vmem:[#allocation13 + $0x5b4] ss:$24 sps:$4 sm:$0xff]  }
 0xa83   :  { %10950 = vmatpush1.bf16.msra.mxu1 %v13833_v2  ;;  %v13911_v2 = vld [vmem:[#allocation13 + $0x5b0] ss:$24 sps:$4 sm:$0xff]  }
 0xa84   :  { %10951 = vmatprep.subr.bf16.mxu1 %v13838_v12  ;;  %v13916_v12 = vld [vmem:[#allocation13 + $0x5e4] ss:$24 sps:$4 sm:$0xff]  }
 0xa87   :  { %10952 = vmatpush1.bf16.msra.mxu1 %v13836_v52  ;;  %v13914_v52 = vld [vmem:[#allocation13 + $0x5e0] ss:$24 sps:$4 sm:$0xff]  }
 0xa88   :  { %10953 = vmatprep.subr.bf16.mxu1 %v13841_v53  ;;  %v13919_v53 = vld [vmem:[#allocation13 + $0x614] ss:$24 sps:$4 sm:$0xff]  }
 0xa8b   :  { %10954 = vmatpush1.bf16.msra.mxu1 %v13839_v15  ;;  %v13917_v15 = vld [vmem:[#allocation13 + $0x610] ss:$24 sps:$4 sm:$0xff]  }
 0xa8c   :  { %10955 = vmatprep.subr.bf16.mxu1 %v13844_v54  ;;  %v13922_v54 = vld [vmem:[#allocation13 + $0x644] ss:$24 sps:$4 sm:$0xff]  }
 0xa8f   :  { %10956 = vmatpush1.bf16.msra.mxu1 %v13842_v56  ;;  %v13920_v56 = vld [vmem:[#allocation13 + $0x640] ss:$24 sps:$4 sm:$0xff]  }
 0xa90   :  { %10957 = vmatprep.subr.bf16.mxu1 %v13847_v61  ;;  %v13925_v61 = vld [vmem:[#allocation13 + $0x674] ss:$24 sps:$4 sm:$0xff]  }
 0xa93   :  { %10958 = vmatpush1.bf16.msra.mxu1 %v13845_v58  ;;  %v13923_v58 = vld [vmem:[#allocation13 + $0x670] ss:$24 sps:$4 sm:$0xff]  }
 0xa94   :  { %10959 = vmatprep.subr.bf16.mxu1 %v13850_v4  ;;  %v13928_v4 = vld [vmem:[#allocation13 + $0x6a4] ss:$24 sps:$4 sm:$0xff]  }
 0xa97   :  { %10960 = vmatpush1.bf16.msra.mxu1 %v13848_v5  ;;  %v13926_v5 = vld [vmem:[#allocation13 + $0x6a0] ss:$24 sps:$4 sm:$0xff]  }
 0xa98   :  { %10961 = vmatprep.subr.bf16.mxu1 %v13853_v6  ;;  %v13931_v6 = vld [vmem:[#allocation13 + $0x6d4] ss:$24 sps:$4 sm:$0xff]  }
 0xa9b   :  { %10962 = vmatpush1.bf16.msra.mxu1 %v13851_v1  ;;  %v13929_v1 = vld [vmem:[#allocation13 + $0x6d0] ss:$24 sps:$4 sm:$0xff]  }
 0xa9c   :  { %10963 = vmatprep.subr.bf16.mxu1 %v13856_v60  ;;  %v13934_v60 = vld [vmem:[#allocation13 + $0x704] ss:$24 sps:$4 sm:$0xff]  }
 0xa9f   :  { %10964 = vmatpush1.bf16.msra.mxu1 %v13854_v62  ;;  %v13937_v62 = vld [vmem:[#allocation13 + $0x734] ss:$24 sps:$4 sm:$0xff]  }
 0xaa0   :  { %10965 = vmatprep.subr.bf16.mxu1 %v13859_v50  ;;  %v13940_v50 = vld [vmem:[#allocation13 + $0x764] ss:$24 sps:$4 sm:$0xff]  }
 0xaa3   :  { %10966 = vmatpush1.bf16.msra.mxu1 %v13857_v25  ;;  %v13938_v25 = vld [vmem:[#allocation13 + $0x760] ss:$24 sps:$4 sm:$0xff]  }
 0xaa4   :  { %10967 = vmatprep.subr.bf16.mxu1 %v13862_v7  ;;  %v13943_v7 = vld [vmem:[#allocation13 + $0x794] ss:$24 sps:$4 sm:$0xff]  }
 0xaa7   :  { %10968 = vmatpush1.bf16.msra.mxu1 %v13860_v59  ;;  %v13941_v59 = vld [vmem:[#allocation13 + $0x790] ss:$24 sps:$4 sm:$0xff]  }
 0xaa8   :  { %10969 = vmatprep.subr.bf16.mxu1 %v13865_v9  ;;  %v13946_v9 = vld [vmem:[#allocation13 + $0x7c4] ss:$24 sps:$4 sm:$0xff]  }
 0xaab   :  { %10970 = vmatpush1.bf16.msra.mxu1 %v13863_v11  ;;  %v13944_v11 = vld [vmem:[#allocation13 + $0x7c0] ss:$24 sps:$4 sm:$0xff]  }
 0xaac   :  { %10971 = vmatprep.subr.bf16.mxu1 %v13868_v13  ;;  %v13949_v13 = vld [vmem:[#allocation13 + $0x7f4] ss:$24 sps:$4 sm:$0xff]  }
 0xaaf   :  { %10972 = vmatpush1.bf16.msra.mxu1 %v13866_v17  ;;  %v13947_v17 = vld [vmem:[#allocation13 + $0x7f0] ss:$24 sps:$4 sm:$0xff]  }
 0xab0   :  { %10982 = vmatprep.subr.bf16.mxu1 %v13871_v19  ;;  %v13952_v19 = vld [vmem:[#allocation13 + $0x824] ss:$24 sps:$4 sm:$0xff]  }
 0xab2   :  { %10974 = vmatmul.mubr.bf16.vlgmr.msra.gmra.mrb[32].mxu1 %v14947_v49  ;;  %v13884_v49 = vld [vmem:[#allocation13 + $0x400] ss:$24 sps:$4 sm:$0xff]  }
 0xab3   :  { %10983 = vmatpush1.bf16.msra.mxu1 %v13869_v22  ;;  %11014 = vmatprep.mubr.bf16.mxu1 %v14951_v14  ;;  %v13887_v14 = vld [vmem:[#allocation13 + $0x430] ss:$24 sps:$4 sm:$0xff]   ;;  %v13950_v22 = vld [vmem:[#allocation13 + $0x820] ss:$24 sps:$4 sm:$0xff]  }
 0xab4   :  { %10984 = vmatprep.subr.bf16.mxu1 %v13874_v20  ;;  %v13955_v20 = vld [vmem:[#allocation13 + $0x854] ss:$24 sps:$4 sm:$0xff]  }
 0xab7   :  { %10985 = vmatpush1.bf16.msra.mxu1 %v13872_v24  ;;  %v13953_v24 = vld [vmem:[#allocation13 + $0x850] ss:$24 sps:$4 sm:$0xff]  }
 0xab8   :  { %10986 = vmatprep.subr.bf16.mxu1 %v13877_v26  ;;  %v13958_v26 = vld [vmem:[#allocation13 + $0x884] ss:$24 sps:$4 sm:$0xff]  }
 0xabb   :  { %10987 = vmatpush1.bf16.msra.mxu1 %v13875_v30  ;;  %v13956_v30 = vld [vmem:[#allocation13 + $0x880] ss:$24 sps:$4 sm:$0xff]  }
 0xabc   :  { %10988 = vmatprep.subr.bf16.mxu1 %v13880_v31  ;;  %v13961_v31 = vld [vmem:[#allocation13 + $0x8b4] ss:$24 sps:$4 sm:$0xff]  }
 0xabf   :  { %10989 = vmatpush1.bf16.msra.mxu1 %v13878_v3  ;;  %v13959_v3 = vld [vmem:[#allocation13 + $0x8b0] ss:$24 sps:$4 sm:$0xff]  }
 0xac0   :  { %10990 = vmatprep.subr.bf16.mxu1 %v13883_v32  ;;  %v13964_v32 = vld [vmem:[#allocation13 + $0x8e4] ss:$24 sps:$4 sm:$0xff]  }
 0xac3   :  { %10991 = vmatpush1.bf16.msra.mxu1 %v13881_v33  ;;  %v13962_v33 = vld [vmem:[#allocation13 + $0x8e0] ss:$24 sps:$4 sm:$0xff]  }
 0xac4   :  { %10992 = vmatprep.subr.bf16.mxu1 %v13886_v35  ;;  %v13967_v35 = vld [vmem:[#allocation13 + $0x914] ss:$24 sps:$4 sm:$0xff]  }
 0xac7   :  { %10993 = vmatpush1.bf16.msra.mxu1 %v13884_v49  ;;  %v13965_v49 = vld [vmem:[#allocation13 + $0x910] ss:$24 sps:$4 sm:$0xff]  }
 0xac8   :  { %10994 = vmatprep.subr.bf16.mxu1 %v13889_v41  ;;  %v13970_v41 = vld [vmem:[#allocation13 + $0x944] ss:$24 sps:$4 sm:$0xff]  }
 0xacb   :  { %10995 = vmatpush1.bf16.msra.mxu1 %v13887_v14  ;;  %v13968_v14 = vld [vmem:[#allocation13 + $0x940] ss:$24 sps:$4 sm:$0xff]  }
 0xacc   :  { %10996 = vmatprep.subr.bf16.mxu1 %v13892_v34  ;;  %v13973_v34 = vld [vmem:[#allocation13 + $0x974] ss:$24 sps:$4 sm:$0xff]  }
 0xacf   :  { %10997 = vmatpush1.bf16.msra.mxu1 %v13890_v36  ;;  %v13971_v36 = vld [vmem:[#allocation13 + $0x970] ss:$24 sps:$4 sm:$0xff]  }
 0xad0   :  { %10998 = vmatprep.subr.bf16.mxu1 %v13895_v48  ;;  %v13976_v48 = vld [vmem:[#allocation13 + $0x9a4] ss:$24 sps:$4 sm:$0xff]  }
 0xad3   :  { %10999 = vmatpush1.bf16.msra.mxu1 %v13893_v39  ;;  %v13974_v39 = vld [vmem:[#allocation13 + $0x9a0] ss:$24 sps:$4 sm:$0xff]  }
 0xad4   :  { %11000 = vmatprep.subr.bf16.mxu1 %v13898_v29  ;;  %v13979_v29 = vld [vmem:[#allocation13 + $0x9d4] ss:$24 sps:$4 sm:$0xff]  }
 0xad7   :  { %11001 = vmatpush1.bf16.msra.mxu1 %v13896_v63  ;;  %v13977_v63 = vld [vmem:[#allocation13 + $0x9d0] ss:$24 sps:$4 sm:$0xff]  }
 0xad8   :  { %11002 = vmatprep.subr.bf16.mxu1 %v13901_v0  ;;  %v15000_v0 = vld [vmem:[#allocation25] sm:$0x3f] }
 0xadb   :  { %11003 = vmatpush1.bf16.msra.mxu1 %v13899_v28  ;;  %v8674_v28 = vrot.slane %v15000_v0, %v14835_v8 }
 0xadc   :  { %11004 = vmatprep.subr.bf16.mxu1 %v13904_v57  ;;  %v8670_v57 = vrot.slane %v15000_v0, %v14820_v37 }
 0xadf   :  { %11005 = vmatpush1.bf16.msra.mxu1 %v13902_v55  ;;  %v8678_v55 = vrot.slane %v15000_v0, %v14838_v10  ;;  %v13988_v10 = vld [vmem:[#allocation13 + $0xa64] ss:$24 sps:$4 sm:$0xff]  }
 0xae0   :  { %11006 = vmatprep.subr.bf16.mxu1 %v13907_v43  ;;  %v13980_v43 = vld [vmem:[#allocation13 + $0xa00] ss:$24 sps:$4 sm:$0xff]  }
 0xae3   :  { %11007 = vmatpush1.bf16.msra.mxu1 %v13905_v44  ;;  %v13985_v44 = vld [vmem:[#allocation13 + $0xa34] ss:$24 sps:$4 sm:$0xff]  }
 0xae4   :  { %11008 = vmatprep.subr.bf16.mxu1 %v13910_v27 }
 0xae7   :  { %11009 = vmatpush1.bf16.msra.mxu1 %v13908_v21 }
 0xae8   :  { %11010 = vmatprep.subr.bf16.mxu1 %v13913_v51 }
 0xaeb   :  { %11011 = vmatpush1.bf16.msra.mxu1 %v13911_v2 }
 0xaec   :  { %11012 = vmatprep.subr.bf16.mxu1 %v13916_v12 }
 0xaef   :  { %11013 = vmatpush1.bf16.msra.mxu1 %v13914_v52 }
 0xaf0   :  { %11023 = vmatprep.subr.bf16.mxu1 %v13919_v53 }
 0xaf2   :  { %11015 = vmatmul.mubr.bf16.vlgmr.msra.gmra.mrb[32].mxu1 %v14960_v40  ;;  %v13932_v40 = vld [vmem:[#allocation13 + $0x700] ss:$24 sps:$4 sm:$0xff]  }
 0xaf3   :  { %11024 = vmatpush1.bf16.msra.mxu1 %v13917_v15  ;;  %11055 = vmatprep.mubr.bf16.mxu1 %v14973_v16  ;;  %v13935_v16 = vld [vmem:[#allocation13 + $0x730] ss:$24 sps:$4 sm:$0xff]  }
 0xaf4   :  { %11025 = vmatprep.subr.bf16.mxu1 %v13922_v54  ;;  %v13983_v54 = vld [vmem:[#allocation13 + $0xa30] ss:$24 sps:$4 sm:$0xff]  }
 0xaf7   :  { %11026 = vmatpush1.bf16.msra.mxu1 %v13920_v56 }
 0xaf8   :  { %11027 = vmatprep.subr.bf16.mxu1 %v13925_v61 }
 0xafb   :  { %11028 = vmatpush1.bf16.msra.mxu1 %v13923_v58 }
 0xafc   :  { %11029 = vmatprep.subr.bf16.mxu1 %v13928_v4 }
 0xaff   :  { %11030 = vmatpush1.bf16.msra.mxu1 %v13926_v5 }
 0xb00   :  { %11031 = vmatprep.subr.bf16.mxu1 %v13931_v6 }
 0xb03   :  { %11032 = vmatpush1.bf16.msra.mxu1 %v13929_v1 }
 0xb04   :  { %11033 = vmatprep.subr.bf16.mxu1 %v13934_v60 }
 0xb07   :  { %11034 = vmatpush1.bf16.msra.mxu1 %v13932_v40 }
 0xb08   :  { %11035 = vmatprep.subr.bf16.mxu1 %v13937_v62  ;;  %v13986_v62 = vld [vmem:[#allocation13 + $0xa60] ss:$24 sps:$4 sm:$0xff]  }
 0xb0b   :  { %11036 = vmatpush1.bf16.msra.mxu1 %v13935_v16  ;;  %v13991_v16 = vld [vmem:[#allocation13 + $0xa94] ss:$24 sps:$4 sm:$0xff]  }
 0xb0c   :  { %11037 = vmatprep.subr.bf16.mxu1 %v13940_v50  ;;  %v13989_v50 = vld [vmem:[#allocation13 + $0xa90] ss:$24 sps:$4 sm:$0xff]  }
 0xb0f   :  { %11038 = vmatpush1.bf16.msra.mxu1 %v13938_v25  ;;  %v13994_v25 = vld [vmem:[#allocation13 + $0xac4] ss:$24 sps:$4 sm:$0xff]  }
 0xb10   :  { %11039 = vmatprep.subr.bf16.mxu1 %v13943_v7  ;;  %v13992_v7 = vld [vmem:[#allocation13 + $0xac0] ss:$24 sps:$4 sm:$0xff]  }
 0xb13   :  { %11040 = vmatpush1.bf16.msra.mxu1 %v13941_v59  ;;  %v13997_v59 = vld [vmem:[#allocation13 + $0xaf4] ss:$24 sps:$4 sm:$0xff]  }
 0xb14   :  { %11041 = vmatprep.subr.bf16.mxu1 %v13946_v9 }
 0xb17   :  { %11042 = vmatpush1.bf16.msra.mxu1 %v13944_v11 }
 0xb18   :  { %11043 = vmatprep.subr.bf16.mxu1 %v13949_v13 }
 0xb1b   :  { %11044 = vmatpush1.bf16.msra.mxu1 %v13947_v17  ;;  %v13995_v17 = vld [vmem:[#allocation13 + $0xaf0] ss:$24 sps:$4 sm:$0xff]  }
 0xb1c   :  { %11045 = vmatprep.subr.bf16.mxu1 %v13952_v19 }
 0xb1f   :  { %11046 = vmatpush1.bf16.msra.mxu1 %v13950_v22 }
 0xb20   :  { %11047 = vmatprep.subr.bf16.mxu1 %v13955_v20  ;;  %v14000_v20 = vld [vmem:[#allocation13 + $0xb24] ss:$24 sps:$4 sm:$0xff]  }
 0xb23   :  { %11048 = vmatpush1.bf16.msra.mxu1 %v13953_v24 }
 0xb24   :  { %11049 = vmatprep.subr.bf16.mxu1 %v13958_v26 }
 0xb27   :  { %11050 = vmatpush1.bf16.msra.mxu1 %v13956_v30 }
 0xb28   :  { %11051 = vmatprep.subr.bf16.mxu1 %v13961_v31  ;;  %v13998_v31 = vld [vmem:[#allocation13 + $0xb20] ss:$24 sps:$4 sm:$0xff]  }
 0xb2b   :  { %11052 = vmatpush1.bf16.msra.mxu1 %v13959_v3  ;;  %v14003_v3 = vld [vmem:[#allocation13 + $0xb54] ss:$24 sps:$4 sm:$0xff]  }
 0xb2c   :  { %11053 = vmatprep.subr.bf16.mxu1 %v13964_v32  ;;  %v14001_v32 = vld [vmem:[#allocation13 + $0xb50] ss:$24 sps:$4 sm:$0xff]  }
 0xb2f   :  { %11054 = vmatpush1.bf16.msra.mxu1 %v13962_v33  ;;  %v14006_v33 = vld [vmem:[#allocation13 + $0xb84] ss:$24 sps:$4 sm:$0xff]  }
 0xb30   :  { %11064 = vmatprep.subr.bf16.mxu1 %v13967_v35 }
 0xb32   :  { %11056 = vmatmul.mubr.bf16.vlgmr.msra.gmra.mrb[32].mxu1 %v14975_v46  ;;  %v13982_v46 = vld [vmem:[#allocation13 + $0xa04] ss:$24 sps:$4 sm:$0xff]  }
 0xb33   :  { %11065 = vmatpush1.bf16.msra.mxu1 %v13965_v49  ;;  %11096 = vmatprep.mubr.bf16.mxu1 %v14979_v23  ;;  %v8666_v23 = vrot.slane %v15000_v0, %v14817_v47  ;;  %v14004_v49 = vld [vmem:[#allocation13 + $0xb80] ss:$24 sps:$4 sm:$0xff]  }
 0xb34   :  { %11066 = vmatprep.subr.bf16.mxu1 %v13970_v41 }
 0xb37   :  { %11067 = vmatpush1.bf16.msra.mxu1 %v13968_v14  ;;  %v14009_v14 = vld [vmem:[#allocation13 + $0xbb4] ss:$24 sps:$4 sm:$0xff]  }
 0xb38   :  { %11068 = vmatprep.subr.bf16.mxu1 %v13973_v34 }
 0xb3b   :  { %11069 = vmatpush1.bf16.msra.mxu1 %v13971_v36 }
 0xb3c   :  { %11070 = vmatprep.subr.bf16.mxu1 %v13976_v48 }
 0xb3f   :  { %11071 = vmatpush1.bf16.msra.mxu1 %v13974_v39 }
 0xb40   :  { %11072 = vmatprep.subr.bf16.mxu1 %v13979_v29  ;;  %v14007_v29 = vld [vmem:[#allocation13 + $0xbb0] ss:$24 sps:$4 sm:$0xff]  }
 0xb43   :  { %11073 = vmatpush1.bf16.msra.mxu1 %v13977_v63 }
 0xb44   :  { %11074 = vmatprep.subr.bf16.mxu1 %v13982_v46  ;;  %v14012_v46 = vld [vmem:[#allocation13 + $0xbe4] ss:$24 sps:$4 sm:$0xff]  }
 0xb45   :  { %v10770_v27 = vpop.f32.mrb[28].mxu1  ;;  %v10934_v21 = vpop.f32.mrb[36].mxu0 }
 0xb46   :  { %v12678_v51 = vadd.f32 %v10770_v27, %v8666_v23  ;;  %v12680_v2 = vadd.f32 %v10934_v21, %v8674_v28  ;;  %v10772_v12 = vpop.f32.mrb[29].mxu1  ;;  %v10936_v52 = vpop.f32.mrb[37].mxu0 }
 0xb47   :  { %v12679_v47 = vadd.f32 %v10772_v12, %v8670_v57  ;;  %v12681_v53 = vadd.f32 %v10936_v52, %v8678_v55  ;;  %v10774_v15 = vpop.f32.mrb[30].mxu1  ;;  %v10938_v8 = vpop.f32.mrb[38].mxu0  ;;  %11075 = vmatpush1.bf16.msra.mxu1 %v13980_v43  ;;  %v14010_v57 = vld [vmem:[#allocation13 + $0xbe0] ss:$24 sps:$4 sm:$0xff]   ;;  %v8682_v55 = vrot.slane %v15000_v0, %v14861_v18  ;;  %v8686_v43 = vrot.slane %v15000_v0, %v14864_v45 }
 0xb48   :  { %v11105_v56 = vsub.f32 0.0, %v12678_v51  ;;  %v11107_v37 = vsub.f32 0.0, %v12680_v2  ;;  %v10775_v61 = vpop.f32.mrb[31].mxu1  ;;  %v10939_v58 = vpop.f32.mrb[39].mxu0  ;;  %11076 = vmatprep.subr.bf16.mxu1 %v13985_v44 }
 0xb49   :  { %v11106_v4 = vsub.f32 0.0, %v12679_v47  ;;  %v11108_v5 = vsub.f32 0.0, %v12681_v53 }
 0xb4a   :  { %v11111_v6 = vmul.f32 1.442695, %v11105_v56  ;;  %v11115_v1 = vmul.f32 1.442695, %v11107_v37 }
 0xb4b   :  { %v11113_v60 = vmul.f32 1.442695, %v11106_v4  ;;  %v11117_v40 = vmul.f32 1.442695, %v11108_v5  ;;  %11077 = vmatpush1.bf16.msra.mxu1 %v13983_v54 }
 0xb4c   :  { %14013 = vpow2.f32 %v11111_v6  ;;  %11078 = vmatprep.subr.bf16.mxu1 %v13988_v10 }
 0xb4d   :  { %14015 = vpow2.f32 %v11115_v1 }
 0xb4e   :  { %14017 = vpow2.f32 %v11113_v60 }
 0xb4f   :  { %14019 = vpow2.f32 %v11117_v40  ;;  %11079 = vmatpush1.bf16.msra.mxu1 %v13986_v62 }
 0xb50   :  { %11080 = vmatprep.subr.bf16.mxu1 %v13991_v16 }
 0xb53   :  { %11081 = vmatpush1.bf16.msra.mxu1 %v13989_v50 }
 0xb54   :  { %11082 = vmatprep.subr.bf16.mxu1 %v13994_v25 }
 0xb56   :  { %v14014_v9 = vpop.eup %14013 }
 0xb57   :  { %v14016_v11 = vpop.eup %14015  ;;  %v11123_v13 = vadd.f32 1.0, %v14014_v9  ;;  %11083 = vmatpush1.bf16.msra.mxu1 %v13992_v7 }
 0xb58   :  { %v14018_v19 = vpop.eup %14017  ;;  %v11125_v22 = vadd.f32 1.0, %v14016_v11  ;;  %11084 = vmatprep.subr.bf16.mxu1 %v13997_v59 }
 0xb59   :  { %v14020_v24 = vpop.eup %14019  ;;  %14021 = vrcp.f32 %v11123_v13  ;;  %v11124_v26 = vadd.f32 1.0, %v14018_v19 }
 0xb5a   :  { %14023 = vrcp.f32 %v11125_v22  ;;  %v11126_v30 = vadd.f32 1.0, %v14020_v24 }
 0xb5b   :  { %14025 = vrcp.f32 %v11124_v26  ;;  %11085 = vmatpush1.bf16.msra.mxu1 %v13995_v17 }
 0xb5c   :  { %14027 = vrcp.f32 %v11126_v30  ;;  %11086 = vmatprep.subr.bf16.mxu1 %v14000_v20 }
 0xb5f   :  { %11087 = vmatpush1.bf16.msra.mxu1 %v13998_v31 }
 0xb60   :  { %11088 = vmatprep.subr.bf16.mxu1 %v14003_v3 }
 0xb63   :  { %v14022_v35 = vpop.eup %14021  ;;  %11089 = vmatpush1.bf16.msra.mxu1 %v14001_v32 }
 0xb64   :  { %v14024_v41 = vpop.eup %14023  ;;  %11090 = vmatprep.subr.bf16.mxu1 %v14006_v33 }
 0xb65   :  { %v14026_v34 = vpop.eup %14025 }
 0xb66   :  { %v14028_v36 = vpop.eup %14027  ;;  %v11147_v48 = vcombine.low %v14022_v35, %v14026_v34 }
 0xb67   :  { %v11148_v39 = vcombine.low %v14024_v41, %v14028_v36  ;;  %11091 = vmatpush1.bf16.msra.mxu1 %v14004_v49 }
 0xb68   :  { %v11155_v63 = vrot.slane %v11147_v48, %v14747_v38  ;;  %11092 = vmatprep.subr.bf16.mxu1 %v14009_v14 }
 0xb69   :  { %v11162_v23 = vrot.slane %v11148_v39, %v14747_v38 }
 0xb6b   :  { %v11163_v28 = vcombine.low %v11155_v63, %v11162_v23  ;;  %11093 = vmatpush1.bf16.msra.mxu1 %v14007_v29 }
 0xb6c   :  { %11094 = vmatprep.subr.bf16.mxu1 %v14012_v46 }
 0xb6d   :  { %11174 = vst [vmem:[%s15040_s17] sm:$0xff] %v11163_v28 }
 0xb6f   :  { %11095 = vmatpush1.bf16.msra.mxu1 %v14010_v57 }
 0xb72   :  { %11097 = vmatmul.mubr.bf16.vlgmr.msra.gmra.mrb[32].mxu1 %v14989_v42 }
 0xc45   :  { %v11098_v44 = vpop.f32.mrb[32].mxu1 }
 0xc46   :  { %v12682_v27 = vadd.f32 %v11098_v44, %v8682_v55  ;;  %v11100_v38 = vpop.f32.mrb[33].mxu1 }
 0xc47   :  { %v12683_v21 = vadd.f32 %v11100_v38, %v8686_v43  ;;  %v11102_v51 = vpop.f32.mrb[34].mxu1 }
 0xc48   :  { %v11109_v2 = vsub.f32 0.0, %v12682_v27  ;;  %v11103_v12 = vpop.f32.mrb[35].mxu1 }
 0xc49   :  { %v11110_v52 = vsub.f32 0.0, %v12683_v21 }
 0xc4a   :  { %v11119_v47 = vmul.f32 1.442695, %v11109_v2 }
 0xc4b   :  { %v11121_v53 = vmul.f32 1.442695, %v11110_v52 }
 0xc4c   :  { %14029 = vpow2.f32 %v11119_v47 }
 0xc4d   :  { %14031 = vpow2.f32 %v11121_v53 }
 0xc56   :  { %v14030_v15 = vpop.eup %14029 }
 0xc57   :  { %v14032_v42 = vpop.eup %14031  ;;  %v11127_v8 = vadd.f32 1.0, %v14030_v15 }
 0xc58   :  { %v11128_v54 = vadd.f32 1.0, %v14032_v42 }
 0xc59   :  { %14033 = vrcp.f32 %v11127_v8 }
 0xc5a   :  { %14035 = vrcp.f32 %v11128_v54 }
 0xc63   :  { %v14034_v18 = vpop.eup %14033 }
 0xc64   :  { %v14036_v45 = vpop.eup %14035 }
 0xc65   :  { %v11164_v0 = vcombine.low %v14034_v18, %v14036_v45 }
 0xc67   :  { %12631 = vst.sshfl [vmem:[%s15040_s17 + $0x8] sm:$0x33 pattern:$0x76325410] %v11164_v0 }
 0xc68   :  { %11180 = vsyncpa [#allocation3], 1 }
 0xc69   :  { %11181 = vsyncpa [#allocation5], 1 }
 0xc6a   :  { %11182 = vsyncpa [#allocation8], 1 }
 0xc6b   :  { %11183 = vsyncpa [#allocation11], 1 }
 0xc6c   :  { %11184 = vsyncpa [#allocation14], 1 }
 0xc6d   :  { %11185 = vsyncpa [#allocation17], 1 }
 0xc6e   :  { %11186 = vsyncpa [#allocation20], 1 }
 0xc6f   :  { %11187 = vsyncpa [#allocation23], 1 }
 0xc70   :  { %11188 = vsyncpa [#allocation26], 1 }

</bundles_post_ra>
